<compile_context>
chip_gen: v6e
topology: v6e:2x2x1
jax: 0.10.0
libtpu: 0.0.40
codegen_flags: <defaults>
</compile_context>

<pallas_src>
import functools

import jax
import jax.numpy as jnp
from jax.experimental import pallas as pl
from jax.experimental.pallas import tpu as pltpu


def _mapping_kernel(x_ref, w_enc_ref, b_enc_ref, w_dis_ref,
                    laten_ref, dis_part_ref):
    """One grid step: one latenSize column tile.

    laten_tile = LeakyReLU(0.2)(x @ W_enc_tile + b_enc_tile)   (MXU + VPU)
    dis_part   = sum_k laten_tile * w_dis_tile                  (VPU + XLU)
    """
    w = w_enc_ref[...].astype(jnp.float32)               # bf16 -> f32 in VMEM
    z = jnp.dot(x_ref[...], w, preferred_element_type=jnp.float32) + b_enc_ref[...]
    laten = jnp.where(z > 0, z, 0.2 * z)                  # LeakyReLU(0.2)
    laten_ref[...] = laten.astype(laten_ref.dtype)

    # Per-tile partial of the discriminator head: (B, tn) * (1, tn) -> (B, 1).
    part = jnp.sum(laten * w_dis_ref[...], axis=-1, keepdims=True)
    dis_part_ref[...] = part[None].astype(dis_part_ref.dtype)


@functools.partial(jax.jit, static_argnames=("tn",))
def mapping_forward(x, w_enc_bf16, b_enc, w_dis, b_dis, *, tn=512):
    """x: [B, resSize] f32; w_enc_bf16: [resSize, latenSize] bf16 (pre-transposed
    vs. PyTorch); b_enc: [1, latenSize] f32; w_dis: [1, latenSize] f32;
    b_dis: [1, 1] f32."""
    B, K = x.shape
    N = w_enc_bf16.shape[1]
    assert N % tn == 0
    num_tiles = N // tn

    flops = 2 * B * K * N + 2 * B * N
    bytes_accessed = (x.size * x.dtype.itemsize
                      + w_enc_bf16.size * w_enc_bf16.dtype.itemsize
                      + b_enc.size * b_enc.dtype.itemsize
                      + w_dis.size * w_dis.dtype.itemsize
                      + B * N * x.dtype.itemsize          # laten out
                      + num_tiles * B * 4)                 # dis partials out

    laten, dis_parts = pl.pallas_call(
        _mapping_kernel,
        out_shape=(
            jax.ShapeDtypeStruct((B, N), x.dtype),
            jax.ShapeDtypeStruct((num_tiles, B, 1), jnp.float32),
        ),
        grid_spec=pltpu.PrefetchScalarGridSpec(
            num_scalar_prefetch=0,
            grid=(num_tiles,),
            in_specs=[
                pl.BlockSpec((B, K), lambda j: (0, 0)),      # x (resident)
                pl.BlockSpec((K, tn), lambda j: (0, j)),     # W_enc column tile (bf16)
                pl.BlockSpec((1, tn), lambda j: (0, j)),     # b_enc tile
                pl.BlockSpec((1, tn), lambda j: (0, j)),     # w_dis tile
            ],
            out_specs=[
                pl.BlockSpec((B, tn), lambda j: (0, j)),         # laten tile
                pl.BlockSpec((1, B, 1), lambda j: (j, 0, 0)),    # dis partial
            ],
        ),
        compiler_params=pltpu.CompilerParams(
            dimension_semantics=("parallel",),               # 2 tiles -> 2 TCs on v7x
        ),
        cost_estimate=pl.CostEstimate(
            flops=flops, transcendentals=0, bytes_accessed=bytes_accessed),
    )(x, w_enc_bf16, b_enc, w_dis)

    # Finish the tiny discriminator head: sum the per-tile partials + bias.
    dis_out = jnp.sum(dis_parts, axis=0) + b_dis            # [B, 1]

    # Glue: views over the kernel output (no extra compute).
    seen = laten[:, :512]
    unseen = laten[:, 512:]
    preds = laten
    predu = laten
    return seen, unseen, dis_out, preds, predu, laten


def _reference(x, w_enc, b_enc, w_dis, b_dis):
    z = jnp.dot(x, w_enc, precision=jax.lax.Precision.HIGHEST) + b_enc
    laten = jnp.where(z > 0, z, 0.2 * z)
    dis_out = jnp.dot(laten, w_dis.T, precision=jax.lax.Precision.HIGHEST) + b_dis
    return laten, dis_out


if __name__ == "__main__":
    # Module hyperparameters (from opt): resSize=2048, latenSize=1024.
    B, RES, LATEN = 128, 2048, 1024

    key = jax.random.PRNGKey(0)
    kx, kw_enc, kw_dis = jax.random.split(key, 3)

    x = jax.random.normal(kx, (B, RES), dtype=jnp.float32)

    # weights_init: Linear weight ~ N(0, 0.02), bias = 0 (deterministic keys).
    w_enc = 0.02 * jax.random.normal(kw_enc, (RES, LATEN), dtype=jnp.float32)
    b_enc = jnp.zeros((1, LATEN), dtype=jnp.float32)
    w_dis = 0.02 * jax.random.normal(kw_dis, (1, LATEN), dtype=jnp.float32)
    b_dis = jnp.zeros((1, 1), dtype=jnp.float32)

    # Stream the big encoder weight in bf16 (perf); biases / the tiny
    # discriminator weight stay f32.
    w_enc_bf16 = w_enc.astype(jnp.bfloat16)

    seen, unseen, dis_out, preds, predu, laten = jax.block_until_ready(
        mapping_forward(x, w_enc_bf16, b_enc, w_dis, b_dis))

    # Correctness check against a pure-JAX reference using the same
    # bf16-quantized encoder weights (dequantized to f32), so the check
    # isolates the kernel math from the intentional weight quantization.
    laten_ref, dis_ref = _reference(
        x, w_enc_bf16.astype(jnp.float32), b_enc, w_dis, b_dis)

    assert seen.shape == (B, 512) and unseen.shape == (B, LATEN - 512)
    assert dis_out.shape == (B, 1) and laten.shape == (B, LATEN)
    assert preds.shape == (B, LATEN) and predu.shape == (B, LATEN)
    assert jnp.allclose(laten, laten_ref, atol=1e-4, rtol=1e-4)
    assert jnp.allclose(dis_out, dis_ref, atol=1e-4, rtol=1e-4)
    assert jnp.array_equal(seen, laten[:, :512])
    assert jnp.array_equal(unseen, laten[:, 512:])
    assert jnp.array_equal(preds, laten) and jnp.array_equal(predu, laten)

    # TODO(synk): classifier / classifier2 / sigmoid / logsoftmax submodules are
    # defined in the PyTorch module but never used in forward(), so they are not
    # implemented here.
    print("KERNEL_OK")
</pallas_src>

<mosaic_0001>
module attributes {stable_mosaic.version = 11 : i64} {
  func.func @_mapping_kernel(%arg0: i32, %arg1: memref<128x2048xf32, #tpu.memory_space<vmem>>, %arg2: memref<2048x512xbf16, #tpu.memory_space<vmem>>, %arg3: memref<1x512xf32, #tpu.memory_space<vmem>>, %arg4: memref<1x512xf32, #tpu.memory_space<vmem>>, %arg5: memref<128x512xf32, #tpu.memory_space<vmem>>, %arg6: memref<1x128x1xf32, #tpu.memory_space<vmem>>) attributes {dimension_semantics = [#tpu.dimension_semantics<parallel>], iteration_bounds = array<i64: 2>, scalar_prefetch = 0 : i64, scratch_operands = 0 : i64, tpu.core_type = #tpu.core_type<tc>, window_params = [{pipeline_mode = #tpu.pipeline_mode<synchronous>, transform_indices = @transform_0, window_bounds = array<i64: 128, 2048>}, {transform_indices = @transform_1, window_bounds = array<i64: 2048, 512>}, {transform_indices = @transform_2, window_bounds = array<i64: 1, 512>}, {transform_indices = @transform_3, window_bounds = array<i64: 1, 512>}, {transform_indices = @transform_4, window_bounds = array<i64: 128, 512>}, {transform_indices = @transform_5, window_bounds = array<i64: 1, 128, 1>}]} {
    %c0 = arith.constant 0 : index
    %c0_0 = arith.constant 0 : index
    %0 = vector.load %arg2[%c0, %c0_0] : memref<2048x512xbf16, #tpu.memory_space<vmem>>, vector<2048x512xbf16>
    %1 = arith.extf %0 : vector<2048x512xbf16> to vector<2048x512xf32>
    %c0_1 = arith.constant 0 : index
    %c0_2 = arith.constant 0 : index
    %2 = vector.load %arg1[%c0_1, %c0_2] : memref<128x2048xf32, #tpu.memory_space<vmem>>, vector<128x2048xf32>
    %cst = arith.constant dense<0.000000e+00> : vector<128x512xf32>
    %3 = tpu.matmul %2, %1, %cst {dimension_numbers = #tpu.dot_dimension_numbers<[1], [0], [0], [1], [0, 0, 1, 1], [], []>} : vector<128x2048xf32>, vector<2048x512xf32>, vector<128x512xf32> -> vector<128x512xf32>
    %c0_3 = arith.constant 0 : index
    %c0_4 = arith.constant 0 : index
    %4 = vector.load %arg3[%c0_3, %c0_4] : memref<1x512xf32, #tpu.memory_space<vmem>>, vector<1x512xf32>
    %5 = vector.broadcast %4 : vector<1x512xf32> to vector<128x512xf32>
    %6 = arith.addf %3, %5 : vector<128x512xf32>
    %cst_5 = arith.constant 0.000000e+00 : f32
    %7 = vector.broadcast %cst_5 : f32 to vector<128x512xf32>
    %8 = arith.cmpf ogt, %6, %7 : vector<128x512xf32>
    %cst_6 = arith.constant 2.000000e-01 : f32
    %9 = vector.broadcast %cst_6 : f32 to vector<128x512xf32>
    %10 = arith.mulf %9, %6 : vector<128x512xf32>
    %11 = arith.select %8, %6, %10 : vector<128x512xi1>, vector<128x512xf32>
    %c0_7 = arith.constant 0 : index
    %c0_8 = arith.constant 0 : index
    %12 = vector.load %arg5[%c0_7, %c0_8] : memref<128x512xf32, #tpu.memory_space<vmem>>, vector<128x512xf32>
    tpu.vector_store %arg5[%c0_7, %c0_8], %11 {strides = array<i32>} : memref<128x512xf32, #tpu.memory_space<vmem>>, vector<128x512xf32>,
    %c0_9 = arith.constant 0 : index
    %c0_10 = arith.constant 0 : index
    %13 = vector.load %arg4[%c0_9, %c0_10] : memref<1x512xf32, #tpu.memory_space<vmem>>, vector<1x512xf32>
    %14 = vector.broadcast %13 : vector<1x512xf32> to vector<128x512xf32>
    %15 = arith.mulf %11, %14 : vector<128x512xf32>
    %cst_11 = arith.constant dense<0.000000e+00> : vector<128xf32>
    %16 = vector.multi_reduction <add>, %15, %cst_11 [1] : vector<128x512xf32> to vector<128xf32>
    %17 = vector.shape_cast %16 : vector<128xf32> to vector<128x1xf32>
    %18 = vector.shape_cast %17 : vector<128x1xf32> to vector<1x128x1xf32>
    %c0_12 = arith.constant 0 : index
    %c0_13 = arith.constant 0 : index
    %c0_14 = arith.constant 0 : index
    %19 = vector.load %arg6[%c0_12, %c0_13, %c0_14] : memref<1x128x1xf32, #tpu.memory_space<vmem>>, vector<1x128x1xf32>
    tpu.vector_store %arg6[%c0_12, %c0_13, %c0_14], %18 {strides = array<i32>} : memref<1x128x1xf32, #tpu.memory_space<vmem>>, vector<1x128x1xf32>,
    return
  }
  func.func @transform_0(%arg0: i32) -> (i32, i32) {
    %c0_i32 = arith.constant 0 : i32
    %c0_i32_0 = arith.constant 0 : i32
    %c0_i32_1 = arith.constant 0 : i32
    return %c0_i32, %c0_i32_0 : i32, i32
  }
  func.func @transform_1(%arg0: i32) -> (i32, i32) {
    %c0_i32 = arith.constant 0 : i32
    %c0_i32_0 = arith.constant 0 : i32
    return %c0_i32, %arg0 : i32, i32
  }
  func.func @transform_2(%arg0: i32) -> (i32, i32) {
    %c0_i32 = arith.constant 0 : i32
    %c0_i32_0 = arith.constant 0 : i32
    return %c0_i32, %arg0 : i32, i32
  }
  func.func @transform_3(%arg0: i32) -> (i32, i32) {
    %c0_i32 = arith.constant 0 : i32
    %c0_i32_0 = arith.constant 0 : i32
    return %c0_i32, %arg0 : i32, i32
  }
  func.func @transform_4(%arg0: i32) -> (i32, i32) {
    %c0_i32 = arith.constant 0 : i32
    %c0_i32_0 = arith.constant 0 : i32
    return %c0_i32, %arg0 : i32, i32
  }
  func.func @transform_5(%arg0: i32) -> (i32, i32, i32) {
    %c0_i32 = arith.constant 0 : i32
    %c0_i32_0 = arith.constant 0 : i32
    %c0_i32_1 = arith.constant 0 : i32
    return %arg0, %c0_i32, %c0_i32_0 : i32, i32, i32
  }
}

</mosaic_0001>

<bundles_post_ra>
// kernel: mapping_forward.1
= control target key start
LH: loop header
LB: loop body
LE: loop exit
PB: predicated region body
PF: predicated region fallthrough
CT: control target
= control target key end

     0   :  { %s8486_s0 = inlined_call_operand.hbm [shape: f32[128,2048], index: 0, kind: input, shape index: {}]   ;;  %s8487_s1 = inlined_call_operand.hbm [shape: bf16[2048,1024], index: 1, kind: input, shape index: {}]   ;;  %s8488_s2 = inlined_call_operand.hbm [shape: f32[1,1024], index: 2, kind: input, shape index: {}]   ;;  %s8489_s3 = inlined_call_operand.hbm [shape: f32[1,1024], index: 3, kind: input, shape index: {}]   ;;  %s8490_s4 = inlined_call_operand.vmem [shape: f32[128,1024], index: 4, kind: output, shape index: {0}]   ;;  %s8491_s5 = inlined_call_operand.vmem [shape: f32[2,128,1], index: 5, kind: output, shape index: {1}]  }
   0x1   :  { %8501 = sst [smem:[#allocation79_spill]] %s8487_s1 }
   0x2   :  { %11 = vsyncpa [#allocation3], 0 }
   0x3   :  { %12 = vsyncpa [#allocation5], 0 }
   0x4   :  { %14 = vsyncpa [#allocation5 + $0x1], 0 }
   0x5   :  { %15 = vsyncpa [#allocation8], 0 }
   0x6   :  { %17 = vsyncpa [#allocation8 + $0x1], 0  ;;  %s6024_s18 = smov 0   ;;  %s6026_s19 = smov 0  }
   0x7   :  { %s6028_s20 = smov 0   ;;  %s6030_s21 = smov 0  }
   0x8 LB: > { %s6045_s22 = sadd.s32 1, %s5983_s21   ;;  %s51_s23 = sadd.s32 1, %s5979_s20  ;;  %s5983_s21 = sphi %s6030_s21, %s8773_s21   ;;  %s5979_s20 = sphi %s6028_s20, %s8772_s20   ;;  %s5975_s19 = sphi %s6026_s19, %s8771_s19   ;;  %s5971_s18 = sphi %s6024_s18, %s8770_s18  }
   0x9   : > { %s48_s24 = ssub.s32 %s5983_s21, %s6045_s22  ;;  %p8492_p0 = scmp.ne.s32.totalorder %s5979_s20, %s5975_s19 }
   0xa   : > { %p49_p1 = scmp.eq.s32.totalorder %s48_s24, 0  ;;  %p59_p2 = scmp.eq.s32.totalorder %s5983_s21, 0 }
   0xb   : > { %p5532_p3 = scmp.lt.s32.totalorder %s5983_s21, 2  ;;  %s205_s26 = sand.u32 1, %s5983_s21  }
   0xc   : > { %s6055_s25 = scalar_select %p49_p1, %s5979_s20, %s51_s23  }
   0xd   : > { %p60_p4 = por %p59_p2, %p8492_p0  ;;  %s6062_s27 = sand.u32 1, %s5979_s20  }
   0xe   : > { %8502 = sst [smem:[#allocation13_spill]] %s6055_s25  ;;  %s5480_s28 = sshll.u32 %s6062_s27, 12 }
   0xf   : > { %s5502_s29 = sshll.u32 %s5983_s21, 8  ;;  %s8503_s1 = sld [smem:[#allocation79_spill]] }
  0x10   : > { %s209_s8 = scalar_lea.vmem [#allocation4], %s5480_s28  ;;  %p6071_p5 = pnand %p5532_p3, %p60_p4 }
  0x11   : > { %s216_s9 = sshll.u32 %s209_s8, 4  ;;  %s6077_s11 = scalar_lea.sflag [#allocation5], %s205_s26  ;;  %s6075_s9 = int_to_ptr.vmem [resolvable:$true] %s216_s9 }
  0x12   : > { %p6083_p7 = pneg %p6071_p5 }
  0x15   : > { %s6069_s7 = scalar_lea.hbm %s8503_s1, %s5502_s29  ;;  %s5836_s16 = scalar_lea.hbm %s8503_s1, 131072 }
  0x16   : > { %s5831_s12 = scalar_lea.hbm %s6069_s7, 65536  ;;  %p5837_p10 = scmp.lt.s32.totalorder %s6069_s7, %s8503_s1 }
  0x17   : > { %p5832_p6 = scmp.ne.s32.totalorder %s6069_s7, %s5831_s12  ;;  %p5838_p11 = scmp.lt.s32.totalorder %s5836_s16, %s5831_s12 }
  0x19   : > { %p5834_p8 = pnand %p6083_p7, %p5832_p6  ;;  %p5839_p12 = por %p5838_p11, %p5837_p10 }
  0x1b   : > { %p5835_p9 = pneg %p5834_p8 }
  0x1d   : > { %p5840_p13 = pnand %p5839_p12, %p5835_p9 }
  0x1f   : > { %5843 = shalt.err (!%p5840_p13)
}
  0x20   : > { %s5844_s24 = scalar_lea.vmem %s6075_s9, 65536  ;;  %s5985_s26 = smov [#allocation4]  }
  0x21   : > { %p5845_p1 = scmp.ne.s32.totalorder %s6075_s9, %s5844_s24  ;;  %s5849_s28 = sshll.u32 %s5985_s26, 4  ;;  %s5850_s28 = int_to_ptr.vmem [resolvable:$false] %s5849_s28 }
  0x22   : > { %s5851_s29 = scalar_lea.vmem %s5850_s28, 131072  ;;  %p5852_p4 = scmp.lt.s32.totalorder %s6075_s9, %s5850_s28 }
  0x23   : > { %p5847_p2 = pnand %p5845_p1, %p6083_p7  ;;  %p5853_p6 = scmp.lt.s32.totalorder %s5851_s29, %s5844_s24 }
  0x25   : > { %p5848_p3 = pneg %p5847_p2  ;;  %p5854_p8 = por %p5853_p6, %p5852_p4 }
  0x27   : > { %p5855_p0 = pnand %p5854_p8, %p5848_p3 }
  0x29   : > { %5858 = shalt.err (!%p5855_p0)
}
  0x2a   : > { %s5986_s30 = smov 512   ;;  %s5987_s6 = smov 256  }
  0x2b   : > { %s5988_s8 = smov 16   ;;  %s6107_s12 = sadd.s32 4294967295, %s5983_s21  }
  0x2c   : > { %5524 = dma.hbm_to_vmem [thread:$0]  (!%p6071_p5), %s6069_s7, 65536, %s6075_s9, %s6077_s11, %s5986_s30, %s5987_s6, %s5988_s8  }
  0x2d   : > { %p64_p0 = scmp.ne.s32.totalorder %s5975_s19, %s5971_s18  ;;  %p8493_p9 = scmp.eq.s32.totalorder %s6107_s12, 0 }
  0x2e   : > { %p140_p10 = scmp.eq.s32.totalorder %s6107_s12, 1  ;;  %p5477_p11 = scmp.ge.s32.totalorder %s5983_s21, 1 }
  0x2f   : > { %p6116_p12 = por %p8493_p9, %p64_p0  ;;  %p179_p13 = scmp.lt.s32.totalorder %s5983_s21, 3 }
  0x30   : > { %p8507_p1 = scmp.ne.s32.totalorder %s5979_s20, %s5975_s19  ;;  %s5989_s18 = smov [#allocation2]  }
  0x31   : > { %s8506_s14 = scalar_select %p6116_p12, 1, 0 }
  0x32   : > { %p6124_p2 = por %p140_p10, %p8507_p1  ;;  %p6128_p3 = pnand %p5477_p11, %p179_p13 }
  0x33   : > { %s191_s15 = sshll.u32 %s5989_s18, 4  ;;  %s8494_s16 = sshll.u32 %s6062_s27, 2  ;;  %s192_s15 = int_to_ptr.vmem [resolvable:$true] %s191_s15 }
  0x34   : > { %s8508_s7 = scalar_select %p6124_p2, 1, 0 }
  0x35   : > { %s8509_s9 = scalar_select %p6128_p3, 1, 0 }
  0x36   : > { %p5517_p4 = pneg %p6128_p3  ;;  %s8495_s23 = sshll.u32 %s5983_s21, 6 }
  0x37   : > { %s230_s24 = scalar_lea.vmem [#allocation6], %s8494_s16  ;;  %s6149_s30 = scalar_lea.hbm %s8488_s2, %s8495_s23 }
  0x38   : > { %p6137_p6 = pnand %p5517_p4, %p8493_p9  ;;  %s238_s26 = sshll.u32 %s230_s24, 4  ;;  %s239_s26 = int_to_ptr.vmem [resolvable:$true] %s238_s26 }
  0x39   : > { %s5870_s6 = scalar_lea.vmem %s192_s15, 32768  ;;  %p5878_p13 = scmp.lt.s32.totalorder %s192_s15, %s192_s15 }
  0x3a   : > { %p5861_p8 = pneg %p6137_p6  ;;  %p5871_p0 = scmp.ne.s32.totalorder %s192_s15, %s5870_s6 }
  0x3b   : > { %p5879_p1 = scmp.lt.s32.totalorder %s5870_s6, %s5870_s6 }
  0x3c   : > { %p5873_p10 = pnand %p5871_p0, %p5861_p8 }
  0x3d   : > { %p5880_p4 = por %p5879_p1, %p5878_p13 }
  0x3e   : > { %p5874_p11 = pneg %p5873_p10 }
  0x40   : > { %p5881_p9 = pnand %p5880_p4, %p5874_p11 }
  0x42   : > { %5884 = shalt.err (!%p5881_p9)
}
  0x43   : > { %s5990_s8 = smov 2048   ;;  %s5991_s18 = smov 128  }
  0x44   : > { %5520 = dma.hbm_to_vmem [thread:$0]  (!%p6137_p6), %s8486_s0, 32768, %s192_s15, [#allocation3], %s5990_s8, %s5990_s8, %s5991_s18  }
  0x45   : > { %s5885_s29 = scalar_lea.hbm %s6149_s30, 64  ;;  %s5890_s23 = scalar_lea.hbm %s8488_s2, 128 }
  0x46   : > { %p5886_p8 = scmp.ne.s32.totalorder %s6149_s30, %s5885_s29  ;;  %p5891_p9 = scmp.lt.s32.totalorder %s6149_s30, %s8488_s2 }
  0x47   : > { %p5892_p11 = scmp.lt.s32.totalorder %s5890_s23, %s5885_s29 }
  0x48   : > { %p5888_p0 = pnand %p5886_p8, %p6083_p7 }
  0x49   : > { %p5893_p13 = por %p5892_p11, %p5891_p9 }
  0x4a   : > { %p5889_p10 = pneg %p5888_p0 }
  0x4c   : > { %p5894_p1 = pnand %p5893_p13, %p5889_p10 }
  0x4e   : > { %5897 = shalt.err (!%p5894_p1)
}
  0x4f   : > { %s5898_s17 = scalar_lea.vmem %s239_s26, 64  ;;  %s5992_s15 = smov [#allocation6]  }
  0x50   : > { %p5899_p6 = scmp.ne.s32.totalorder %s239_s26, %s5898_s17  ;;  %s5903_s8 = sshll.u32 %s5992_s15, 4  ;;  %s5904_s8 = int_to_ptr.vmem [resolvable:$false] %s5903_s8 }
  0x51   : > { %s5905_s18 = scalar_lea.vmem %s5904_s8, 128  ;;  %p5906_p8 = scmp.lt.s32.totalorder %s239_s26, %s5904_s8 }
  0x52   : > { %p5901_p4 = pnand %p5899_p6, %p6083_p7  ;;  %p5907_p0 = scmp.lt.s32.totalorder %s5905_s18, %s5898_s17 }
  0x54   : > { %p5902_p2 = pneg %p5901_p4  ;;  %p5908_p12 = por %p5907_p0, %p5906_p8 }
  0x56   : > { %p5909_p3 = pnand %p5908_p12, %p5902_p2 }
  0x58   : > { %5912 = shalt.err (!%p5909_p3)
}
  0x59   : > { %5527 = dma.hbm_to_vmem [thread:$0]  (!%p6071_p5), %s6149_s30, 64, %s239_s26, %s6077_s11  }
  0x5a   : > { %s8511_s1 = sshll.u32 %s5983_s21, 6  ;;  %s8512_s24 = sshll.u32 %s6062_s27, 2 }
  0x5b   : > { %s6180_s23 = scalar_lea.hbm %s8489_s3, %s8511_s1  ;;  %s249_s28 = scalar_lea.vmem [#allocation7], %s8512_s24 }
  0x5c   : > { %s257_s29 = sshll.u32 %s249_s28, 4  ;;  %s246_s6 = scalar_lea.sflag [#allocation8], %s6062_s27  ;;  %s258_s29 = int_to_ptr.vmem [resolvable:$true] %s257_s29 }
  0x5d   : > { %s5913_s17 = scalar_lea.hbm %s6180_s23, 64  ;;  %s5918_s26 = scalar_lea.hbm %s8489_s3, 128 }
  0x5e   : > { %p5914_p12 = scmp.ne.s32.totalorder %s6180_s23, %s5913_s17  ;;  %p5919_p10 = scmp.lt.s32.totalorder %s6180_s23, %s8489_s3 }
  0x5f   : > { %p5920_p9 = scmp.lt.s32.totalorder %s5918_s26, %s5913_s17 }
  0x60   : > { %p5916_p2 = pnand %p5914_p12, %p6083_p7 }
  0x61   : > { %p5921_p11 = por %p5920_p9, %p5919_p10 }
  0x62   : > { %p5917_p3 = pneg %p5916_p2 }
  0x64   : > { %p5922_p13 = pnand %p5921_p11, %p5917_p3 }
  0x66   : > { %5925 = shalt.err (!%p5922_p13)
}
  0x67   : > { %s5926_s8 = scalar_lea.vmem %s258_s29, 64  ;;  %s5993_s27 = smov [#allocation7]  }
  0x68   : > { %p5927_p1 = scmp.ne.s32.totalorder %s258_s29, %s5926_s8  ;;  %s5931_s18 = sshll.u32 %s5993_s27, 4  ;;  %s5932_s18 = int_to_ptr.vmem [resolvable:$false] %s5931_s18 }
  0x69   : > { %s5933_s1 = scalar_lea.vmem %s5932_s18, 128  ;;  %p5934_p8 = scmp.lt.s32.totalorder %s258_s29, %s5932_s18 }
  0x6a   : > { %p5929_p6 = pnand %p5927_p1, %p6083_p7  ;;  %p5935_p0 = scmp.lt.s32.totalorder %s5933_s1, %s5926_s8 }
  0x6c   : > { %p5930_p4 = pneg %p5929_p6  ;;  %p5936_p12 = por %p5935_p0, %p5934_p8 }
  0x6e   : > { %p5937_p2 = pnand %p5936_p12, %p5930_p4 }
  0x70   : > { %5940 = shalt.err (!%p5937_p2)
}
  0x71   : > { %5530 = dma.hbm_to_vmem [thread:$0]  (!%p6071_p5), %s6180_s23, 64, %s258_s29, %s246_s6  }
  0x72   : > { %p8513_p3 = scmp.ne.s32.totalorder %s8509_s9, 0 }
  0x74   : > { %266 = sbr.rel (%p8513_p3) target bundleno = 1279 (0x4ff), region = 36 }
  0x79   : > { %p8514_p10 = scmp.eq.s32.totalorder %s6107_s12, 0 }
  0x7b   : > { %5958 = dma.done.wait (%p8514_p10), [#allocation3], 32768   ;;  %p8515_p7 = pmov %p8514_p10 }
  0x7c   : > { %s272_s13 = sand.u32 1, %s6107_s12   ;;  %s6209_s25 = sand.u32 1, %s5975_s19  }
  0x7d   : > { %5960 = vsyncadd (%p8515_p7), [#allocation3], 4294934528  ;;  %s5491_s16 = sshll.u32 %s6209_s25, 12  ;;  %s273_s10 = scalar_lea.sflag [#allocation5], %s272_s13 }
  0x7e   : > { %s6212_s24 = scalar_lea.vmem [#allocation4], %s5491_s16  ;;  %p8516_p5 = scmp.ne.s32.totalorder %s8506_s14, 0 }
  0x80   : > { %5962 = dma.done.wait (%p8516_p5), %s273_s10, 65600  }
  0x81   : > { %5964 = vsyncadd (%p8516_p5), %s273_s10, 4294901696  ;;  %s5492_s9 = sshll.u32 %s6209_s25, 2  ;;  %s291_s28 = scalar_lea.sflag [#allocation8], %s6209_s25 }
  0x82   : > { %s6219_s23 = scalar_lea.vmem [#allocation6], %s5492_s9  ;;  %s6222_s29 = scalar_lea.vmem [#allocation7], %s5492_s9 }
  0x83   : > { %5966 = dma.done.wait (%p8516_p5), %s291_s28, 64  }
  0x84   : > { %5968 = vsyncadd (%p8516_p5), %s291_s28, 4294967232  ;;  %v374_v0 = vld [vmem:[%s6212_s24 + $0xf0] sm:$0xff]  ;;  %v372_v2 = vld [vmem:[%s6212_s24 + $0xe0] sm:$0xff]  ;;  %s5494_s14 = sshll.u32 %s6209_s25, 9  ;;  %p339_p9 = scmp.lt.s32.totalorder %s6107_s12, 1 }
  0x85   : > { %v438_v1 = vld [vmem:[%s6212_s24 + $0x2f0] sm:$0xff]  ;;  %v917_v3 = vunpack.c.h.bf16 %v374_v0  ;;  %v916_v4 = vunpack.c.l.bf16 %v374_v0  ;;  %v913_v6 = vunpack.c.h.bf16 %v372_v2  ;;  %v436_v7 = vld [vmem:[%s6212_s24 + $0x2e0] sm:$0xff]  ;;  %v912_v11 = vunpack.c.l.bf16 %v372_v2  ;;  %s7177_s6 = scalar_lea.vmem [#allocation9], %s5494_s14  ;;  %p8768_p11 = scmp.ne.s32.totalorder %s8508_s7, 0 }
  0x86   : > { %v1045_v5 = vunpack.c.h.bf16 %v438_v1  ;;  %v370_v8 = vld [vmem:[%s6212_s24 + $0xd0] sm:$0xff]  ;;  %v1044_v10 = vunpack.c.l.bf16 %v438_v1  ;;  %v1041_v12 = vunpack.c.h.bf16 %v436_v7  ;;  %v368_v13 = vld [vmem:[%s6212_s24 + $0xc0] sm:$0xff]  ;;  %v1040_v16 = vunpack.c.l.bf16 %v436_v7  ;;  %s340_s17 = scalar_select %p339_p9, %s6107_s12, 1 }
  0x87   : > { %v434_v9 = vld [vmem:[%s6212_s24 + $0x2d0] sm:$0xff]  ;;  %v432_v14 = vld [vmem:[%s6212_s24 + $0x2c0] sm:$0xff]  ;;  %2158 = vmatprep.subr.mxu0 %v917_v3  ;;  %v909_v15 = vunpack.c.h.bf16 %v370_v8  ;;  %v908_v18 = vunpack.c.l.bf16 %v370_v8  ;;  %v905_v22 = vunpack.c.h.bf16 %v368_v13  ;;  %v904_v24 = vunpack.c.l.bf16 %v368_v13  ;;  %s5506_s15 = sshll.u32 (%p8768_p11), %s6107_s12, 5 }
  0x88   : > { %2319 = vmatprep.subr.mxu1 %v1045_v5  ;;  %v1037_v17 = vunpack.c.h.bf16 %v434_v9  ;;  %2159 = vmatpush1.msra.mxu0 %v916_v4  ;;  %v1036_v19 = vunpack.c.l.bf16 %v434_v9  ;;  %v366_v20 = vld [vmem:[%s6212_s24 + $0xb0] sm:$0xff]  ;;  %v1033_v23 = vunpack.c.h.bf16 %v432_v14  ;;  %v1032_v25 = vunpack.c.l.bf16 %v432_v14  ;;  %v364_v26 = vld [vmem:[%s6212_s24 + $0xa0] sm:$0xff]  ;;  %s5505_s11 = sshll.u32 %s340_s17, 7  ;;  %s8346_s18 = scalar_lea.vmem (%p8768_p11), %s8490_s4, %s5506_s15 }
  0x89   : > { %2320 = vmatpush1.msra.mxu1 %v1044_v10  ;;  %v430_v21 = vld [vmem:[%s6212_s24 + $0x2b0] sm:$0xff]  ;;  %2160 = vmatprep.subr.mxu0 %v913_v6  ;;  %v428_v27 = vld [vmem:[%s6212_s24 + $0x2a0] sm:$0xff]  ;;  %v901_v28 = vunpack.c.h.bf16 %v366_v20  ;;  %v900_v30 = vunpack.c.l.bf16 %v366_v20  ;;  %v897_v34 = vunpack.c.h.bf16 %v364_v26  ;;  %v896_v36 = vunpack.c.l.bf16 %v364_v26  ;;  %s8303_s30 = scalar_lea.vmem %s8491_s5, %s5505_s11 }
  0x8a   : > { %2321 = vmatprep.subr.mxu1 %v1041_v12  ;;  %2161 = vmatpush1.msra.mxu0 %v912_v11  ;;  %v1029_v29 = vunpack.c.h.bf16 %v430_v21  ;;  %v1028_v31 = vunpack.c.l.bf16 %v430_v21  ;;  %v362_v32 = vld [vmem:[%s6212_s24 + $0x90] sm:$0xff]  ;;  %v1025_v35 = vunpack.c.h.bf16 %v428_v27  ;;  %v1024_v37 = vunpack.c.l.bf16 %v428_v27  ;;  %v360_v38 = vld [vmem:[%s6212_s24 + $0x80] sm:$0xff] }
  0x8b   : > { %2322 = vmatpush1.msra.mxu1 %v1040_v16  ;;  %2162 = vmatprep.subr.mxu0 %v909_v15  ;;  %v426_v33 = vld [vmem:[%s6212_s24 + $0x290] sm:$0xff]  ;;  %v424_v39 = vld [vmem:[%s6212_s24 + $0x280] sm:$0xff]  ;;  %v893_v40 = vunpack.c.h.bf16 %v362_v32  ;;  %v892_v42 = vunpack.c.l.bf16 %v362_v32  ;;  %v889_v46 = vunpack.c.h.bf16 %v360_v38  ;;  %v888_v48 = vunpack.c.l.bf16 %v360_v38 }
  0x8c   : > { %2323 = vmatprep.subr.mxu1 %v1037_v17  ;;  %2163 = vmatpush1.msra.mxu0 %v908_v18  ;;  %v1021_v41 = vunpack.c.h.bf16 %v426_v33  ;;  %v1020_v43 = vunpack.c.l.bf16 %v426_v33  ;;  %v358_v44 = vld [vmem:[%s6212_s24 + $0x70] sm:$0xff]  ;;  %v1017_v47 = vunpack.c.h.bf16 %v424_v39  ;;  %v1016_v49 = vunpack.c.l.bf16 %v424_v39  ;;  %v356_v50 = vld [vmem:[%s6212_s24 + $0x60] sm:$0xff] }
  0x8d   : > { %2324 = vmatpush1.msra.mxu1 %v1036_v19  ;;  %2164 = vmatprep.subr.mxu0 %v905_v22  ;;  %v422_v45 = vld [vmem:[%s6212_s24 + $0x270] sm:$0xff]  ;;  %v420_v51 = vld [vmem:[%s6212_s24 + $0x260] sm:$0xff]  ;;  %v885_v52 = vunpack.c.h.bf16 %v358_v44  ;;  %v884_v54 = vunpack.c.l.bf16 %v358_v44  ;;  %v881_v58 = vunpack.c.h.bf16 %v356_v50  ;;  %v880_v60 = vunpack.c.l.bf16 %v356_v50 }
  0x8e   : > { %2325 = vmatprep.subr.mxu1 %v1033_v23  ;;  %2165 = vmatpush1.msra.mxu0 %v904_v24  ;;  %v1013_v53 = vunpack.c.h.bf16 %v422_v45  ;;  %v1012_v55 = vunpack.c.l.bf16 %v422_v45  ;;  %v354_v56 = vld [vmem:[%s6212_s24 + $0x50] sm:$0xff]  ;;  %v1009_v59 = vunpack.c.h.bf16 %v420_v51  ;;  %v1008_v61 = vunpack.c.l.bf16 %v420_v51  ;;  %v352_v62 = vld [vmem:[%s6212_s24 + $0x40] sm:$0xff] }
  0x8f   : > { %2326 = vmatpush1.msra.mxu1 %v1032_v25  ;;  %2166 = vmatprep.subr.mxu0 %v901_v28  ;;  %v418_v57 = vld [vmem:[%s6212_s24 + $0x250] sm:$0xff]  ;;  %v416_v63 = vld [vmem:[%s6212_s24 + $0x240] sm:$0xff]  ;;  %v877_v0 = vunpack.c.h.bf16 %v354_v56  ;;  %v876_v2 = vunpack.c.l.bf16 %v354_v56  ;;  %v873_v6 = vunpack.c.h.bf16 %v352_v62  ;;  %v872_v8 = vunpack.c.l.bf16 %v352_v62 }
  0x90   : > { %2327 = vmatprep.subr.mxu1 %v1029_v29  ;;  %2167 = vmatpush1.msra.mxu0 %v900_v30  ;;  %v1005_v1 = vunpack.c.h.bf16 %v418_v57  ;;  %v1004_v3 = vunpack.c.l.bf16 %v418_v57  ;;  %v350_v4 = vld [vmem:[%s6212_s24 + $0x30] sm:$0xff]  ;;  %v1001_v7 = vunpack.c.h.bf16 %v416_v63  ;;  %v1000_v9 = vunpack.c.l.bf16 %v416_v63  ;;  %v348_v10 = vld [vmem:[%s6212_s24 + $0x20] sm:$0xff] }
  0x91   : > { %2328 = vmatpush1.msra.mxu1 %v1028_v31  ;;  %2168 = vmatprep.subr.mxu0 %v897_v34  ;;  %v414_v5 = vld [vmem:[%s6212_s24 + $0x230] sm:$0xff]  ;;  %v412_v11 = vld [vmem:[%s6212_s24 + $0x220] sm:$0xff]  ;;  %v869_v12 = vunpack.c.h.bf16 %v350_v4  ;;  %v868_v14 = vunpack.c.l.bf16 %v350_v4  ;;  %v865_v18 = vunpack.c.h.bf16 %v348_v10  ;;  %v864_v20 = vunpack.c.l.bf16 %v348_v10 }
  0x92   : > { %2329 = vmatprep.subr.mxu1 %v1025_v35  ;;  %2169 = vmatpush1.msra.mxu0 %v896_v36  ;;  %v997_v13 = vunpack.c.h.bf16 %v414_v5  ;;  %v996_v15 = vunpack.c.l.bf16 %v414_v5  ;;  %v346_v16 = vld [vmem:[%s6212_s24 + $0x10] sm:$0xff]  ;;  %v993_v19 = vunpack.c.h.bf16 %v412_v11  ;;  %v992_v21 = vunpack.c.l.bf16 %v412_v11  ;;  %v344_v22 = vld [vmem:[%s6212_s24] sm:$0xff] }
  0x93   : > { %2330 = vmatpush1.msra.mxu1 %v1024_v37  ;;  %2170 = vmatprep.subr.mxu0 %v893_v40  ;;  %v410_v17 = vld [vmem:[%s6212_s24 + $0x210] sm:$0xff]  ;;  %v408_v23 = vld [vmem:[%s6212_s24 + $0x200] sm:$0xff]  ;;  %v861_v24 = vunpack.c.h.bf16 %v346_v16  ;;  %v860_v26 = vunpack.c.l.bf16 %v346_v16  ;;  %v857_v30 = vunpack.c.h.bf16 %v344_v22  ;;  %v856_v32 = vunpack.c.l.bf16 %v344_v22 }
  0x94   : > { %2331 = vmatprep.subr.mxu1 %v1021_v41  ;;  %2171 = vmatpush1.msra.mxu0 %v892_v42  ;;  %v989_v25 = vunpack.c.h.bf16 %v410_v17  ;;  %v988_v27 = vunpack.c.l.bf16 %v410_v17  ;;  %v406_v28 = vld [vmem:[%s6212_s24 + $0x1f0] sm:$0xff]  ;;  %v985_v31 = vunpack.c.h.bf16 %v408_v23  ;;  %v984_v33 = vunpack.c.l.bf16 %v408_v23  ;;  %v404_v34 = vld [vmem:[%s6212_s24 + $0x1e0] sm:$0xff] }
  0x95   : > { %2332 = vmatpush1.msra.mxu1 %v1020_v43  ;;  %2172 = vmatprep.subr.mxu0 %v889_v46  ;;  %v470_v29 = vld [vmem:[%s6212_s24 + $0x3f0] sm:$0xff]  ;;  %v468_v35 = vld [vmem:[%s6212_s24 + $0x3e0] sm:$0xff]  ;;  %v981_v36 = vunpack.c.h.bf16 %v406_v28  ;;  %v980_v38 = vunpack.c.l.bf16 %v406_v28  ;;  %v977_v42 = vunpack.c.h.bf16 %v404_v34  ;;  %v976_v44 = vunpack.c.l.bf16 %v404_v34 }
  0x96   : > { %2333 = vmatprep.subr.mxu1 %v1017_v47  ;;  %2173 = vmatpush1.msra.mxu0 %v888_v48  ;;  %v1109_v37 = vunpack.c.h.bf16 %v470_v29  ;;  %v1108_v39 = vunpack.c.l.bf16 %v470_v29  ;;  %v402_v40 = vld [vmem:[%s6212_s24 + $0x1d0] sm:$0xff]  ;;  %v1105_v43 = vunpack.c.h.bf16 %v468_v35  ;;  %v1104_v45 = vunpack.c.l.bf16 %v468_v35  ;;  %v400_v46 = vld [vmem:[%s6212_s24 + $0x1c0] sm:$0xff] }
  0x97   : > { %2334 = vmatpush1.msra.mxu1 %v1016_v49  ;;  %2174 = vmatprep.subr.mxu0 %v885_v52  ;;  %v466_v41 = vld [vmem:[%s6212_s24 + $0x3d0] sm:$0xff]  ;;  %v464_v47 = vld [vmem:[%s6212_s24 + $0x3c0] sm:$0xff]  ;;  %v973_v48 = vunpack.c.h.bf16 %v402_v40  ;;  %v972_v50 = vunpack.c.l.bf16 %v402_v40  ;;  %v968_v56 = vunpack.c.l.bf16 %v400_v46 }
  0x98   : > { %2335 = vmatprep.subr.mxu1 %v1013_v53  ;;  %2175 = vmatpush1.msra.mxu0 %v884_v54  ;;  %v1101_v49 = vunpack.c.h.bf16 %v466_v41  ;;  %v1100_v51 = vunpack.c.l.bf16 %v466_v41  ;;  %v398_v52 = vld [vmem:[%s6212_s24 + $0x1b0] sm:$0xff]  ;;  %v969_v54 = vunpack.c.h.bf16 %v400_v46  ;;  %v1096_v57 = vunpack.c.l.bf16 %v464_v47 }
  0x99   : > { %2336 = vmatpush1.msra.mxu1 %v1012_v55  ;;  %2176 = vmatprep.subr.mxu0 %v881_v58  ;;  %v462_v53 = vld [vmem:[%s6212_s24 + $0x3b0] sm:$0xff]  ;;  %v1097_v55 = vunpack.c.h.bf16 %v464_v47  ;;  %v396_v58 = vld [vmem:[%s6212_s24 + $0x1a0] sm:$0xff]  ;;  %v964_v62 = vunpack.c.l.bf16 %v398_v52 }
  0x9a   : > { %2337 = vmatprep.subr.mxu1 %v1009_v59  ;;  %2177 = vmatpush1.msra.mxu0 %v880_v60  ;;  %v460_v59 = vld [vmem:[%s6212_s24 + $0x3a0] sm:$0xff]  ;;  %v965_v60 = vunpack.c.h.bf16 %v398_v52  ;;  %v1092_v63 = vunpack.c.l.bf16 %v462_v53  ;;  %v960_v4 = vunpack.c.l.bf16 %v396_v58 }
  0x9b   : > { %2338 = vmatpush1.msra.mxu1 %v1008_v61  ;;  %2178 = vmatprep.subr.mxu0 %v877_v0  ;;  %v1093_v61 = vunpack.c.h.bf16 %v462_v53  ;;  %v394_v0 = vld [vmem:[%s6212_s24 + $0x190] sm:$0xff]  ;;  %v1088_v5 = vunpack.c.l.bf16 %v460_v59 }
  0x9c   : > { %2339 = vmatprep.subr.mxu1 %v1005_v1  ;;  %2179 = vmatpush1.msra.mxu0 %v876_v2  ;;  %v458_v1 = vld [vmem:[%s6212_s24 + $0x390] sm:$0xff]  ;;  %v961_v2 = vunpack.c.h.bf16 %v396_v58  ;;  %v956_v10 = vunpack.c.l.bf16 %v394_v0 }
  0x9d   : > { %2340 = vmatpush1.msra.mxu1 %v1004_v3  ;;  %2180 = vmatprep.subr.mxu0 %v873_v6  ;;  %v1089_v3 = vunpack.c.h.bf16 %v460_v59  ;;  %v392_v6 = vld [vmem:[%s6212_s24 + $0x180] sm:$0xff]  ;;  %v1084_v11 = vunpack.c.l.bf16 %v458_v1 }
  0x9e   : > { %2341 = vmatprep.subr.mxu1 %v1001_v7  ;;  %2181 = vmatpush1.msra.mxu0 %v872_v8  ;;  %v456_v7 = vld [vmem:[%s6212_s24 + $0x380] sm:$0xff]  ;;  %v957_v8 = vunpack.c.h.bf16 %v394_v0  ;;  %v952_v16 = vunpack.c.l.bf16 %v392_v6 }
  0x9f   : > { %2342 = vmatpush1.msra.mxu1 %v1000_v9  ;;  %2182 = vmatprep.subr.mxu0 %v869_v12  ;;  %v1085_v9 = vunpack.c.h.bf16 %v458_v1  ;;  %v390_v12 = vld [vmem:[%s6212_s24 + $0x170] sm:$0xff]  ;;  %v1080_v17 = vunpack.c.l.bf16 %v456_v7 }
  0xa0   : > { %2343 = vmatprep.subr.mxu1 %v997_v13  ;;  %2183 = vmatpush1.msra.mxu0 %v868_v14  ;;  %v454_v13 = vld [vmem:[%s6212_s24 + $0x370] sm:$0xff]  ;;  %v953_v14 = vunpack.c.h.bf16 %v392_v6  ;;  %v948_v22 = vunpack.c.l.bf16 %v390_v12  ;;  %v1883_v6 = vld [vmem:[#allocation2 + $0x18] sm:$0xff] }
  0xa1   : > { %2344 = vmatpush1.msra.mxu1 %v996_v15  ;;  %2184 = vmatprep.subr.mxu0 %v865_v18  ;;  %v1081_v15 = vunpack.c.h.bf16 %v456_v7  ;;  %v388_v18 = vld [vmem:[%s6212_s24 + $0x160] sm:$0xff]  ;;  %v1076_v23 = vunpack.c.l.bf16 %v454_v13 }
  0xa2   : > { %2345 = vmatprep.subr.mxu1 %v993_v19  ;;  %2185 = vmatpush1.msra.mxu0 %v864_v20  ;;  %v452_v19 = vld [vmem:[%s6212_s24 + $0x360] sm:$0xff]  ;;  %v949_v20 = vunpack.c.h.bf16 %v390_v12  ;;  %v944_v28 = vunpack.c.l.bf16 %v388_v18 }
  0xa3   : > { %2346 = vmatpush1.msra.mxu1 %v992_v21  ;;  %2186 = vmatprep.subr.mxu0 %v861_v24  ;;  %v1077_v21 = vunpack.c.h.bf16 %v454_v13  ;;  %v386_v24 = vld [vmem:[%s6212_s24 + $0x150] sm:$0xff]  ;;  %v1072_v29 = vunpack.c.l.bf16 %v452_v19 }
  0xa4   : > { %2347 = vmatprep.subr.mxu1 %v989_v25  ;;  %2187 = vmatpush1.msra.mxu0 %v860_v26  ;;  %v450_v25 = vld [vmem:[%s6212_s24 + $0x350] sm:$0xff]  ;;  %v945_v26 = vunpack.c.h.bf16 %v388_v18  ;;  %v940_v34 = vunpack.c.l.bf16 %v386_v24  ;;  %v496_v18 = vld [vmem:[%s6212_s24 + $0x4c0] sm:$0xff] }
  0xa5   : > { %2348 = vmatpush1.msra.mxu1 %v988_v27  ;;  %2188 = vmatprep.subr.mxu0 %v857_v30  ;;  %v1073_v27 = vunpack.c.h.bf16 %v452_v19  ;;  %v384_v30 = vld [vmem:[%s6212_s24 + $0x140] sm:$0xff]  ;;  %v1068_v35 = vunpack.c.l.bf16 %v450_v25  ;;  %v498_v13 = vld [vmem:[%s6212_s24 + $0x4d0] sm:$0xff] }
  0xa6   : > { %2349 = vmatprep.subr.mxu1 %v985_v31  ;;  %2189 = vmatpush1.msra.mxu0 %v856_v32  ;;  %v448_v31 = vld [vmem:[%s6212_s24 + $0x340] sm:$0xff]  ;;  %v941_v32 = vunpack.c.h.bf16 %v386_v24  ;;  %v936_v40 = vunpack.c.l.bf16 %v384_v30 }
  0xa7   : > { %2350 = vmatpush1.msra.mxu1 %v984_v33  ;;  %2190 = vmatprep.subr.mxu0 %v981_v36  ;;  %v1069_v33 = vunpack.c.h.bf16 %v450_v25  ;;  %v382_v36 = vld [vmem:[%s6212_s24 + $0x130] sm:$0xff]  ;;  %v1064_v41 = vunpack.c.l.bf16 %v448_v31  ;;  %v560_v24 = vld [vmem:[%s6212_s24 + $0x6c0] sm:$0xff] }
  0xa8   : > { %2351 = vmatprep.subr.mxu1 %v1109_v37  ;;  %2191 = vmatpush2.msra.mxu0 %v980_v38  ;;  %v446_v37 = vld [vmem:[%s6212_s24 + $0x330] sm:$0xff]  ;;  %v937_v38 = vunpack.c.h.bf16 %v384_v30  ;;  %v932_v46 = vunpack.c.l.bf16 %v382_v36  ;;  %v1160_v30 = vunpack.c.l.bf16 %v496_v18 }
  0xa9   : > { %2352 = vmatpush2.msra.mxu1 %v1108_v39  ;;  %2192 = vmatprep.subr.mxu0 %v977_v42  ;;  %v1065_v39 = vunpack.c.h.bf16 %v448_v31  ;;  %v380_v42 = vld [vmem:[%s6212_s24 + $0x120] sm:$0xff]  ;;  %v1060_v47 = vunpack.c.l.bf16 %v446_v37  ;;  %v1898_v25 = vld [vmem:[#allocation2 + $0x90] sm:$0xff]  ;;  %v1913_v31 = vld [vmem:[#allocation2 + $0x108] sm:$0xff] }
  0xaa   : > { %2353 = vmatprep.subr.mxu1 %v1105_v43  ;;  %2193 = vmatpush2.msra.mxu0 %v976_v44  ;;  %v444_v43 = vld [vmem:[%s6212_s24 + $0x320] sm:$0xff]  ;;  %v933_v44 = vunpack.c.h.bf16 %v382_v36  ;;  %v928_v52 = vunpack.c.l.bf16 %v380_v42 }
  0xab   : > { %2354 = vmatpush2.msra.mxu1 %v1104_v45  ;;  %2194 = vmatprep.subr.mxu0 %v973_v48  ;;  %v1061_v45 = vunpack.c.h.bf16 %v446_v37  ;;  %v378_v48 = vld [vmem:[%s6212_s24 + $0x110] sm:$0xff]  ;;  %v1056_v53 = vunpack.c.l.bf16 %v444_v43  ;;  %v1912_v36 = vld [vmem:[#allocation2 + $0x100] sm:$0xff]  ;;  %v1915_v37 = vld [vmem:[#allocation2 + $0x118] sm:$0xff] }
  0xac   : > { %2355 = vmatprep.subr.mxu1 %v1101_v49  ;;  %2195 = vmatpush2.msra.mxu0 %v972_v50  ;;  %v442_v49 = vld [vmem:[%s6212_s24 + $0x310] sm:$0xff]  ;;  %v929_v50 = vunpack.c.h.bf16 %v380_v42  ;;  %v924_v58 = vunpack.c.l.bf16 %v378_v48 }
  0xad   : > { %2356 = vmatpush2.msra.mxu1 %v1100_v51  ;;  %2196 = vmatprep.subr.mxu0 %v969_v54  ;;  %v1057_v51 = vunpack.c.h.bf16 %v444_v43  ;;  %v376_v54 = vld [vmem:[%s6212_s24 + $0x100] sm:$0xff]  ;;  %v1052_v59 = vunpack.c.l.bf16 %v442_v49 }
  0xae   : > { %2357 = vmatprep.subr.mxu1 %v1097_v55  ;;  %2197 = vmatpush2.msra.mxu0 %v968_v56  ;;  %v925_v55 = vunpack.c.h.bf16 %v378_v48  ;;  %v1053_v56 = vunpack.c.h.bf16 %v442_v49  ;;  %v554_v49 = vld [vmem:[%s6212_s24 + $0x690] sm:$0xff] }
  0xaf   : > { %2358 = vmatpush2.msra.mxu1 %v1096_v57  ;;  %2198 = vmatprep.subr.mxu0 %v965_v60  ;;  %v440_v57 = vld [vmem:[%s6212_s24 + $0x300] sm:$0xff]  ;;  %v921_v60 = vunpack.c.h.bf16 %v376_v54 }
  0xb0   : > { %2359 = vmatprep.subr.mxu1 %v1093_v61  ;;  %2199 = vmatpush2.msra.mxu0 %v964_v62  ;;  %v502_v61 = vld [vmem:[%s6212_s24 + $0x4f0] sm:$0xff]  ;;  %v920_v62 = vunpack.c.l.bf16 %v376_v54  ;;  %v1049_v0 = vunpack.c.h.bf16 %v440_v57  ;;  %v1048_v1 = vunpack.c.l.bf16 %v440_v57 }
  0xb1   : > { %2360 = vmatpush2.msra.mxu1 %v1092_v63  ;;  %2200 = vmatprep.subr.mxu0 %v961_v2  ;;  %v1881_v63 = vld [vmem:[#allocation2 + $0x8] sm:$0xff]  ;;  %v566_v2 = vld [vmem:[%s6212_s24 + $0x6f0] sm:$0xff]  ;;  %v1172_v7 = vunpack.c.l.bf16 %v502_v61 }
  0xb2   : > { %2361 = vmatprep.subr.mxu1 %v1089_v3  ;;  %2201 = vmatpush2.msra.mxu0 %v960_v4  ;;  %v500_v3 = vld [vmem:[%s6212_s24 + $0x4e0] sm:$0xff]  ;;  %v1300_v12 = vunpack.c.l.bf16 %v566_v2  ;;  %v1930_v57 = vld [vmem:[#allocation2 + $0x190] sm:$0xff] }
  0xb3   : > { %2362 = vmatpush2.msra.mxu1 %v1088_v5  ;;  %2202 = vmatprep.subr.mxu0 %v957_v8  ;;  %v1880_v4 = vld [vmem:[#allocation2] sm:$0xff]  ;;  %v1173_v5 = vunpack.c.h.bf16 %v502_v61  ;;  %v486_v61 = vld [vmem:[%s6212_s24 + $0x470] sm:$0xff] }
  0xb4   : > { %2363 = vmatprep.subr.mxu1 %v1085_v9  ;;  %2203 = vmatpush2.msra.mxu0 %v956_v10  ;;  %v564_v8 = vld [vmem:[%s6212_s24 + $0x6e0] sm:$0xff]  ;;  %v1882_v9 = vld [vmem:[#allocation2 + $0x10] sm:$0xff]  ;;  %v1301_v10 = vunpack.c.h.bf16 %v566_v2 }
  0xb5   : > { %2364 = vmatpush2.msra.mxu1 %v1084_v11  ;;  %2204 = vmatprep.subr.mxu0 %v953_v14  ;;  %v1169_v11 = vunpack.c.h.bf16 %v500_v3  ;;  %v1168_v14 = vunpack.c.l.bf16 %v500_v3  ;;  %v1296_v19 = vunpack.c.l.bf16 %v564_v8  ;;  %v484_v2 = vld [vmem:[%s6212_s24 + $0x460] sm:$0xff] }
  0xb6   : > { %2365 = vmatprep.subr.mxu1 %v1081_v15  ;;  %2205 = vmatpush2.msra.mxu0 %v952_v16  ;;  %v1897_v15 = vld [vmem:[#allocation2 + $0x88] sm:$0xff]  ;;  %v1297_v16 = vunpack.c.h.bf16 %v564_v8  ;;  %v548_v8 = vld [vmem:[%s6212_s24 + $0x660] sm:$0xff] }
  0xb7   : > { %2366 = vmatpush2.msra.mxu1 %v1080_v17  ;;  %2206 = vmatprep.subr.mxu0 %v949_v20  ;;  %v562_v17 = vld [vmem:[%s6212_s24 + $0x6d0] sm:$0xff]  ;;  %v1896_v20 = vld [vmem:[#allocation2 + $0x80] sm:$0xff] }
  0xb8   : > { %2367 = vmatprep.subr.mxu1 %v1077_v21  ;;  %2207 = vmatpush2.msra.mxu0 %v948_v22  ;;  %v1899_v21 = vld [vmem:[#allocation2 + $0x98] sm:$0xff]  ;;  %v1165_v22 = vunpack.c.h.bf16 %v498_v13 }
  0xb9   : > { %2368 = vmatpush2.msra.mxu1 %v1076_v23  ;;  %2208 = vmatprep.subr.mxu0 %v945_v26  ;;  %v1164_v23 = vunpack.c.l.bf16 %v498_v13  ;;  %v1293_v26 = vunpack.c.h.bf16 %v562_v17  ;;  %v482_v13 = vld [vmem:[%s6212_s24 + $0x450] sm:$0xff] }
  0xba   : > { %2369 = vmatprep.subr.mxu1 %v1073_v27  ;;  %2209 = vmatpush2.msra.mxu0 %v944_v28  ;;  %v1161_v27 = vunpack.c.h.bf16 %v496_v18  ;;  %v1292_v28 = vunpack.c.l.bf16 %v562_v17  ;;  %v546_v17 = vld [vmem:[%s6212_s24 + $0x650] sm:$0xff]  ;;  %v480_v18 = vld [vmem:[%s6212_s24 + $0x440] sm:$0xff] }
  0xbb   : > { %2370 = vmatpush2.msra.mxu1 %v1072_v29  ;;  %2210 = vmatprep.subr.mxu0 %v941_v32  ;;  %v494_v29 = vld [vmem:[%s6212_s24 + $0x4b0] sm:$0xff]  ;;  %v1289_v32 = vunpack.c.h.bf16 %v560_v24 }
  0xbc   : > { %2371 = vmatprep.subr.mxu1 %v1069_v33  ;;  %2211 = vmatpush2.msra.mxu0 %v940_v34  ;;  %v558_v33 = vld [vmem:[%s6212_s24 + $0x6b0] sm:$0xff]  ;;  %v492_v34 = vld [vmem:[%s6212_s24 + $0x4a0] sm:$0xff] }
  0xbd   : > { %2372 = vmatpush2.msra.mxu1 %v1068_v35  ;;  %2212 = vmatprep.subr.mxu0 %v937_v38  ;;  %v1288_v35 = vunpack.c.l.bf16 %v560_v24  ;;  %v1157_v38 = vunpack.c.h.bf16 %v494_v29  ;;  %v1285_v42 = vunpack.c.h.bf16 %v558_v33  ;;  %v1153_v43 = vunpack.c.h.bf16 %v492_v34  ;;  %v544_v24 = vld [vmem:[%s6212_s24 + $0x640] sm:$0xff] }
  0xbe   : > { %2373 = vmatprep.subr.mxu1 %v1065_v39  ;;  %2213 = vmatpush2.msra.mxu0 %v936_v40  ;;  %v1156_v39 = vunpack.c.l.bf16 %v494_v29  ;;  %v556_v40 = vld [vmem:[%s6212_s24 + $0x6a0] sm:$0xff]  ;;  %v478_v29 = vld [vmem:[%s6212_s24 + $0x430] sm:$0xff] }
  0xbf   : > { %2374 = vmatpush2.msra.mxu1 %v1064_v41  ;;  %2214 = vmatprep.subr.mxu0 %v933_v44  ;;  %v1914_v41 = vld [vmem:[#allocation2 + $0x110] sm:$0xff]  ;;  %v1284_v44 = vunpack.c.l.bf16 %v558_v33  ;;  %v1281_v48 = vunpack.c.h.bf16 %v556_v40 }
  0xc0   : > { %2375 = vmatprep.subr.mxu1 %v1061_v45  ;;  %2215 = vmatpush2.msra.mxu0 %v932_v46  ;;  %v490_v45 = vld [vmem:[%s6212_s24 + $0x490] sm:$0xff]  ;;  %v1152_v46 = vunpack.c.l.bf16 %v492_v34  ;;  %v476_v34 = vld [vmem:[%s6212_s24 + $0x420] sm:$0xff] }
  0xc1   : > { %2376 = vmatpush2.msra.mxu1 %v1060_v47  ;;  %2216 = vmatprep.subr.mxu0 %v929_v50  ;;  %v1929_v47 = vld [vmem:[#allocation2 + $0x188] sm:$0xff]  ;;  %v488_v50 = vld [vmem:[%s6212_s24 + $0x480] sm:$0xff]  ;;  %v1149_v54 = vunpack.c.h.bf16 %v490_v45  ;;  %v542_v33 = vld [vmem:[%s6212_s24 + $0x630] sm:$0xff] }
  0xc2   : > { %2377 = vmatprep.subr.mxu1 %v1057_v51  ;;  %2217 = vmatpush2.msra.mxu0 %v928_v52  ;;  %v1280_v51 = vunpack.c.l.bf16 %v556_v40  ;;  %v1928_v52 = vld [vmem:[#allocation2 + $0x180] sm:$0xff] }
  0xc3   : > { %2378 = vmatpush2.msra.mxu1 %v1056_v53  ;;  %2218 = vmatprep.subr.mxu0 %v925_v55  ;;  %v1931_v53 = vld [vmem:[#allocation2 + $0x198] sm:$0xff]  ;;  %v1148_v55 = vunpack.c.l.bf16 %v490_v45  ;;  %v540_v40 = vld [vmem:[%s6212_s24 + $0x620] sm:$0xff]  ;;  %v474_v45 = vld [vmem:[%s6212_s24 + $0x410] sm:$0xff] }
  0xc4   : > { %2379 = vmatprep.subr.mxu1 %v1053_v56  ;;  %2219 = vmatpush2.msra.mxu0 %v924_v58  ;;  %v552_v56 = vld [vmem:[%s6212_s24 + $0x680] sm:$0xff]  ;;  %v1277_v58 = vunpack.c.h.bf16 %v554_v49 }
  0xc5   : > { %2380 = vmatpush2.msra.mxu1 %v1052_v59  ;;  %2220 = vmatprep.subr.mxu0 %v921_v60  ;;  %v1145_v59 = vunpack.c.h.bf16 %v488_v50  ;;  %v1276_v60 = vunpack.c.l.bf16 %v554_v49  ;;  %v1272_v3 = vunpack.c.l.bf16 %v552_v56  ;;  %v538_v49 = vld [vmem:[%s6212_s24 + $0x610] sm:$0xff] }
  0xc6   : > { %2222 = vmatprep.mubr.f32.mxu0 %v1881_v63  ;;  %2221 = vmatpush2.msra.mxu0 %v920_v62  ;;  %v1144_v62 = vunpack.c.l.bf16 %v488_v50  ;;  %v1945_v63 = vld [vmem:[#allocation2 + $0x208] sm:$0xff]  ;;  %v472_v50 = vld [vmem:[%s6212_s24 + $0x400] sm:$0xff] }
  0xc7   : > { %2381 = vmatprep.subr.mxu1 %v1049_v0  ;;  %2223 = vmatmul.mubr.f32.vlgmr.msra.gmra.mxu0 %v1880_v4  ;;  %v1273_v0 = vunpack.c.h.bf16 %v552_v56  ;;  %v1944_v4 = vld [vmem:[#allocation2 + $0x200] sm:$0xff] }
  0xc8   : > { %2382 = vmatpush2.msra.mxu1 %v1048_v1  ;;  %2383 = vmatprep.mubr.f32.mxu1 %v1883_v6  ;;  %v550_v1 = vld [vmem:[%s6212_s24 + $0x670] sm:$0xff]  ;;  %v1141_v6 = vunpack.c.h.bf16 %v486_v61  ;;  %v536_v56 = vld [vmem:[%s6212_s24 + $0x600] sm:$0xff] }
  0xc9   : > { %2480 = vmatprep.subr.mxu0 %v1173_v5  ;;  %2384 = vmatmul.mubr.f32.vlgmr.msra.gmra.mxu1 %v1882_v9  ;;  %v1947_v5 = vld [vmem:[#allocation2 + $0x218] sm:$0xff]  ;;  %v1946_v9 = vld [vmem:[#allocation2 + $0x210] sm:$0xff] }
  0xca   : > { %2481 = vmatpush1.msra.mxu0 %v1172_v7  ;;  %2641 = vmatprep.subr.mxu1 %v1301_v10  ;;  %v1140_v7 = vunpack.c.l.bf16 %v486_v61  ;;  %v1269_v10 = vunpack.c.h.bf16 %v550_v1  ;;  %v534_v61 = vld [vmem:[%s6212_s24 + $0x5f0] sm:$0xff] }
  0xcb   : > { %2482 = vmatprep.subr.mxu0 %v1169_v11  ;;  %2642 = vmatpush1.msra.mxu1 %v1300_v12  ;;  %v1137_v11 = vunpack.c.h.bf16 %v484_v2  ;;  %v1268_v12 = vunpack.c.l.bf16 %v550_v1  ;;  %v598_v1 = vld [vmem:[%s6212_s24 + $0x7f0] sm:$0xff] }
  0xcc   : > { %2228 = vmatprep.mubr.f32.mxu0 %v1897_v15  ;;  %2483 = vmatpush1.msra.mxu0 %v1168_v14  ;;  %v1136_v14 = vunpack.c.l.bf16 %v484_v2  ;;  %v1961_v15 = vld [vmem:[#allocation2 + $0x288] sm:$0xff]  ;;  %v532_v2 = vld [vmem:[%s6212_s24 + $0x5e0] sm:$0xff] }
  0xcd   : > { %2643 = vmatprep.subr.mxu1 %v1297_v16  ;;  %2229 = vmatmul.mubr.f32.gmra.mxu0 %v1896_v20  ;;  %v1265_v16 = vunpack.c.h.bf16 %v548_v8  ;;  %v1960_v20 = vld [vmem:[#allocation2 + $0x280] sm:$0xff] }
  0xce   : > { %2389 = vmatprep.mubr.f32.mxu1 %v1899_v21  ;;  %2484 = vmatprep.subr.mxu0 %v1165_v22  ;;  %v1963_v21 = vld [vmem:[#allocation2 + $0x298] sm:$0xff]  ;;  %v1133_v22 = vunpack.c.h.bf16 %v482_v13 }
  0xcf   : > { %2644 = vmatpush1.msra.mxu1 %v1296_v19  ;;  %2485 = vmatpush1.msra.mxu0 %v1164_v23  ;;  %v1264_v19 = vunpack.c.l.bf16 %v548_v8  ;;  %v1132_v23 = vunpack.c.l.bf16 %v482_v13  ;;  %v596_v8 = vld [vmem:[%s6212_s24 + $0x7e0] sm:$0xff]  ;;  %v530_v13 = vld [vmem:[%s6212_s24 + $0x5d0] sm:$0xff] }
  0xd0   : > { %2390 = vmatmul.mubr.f32.gmra.mxu1 %v1898_v25  ;;  %2645 = vmatprep.subr.mxu1 %v1293_v26  ;;  %v1962_v25 = vld [vmem:[#allocation2 + $0x290] sm:$0xff]  ;;  %v1261_v26 = vunpack.c.h.bf16 %v546_v17 }
  0xd1   : > { %2486 = vmatprep.subr.mxu0 %v1161_v27  ;;  %2646 = vmatpush1.msra.mxu1 %v1292_v28  ;;  %v1129_v27 = vunpack.c.h.bf16 %v480_v18  ;;  %v1260_v28 = vunpack.c.l.bf16 %v546_v17  ;;  %v594_v17 = vld [vmem:[%s6212_s24 + $0x7d0] sm:$0xff] }
  0xd2   : > { %2234 = vmatprep.mubr.f32.mxu0 %v1913_v31  ;;  %2487 = vmatpush1.msra.mxu0 %v1160_v30  ;;  %v1128_v30 = vunpack.c.l.bf16 %v480_v18  ;;  %v1977_v31 = vld [vmem:[#allocation2 + $0x308] sm:$0xff]  ;;  %v528_v18 = vld [vmem:[%s6212_s24 + $0x5c0] sm:$0xff] }
  0xd3   : > { %2647 = vmatprep.subr.mxu1 %v1289_v32  ;;  %2235 = vmatmul.mubr.f32.gmra.mxu0 %v1912_v36  ;;  %v1257_v32 = vunpack.c.h.bf16 %v544_v24  ;;  %v1976_v36 = vld [vmem:[#allocation2 + $0x300] sm:$0xff] }
  0xd4   : > { %2395 = vmatprep.mubr.f32.mxu1 %v1915_v37  ;;  %2488 = vmatprep.subr.mxu0 %v1157_v38  ;;  %v1979_v37 = vld [vmem:[#allocation2 + $0x318] sm:$0xff]  ;;  %v1125_v38 = vunpack.c.h.bf16 %v478_v29 }
  0xd5   : > { %2648 = vmatpush1.msra.mxu1 %v1288_v35  ;;  %2489 = vmatpush1.msra.mxu0 %v1156_v39  ;;  %v1256_v35 = vunpack.c.l.bf16 %v544_v24  ;;  %v1124_v39 = vunpack.c.l.bf16 %v478_v29  ;;  %v592_v24 = vld [vmem:[%s6212_s24 + $0x7c0] sm:$0xff]  ;;  %v526_v29 = vld [vmem:[%s6212_s24 + $0x5b0] sm:$0xff] }
  0xd6   : > { %2396 = vmatmul.mubr.f32.gmra.mxu1 %v1914_v41  ;;  %2649 = vmatprep.subr.mxu1 %v1285_v42  ;;  %v1978_v41 = vld [vmem:[#allocation2 + $0x310] sm:$0xff]  ;;  %v1253_v42 = vunpack.c.h.bf16 %v542_v33 }
  0xd7   : > { %2490 = vmatprep.subr.mxu0 %v1153_v43  ;;  %2650 = vmatpush1.msra.mxu1 %v1284_v44  ;;  %v1121_v43 = vunpack.c.h.bf16 %v476_v34  ;;  %v1252_v44 = vunpack.c.l.bf16 %v542_v33  ;;  %v590_v33 = vld [vmem:[%s6212_s24 + $0x7b0] sm:$0xff] }
  0xd8   : > { %2240 = vmatprep.mubr.f32.mxu0 %v1929_v47  ;;  %2491 = vmatpush1.msra.mxu0 %v1152_v46  ;;  %v1120_v46 = vunpack.c.l.bf16 %v476_v34  ;;  %v1993_v47 = vld [vmem:[#allocation2 + $0x388] sm:$0xff]  ;;  %v524_v34 = vld [vmem:[%s6212_s24 + $0x5a0] sm:$0xff] }
  0xd9   : > { %2651 = vmatprep.subr.mxu1 %v1281_v48  ;;  %2241 = vmatmul.mubr.f32.gmra.mxu0 %v1928_v52  ;;  %v1249_v48 = vunpack.c.h.bf16 %v540_v40  ;;  %v1992_v52 = vld [vmem:[#allocation2 + $0x380] sm:$0xff] }
  0xda   : > { %2401 = vmatprep.mubr.f32.mxu1 %v1931_v53  ;;  %2492 = vmatprep.subr.mxu0 %v1149_v54  ;;  %v1995_v53 = vld [vmem:[#allocation2 + $0x398] sm:$0xff]  ;;  %v1117_v54 = vunpack.c.h.bf16 %v474_v45 }
  0xdb   : > { %2652 = vmatpush1.msra.mxu1 %v1280_v51  ;;  %2493 = vmatpush1.msra.mxu0 %v1148_v55  ;;  %v1248_v51 = vunpack.c.l.bf16 %v540_v40  ;;  %v1116_v55 = vunpack.c.l.bf16 %v474_v45  ;;  %v588_v40 = vld [vmem:[%s6212_s24 + $0x7a0] sm:$0xff]  ;;  %v522_v45 = vld [vmem:[%s6212_s24 + $0x590] sm:$0xff] }
  0xdc   : > { %2402 = vmatmul.mubr.f32.gmra.mxu1 %v1930_v57  ;;  %2653 = vmatprep.subr.mxu1 %v1277_v58  ;;  %v1994_v57 = vld [vmem:[#allocation2 + $0x390] sm:$0xff]  ;;  %v1245_v58 = vunpack.c.h.bf16 %v538_v49 }
  0xdd   : > { %2494 = vmatprep.subr.mxu0 %v1145_v59  ;;  %2654 = vmatpush1.msra.mxu1 %v1276_v60  ;;  %v1113_v59 = vunpack.c.h.bf16 %v472_v50  ;;  %v1244_v60 = vunpack.c.l.bf16 %v538_v49  ;;  %v586_v49 = vld [vmem:[%s6212_s24 + $0x790] sm:$0xff] }
  0xde   : > { %2246 = vmatprep.mubr.f32.mxu0 %v1945_v63  ;;  %2495 = vmatpush1.msra.mxu0 %v1144_v62  ;;  %v1112_v62 = vunpack.c.l.bf16 %v472_v50  ;;  %v2009_v63 = vld [vmem:[#allocation2 + $0x408] sm:$0xff]  ;;  %v520_v50 = vld [vmem:[%s6212_s24 + $0x580] sm:$0xff] }
  0xdf   : > { %2655 = vmatprep.subr.mxu1 %v1273_v0  ;;  %2247 = vmatmul.mubr.f32.gmra.mxu0 %v1944_v4  ;;  %v1241_v0 = vunpack.c.h.bf16 %v536_v56  ;;  %v2008_v4 = vld [vmem:[#allocation2 + $0x400] sm:$0xff] }
  0xe0   : > { %2407 = vmatprep.mubr.f32.mxu1 %v1947_v5  ;;  %2496 = vmatprep.subr.mxu0 %v1141_v6  ;;  %v2011_v5 = vld [vmem:[#allocation2 + $0x418] sm:$0xff]  ;;  %v1237_v6 = vunpack.c.h.bf16 %v534_v61 }
  0xe1   : > { %2656 = vmatpush1.msra.mxu1 %v1272_v3  ;;  %2497 = vmatpush1.msra.mxu0 %v1140_v7  ;;  %v1240_v3 = vunpack.c.l.bf16 %v536_v56  ;;  %v1236_v7 = vunpack.c.l.bf16 %v534_v61  ;;  %v584_v56 = vld [vmem:[%s6212_s24 + $0x780] sm:$0xff]  ;;  %v518_v61 = vld [vmem:[%s6212_s24 + $0x570] sm:$0xff] }
  0xe2   : > { %2408 = vmatmul.mubr.f32.gmra.mxu1 %v1946_v9  ;;  %2657 = vmatprep.subr.mxu1 %v1269_v10  ;;  %v2010_v9 = vld [vmem:[#allocation2 + $0x410] sm:$0xff]  ;;  %v1365_v10 = vunpack.c.h.bf16 %v598_v1 }
  0xe3   : > { %2498 = vmatprep.subr.mxu0 %v1137_v11  ;;  %2658 = vmatpush1.msra.mxu1 %v1268_v12  ;;  %v1233_v11 = vunpack.c.h.bf16 %v532_v2  ;;  %v1364_v12 = vunpack.c.l.bf16 %v598_v1  ;;  %v582_v1 = vld [vmem:[%s6212_s24 + $0x770] sm:$0xff] }
  0xe4   : > { %2252 = vmatprep.mubr.f32.mxu0 %v1961_v15  ;;  %2499 = vmatpush1.msra.mxu0 %v1136_v14  ;;  %v1232_v14 = vunpack.c.l.bf16 %v532_v2  ;;  %v2025_v15 = vld [vmem:[#allocation2 + $0x488] sm:$0xff]  ;;  %v516_v2 = vld [vmem:[%s6212_s24 + $0x560] sm:$0xff] }
  0xe5   : > { %2659 = vmatprep.subr.mxu1 %v1265_v16  ;;  %2253 = vmatmul.mubr.f32.gmra.mxu0 %v1960_v20  ;;  %v1361_v16 = vunpack.c.h.bf16 %v596_v8  ;;  %v2024_v20 = vld [vmem:[#allocation2 + $0x480] sm:$0xff] }
  0xe6   : > { %2413 = vmatprep.mubr.f32.mxu1 %v1963_v21  ;;  %2500 = vmatprep.subr.mxu0 %v1133_v22  ;;  %v2027_v21 = vld [vmem:[#allocation2 + $0x498] sm:$0xff]  ;;  %v1229_v22 = vunpack.c.h.bf16 %v530_v13 }
  0xe7   : > { %2660 = vmatpush1.msra.mxu1 %v1264_v19  ;;  %2501 = vmatpush1.msra.mxu0 %v1132_v23  ;;  %v1360_v19 = vunpack.c.l.bf16 %v596_v8  ;;  %v1228_v23 = vunpack.c.l.bf16 %v530_v13  ;;  %v580_v8 = vld [vmem:[%s6212_s24 + $0x760] sm:$0xff]  ;;  %v514_v13 = vld [vmem:[%s6212_s24 + $0x550] sm:$0xff] }
  0xe8   : > { %2414 = vmatmul.mubr.f32.gmra.mxu1 %v1962_v25  ;;  %2661 = vmatprep.subr.mxu1 %v1261_v26  ;;  %v2026_v25 = vld [vmem:[#allocation2 + $0x490] sm:$0xff]  ;;  %v1357_v26 = vunpack.c.h.bf16 %v594_v17 }
  0xe9   : > { %2502 = vmatprep.subr.mxu0 %v1129_v27  ;;  %2662 = vmatpush1.msra.mxu1 %v1260_v28  ;;  %v1225_v27 = vunpack.c.h.bf16 %v528_v18  ;;  %v1356_v28 = vunpack.c.l.bf16 %v594_v17  ;;  %v578_v17 = vld [vmem:[%s6212_s24 + $0x750] sm:$0xff] }
  0xea   : > { %2258 = vmatprep.mubr.f32.mxu0 %v1977_v31  ;;  %2503 = vmatpush1.msra.mxu0 %v1128_v30  ;;  %v1224_v30 = vunpack.c.l.bf16 %v528_v18  ;;  %v2041_v31 = vld [vmem:[#allocation2 + $0x508] sm:$0xff]  ;;  %v512_v18 = vld [vmem:[%s6212_s24 + $0x540] sm:$0xff] }
  0xeb   : > { %2663 = vmatprep.subr.mxu1 %v1257_v32  ;;  %2259 = vmatmul.mubr.f32.gmra.mxu0 %v1976_v36  ;;  %v1353_v32 = vunpack.c.h.bf16 %v592_v24  ;;  %v2040_v36 = vld [vmem:[#allocation2 + $0x500] sm:$0xff] }
  0xec   : > { %2419 = vmatprep.mubr.f32.mxu1 %v1979_v37  ;;  %2504 = vmatprep.subr.mxu0 %v1125_v38  ;;  %v2043_v37 = vld [vmem:[#allocation2 + $0x518] sm:$0xff]  ;;  %v1221_v38 = vunpack.c.h.bf16 %v526_v29 }
  0xed   : > { %2664 = vmatpush1.msra.mxu1 %v1256_v35  ;;  %2505 = vmatpush1.msra.mxu0 %v1124_v39  ;;  %v1352_v35 = vunpack.c.l.bf16 %v592_v24  ;;  %v1220_v39 = vunpack.c.l.bf16 %v526_v29  ;;  %v576_v24 = vld [vmem:[%s6212_s24 + $0x740] sm:$0xff]  ;;  %v510_v29 = vld [vmem:[%s6212_s24 + $0x530] sm:$0xff] }
  0xee   : > { %2420 = vmatmul.mubr.f32.gmra.mxu1 %v1978_v41  ;;  %2665 = vmatprep.subr.mxu1 %v1253_v42  ;;  %v2042_v41 = vld [vmem:[#allocation2 + $0x510] sm:$0xff]  ;;  %v1349_v42 = vunpack.c.h.bf16 %v590_v33 }
  0xef   : > { %2506 = vmatprep.subr.mxu0 %v1121_v43  ;;  %2666 = vmatpush1.msra.mxu1 %v1252_v44  ;;  %v1217_v43 = vunpack.c.h.bf16 %v524_v34  ;;  %v1348_v44 = vunpack.c.l.bf16 %v590_v33  ;;  %v574_v33 = vld [vmem:[%s6212_s24 + $0x730] sm:$0xff] }
  0xf0   : > { %2264 = vmatprep.mubr.f32.mxu0 %v1993_v47  ;;  %2507 = vmatpush1.msra.mxu0 %v1120_v46  ;;  %v1216_v46 = vunpack.c.l.bf16 %v524_v34  ;;  %v2057_v47 = vld [vmem:[#allocation2 + $0x588] sm:$0xff]  ;;  %v508_v34 = vld [vmem:[%s6212_s24 + $0x520] sm:$0xff] }
  0xf1   : > { %2667 = vmatprep.subr.mxu1 %v1249_v48  ;;  %2265 = vmatmul.mubr.f32.gmra.mxu0 %v1992_v52  ;;  %v1345_v48 = vunpack.c.h.bf16 %v588_v40  ;;  %v2056_v52 = vld [vmem:[#allocation2 + $0x580] sm:$0xff] }
  0xf2   : > { %2425 = vmatprep.mubr.f32.mxu1 %v1995_v53  ;;  %2508 = vmatprep.subr.mxu0 %v1117_v54  ;;  %v2059_v53 = vld [vmem:[#allocation2 + $0x598] sm:$0xff]  ;;  %v1213_v54 = vunpack.c.h.bf16 %v522_v45 }
  0xf3   : > { %2668 = vmatpush1.msra.mxu1 %v1248_v51  ;;  %2509 = vmatpush1.msra.mxu0 %v1116_v55  ;;  %v1344_v51 = vunpack.c.l.bf16 %v588_v40  ;;  %v1212_v55 = vunpack.c.l.bf16 %v522_v45  ;;  %v572_v40 = vld [vmem:[%s6212_s24 + $0x720] sm:$0xff]  ;;  %v506_v45 = vld [vmem:[%s6212_s24 + $0x510] sm:$0xff] }
  0xf4   : > { %2426 = vmatmul.mubr.f32.gmra.mxu1 %v1994_v57  ;;  %2669 = vmatprep.subr.mxu1 %v1245_v58  ;;  %v2058_v57 = vld [vmem:[#allocation2 + $0x590] sm:$0xff]  ;;  %v1341_v58 = vunpack.c.h.bf16 %v586_v49 }
  0xf5   : > { %2510 = vmatprep.subr.mxu0 %v1113_v59  ;;  %2670 = vmatpush1.msra.mxu1 %v1244_v60  ;;  %v1209_v59 = vunpack.c.h.bf16 %v520_v50  ;;  %v1340_v60 = vunpack.c.l.bf16 %v586_v49  ;;  %v570_v49 = vld [vmem:[%s6212_s24 + $0x710] sm:$0xff] }
  0xf6   : > { %2270 = vmatprep.mubr.f32.mxu0 %v2009_v63  ;;  %2511 = vmatpush1.msra.mxu0 %v1112_v62  ;;  %v1208_v62 = vunpack.c.l.bf16 %v520_v50  ;;  %v2073_v63 = vld [vmem:[#allocation2 + $0x608] sm:$0xff]  ;;  %v504_v50 = vld [vmem:[%s6212_s24 + $0x500] sm:$0xff] }
  0xf7   : > { %2671 = vmatprep.subr.mxu1 %v1241_v0  ;;  %2271 = vmatmul.mubr.f32.gmra.mxu0 %v2008_v4  ;;  %v1337_v0 = vunpack.c.h.bf16 %v584_v56  ;;  %v2072_v4 = vld [vmem:[#allocation2 + $0x600] sm:$0xff] }
  0xf8   : > { %2431 = vmatprep.mubr.f32.mxu1 %v2011_v5  ;;  %2512 = vmatprep.subr.mxu0 %v1237_v6  ;;  %v2075_v5 = vld [vmem:[#allocation2 + $0x618] sm:$0xff]  ;;  %v1205_v6 = vunpack.c.h.bf16 %v518_v61 }
  0xf9   : > { %2672 = vmatpush1.msra.mxu1 %v1240_v3  ;;  %2513 = vmatpush2.msra.mxu0 %v1236_v7  ;;  %v1336_v3 = vunpack.c.l.bf16 %v584_v56  ;;  %v1204_v7 = vunpack.c.l.bf16 %v518_v61  ;;  %v568_v56 = vld [vmem:[%s6212_s24 + $0x700] sm:$0xff]  ;;  %v1176_v61 = vunpack.c.l.bf16 %v504_v50 }
  0xfa   : > { %2432 = vmatmul.mubr.f32.gmra.mxu1 %v2010_v9  ;;  %2673 = vmatprep.subr.mxu1 %v1365_v10  ;;  %v2074_v9 = vld [vmem:[#allocation2 + $0x610] sm:$0xff]  ;;  %v1333_v10 = vunpack.c.h.bf16 %v582_v1 }
  0xfb   : > { %2514 = vmatprep.subr.mxu0 %v1233_v11  ;;  %2674 = vmatpush2.msra.mxu1 %v1364_v12  ;;  %v1201_v11 = vunpack.c.h.bf16 %v516_v2  ;;  %v1332_v12 = vunpack.c.l.bf16 %v582_v1  ;;  %v1304_v1 = vunpack.c.l.bf16 %v568_v56 }
  0xfc   : > { %2276 = vmatprep.mubr.f32.mxu0 %v2025_v15  ;;  %2515 = vmatpush2.msra.mxu0 %v1232_v14  ;;  %v1200_v14 = vunpack.c.l.bf16 %v516_v2  ;;  %v2089_v15 = vld [vmem:[#allocation2 + $0x688] sm:$0xff]  ;;  %v694_v2 = vld [vmem:[%s6212_s24 + $0xaf0] sm:$0xff] }
  0xfd   : > { %2675 = vmatprep.subr.mxu1 %v1361_v16  ;;  %2277 = vmatmul.mubr.f32.gmra.mxu0 %v2024_v20  ;;  %v1329_v16 = vunpack.c.h.bf16 %v580_v8  ;;  %v2088_v20 = vld [vmem:[#allocation2 + $0x680] sm:$0xff] }
  0xfe   : > { %2437 = vmatprep.mubr.f32.mxu1 %v2027_v21  ;;  %2516 = vmatprep.subr.mxu0 %v1229_v22  ;;  %v2091_v21 = vld [vmem:[#allocation2 + $0x698] sm:$0xff]  ;;  %v1197_v22 = vunpack.c.h.bf16 %v514_v13 }
  0xff   : > { %2676 = vmatpush2.msra.mxu1 %v1360_v19  ;;  %2517 = vmatpush2.msra.mxu0 %v1228_v23  ;;  %v1328_v19 = vunpack.c.l.bf16 %v580_v8  ;;  %v1196_v23 = vunpack.c.l.bf16 %v514_v13  ;;  %v692_v8 = vld [vmem:[%s6212_s24 + $0xae0] sm:$0xff]  ;;  %v626_v13 = vld [vmem:[%s6212_s24 + $0x8d0] sm:$0xff] }
 0x100   : > { %2438 = vmatmul.mubr.f32.gmra.mxu1 %v2026_v25  ;;  %2677 = vmatprep.subr.mxu1 %v1357_v26  ;;  %v2090_v25 = vld [vmem:[#allocation2 + $0x690] sm:$0xff]  ;;  %v1325_v26 = vunpack.c.h.bf16 %v578_v17 }
 0x101   : > { %2518 = vmatprep.subr.mxu0 %v1225_v27  ;;  %2678 = vmatpush2.msra.mxu1 %v1356_v28  ;;  %v1193_v27 = vunpack.c.h.bf16 %v512_v18  ;;  %v1324_v28 = vunpack.c.l.bf16 %v578_v17  ;;  %v690_v17 = vld [vmem:[%s6212_s24 + $0xad0] sm:$0xff] }
 0x102   : > { %2282 = vmatprep.mubr.f32.mxu0 %v2041_v31  ;;  %2519 = vmatpush2.msra.mxu0 %v1224_v30  ;;  %v1192_v30 = vunpack.c.l.bf16 %v512_v18  ;;  %v2105_v31 = vld [vmem:[#allocation2 + $0x708] sm:$0xff]  ;;  %v624_v18 = vld [vmem:[%s6212_s24 + $0x8c0] sm:$0xff] }
 0x103   : > { %2679 = vmatprep.subr.mxu1 %v1353_v32  ;;  %2283 = vmatmul.mubr.f32.gmra.mxu0 %v2040_v36  ;;  %v1321_v32 = vunpack.c.h.bf16 %v576_v24  ;;  %v2104_v36 = vld [vmem:[#allocation2 + $0x700] sm:$0xff] }
 0x104   : > { %2443 = vmatprep.mubr.f32.mxu1 %v2043_v37  ;;  %2520 = vmatprep.subr.mxu0 %v1221_v38  ;;  %v2107_v37 = vld [vmem:[#allocation2 + $0x718] sm:$0xff]  ;;  %v1189_v38 = vunpack.c.h.bf16 %v510_v29 }
 0x105   : > { %2680 = vmatpush2.msra.mxu1 %v1352_v35  ;;  %2521 = vmatpush2.msra.mxu0 %v1220_v39  ;;  %v1320_v35 = vunpack.c.l.bf16 %v576_v24  ;;  %v1188_v39 = vunpack.c.l.bf16 %v510_v29  ;;  %v688_v24 = vld [vmem:[%s6212_s24 + $0xac0] sm:$0xff]  ;;  %v622_v29 = vld [vmem:[%s6212_s24 + $0x8b0] sm:$0xff] }
 0x106   : > { %2444 = vmatmul.mubr.f32.gmra.mxu1 %v2042_v41  ;;  %2681 = vmatprep.subr.mxu1 %v1349_v42  ;;  %v2106_v41 = vld [vmem:[#allocation2 + $0x710] sm:$0xff]  ;;  %v1317_v42 = vunpack.c.h.bf16 %v574_v33 }
 0x107   : > { %2522 = vmatprep.subr.mxu0 %v1217_v43  ;;  %2682 = vmatpush2.msra.mxu1 %v1348_v44  ;;  %v1185_v43 = vunpack.c.h.bf16 %v508_v34  ;;  %v1316_v44 = vunpack.c.l.bf16 %v574_v33  ;;  %v686_v33 = vld [vmem:[%s6212_s24 + $0xab0] sm:$0xff] }
 0x108   : > { %2288 = vmatprep.mubr.f32.mxu0 %v2057_v47  ;;  %2523 = vmatpush2.msra.mxu0 %v1216_v46  ;;  %v1184_v46 = vunpack.c.l.bf16 %v508_v34  ;;  %v2121_v47 = vld [vmem:[#allocation2 + $0x788] sm:$0xff]  ;;  %v620_v34 = vld [vmem:[%s6212_s24 + $0x8a0] sm:$0xff] }
 0x109   : > { %2683 = vmatprep.subr.mxu1 %v1345_v48  ;;  %2289 = vmatmul.mubr.f32.gmra.mxu0 %v2056_v52  ;;  %v1313_v48 = vunpack.c.h.bf16 %v572_v40  ;;  %v2120_v52 = vld [vmem:[#allocation2 + $0x780] sm:$0xff] }
 0x10a   : > { %2449 = vmatprep.mubr.f32.mxu1 %v2059_v53  ;;  %2524 = vmatprep.subr.mxu0 %v1213_v54  ;;  %v2123_v53 = vld [vmem:[#allocation2 + $0x798] sm:$0xff]  ;;  %v1181_v54 = vunpack.c.h.bf16 %v506_v45 }
 0x10b   : > { %2684 = vmatpush2.msra.mxu1 %v1344_v51  ;;  %2525 = vmatpush2.msra.mxu0 %v1212_v55  ;;  %v1312_v51 = vunpack.c.l.bf16 %v572_v40  ;;  %v1180_v55 = vunpack.c.l.bf16 %v506_v45  ;;  %v684_v40 = vld [vmem:[%s6212_s24 + $0xaa0] sm:$0xff]  ;;  %v618_v45 = vld [vmem:[%s6212_s24 + $0x890] sm:$0xff] }
 0x10c   : > { %2450 = vmatmul.mubr.f32.gmra.mxu1 %v2058_v57  ;;  %2685 = vmatprep.subr.mxu1 %v1341_v58  ;;  %v2122_v57 = vld [vmem:[#allocation2 + $0x790] sm:$0xff]  ;;  %v1309_v58 = vunpack.c.h.bf16 %v570_v49 }
 0x10d   : > { %2526 = vmatprep.subr.mxu0 %v1209_v59  ;;  %2686 = vmatpush2.msra.mxu1 %v1340_v60  ;;  %v1177_v59 = vunpack.c.h.bf16 %v504_v50  ;;  %v1308_v60 = vunpack.c.l.bf16 %v570_v49  ;;  %v682_v49 = vld [vmem:[%s6212_s24 + $0xa90] sm:$0xff]  ;;  %v616_v50 = vld [vmem:[%s6212_s24 + $0x880] sm:$0xff] }
 0x10e   : > { %2294 = vmatprep.mubr.f32.mxu0 %v2073_v63  ;;  %2527 = vmatpush2.msra.mxu0 %v1208_v62  ;;  %v630_v62 = vld [vmem:[%s6212_s24 + $0x8f0] sm:$0xff]  ;;  %v1305_v63 = vunpack.c.h.bf16 %v568_v56  ;;  %v680_v56 = vld [vmem:[%s6212_s24 + $0xa80] sm:$0xff] }
 0x10f   : > { %2687 = vmatprep.subr.mxu1 %v1337_v0  ;;  %2295 = vmatmul.mubr.f32.gmra.mxu0 %v2072_v4  ;;  %v1885_v0 = vld [vmem:[#allocation2 + $0x28] sm:$0xff]  ;;  %v1884_v4 = vld [vmem:[#allocation2 + $0x20] sm:$0xff] }
 0x110   : > { %2455 = vmatprep.mubr.f32.mxu1 %v2075_v5  ;;  %2528 = vmatprep.subr.mxu0 %v1205_v6  ;;  %v1429_v5 = vunpack.c.h.bf16 %v630_v62  ;;  %v1887_v6 = vld [vmem:[#allocation2 + $0x38] sm:$0xff] }
 0x111   : > { %2688 = vmatpush2.msra.mxu1 %v1336_v3  ;;  %2529 = vmatpush2.msra.mxu0 %v1204_v7  ;;  %v628_v3 = vld [vmem:[%s6212_s24 + $0x8e0] sm:$0xff]  ;;  %v1428_v7 = vunpack.c.l.bf16 %v630_v62  ;;  %v1400_v62 = vunpack.c.l.bf16 %v616_v50 }
 0x112   : > { %2456 = vmatmul.mubr.f32.gmra.mxu1 %v2074_v9  ;;  %2689 = vmatprep.subr.mxu1 %v1333_v10  ;;  %v1886_v9 = vld [vmem:[#allocation2 + $0x30] sm:$0xff]  ;;  %v1557_v10 = vunpack.c.h.bf16 %v694_v2 }
 0x113   : > { %2530 = vmatprep.subr.mxu0 %v1201_v11  ;;  %2690 = vmatpush2.msra.mxu1 %v1332_v12  ;;  %v1425_v11 = vunpack.c.h.bf16 %v628_v3  ;;  %v1556_v12 = vunpack.c.l.bf16 %v694_v2  ;;  %v612_v2 = vld [vmem:[%s6212_s24 + $0x860] sm:$0xff] }
 0x114   : > { %2300 = vmatprep.mubr.f32.mxu0 %v2089_v15  ;;  %2531 = vmatpush2.msra.mxu0 %v1200_v14  ;;  %v1424_v14 = vunpack.c.l.bf16 %v628_v3  ;;  %v1901_v15 = vld [vmem:[#allocation2 + $0xa8] sm:$0xff]  ;;  %v1528_v3 = vunpack.c.l.bf16 %v680_v56 }
 0x115   : > { %2691 = vmatprep.subr.mxu1 %v1329_v16  ;;  %2301 = vmatmul.mubr.f32.gmra.mxu0 %v2088_v20  ;;  %v1553_v16 = vunpack.c.h.bf16 %v692_v8  ;;  %v1900_v20 = vld [vmem:[#allocation2 + $0xa0] sm:$0xff] }
 0x116   : > { %2461 = vmatprep.mubr.f32.mxu1 %v2091_v21  ;;  %2532 = vmatprep.subr.mxu0 %v1197_v22  ;;  %v1903_v21 = vld [vmem:[#allocation2 + $0xb8] sm:$0xff]  ;;  %v1421_v22 = vunpack.c.h.bf16 %v626_v13 }
 0x117   : > { %2692 = vmatpush2.msra.mxu1 %v1328_v19  ;;  %2533 = vmatpush2.msra.mxu0 %v1196_v23  ;;  %v1552_v19 = vunpack.c.l.bf16 %v692_v8  ;;  %v1420_v23 = vunpack.c.l.bf16 %v626_v13  ;;  %v676_v8 = vld [vmem:[%s6212_s24 + $0xa60] sm:$0xff]  ;;  %v610_v13 = vld [vmem:[%s6212_s24 + $0x850] sm:$0xff] }
 0x118   : > { %2462 = vmatmul.mubr.f32.gmra.mxu1 %v2090_v25  ;;  %2693 = vmatprep.subr.mxu1 %v1325_v26  ;;  %v1902_v25 = vld [vmem:[#allocation2 + $0xb0] sm:$0xff]  ;;  %v1549_v26 = vunpack.c.h.bf16 %v690_v17 }
 0x119   : > { %2534 = vmatprep.subr.mxu0 %v1193_v27  ;;  %2694 = vmatpush2.msra.mxu1 %v1324_v28  ;;  %v1417_v27 = vunpack.c.h.bf16 %v624_v18  ;;  %v1548_v28 = vunpack.c.l.bf16 %v690_v17  ;;  %v674_v17 = vld [vmem:[%s6212_s24 + $0xa50] sm:$0xff] }
 0x11a   : > { %2306 = vmatprep.mubr.f32.mxu0 %v2105_v31  ;;  %2535 = vmatpush2.msra.mxu0 %v1192_v30  ;;  %v1416_v30 = vunpack.c.l.bf16 %v624_v18  ;;  %v1917_v31 = vld [vmem:[#allocation2 + $0x128] sm:$0xff]  ;;  %v608_v18 = vld [vmem:[%s6212_s24 + $0x840] sm:$0xff] }
 0x11b   : > { %2695 = vmatprep.subr.mxu1 %v1321_v32  ;;  %2307 = vmatmul.mubr.f32.gmra.mxu0 %v2104_v36  ;;  %v1545_v32 = vunpack.c.h.bf16 %v688_v24  ;;  %v1916_v36 = vld [vmem:[#allocation2 + $0x120] sm:$0xff] }
 0x11c   : > { %2467 = vmatprep.mubr.f32.mxu1 %v2107_v37  ;;  %2536 = vmatprep.subr.mxu0 %v1189_v38  ;;  %v1919_v37 = vld [vmem:[#allocation2 + $0x138] sm:$0xff]  ;;  %v1413_v38 = vunpack.c.h.bf16 %v622_v29 }
 0x11d   : > { %2696 = vmatpush2.msra.mxu1 %v1320_v35  ;;  %2537 = vmatpush2.msra.mxu0 %v1188_v39  ;;  %v1544_v35 = vunpack.c.l.bf16 %v688_v24  ;;  %v1412_v39 = vunpack.c.l.bf16 %v622_v29  ;;  %v672_v24 = vld [vmem:[%s6212_s24 + $0xa40] sm:$0xff]  ;;  %v606_v29 = vld [vmem:[%s6212_s24 + $0x830] sm:$0xff] }
 0x11e   : > { %2468 = vmatmul.mubr.f32.gmra.mxu1 %v2106_v41  ;;  %2697 = vmatprep.subr.mxu1 %v1317_v42  ;;  %v1918_v41 = vld [vmem:[#allocation2 + $0x130] sm:$0xff]  ;;  %v1541_v42 = vunpack.c.h.bf16 %v686_v33 }
 0x11f   : > { %2538 = vmatprep.subr.mxu0 %v1185_v43  ;;  %2698 = vmatpush2.msra.mxu1 %v1316_v44  ;;  %v1409_v43 = vunpack.c.h.bf16 %v620_v34  ;;  %v1540_v44 = vunpack.c.l.bf16 %v686_v33  ;;  %v670_v33 = vld [vmem:[%s6212_s24 + $0xa30] sm:$0xff] }
 0x120   : > { %2312 = vmatprep.mubr.f32.mxu0 %v2121_v47  ;;  %2539 = vmatpush2.msra.mxu0 %v1184_v46  ;;  %v1408_v46 = vunpack.c.l.bf16 %v620_v34  ;;  %v1933_v47 = vld [vmem:[#allocation2 + $0x1a8] sm:$0xff]  ;;  %v604_v34 = vld [vmem:[%s6212_s24 + $0x820] sm:$0xff] }
 0x121   : > { %2699 = vmatprep.subr.mxu1 %v1313_v48  ;;  %2313 = vmatmul.mubr.f32.gmra.mxu0 %v2120_v52  ;;  %v1537_v48 = vunpack.c.h.bf16 %v684_v40  ;;  %v1932_v52 = vld [vmem:[#allocation2 + $0x1a0] sm:$0xff] }
 0x122   : > { %2473 = vmatprep.mubr.f32.mxu1 %v2123_v53  ;;  %2540 = vmatprep.subr.mxu0 %v1181_v54  ;;  %v1935_v53 = vld [vmem:[#allocation2 + $0x1b8] sm:$0xff]  ;;  %v1405_v54 = vunpack.c.h.bf16 %v618_v45 }
 0x123   : > { %2700 = vmatpush2.msra.mxu1 %v1312_v51  ;;  %2541 = vmatpush2.msra.mxu0 %v1180_v55  ;;  %v1536_v51 = vunpack.c.l.bf16 %v684_v40  ;;  %v1404_v55 = vunpack.c.l.bf16 %v618_v45  ;;  %v668_v40 = vld [vmem:[%s6212_s24 + $0xa20] sm:$0xff]  ;;  %v602_v45 = vld [vmem:[%s6212_s24 + $0x810] sm:$0xff] }
 0x124   : > { %2474 = vmatmul.mubr.f32.gmra.mxu1 %v2122_v57  ;;  %2701 = vmatprep.subr.mxu1 %v1309_v58  ;;  %v1934_v57 = vld [vmem:[#allocation2 + $0x1b0] sm:$0xff]  ;;  %v1533_v58 = vunpack.c.h.bf16 %v682_v49 }
 0x125   : > { %2542 = vmatprep.subr.mxu0 %v1177_v59  ;;  %2702 = vmatpush2.msra.mxu1 %v1308_v60  ;;  %v1401_v59 = vunpack.c.h.bf16 %v616_v50  ;;  %v1532_v60 = vunpack.c.l.bf16 %v682_v49  ;;  %v666_v49 = vld [vmem:[%s6212_s24 + $0xa10] sm:$0xff]  ;;  %v600_v50 = vld [vmem:[%s6212_s24 + $0x800] sm:$0xff] }
 0x126   : > { %2543 = vmatpush2.msra.mxu0 %v1176_v61  ;;  %2544 = vmatprep.mubr.f32.mxu0 %v1885_v0  ;;  %v614_v61 = vld [vmem:[%s6212_s24 + $0x870] sm:$0xff]  ;;  %v1529_v0 = vunpack.c.h.bf16 %v680_v56  ;;  %v664_v56 = vld [vmem:[%s6212_s24 + $0xa00] sm:$0xff] }
 0x127   : > { %2703 = vmatprep.subr.mxu1 %v1305_v63  ;;  %2545 = vmatmul.mubr.f32.vlgmr.msra.gmra.mxu0 %v1884_v4  ;;  %v1949_v63 = vld [vmem:[#allocation2 + $0x228] sm:$0xff]  ;;  %v1948_v4 = vld [vmem:[#allocation2 + $0x220] sm:$0xff] }
 0x128   : > { %2704 = vmatpush2.msra.mxu1 %v1304_v1  ;;  %2705 = vmatprep.mubr.f32.mxu1 %v1887_v6  ;;  %v678_v1 = vld [vmem:[%s6212_s24 + $0xa70] sm:$0xff]  ;;  %v1397_v6 = vunpack.c.h.bf16 %v614_v61 }
 0x129   : > { %2802 = vmatprep.subr.mxu0 %v1429_v5  ;;  %2706 = vmatmul.mubr.f32.vlgmr.msra.gmra.mxu1 %v1886_v9  ;;  %v1951_v5 = vld [vmem:[#allocation2 + $0x238] sm:$0xff]  ;;  %v1950_v9 = vld [vmem:[#allocation2 + $0x230] sm:$0xff] }
 0x12a   : > { %2803 = vmatpush1.msra.mxu0 %v1428_v7  ;;  %2963 = vmatprep.subr.mxu1 %v1557_v10  ;;  %v1396_v7 = vunpack.c.l.bf16 %v614_v61  ;;  %v1525_v10 = vunpack.c.h.bf16 %v678_v1  ;;  %v662_v61 = vld [vmem:[%s6212_s24 + $0x9f0] sm:$0xff] }
 0x12b   : > { %2804 = vmatprep.subr.mxu0 %v1425_v11  ;;  %2964 = vmatpush1.msra.mxu1 %v1556_v12  ;;  %v1393_v11 = vunpack.c.h.bf16 %v612_v2  ;;  %v1524_v12 = vunpack.c.l.bf16 %v678_v1  ;;  %v726_v1 = vld [vmem:[%s6212_s24 + $0xbf0] sm:$0xff] }
 0x12c   : > { %2550 = vmatprep.mubr.f32.mxu0 %v1901_v15  ;;  %2805 = vmatpush1.msra.mxu0 %v1424_v14  ;;  %v1392_v14 = vunpack.c.l.bf16 %v612_v2  ;;  %v1965_v15 = vld [vmem:[#allocation2 + $0x2a8] sm:$0xff]  ;;  %v660_v2 = vld [vmem:[%s6212_s24 + $0x9e0] sm:$0xff] }
 0x12d   : > { %2965 = vmatprep.subr.mxu1 %v1553_v16  ;;  %2551 = vmatmul.mubr.f32.gmra.mxu0 %v1900_v20  ;;  %v1521_v16 = vunpack.c.h.bf16 %v676_v8  ;;  %v1964_v20 = vld [vmem:[#allocation2 + $0x2a0] sm:$0xff] }
 0x12e   : > { %2711 = vmatprep.mubr.f32.mxu1 %v1903_v21  ;;  %2806 = vmatprep.subr.mxu0 %v1421_v22  ;;  %v1967_v21 = vld [vmem:[#allocation2 + $0x2b8] sm:$0xff]  ;;  %v1389_v22 = vunpack.c.h.bf16 %v610_v13 }
 0x12f   : > { %2966 = vmatpush1.msra.mxu1 %v1552_v19  ;;  %2807 = vmatpush1.msra.mxu0 %v1420_v23  ;;  %v1520_v19 = vunpack.c.l.bf16 %v676_v8  ;;  %v1388_v23 = vunpack.c.l.bf16 %v610_v13  ;;  %v724_v8 = vld [vmem:[%s6212_s24 + $0xbe0] sm:$0xff]  ;;  %v658_v13 = vld [vmem:[%s6212_s24 + $0x9d0] sm:$0xff] }
 0x130   : > { %2712 = vmatmul.mubr.f32.gmra.mxu1 %v1902_v25  ;;  %2967 = vmatprep.subr.mxu1 %v1549_v26  ;;  %v1966_v25 = vld [vmem:[#allocation2 + $0x2b0] sm:$0xff]  ;;  %v1517_v26 = vunpack.c.h.bf16 %v674_v17 }
 0x131   : > { %2808 = vmatprep.subr.mxu0 %v1417_v27  ;;  %2968 = vmatpush1.msra.mxu1 %v1548_v28  ;;  %v1385_v27 = vunpack.c.h.bf16 %v608_v18  ;;  %v1516_v28 = vunpack.c.l.bf16 %v674_v17  ;;  %v722_v17 = vld [vmem:[%s6212_s24 + $0xbd0] sm:$0xff] }
 0x132   : > { %2556 = vmatprep.mubr.f32.mxu0 %v1917_v31  ;;  %2809 = vmatpush1.msra.mxu0 %v1416_v30  ;;  %v1384_v30 = vunpack.c.l.bf16 %v608_v18  ;;  %v1981_v31 = vld [vmem:[#allocation2 + $0x328] sm:$0xff]  ;;  %v656_v18 = vld [vmem:[%s6212_s24 + $0x9c0] sm:$0xff] }
 0x133   : > { %2969 = vmatprep.subr.mxu1 %v1545_v32  ;;  %2557 = vmatmul.mubr.f32.gmra.mxu0 %v1916_v36  ;;  %v1513_v32 = vunpack.c.h.bf16 %v672_v24  ;;  %v1980_v36 = vld [vmem:[#allocation2 + $0x320] sm:$0xff] }
 0x134   : > { %2717 = vmatprep.mubr.f32.mxu1 %v1919_v37  ;;  %2810 = vmatprep.subr.mxu0 %v1413_v38  ;;  %v1983_v37 = vld [vmem:[#allocation2 + $0x338] sm:$0xff]  ;;  %v1381_v38 = vunpack.c.h.bf16 %v606_v29 }
 0x135   : > { %2970 = vmatpush1.msra.mxu1 %v1544_v35  ;;  %2811 = vmatpush1.msra.mxu0 %v1412_v39  ;;  %v1512_v35 = vunpack.c.l.bf16 %v672_v24  ;;  %v1380_v39 = vunpack.c.l.bf16 %v606_v29  ;;  %v720_v24 = vld [vmem:[%s6212_s24 + $0xbc0] sm:$0xff]  ;;  %v654_v29 = vld [vmem:[%s6212_s24 + $0x9b0] sm:$0xff] }
 0x136   : > { %2718 = vmatmul.mubr.f32.gmra.mxu1 %v1918_v41  ;;  %2971 = vmatprep.subr.mxu1 %v1541_v42  ;;  %v1982_v41 = vld [vmem:[#allocation2 + $0x330] sm:$0xff]  ;;  %v1509_v42 = vunpack.c.h.bf16 %v670_v33 }
 0x137   : > { %2812 = vmatprep.subr.mxu0 %v1409_v43  ;;  %2972 = vmatpush1.msra.mxu1 %v1540_v44  ;;  %v1377_v43 = vunpack.c.h.bf16 %v604_v34  ;;  %v1508_v44 = vunpack.c.l.bf16 %v670_v33  ;;  %v718_v33 = vld [vmem:[%s6212_s24 + $0xbb0] sm:$0xff] }
 0x138   : > { %2562 = vmatprep.mubr.f32.mxu0 %v1933_v47  ;;  %2813 = vmatpush1.msra.mxu0 %v1408_v46  ;;  %v1376_v46 = vunpack.c.l.bf16 %v604_v34  ;;  %v1997_v47 = vld [vmem:[#allocation2 + $0x3a8] sm:$0xff]  ;;  %v652_v34 = vld [vmem:[%s6212_s24 + $0x9a0] sm:$0xff] }
 0x139   : > { %2973 = vmatprep.subr.mxu1 %v1537_v48  ;;  %2563 = vmatmul.mubr.f32.gmra.mxu0 %v1932_v52  ;;  %v1505_v48 = vunpack.c.h.bf16 %v668_v40  ;;  %v1996_v52 = vld [vmem:[#allocation2 + $0x3a0] sm:$0xff] }
 0x13a   : > { %2723 = vmatprep.mubr.f32.mxu1 %v1935_v53  ;;  %2814 = vmatprep.subr.mxu0 %v1405_v54  ;;  %v1999_v53 = vld [vmem:[#allocation2 + $0x3b8] sm:$0xff]  ;;  %v1373_v54 = vunpack.c.h.bf16 %v602_v45 }
 0x13b   : > { %2974 = vmatpush1.msra.mxu1 %v1536_v51  ;;  %2815 = vmatpush1.msra.mxu0 %v1404_v55  ;;  %v1504_v51 = vunpack.c.l.bf16 %v668_v40  ;;  %v1372_v55 = vunpack.c.l.bf16 %v602_v45  ;;  %v716_v40 = vld [vmem:[%s6212_s24 + $0xba0] sm:$0xff]  ;;  %v650_v45 = vld [vmem:[%s6212_s24 + $0x990] sm:$0xff] }
 0x13c   : > { %2724 = vmatmul.mubr.f32.gmra.mxu1 %v1934_v57  ;;  %2975 = vmatprep.subr.mxu1 %v1533_v58  ;;  %v1998_v57 = vld [vmem:[#allocation2 + $0x3b0] sm:$0xff]  ;;  %v1501_v58 = vunpack.c.h.bf16 %v666_v49 }
 0x13d   : > { %2816 = vmatprep.subr.mxu0 %v1401_v59  ;;  %2976 = vmatpush1.msra.mxu1 %v1532_v60  ;;  %v1369_v59 = vunpack.c.h.bf16 %v600_v50  ;;  %v1500_v60 = vunpack.c.l.bf16 %v666_v49  ;;  %v714_v49 = vld [vmem:[%s6212_s24 + $0xb90] sm:$0xff] }
 0x13e   : > { %2568 = vmatprep.mubr.f32.mxu0 %v1949_v63  ;;  %2817 = vmatpush1.msra.mxu0 %v1400_v62  ;;  %v1368_v62 = vunpack.c.l.bf16 %v600_v50  ;;  %v2013_v63 = vld [vmem:[#allocation2 + $0x428] sm:$0xff]  ;;  %v648_v50 = vld [vmem:[%s6212_s24 + $0x980] sm:$0xff] }
 0x13f   : > { %2977 = vmatprep.subr.mxu1 %v1529_v0  ;;  %2569 = vmatmul.mubr.f32.gmra.mxu0 %v1948_v4  ;;  %v1497_v0 = vunpack.c.h.bf16 %v664_v56  ;;  %v2012_v4 = vld [vmem:[#allocation2 + $0x420] sm:$0xff] }
 0x140   : > { %2729 = vmatprep.mubr.f32.mxu1 %v1951_v5  ;;  %2818 = vmatprep.subr.mxu0 %v1397_v6  ;;  %v2015_v5 = vld [vmem:[#allocation2 + $0x438] sm:$0xff]  ;;  %v1493_v6 = vunpack.c.h.bf16 %v662_v61 }
 0x141   : > { %2978 = vmatpush1.msra.mxu1 %v1528_v3  ;;  %2819 = vmatpush1.msra.mxu0 %v1396_v7  ;;  %v1496_v3 = vunpack.c.l.bf16 %v664_v56  ;;  %v1492_v7 = vunpack.c.l.bf16 %v662_v61  ;;  %v712_v56 = vld [vmem:[%s6212_s24 + $0xb80] sm:$0xff]  ;;  %v646_v61 = vld [vmem:[%s6212_s24 + $0x970] sm:$0xff] }
 0x142   : > { %2730 = vmatmul.mubr.f32.gmra.mxu1 %v1950_v9  ;;  %2979 = vmatprep.subr.mxu1 %v1525_v10  ;;  %v2014_v9 = vld [vmem:[#allocation2 + $0x430] sm:$0xff]  ;;  %v1621_v10 = vunpack.c.h.bf16 %v726_v1 }
 0x143   : > { %2820 = vmatprep.subr.mxu0 %v1393_v11  ;;  %2980 = vmatpush1.msra.mxu1 %v1524_v12  ;;  %v1489_v11 = vunpack.c.h.bf16 %v660_v2  ;;  %v1620_v12 = vunpack.c.l.bf16 %v726_v1  ;;  %v710_v1 = vld [vmem:[%s6212_s24 + $0xb70] sm:$0xff] }
 0x144   : > { %2574 = vmatprep.mubr.f32.mxu0 %v1965_v15  ;;  %2821 = vmatpush1.msra.mxu0 %v1392_v14  ;;  %v1488_v14 = vunpack.c.l.bf16 %v660_v2  ;;  %v2029_v15 = vld [vmem:[#allocation2 + $0x4a8] sm:$0xff]  ;;  %v644_v2 = vld [vmem:[%s6212_s24 + $0x960] sm:$0xff] }
 0x145   : > { %2981 = vmatprep.subr.mxu1 %v1521_v16  ;;  %2575 = vmatmul.mubr.f32.gmra.mxu0 %v1964_v20  ;;  %v1617_v16 = vunpack.c.h.bf16 %v724_v8  ;;  %v2028_v20 = vld [vmem:[#allocation2 + $0x4a0] sm:$0xff] }
 0x146   : > { %2735 = vmatprep.mubr.f32.mxu1 %v1967_v21  ;;  %2822 = vmatprep.subr.mxu0 %v1389_v22  ;;  %v2031_v21 = vld [vmem:[#allocation2 + $0x4b8] sm:$0xff]  ;;  %v1485_v22 = vunpack.c.h.bf16 %v658_v13 }
 0x147   : > { %2982 = vmatpush1.msra.mxu1 %v1520_v19  ;;  %2823 = vmatpush1.msra.mxu0 %v1388_v23  ;;  %v1616_v19 = vunpack.c.l.bf16 %v724_v8  ;;  %v1484_v23 = vunpack.c.l.bf16 %v658_v13  ;;  %v708_v8 = vld [vmem:[%s6212_s24 + $0xb60] sm:$0xff]  ;;  %v642_v13 = vld [vmem:[%s6212_s24 + $0x950] sm:$0xff] }
 0x148   : > { %2736 = vmatmul.mubr.f32.gmra.mxu1 %v1966_v25  ;;  %2983 = vmatprep.subr.mxu1 %v1517_v26  ;;  %v2030_v25 = vld [vmem:[#allocation2 + $0x4b0] sm:$0xff]  ;;  %v1613_v26 = vunpack.c.h.bf16 %v722_v17 }
 0x149   : > { %2824 = vmatprep.subr.mxu0 %v1385_v27  ;;  %2984 = vmatpush1.msra.mxu1 %v1516_v28  ;;  %v1481_v27 = vunpack.c.h.bf16 %v656_v18  ;;  %v1612_v28 = vunpack.c.l.bf16 %v722_v17  ;;  %v706_v17 = vld [vmem:[%s6212_s24 + $0xb50] sm:$0xff] }
 0x14a   : > { %2580 = vmatprep.mubr.f32.mxu0 %v1981_v31  ;;  %2825 = vmatpush1.msra.mxu0 %v1384_v30  ;;  %v1480_v30 = vunpack.c.l.bf16 %v656_v18  ;;  %v2045_v31 = vld [vmem:[#allocation2 + $0x528] sm:$0xff]  ;;  %v640_v18 = vld [vmem:[%s6212_s24 + $0x940] sm:$0xff] }
 0x14b   : > { %2985 = vmatprep.subr.mxu1 %v1513_v32  ;;  %2581 = vmatmul.mubr.f32.gmra.mxu0 %v1980_v36  ;;  %v1609_v32 = vunpack.c.h.bf16 %v720_v24  ;;  %v2044_v36 = vld [vmem:[#allocation2 + $0x520] sm:$0xff] }
 0x14c   : > { %2741 = vmatprep.mubr.f32.mxu1 %v1983_v37  ;;  %2826 = vmatprep.subr.mxu0 %v1381_v38  ;;  %v2047_v37 = vld [vmem:[#allocation2 + $0x538] sm:$0xff]  ;;  %v1477_v38 = vunpack.c.h.bf16 %v654_v29 }
 0x14d   : > { %2986 = vmatpush1.msra.mxu1 %v1512_v35  ;;  %2827 = vmatpush1.msra.mxu0 %v1380_v39  ;;  %v1608_v35 = vunpack.c.l.bf16 %v720_v24  ;;  %v1476_v39 = vunpack.c.l.bf16 %v654_v29  ;;  %v704_v24 = vld [vmem:[%s6212_s24 + $0xb40] sm:$0xff]  ;;  %v638_v29 = vld [vmem:[%s6212_s24 + $0x930] sm:$0xff] }
 0x14e   : > { %2742 = vmatmul.mubr.f32.gmra.mxu1 %v1982_v41  ;;  %2987 = vmatprep.subr.mxu1 %v1509_v42  ;;  %v2046_v41 = vld [vmem:[#allocation2 + $0x530] sm:$0xff]  ;;  %v1605_v42 = vunpack.c.h.bf16 %v718_v33 }
 0x14f   : > { %2828 = vmatprep.subr.mxu0 %v1377_v43  ;;  %2988 = vmatpush1.msra.mxu1 %v1508_v44  ;;  %v1473_v43 = vunpack.c.h.bf16 %v652_v34  ;;  %v1604_v44 = vunpack.c.l.bf16 %v718_v33  ;;  %v702_v33 = vld [vmem:[%s6212_s24 + $0xb30] sm:$0xff] }
 0x150   : > { %2586 = vmatprep.mubr.f32.mxu0 %v1997_v47  ;;  %2829 = vmatpush1.msra.mxu0 %v1376_v46  ;;  %v1472_v46 = vunpack.c.l.bf16 %v652_v34  ;;  %v2061_v47 = vld [vmem:[#allocation2 + $0x5a8] sm:$0xff]  ;;  %v636_v34 = vld [vmem:[%s6212_s24 + $0x920] sm:$0xff] }
 0x151   : > { %2989 = vmatprep.subr.mxu1 %v1505_v48  ;;  %2587 = vmatmul.mubr.f32.gmra.mxu0 %v1996_v52  ;;  %v1601_v48 = vunpack.c.h.bf16 %v716_v40  ;;  %v2060_v52 = vld [vmem:[#allocation2 + $0x5a0] sm:$0xff] }
 0x152   : > { %2747 = vmatprep.mubr.f32.mxu1 %v1999_v53  ;;  %2830 = vmatprep.subr.mxu0 %v1373_v54  ;;  %v2063_v53 = vld [vmem:[#allocation2 + $0x5b8] sm:$0xff]  ;;  %v1469_v54 = vunpack.c.h.bf16 %v650_v45 }
 0x153   : > { %2990 = vmatpush1.msra.mxu1 %v1504_v51  ;;  %2831 = vmatpush1.msra.mxu0 %v1372_v55  ;;  %v1600_v51 = vunpack.c.l.bf16 %v716_v40  ;;  %v1468_v55 = vunpack.c.l.bf16 %v650_v45  ;;  %v1444_v40 = vunpack.c.l.bf16 %v638_v29  ;;  %v1572_v45 = vunpack.c.l.bf16 %v702_v33 }
 0x154   : > { %2748 = vmatmul.mubr.f32.gmra.mxu1 %v1998_v57  ;;  %2991 = vmatprep.subr.mxu1 %v1501_v58  ;;  %v2062_v57 = vld [vmem:[#allocation2 + $0x5b0] sm:$0xff]  ;;  %v1597_v58 = vunpack.c.h.bf16 %v714_v49 }
 0x155   : > { %2832 = vmatprep.subr.mxu0 %v1369_v59  ;;  %2992 = vmatpush1.msra.mxu1 %v1500_v60  ;;  %v1465_v59 = vunpack.c.h.bf16 %v648_v50  ;;  %v1596_v60 = vunpack.c.l.bf16 %v714_v49 }
 0x156   : > { %2592 = vmatprep.mubr.f32.mxu0 %v2013_v63  ;;  %2833 = vmatpush1.msra.mxu0 %v1368_v62  ;;  %v1464_v62 = vunpack.c.l.bf16 %v648_v50  ;;  %v2077_v63 = vld [vmem:[#allocation2 + $0x628] sm:$0xff] }
 0x157   : > { %2993 = vmatprep.subr.mxu1 %v1497_v0  ;;  %2593 = vmatmul.mubr.f32.gmra.mxu0 %v2012_v4  ;;  %v1593_v0 = vunpack.c.h.bf16 %v712_v56  ;;  %v2076_v4 = vld [vmem:[#allocation2 + $0x620] sm:$0xff] }
 0x158   : > { %2753 = vmatprep.mubr.f32.mxu1 %v2015_v5  ;;  %2834 = vmatprep.subr.mxu0 %v1493_v6  ;;  %v2079_v5 = vld [vmem:[#allocation2 + $0x638] sm:$0xff]  ;;  %v1461_v6 = vunpack.c.h.bf16 %v646_v61 }
 0x159   : > { %2994 = vmatpush1.msra.mxu1 %v1496_v3  ;;  %2835 = vmatpush2.msra.mxu0 %v1492_v7  ;;  %v1592_v3 = vunpack.c.l.bf16 %v712_v56  ;;  %v1460_v7 = vunpack.c.l.bf16 %v646_v61 }
 0x15a   : > { %2754 = vmatmul.mubr.f32.gmra.mxu1 %v2014_v9  ;;  %2995 = vmatprep.subr.mxu1 %v1621_v10  ;;  %v2078_v9 = vld [vmem:[#allocation2 + $0x630] sm:$0xff]  ;;  %v1589_v10 = vunpack.c.h.bf16 %v710_v1 }
 0x15b   : > { %2836 = vmatprep.subr.mxu0 %v1489_v11  ;;  %2996 = vmatpush2.msra.mxu1 %v1620_v12  ;;  %v1457_v11 = vunpack.c.h.bf16 %v644_v2  ;;  %v1588_v12 = vunpack.c.l.bf16 %v710_v1  ;;  %v758_v1 = vld [vmem:[%s6212_s24 + $0xcf0] sm:$0xff] }
 0x15c   : > { %2598 = vmatprep.mubr.f32.mxu0 %v2029_v15  ;;  %2837 = vmatpush2.msra.mxu0 %v1488_v14  ;;  %v1456_v14 = vunpack.c.l.bf16 %v644_v2  ;;  %v2093_v15 = vld [vmem:[#allocation2 + $0x6a8] sm:$0xff]  ;;  %v2136_v2 = vld [vmem:[%s6219_s23] sm:$0xf] }
 0x15d   : > { %2997 = vmatprep.subr.mxu1 %v1617_v16  ;;  %2599 = vmatmul.mubr.f32.gmra.mxu0 %v2028_v20  ;;  %v1585_v16 = vunpack.c.h.bf16 %v708_v8  ;;  %v2092_v20 = vld [vmem:[#allocation2 + $0x6a0] sm:$0xff] }
 0x15e   : > { %2759 = vmatprep.mubr.f32.mxu1 %v2031_v21  ;;  %2838 = vmatprep.subr.mxu0 %v1485_v22  ;;  %v2095_v21 = vld [vmem:[#allocation2 + $0x6b8] sm:$0xff]  ;;  %v1453_v22 = vunpack.c.h.bf16 %v642_v13 }
 0x15f   : > { %2998 = vmatpush2.msra.mxu1 %v1616_v19  ;;  %2839 = vmatpush2.msra.mxu0 %v1484_v23  ;;  %v1584_v19 = vunpack.c.l.bf16 %v708_v8  ;;  %v1452_v23 = vunpack.c.l.bf16 %v642_v13  ;;  %v1888_v8 = vld [vmem:[#allocation2 + $0x40] sm:$0xff] }
 0x160   : > { %2760 = vmatmul.mubr.f32.gmra.mxu1 %v2030_v25  ;;  %2999 = vmatprep.subr.mxu1 %v1613_v26  ;;  %v2094_v25 = vld [vmem:[#allocation2 + $0x6b0] sm:$0xff]  ;;  %v1581_v26 = vunpack.c.h.bf16 %v706_v17  ;;  %v820_v13 = vld [vmem:[%s6212_s24 + $0xee0] sm:$0xff] }
 0x161   : > { %2840 = vmatprep.subr.mxu0 %v1481_v27  ;;  %3000 = vmatpush2.msra.mxu1 %v1612_v28  ;;  %v1449_v27 = vunpack.c.h.bf16 %v640_v18  ;;  %v1580_v28 = vunpack.c.l.bf16 %v706_v17 }
 0x162   : > { %2604 = vmatprep.mubr.f32.mxu0 %v2045_v31  ;;  %2841 = vmatpush2.msra.mxu0 %v1480_v30  ;;  %v1448_v30 = vunpack.c.l.bf16 %v640_v18  ;;  %v2109_v31 = vld [vmem:[#allocation2 + $0x728] sm:$0xff]  ;;  %v754_v18 = vld [vmem:[%s6212_s24 + $0xcd0] sm:$0xff] }
 0x163   : > { %3001 = vmatprep.subr.mxu1 %v1609_v32  ;;  %2605 = vmatmul.mubr.f32.gmra.mxu0 %v2044_v36  ;;  %v1577_v32 = vunpack.c.h.bf16 %v704_v24  ;;  %v2108_v36 = vld [vmem:[#allocation2 + $0x720] sm:$0xff] }
 0x164   : > { %2765 = vmatprep.mubr.f32.mxu1 %v2047_v37  ;;  %2842 = vmatprep.subr.mxu0 %v1477_v38  ;;  %v2111_v37 = vld [vmem:[#allocation2 + $0x738] sm:$0xff]  ;;  %v1445_v38 = vunpack.c.h.bf16 %v638_v29  ;;  %v1904_v29 = vld [vmem:[#allocation2 + $0xc0] sm:$0xff] }
 0x165   : > { %3002 = vmatpush2.msra.mxu1 %v1608_v35  ;;  %2843 = vmatpush2.msra.mxu0 %v1476_v39  ;;  %v1576_v35 = vunpack.c.l.bf16 %v704_v24  ;;  %v2138_v39 = vlaneseq  ;;  %v818_v24 = vld [vmem:[%s6212_s24 + $0xed0] sm:$0xff] }
 0x166   : > { %2766 = vmatmul.mubr.f32.gmra.mxu1 %v2046_v41  ;;  %3003 = vmatprep.subr.mxu1 %v1605_v42  ;;  %v700_v41 = vld [vmem:[%s6212_s24 + $0xb20] sm:$0xff]  ;;  %v2110_v42 = vld [vmem:[#allocation2 + $0x730] sm:$0xff] }
 0x167   : > { %2844 = vmatprep.subr.mxu0 %v1473_v43  ;;  %3004 = vmatpush2.msra.mxu1 %v1604_v44  ;;  %v1573_v43 = vunpack.c.h.bf16 %v702_v33  ;;  %v1441_v44 = vunpack.c.h.bf16 %v636_v34  ;;  %v1569_v49 = vunpack.c.h.bf16 %v700_v41  ;;  %v6417_v50 = vshrl.u32 %v2138_v39, 7 }
 0x168   : > { %2610 = vmatprep.mubr.f32.mxu0 %v2061_v47  ;;  %2845 = vmatpush2.msra.mxu0 %v1472_v46  ;;  %v634_v46 = vld [vmem:[%s6212_s24 + $0x910] sm:$0xff]  ;;  %v1440_v47 = vunpack.c.l.bf16 %v636_v34  ;;  %v1676_v33 = vunpack.c.l.bf16 %v754_v18  ;;  %v816_v34 = vld [vmem:[%s6212_s24 + $0xec0] sm:$0xff]  ;;  %v1804_v39 = vunpack.c.l.bf16 %v818_v24 }
 0x169   : > { %3005 = vmatprep.subr.mxu1 %v1601_v48  ;;  %2611 = vmatmul.mubr.f32.gmra.mxu0 %v2060_v52  ;;  %v2125_v48 = vld [vmem:[#allocation2 + $0x7a8] sm:$0xff]  ;;  %v632_v52 = vld [vmem:[%s6212_s24 + $0x900] sm:$0xff]  ;;  %v1437_v56 = vunpack.c.h.bf16 %v634_v46 }
 0x16a   : > { %2771 = vmatprep.mubr.f32.mxu1 %v2063_v53  ;;  %2846 = vmatprep.subr.mxu0 %v1469_v54  ;;  %v1568_v53 = vunpack.c.l.bf16 %v700_v41  ;;  %v2124_v54 = vld [vmem:[#allocation2 + $0x7a0] sm:$0xff]  ;;  %v1433_v61 = vunpack.c.h.bf16 %v632_v52 }
 0x16b   : > { %3006 = vmatpush2.msra.mxu1 %v1600_v51  ;;  %2847 = vmatpush2.msra.mxu0 %v1468_v55  ;;  %v698_v51 = vld [vmem:[%s6212_s24 + $0xb10] sm:$0xff]  ;;  %v2127_v55 = vld [vmem:[#allocation2 + $0x7b8] sm:$0xff] }
 0x16c   : > { %2772 = vmatmul.mubr.f32.gmra.mxu1 %v2062_v57  ;;  %3007 = vmatprep.subr.mxu1 %v1597_v58  ;;  %v1436_v57 = vunpack.c.l.bf16 %v634_v46  ;;  %v696_v58 = vld [vmem:[%s6212_s24 + $0xb00] sm:$0xff]  ;;  %v814_v46 = vld [vmem:[%s6212_s24 + $0xeb0] sm:$0xff] }
 0x16d   : > { %2848 = vmatprep.subr.mxu0 %v1465_v59  ;;  %3008 = vmatpush2.msra.mxu1 %v1596_v60  ;;  %v2126_v59 = vld [vmem:[#allocation2 + $0x7b0] sm:$0xff]  ;;  %v1565_v60 = vunpack.c.h.bf16 %v698_v51 }
 0x16e   : > { %2616 = vmatprep.mubr.f32.mxu0 %v2077_v63  ;;  %2849 = vmatpush2.msra.mxu0 %v1464_v62  ;;  %v8498_v62 = vsub.s32 0, %v6417_v50  ;;  %v1564_v63 = vunpack.c.l.bf16 %v698_v51  ;;  %v1800_v51 = vunpack.c.l.bf16 %v816_v34 }
 0x16f   : > { %3009 = vmatprep.subr.mxu1 %v1593_v0  ;;  %2617 = vmatmul.mubr.f32.gmra.mxu0 %v2076_v4  ;;  %v1432_v0 = vunpack.c.l.bf16 %v632_v52  ;;  %v1889_v4 = vld [vmem:[#allocation2 + $0x48] sm:$0xff]  ;;  %v1920_v52 = vld [vmem:[#allocation2 + $0x140] sm:$0xff] }
 0x170   : > { %2777 = vmatprep.mubr.f32.mxu1 %v2079_v5  ;;  %2850 = vmatprep.subr.mxu0 %v1461_v6  ;;  %v1560_v5 = vunpack.c.l.bf16 %v696_v58  ;;  %v822_v6 = vld [vmem:[%s6212_s24 + $0xef0] sm:$0xff] }
 0x171   : > { %3010 = vmatpush2.msra.mxu1 %v1592_v3  ;;  %2851 = vmatpush2.msra.mxu0 %v1460_v7  ;;  %v1561_v3 = vunpack.c.h.bf16 %v696_v58  ;;  %v756_v7 = vld [vmem:[%s6212_s24 + $0xce0] sm:$0xff]  ;;  %v1812_v17 = vunpack.c.l.bf16 %v822_v6 }
 0x172   : > { %2778 = vmatmul.mubr.f32.gmra.mxu1 %v2078_v9  ;;  %3011 = vmatprep.subr.mxu1 %v1589_v10  ;;  %v1685_v9 = vunpack.c.h.bf16 %v758_v1  ;;  %v6429_v10 = vrot.slane %v2136_v2, %v8498_v62 }
 0x173   : > { %2852 = vmatprep.subr.mxu0 %v1457_v11  ;;  %3012 = vmatpush2.msra.mxu1 %v1588_v12  ;;  %v1891_v11 = vld [vmem:[#allocation2 + $0x58] sm:$0xff]  ;;  %v1684_v12 = vunpack.c.l.bf16 %v758_v1 }
 0x174   : > { %2622 = vmatprep.mubr.f32.mxu0 %v2093_v15  ;;  %2853 = vmatpush2.msra.mxu0 %v1456_v14  ;;  %v1890_v14 = vld [vmem:[#allocation2 + $0x50] sm:$0xff]  ;;  %v1813_v15 = vunpack.c.h.bf16 %v822_v6 }
 0x175   : > { %3013 = vmatprep.subr.mxu1 %v1585_v16  ;;  %2623 = vmatmul.mubr.f32.gmra.mxu0 %v2092_v20  ;;  %v1681_v16 = vunpack.c.h.bf16 %v756_v7  ;;  %v1680_v20 = vunpack.c.l.bf16 %v756_v7  ;;  %v810_v6 = vld [vmem:[%s6212_s24 + $0xe90] sm:$0xff]  ;;  %v744_v7 = vld [vmem:[%s6212_s24 + $0xc80] sm:$0xff] }
 0x176   : > { %2783 = vmatprep.mubr.f32.mxu1 %v2095_v21  ;;  %2854 = vmatprep.subr.mxu0 %v1453_v22  ;;  %v1905_v21 = vld [vmem:[#allocation2 + $0xc8] sm:$0xff]  ;;  %v1809_v22 = vunpack.c.h.bf16 %v820_v13 }
 0x177   : > { %3014 = vmatpush2.msra.mxu1 %v1584_v19  ;;  %2855 = vmatpush2.msra.mxu0 %v1452_v23 }
 0x178   : > { %2784 = vmatmul.mubr.f32.gmra.mxu1 %v2094_v25  ;;  %3015 = vmatprep.subr.mxu1 %v1581_v26  ;;  %v752_v25 = vld [vmem:[%s6212_s24 + $0xcc0] sm:$0xff] }
 0x179   : > { %2856 = vmatprep.subr.mxu0 %v1449_v27  ;;  %3016 = vmatpush2.msra.mxu1 %v1580_v28  ;;  %v1808_v28 = vunpack.c.l.bf16 %v820_v13  ;;  %v1939_v13 = vld [vmem:[#allocation2 + $0x1d8] sm:$0xff] }
 0x17a   : > { %2628 = vmatprep.mubr.f32.mxu0 %v2109_v31  ;;  %2857 = vmatpush2.msra.mxu0 %v1448_v30  ;;  %v1907_v30 = vld [vmem:[#allocation2 + $0xd8] sm:$0xff]  ;;  %v1677_v31 = vunpack.c.h.bf16 %v754_v18 }
 0x17b   : > { %3017 = vmatprep.subr.mxu1 %v1577_v32  ;;  %2629 = vmatmul.mubr.f32.gmra.mxu0 %v2108_v36  ;;  %v1906_v36 = vld [vmem:[#allocation2 + $0xd0] sm:$0xff] }
 0x17c   : > { %2789 = vmatprep.mubr.f32.mxu1 %v2111_v37  ;;  %2858 = vmatprep.subr.mxu0 %v1445_v38  ;;  %v1805_v37 = vunpack.c.h.bf16 %v818_v24  ;;  %v1673_v38 = vunpack.c.h.bf16 %v752_v25 }
 0x17d   : > { %3018 = vmatpush2.msra.mxu1 %v1576_v35  ;;  %2859 = vmatpush2.msra.mxu0 %v1444_v40  ;;  %v750_v40 = vld [vmem:[%s6212_s24 + $0xcb0] sm:$0xff] }
 0x17e   : > { %2790 = vmatmul.mubr.f32.gmra.mxu1 %v2110_v42  ;;  %3019 = vmatprep.subr.mxu1 %v1573_v43  ;;  %v1672_v42 = vunpack.c.l.bf16 %v752_v25  ;;  %v1921_v43 = vld [vmem:[#allocation2 + $0x148] sm:$0xff]  ;;  %v1656_v25 = vunpack.c.l.bf16 %v744_v7 }
 0x17f   : > { %2860 = vmatprep.subr.mxu0 %v1441_v44  ;;  %3020 = vmatpush2.msra.mxu1 %v1572_v45  ;;  %v1801_v44 = vunpack.c.h.bf16 %v816_v34 }
 0x180   : > { %2634 = vmatprep.mubr.f32.mxu0 %v2125_v48  ;;  %2861 = vmatpush2.msra.mxu0 %v1440_v47  ;;  %v748_v47 = vld [vmem:[%s6212_s24 + $0xca0] sm:$0xff] }
 0x181   : > { %3021 = vmatprep.subr.mxu1 %v1569_v49  ;;  %2635 = vmatmul.mubr.f32.gmra.mxu0 %v2124_v54  ;;  %v1669_v54 = vunpack.c.h.bf16 %v750_v40  ;;  %v1664_v2 = vunpack.c.l.bf16 %v748_v47 }
 0x182   : > { %2795 = vmatprep.mubr.f32.mxu1 %v2127_v55  ;;  %2862 = vmatprep.subr.mxu0 %v1437_v56  ;;  %v1668_v56 = vunpack.c.l.bf16 %v750_v40 }
 0x183   : > { %3022 = vmatpush2.msra.mxu1 %v1568_v53  ;;  %2863 = vmatpush2.msra.mxu0 %v1436_v57  ;;  %v1923_v53 = vld [vmem:[#allocation2 + $0x158] sm:$0xff]  ;;  %v812_v57 = vld [vmem:[%s6212_s24 + $0xea0] sm:$0xff] }
 0x184   : > { %2796 = vmatmul.mubr.f32.gmra.mxu1 %v2126_v59  ;;  %3023 = vmatprep.subr.mxu1 %v1565_v60  ;;  %v1922_v59 = vld [vmem:[#allocation2 + $0x150] sm:$0xff]  ;;  %v1797_v60 = vunpack.c.h.bf16 %v814_v46 }
 0x185   : > { %2864 = vmatprep.subr.mxu0 %v1433_v61  ;;  %3024 = vmatpush2.msra.mxu1 %v1564_v63  ;;  %v1665_v61 = vunpack.c.h.bf16 %v748_v47  ;;  %v1796_v63 = vunpack.c.l.bf16 %v814_v46 }
 0x186   : > { %2865 = vmatpush2.msra.mxu0 %v1432_v0  ;;  %2866 = vmatprep.mubr.f32.mxu0 %v1889_v4  ;;  %v746_v0 = vld [vmem:[%s6212_s24 + $0xc90] sm:$0xff]  ;;  %v1793_v4 = vunpack.c.h.bf16 %v812_v57 }
 0x187   : > { %3025 = vmatprep.subr.mxu1 %v1561_v3  ;;  %2867 = vmatmul.mubr.f32.vlgmr.msra.gmra.mxu0 %v1888_v8  ;;  %v2224_v19 = vpop.f32.mrf.mxu0  ;;  %v1937_v3 = vld [vmem:[#allocation2 + $0x1c8] sm:$0xff] }
 0x188   : > { %3026 = vmatpush2.msra.mxu1 %v1560_v5  ;;  %3027 = vmatprep.mubr.f32.mxu1 %v1891_v11  ;;  %v2225_v23 = vadd.f32 %v2224_v19, %v6429_v10  ;;  %v1792_v11 = vunpack.c.l.bf16 %v812_v57  ;;  %v1938_v19 = vld [vmem:[#allocation2 + $0x1d0] sm:$0xff] }
 0x189   : > { %3124 = vmatprep.subr.mxu0 %v1685_v9  ;;  %3028 = vmatmul.mubr.f32.vlgmr.msra.gmra.mxu1 %v1890_v14  ;;  %v2385_v26 = vpop.f32.mrf.mxu1  ;;  %v6436_v27 = vpop.f32.mrf.mxu0  ;;  %v1661_v14 = vunpack.c.h.bf16 %v746_v0  ;;  %v802_v57 = vld [vmem:[%s6212_s24 + $0xe50] sm:$0xff] }
 0x18a   : > { %3125 = vmatpush1.msra.mxu0 %v1684_v12  ;;  %3285 = vmatprep.subr.mxu1 %v1813_v15  ;;  %v6438_v32 = vadd.f32 %v2385_v26, %v2225_v23  ;;  %v1936_v12 = vld [vmem:[#allocation2 + $0x1c0] sm:$0xff]  ;;  %v742_v23 = vld [vmem:[%s6212_s24 + $0xc70] sm:$0xff]  ;;  %v1953_v26 = vld [vmem:[#allocation2 + $0x248] sm:$0xff] }
 0x18b   : > { %3126 = vmatprep.subr.mxu0 %v1681_v16  ;;  %3286 = vmatpush1.msra.mxu1 %v1812_v17  ;;  %v6441_v35 = vpop.f32.mrf.mxu1  ;;  %v1660_v16 = vunpack.c.l.bf16 %v746_v0  ;;  %v808_v17 = vld [vmem:[%s6212_s24 + $0xe80] sm:$0xff] }
 0x18c   : > { %2872 = vmatprep.mubr.f32.mxu0 %v1905_v21  ;;  %3127 = vmatpush1.msra.mxu0 %v1680_v20  ;;  %v1789_v20 = vunpack.c.h.bf16 %v810_v6  ;;  %v1657_v21 = vunpack.c.h.bf16 %v744_v7  ;;  %v1968_v0 = vld [vmem:[#allocation2 + $0x2c0] sm:$0xff]  ;;  %v1970_v7 = vld [vmem:[#allocation2 + $0x2d0] sm:$0xff] }
 0x18d   : > { %3287 = vmatprep.subr.mxu1 %v1809_v22  ;;  %2873 = vmatmul.mubr.f32.gmra.mxu0 %v1904_v29  ;;  %v2230_v41 = vpop.f32.mrf.mxu0  ;;  %v1788_v22 = vunpack.c.l.bf16 %v810_v6 }
 0x18e   : > { %3033 = vmatprep.mubr.f32.mxu1 %v1907_v30  ;;  %3128 = vmatprep.subr.mxu0 %v1677_v31  ;;  %v2231_v45 = vadd.f32 %v2230_v41, %v6429_v10  ;;  %v806_v30 = vld [vmem:[%s6212_s24 + $0xe70] sm:$0xff]  ;;  %v740_v31 = vld [vmem:[%s6212_s24 + $0xc60] sm:$0xff]  ;;  %v1652_v41 = vunpack.c.l.bf16 %v742_v23 }
 0x18f   : > { %3288 = vmatpush1.msra.mxu1 %v1808_v28  ;;  %3129 = vmatpush1.msra.mxu0 %v1676_v33  ;;  %v6447_v49 = vpop.f32.mrf.mxu0  ;;  %v1785_v28 = vunpack.c.h.bf16 %v808_v17  ;;  %v1649_v46 = vunpack.c.h.bf16 %v740_v31  ;;  %v1780_v47 = vunpack.c.l.bf16 %v806_v30 }
 0x190   : > { %3034 = vmatmul.mubr.f32.gmra.mxu1 %v1906_v36  ;;  %v2391_v48 = vpop.f32.mrf.mxu1  ;;  %3289 = vmatprep.subr.mxu1 %v1805_v37  ;;  %v1784_v36 = vunpack.c.l.bf16 %v808_v17  ;;  %v1952_v37 = vld [vmem:[#allocation2 + $0x240] sm:$0xff]  ;;  %v1985_v17 = vld [vmem:[#allocation2 + $0x348] sm:$0xff] }
 0x191   : > { %3130 = vmatprep.subr.mxu0 %v1673_v38  ;;  %v6449_v55 = vadd.f32 %v2391_v48, %v2231_v45  ;;  %3290 = vmatpush1.msra.mxu1 %v1804_v39  ;;  %v1955_v38 = vld [vmem:[#allocation2 + $0x258] sm:$0xff]  ;;  %v1653_v39 = vunpack.c.h.bf16 %v742_v23  ;;  %v1781_v45 = vunpack.c.h.bf16 %v806_v30  ;;  %v738_v48 = vld [vmem:[%s6212_s24 + $0xc50] sm:$0xff] }
 0x192   : > { %2878 = vmatprep.mubr.f32.mxu0 %v1921_v43  ;;  %v6452_v58 = vpop.f32.mrf.mxu1  ;;  %3131 = vmatpush1.msra.mxu0 %v1672_v42  ;;  %v804_v42 = vld [vmem:[%s6212_s24 + $0xe60] sm:$0xff] }
 0x193   : > { %3291 = vmatprep.subr.mxu1 %v1801_v44  ;;  %2879 = vmatmul.mubr.f32.gmra.mxu0 %v1920_v52  ;;  %v2236_v1 = vpop.f32.mrf.mxu0  ;;  %v1954_v44 = vld [vmem:[#allocation2 + $0x250] sm:$0xff]  ;;  %v1648_v52 = vunpack.c.l.bf16 %v740_v31 }
 0x194   : > { %3039 = vmatprep.mubr.f32.mxu1 %v1923_v53  ;;  %3132 = vmatprep.subr.mxu0 %v1669_v54  ;;  %v2237_v5 = vadd.f32 %v2236_v1, %v6429_v10  ;;  %v1969_v53 = vld [vmem:[#allocation2 + $0x2c8] sm:$0xff]  ;;  %v1777_v54 = vunpack.c.h.bf16 %v804_v42  ;;  %v1971_v1 = vld [vmem:[#allocation2 + $0x2d8] sm:$0xff] }
 0x195   : > { %3292 = vmatpush1.msra.mxu1 %v1800_v51  ;;  %3133 = vmatpush1.msra.mxu0 %v1668_v56  ;;  %v6458_v9 = vpop.f32.mrf.mxu0 }
 0x196   : > { %3040 = vmatmul.mubr.f32.gmra.mxu1 %v1922_v59  ;;  %v2397_v8 = vpop.f32.mrf.mxu1  ;;  %3293 = vmatprep.subr.mxu1 %v1797_v60  ;;  %v736_v59 = vld [vmem:[%s6212_s24 + $0xc40] sm:$0xff] }
 0x197   : > { %3134 = vmatprep.subr.mxu0 %v1665_v61  ;;  %v6460_v15 = vadd.f32 %v2397_v8, %v2237_v5  ;;  %3294 = vmatpush1.msra.mxu1 %v1796_v63  ;;  %v1776_v63 = vunpack.c.l.bf16 %v804_v42  ;;  %v800_v5 = vld [vmem:[%s6212_s24 + $0xe40] sm:$0xff]  ;;  %v1773_v8 = vunpack.c.h.bf16 %v802_v57  ;;  %v730_v42 = vld [vmem:[%s6212_s24 + $0xc10] sm:$0xff] }
 0x198   : > { %2884 = vmatprep.mubr.f32.mxu0 %v1937_v3  ;;  %v6463_v18 = vpop.f32.mrf.mxu1  ;;  %3135 = vmatpush1.msra.mxu0 %v1664_v2  ;;  %v1645_v2 = vunpack.c.h.bf16 %v738_v48 }
 0x199   : > { %3295 = vmatprep.subr.mxu1 %v1793_v4  ;;  %2885 = vmatmul.mubr.f32.gmra.mxu0 %v1936_v12  ;;  %v2242_v24 = vpop.f32.mrf.mxu0  ;;  %v1644_v4 = vunpack.c.l.bf16 %v738_v48  ;;  %v1772_v12 = vunpack.c.l.bf16 %v802_v57  ;;  %v2000_v57 = vld [vmem:[#allocation2 + $0x3c0] sm:$0xff] }
 0x19a   : > { %3045 = vmatprep.mubr.f32.mxu1 %v1939_v13  ;;  %3136 = vmatprep.subr.mxu0 %v1661_v14  ;;  %v2243_v29 = vadd.f32 %v2242_v24, %v6429_v10  ;;  %v734_v13 = vld [vmem:[%s6212_s24 + $0xc30] sm:$0xff] }
 0x19b   : > { %3296 = vmatpush1.msra.mxu1 %v1792_v11  ;;  %3137 = vmatpush1.msra.mxu0 %v1660_v16  ;;  %v6469_v34 = vpop.f32.mrf.mxu0  ;;  %v1641_v11 = vunpack.c.h.bf16 %v736_v59  ;;  %v1640_v16 = vunpack.c.l.bf16 %v736_v59  ;;  %v1636_v31 = vunpack.c.l.bf16 %v734_v13  ;;  %v2003_v59 = vld [vmem:[#allocation2 + $0x3d8] sm:$0xff] }
 0x19c   : > { %3046 = vmatmul.mubr.f32.gmra.mxu1 %v1938_v19  ;;  %v2403_v33 = vpop.f32.mrf.mxu1  ;;  %3297 = vmatprep.subr.mxu1 %v1789_v20  ;;  %v1769_v19 = vunpack.c.h.bf16 %v800_v5 }
 0x19d   : > { %3138 = vmatprep.subr.mxu0 %v1657_v21  ;;  %v6471_v40 = vadd.f32 %v2403_v33, %v2243_v29  ;;  %3298 = vmatpush1.msra.mxu1 %v1788_v22  ;;  %v798_v21 = vld [vmem:[%s6212_s24 + $0xe30] sm:$0xff]  ;;  %v732_v22 = vld [vmem:[%s6212_s24 + $0xc20] sm:$0xff]  ;;  %v1637_v29 = vunpack.c.h.bf16 %v734_v13 }
 0x19e   : > { %2890 = vmatprep.mubr.f32.mxu0 %v1953_v26  ;;  %v6474_v43 = vpop.f32.mrf.mxu1  ;;  %3139 = vmatpush1.msra.mxu0 %v1656_v25  ;;  %v1768_v25 = vunpack.c.l.bf16 %v800_v5  ;;  %v1984_v26 = vld [vmem:[#allocation2 + $0x340] sm:$0xff] }
 0x19f   : > { %3299 = vmatprep.subr.mxu1 %v1785_v28  ;;  %2891 = vmatmul.mubr.f32.gmra.mxu0 %v1952_v37  ;;  %v2248_v51 = vpop.f32.mrf.mxu0  ;;  %v1987_v28 = vld [vmem:[#allocation2 + $0x358] sm:$0xff]  ;;  %v796_v33 = vld [vmem:[%s6212_s24 + $0xe20] sm:$0xff]  ;;  %v1986_v37 = vld [vmem:[#allocation2 + $0x350] sm:$0xff] }
 0x1a0   : > { %3051 = vmatprep.mubr.f32.mxu1 %v1955_v38  ;;  %3140 = vmatprep.subr.mxu0 %v1653_v39  ;;  %v2249_v56 = vadd.f32 %v2248_v51, %v6429_v10  ;;  %v1765_v38 = vunpack.c.h.bf16 %v798_v21  ;;  %v1633_v39 = vunpack.c.h.bf16 %v732_v22  ;;  %v794_v51 = vld [vmem:[%s6212_s24 + $0xe10] sm:$0xff] }
 0x1a1   : > { %3300 = vmatpush1.msra.mxu1 %v1784_v36  ;;  %3141 = vmatpush1.msra.mxu0 %v1652_v41  ;;  %v6480_v61 = vpop.f32.mrf.mxu0  ;;  %v1764_v41 = vunpack.c.l.bf16 %v798_v21  ;;  %v1757_v5 = vunpack.c.h.bf16 %v794_v51 }
 0x1a2   : > { %3052 = vmatmul.mubr.f32.gmra.mxu1 %v1954_v44  ;;  %v2409_v60 = vpop.f32.mrf.mxu1  ;;  %3301 = vmatprep.subr.mxu1 %v1781_v45  ;;  %v1632_v45 = vunpack.c.l.bf16 %v732_v22 }
 0x1a3   : > { %3142 = vmatprep.subr.mxu0 %v1649_v46  ;;  %v6482_v3 = vadd.f32 %v2409_v60, %v2249_v56  ;;  %3302 = vmatpush1.msra.mxu1 %v1780_v47  ;;  %v2001_v46 = vld [vmem:[#allocation2 + $0x3c8] sm:$0xff]  ;;  %v1761_v47 = vunpack.c.h.bf16 %v796_v33  ;;  %v1760_v56 = vunpack.c.l.bf16 %v796_v33  ;;  %v1629_v60 = vunpack.c.h.bf16 %v730_v42  ;;  %v852_v33 = vld [vmem:[%s6212_s24 + $0xfe0] sm:$0xff] }
 0x1a4   : > { %2896 = vmatprep.mubr.f32.mxu0 %v1969_v53  ;;  %v6485_v6 = vpop.f32.mrf.mxu1  ;;  %3143 = vmatpush1.msra.mxu0 %v1648_v52  ;;  %v728_v52 = vld [vmem:[%s6212_s24 + $0xc00] sm:$0xff] }
 0x1a5   : > { %3303 = vmatprep.subr.mxu1 %v1777_v54  ;;  %2897 = vmatmul.mubr.f32.gmra.mxu0 %v1968_v0  ;;  %v2254_v14 = vpop.f32.mrf.mxu0  ;;  %v1628_v0 = vunpack.c.l.bf16 %v730_v42  ;;  %v1624_v13 = vunpack.c.l.bf16 %v728_v52 }
 0x1a6   : > { %3057 = vmatprep.mubr.f32.mxu1 %v1971_v1  ;;  %3144 = vmatprep.subr.mxu0 %v1645_v2  ;;  %v2255_v20 = vadd.f32 %v2254_v14, %v6429_v10  ;;  %v792_v1 = vld [vmem:[%s6212_s24 + $0xe00] sm:$0xff]  ;;  %v2017_v14 = vld [vmem:[#allocation2 + $0x448] sm:$0xff] }
 0x1a7   : > { %3304 = vmatpush1.msra.mxu1 %v1776_v63  ;;  %3145 = vmatpush1.msra.mxu0 %v1644_v4  ;;  %v6491_v24 = vpop.f32.mrf.mxu0  ;;  %v2002_v4 = vld [vmem:[#allocation2 + $0x3d0] sm:$0xff] }
 0x1a8   : > { %3058 = vmatmul.mubr.f32.gmra.mxu1 %v1970_v7  ;;  %v2415_v23 = vpop.f32.mrf.mxu1  ;;  %3305 = vmatprep.subr.mxu1 %v1773_v8  ;;  %v1625_v7 = vunpack.c.h.bf16 %v728_v52  ;;  %v1756_v8 = vunpack.c.l.bf16 %v794_v51  ;;  %v850_v52 = vld [vmem:[%s6212_s24 + $0xfd0] sm:$0xff] }
 0x1a9   : > { %3146 = vmatprep.subr.mxu0 %v1641_v11  ;;  %v6493_v30 = vadd.f32 %v2415_v23, %v2255_v20  ;;  %3306 = vmatpush1.msra.mxu1 %v1772_v12  ;;  %v790_v11 = vld [vmem:[%s6212_s24 + $0xdf0] sm:$0xff]  ;;  %v788_v20 = vld [vmem:[%s6212_s24 + $0xde0] sm:$0xff]  ;;  %v1752_v23 = vunpack.c.l.bf16 %v792_v1 }
 0x1aa   : > { %2902 = vmatprep.mubr.f32.mxu0 %v1985_v17  ;;  %v6496_v36 = vpop.f32.mrf.mxu1  ;;  %3147 = vmatpush1.msra.mxu0 %v1640_v16  ;;  %v1753_v16 = vunpack.c.h.bf16 %v792_v1 }
 0x1ab   : > { %3307 = vmatprep.subr.mxu1 %v1769_v19  ;;  %2903 = vmatmul.mubr.f32.gmra.mxu0 %v1984_v26  ;;  %v2260_v44 = vpop.f32.mrf.mxu0  ;;  %v854_v19 = vld [vmem:[%s6212_s24 + $0xff0] sm:$0xff]  ;;  %v2019_v26 = vld [vmem:[#allocation2 + $0x458] sm:$0xff] }
 0x1ac   : > { %3063 = vmatprep.mubr.f32.mxu1 %v1987_v28  ;;  %3148 = vmatprep.subr.mxu0 %v1637_v29  ;;  %v2261_v48 = vadd.f32 %v2260_v44, %v6429_v10  ;;  %v1749_v28 = vunpack.c.h.bf16 %v790_v11  ;;  %v1876_v42 = vunpack.c.l.bf16 %v854_v19  ;;  %v786_v44 = vld [vmem:[%s6212_s24 + $0xdd0] sm:$0xff] }
 0x1ad   : > { %3308 = vmatpush1.msra.mxu1 %v1768_v25  ;;  %3149 = vmatpush1.msra.mxu0 %v1636_v31  ;;  %v6502_v54 = vpop.f32.mrf.mxu0  ;;  %v2016_v25 = vld [vmem:[#allocation2 + $0x440] sm:$0xff]  ;;  %v1748_v31 = vunpack.c.l.bf16 %v790_v11  ;;  %v1741_v1 = vunpack.c.h.bf16 %v786_v44  ;;  %v2034_v11 = vld [vmem:[#allocation2 + $0x4d0] sm:$0xff] }
 0x1ae   : > { %3064 = vmatmul.mubr.f32.gmra.mxu1 %v1986_v37  ;;  %v2421_v53 = vpop.f32.mrf.mxu1  ;;  %3309 = vmatprep.subr.mxu1 %v1765_v38  ;;  %v2018_v38 = vld [vmem:[#allocation2 + $0x450] sm:$0xff] }
 0x1af   : > { %3150 = vmatprep.subr.mxu0 %v1633_v39  ;;  %v6504_v63 = vadd.f32 %v2421_v53, %v2261_v48  ;;  %3310 = vmatpush1.msra.mxu1 %v1764_v41  ;;  %v1877_v39 = vunpack.c.h.bf16 %v854_v19  ;;  %v1745_v41 = vunpack.c.h.bf16 %v788_v20  ;;  %v1873_v48 = vunpack.c.h.bf16 %v852_v33  ;;  %v784_v53 = vld [vmem:[%s6212_s24 + $0xdc0] sm:$0xff] }
 0x1b0   : > { %2908 = vmatprep.mubr.f32.mxu0 %v2001_v46  ;;  %v6507_v2 = vpop.f32.mrf.mxu1  ;;  %3151 = vmatpush1.msra.mxu0 %v1632_v45  ;;  %v1744_v46 = vunpack.c.l.bf16 %v788_v20  ;;  %v1736_v19 = vunpack.c.l.bf16 %v784_v53  ;;  %v2049_v20 = vld [vmem:[#allocation2 + $0x548] sm:$0xff] }
 0x1b1   : > { %3311 = vmatprep.subr.mxu1 %v1761_v47  ;;  %2909 = vmatmul.mubr.f32.gmra.mxu0 %v2000_v57  ;;  %v2266_v12 = vpop.f32.mrf.mxu0  ;;  %v2033_v47 = vld [vmem:[#allocation2 + $0x4c8] sm:$0xff] }
 0x1b2   : > { %3069 = vmatprep.mubr.f32.mxu1 %v2003_v59  ;;  %3152 = vmatprep.subr.mxu0 %v1629_v60  ;;  %v2267_v17 = vadd.f32 %v2266_v12, %v6429_v10  ;;  %v1872_v59 = vunpack.c.l.bf16 %v852_v33  ;;  %v2032_v60 = vld [vmem:[#allocation2 + $0x4c0] sm:$0xff]  ;;  %v1869_v12 = vunpack.c.h.bf16 %v850_v52 }
 0x1b3   : > { %3312 = vmatpush1.msra.mxu1 %v1760_v56  ;;  %3153 = vmatpush1.msra.mxu0 %v1628_v0  ;;  %v6513_v22 = vpop.f32.mrf.mxu0  ;;  %v2035_v0 = vld [vmem:[#allocation2 + $0x4d8] sm:$0xff] }
 0x1b4   : > { %3070 = vmatmul.mubr.f32.gmra.mxu1 %v2002_v4  ;;  %v2427_v21 = vpop.f32.mrf.mxu1  ;;  %3313 = vmatprep.subr.mxu1 %v1757_v5  ;;  %v1740_v5 = vunpack.c.l.bf16 %v786_v44 }
 0x1b5   : > { %3154 = vmatprep.subr.mxu0 %v1625_v7  ;;  %v6515_v29 = vadd.f32 %v2427_v21, %v2267_v17  ;;  %3314 = vmatpush1.msra.mxu1 %v1756_v8  ;;  %v848_v7 = vld [vmem:[%s6212_s24 + $0xfc0] sm:$0xff] }
 0x1b6   : > { %2914 = vmatprep.mubr.f32.mxu0 %v2017_v14  ;;  %v6518_v37 = vpop.f32.mrf.mxu1  ;;  %3155 = vmatpush1.msra.mxu0 %v1624_v13  ;;  %v1737_v13 = vunpack.c.h.bf16 %v784_v53  ;;  %v1868_v14 = vunpack.c.l.bf16 %v850_v52  ;;  %v1865_v21 = vunpack.c.h.bf16 %v848_v7  ;;  %v1864_v33 = vunpack.c.l.bf16 %v848_v7  ;;  %v778_v53 = vld [vmem:[%s6212_s24 + $0xd90] sm:$0xff]  ;;  %v776_v7 = vld [vmem:[%s6212_s24 + $0xd80] sm:$0xff] }
 0x1b7   : > { %3315 = vmatprep.subr.mxu1 %v1753_v16  ;;  %2915 = vmatmul.mubr.f32.gmra.mxu0 %v2016_v25  ;;  %v2272_v45 = vpop.f32.mrf.mxu0  ;;  %v782_v16 = vld [vmem:[%s6212_s24 + $0xdb0] sm:$0xff] }
 0x1b8   : > { %3075 = vmatprep.mubr.f32.mxu1 %v2019_v26  ;;  %3156 = vmatprep.subr.mxu0 %v1749_v28  ;;  %v2273_v51 = vadd.f32 %v2272_v45, %v6429_v10  ;;  %v846_v25 = vld [vmem:[%s6212_s24 + $0xfb0] sm:$0xff]  ;;  %v780_v26 = vld [vmem:[%s6212_s24 + $0xda0] sm:$0xff]  ;;  %v1732_v44 = vunpack.c.l.bf16 %v782_v16 }
 0x1b9   : > { %3316 = vmatpush1.msra.mxu1 %v1752_v23  ;;  %3157 = vmatpush2.msra.mxu0 %v1748_v31  ;;  %v6524_v57 = vpop.f32.mrf.mxu0  ;;  %v844_v45 = vld [vmem:[%s6212_s24 + $0xfa0] sm:$0xff]  ;;  %v1860_v52 = vunpack.c.l.bf16 %v846_v25 }
 0x1ba   : > { %3076 = vmatmul.mubr.f32.gmra.mxu1 %v2018_v38  ;;  %v2433_v56 = vpop.f32.mrf.mxu1  ;;  %3317 = vmatprep.subr.mxu1 %v1877_v39  ;;  %v2048_v38 = vld [vmem:[#allocation2 + $0x540] sm:$0xff]  ;;  %v2051_v39 = vld [vmem:[#allocation2 + $0x558] sm:$0xff] }
 0x1bb   : > { %3158 = vmatprep.subr.mxu0 %v1745_v41  ;;  %v6526_v4 = vadd.f32 %v2433_v56, %v2273_v51  ;;  %3318 = vmatpush2.msra.mxu1 %v1876_v42  ;;  %v1733_v41 = vunpack.c.h.bf16 %v782_v16  ;;  %v1729_v51 = vunpack.c.h.bf16 %v780_v26  ;;  %v2067_v16 = vld [vmem:[#allocation2 + $0x5d8] sm:$0xff] }
 0x1bc   : > { %2920 = vmatprep.mubr.f32.mxu0 %v2033_v47  ;;  %v6529_v8 = vpop.f32.mrf.mxu1  ;;  %3159 = vmatpush2.msra.mxu0 %v1744_v46  ;;  %v2050_v47 = vld [vmem:[#allocation2 + $0x550] sm:$0xff] }
 0x1bd   : > { %3319 = vmatprep.subr.mxu1 %v1873_v48  ;;  %2921 = vmatmul.mubr.f32.gmra.mxu0 %v2032_v60  ;;  %v2278_v17 = vpop.f32.mrf.mxu0  ;;  %v1861_v48 = vunpack.c.h.bf16 %v846_v25  ;;  %v2065_v60 = vld [vmem:[#allocation2 + $0x5c8] sm:$0xff]  ;;  %v2066_v25 = vld [vmem:[#allocation2 + $0x5d0] sm:$0xff] }
 0x1be   : > { %3081 = vmatprep.mubr.f32.mxu1 %v2035_v0  ;;  %3160 = vmatprep.subr.mxu0 %v1741_v1  ;;  %v2279_v23 = vadd.f32 %v2278_v17, %v6429_v10  ;;  %v1857_v0 = vunpack.c.h.bf16 %v844_v45  ;;  %v1725_v17 = vunpack.c.h.bf16 %v778_v53 }
 0x1bf   : > { %3320 = vmatpush2.msra.mxu1 %v1872_v59  ;;  %3161 = vmatpush2.msra.mxu0 %v1740_v5  ;;  %v6535_v31 = vpop.f32.mrf.mxu0  ;;  %v1728_v59 = vunpack.c.l.bf16 %v780_v26  ;;  %v842_v5 = vld [vmem:[%s6212_s24 + $0xf90] sm:$0xff] }
 0x1c0   : > { %3082 = vmatmul.mubr.f32.gmra.mxu1 %v2034_v11  ;;  %v2439_v28 = vpop.f32.mrf.mxu1  ;;  %3321 = vmatprep.subr.mxu1 %v1869_v12  ;;  %v1853_v26 = vunpack.c.h.bf16 %v842_v5 }
 0x1c1   : > { %3162 = vmatprep.subr.mxu0 %v1737_v13  ;;  %v6537_v42 = vadd.f32 %v2439_v28, %v2279_v23  ;;  %3322 = vmatpush2.msra.mxu1 %v1868_v14  ;;  %v1856_v13 = vunpack.c.l.bf16 %v844_v45  ;;  %v2064_v14 = vld [vmem:[#allocation2 + $0x5c0] sm:$0xff]  ;;  %v1721_v28 = vunpack.c.h.bf16 %v776_v7 }
 0x1c2   : > { %2926 = vmatprep.mubr.f32.mxu0 %v2049_v20  ;;  %v6540_v46 = vpop.f32.mrf.mxu1  ;;  %3163 = vmatpush2.msra.mxu0 %v1736_v19  ;;  %v1724_v20 = vunpack.c.l.bf16 %v778_v53 }
 0x1c3   : > { %3323 = vmatprep.subr.mxu1 %v1865_v21  ;;  %2927 = vmatmul.mubr.f32.gmra.mxu0 %v2048_v38  ;;  %v2284_v56 = vpop.f32.mrf.mxu0  ;;  %v840_v21 = vld [vmem:[%s6212_s24 + $0xf80] sm:$0xff]  ;;  %v774_v38 = vld [vmem:[%s6212_s24 + $0xd70] sm:$0xff] }
 0x1c4   : > { %3087 = vmatprep.mubr.f32.mxu1 %v2051_v39  ;;  %3164 = vmatprep.subr.mxu0 %v1733_v41  ;;  %v2285_v1 = vadd.f32 %v2284_v56, %v6429_v10  ;;  %v1720_v41 = vunpack.c.l.bf16 %v776_v7  ;;  %v1849_v45 = vunpack.c.h.bf16 %v840_v21  ;;  %v1848_v56 = vunpack.c.l.bf16 %v840_v21  ;;  %v836_v7 = vld [vmem:[%s6212_s24 + $0xf60] sm:$0xff] }
 0x1c5   : > { %3324 = vmatpush2.msra.mxu1 %v1864_v33  ;;  %3165 = vmatpush2.msra.mxu0 %v1732_v44  ;;  %v6546_v12 = vpop.f32.mrf.mxu0  ;;  %v1852_v33 = vunpack.c.l.bf16 %v842_v5  ;;  %v2081_v44 = vld [vmem:[#allocation2 + $0x648] sm:$0xff]  ;;  %v1716_v5 = vunpack.c.l.bf16 %v774_v38 }
 0x1c6   : > { %3088 = vmatmul.mubr.f32.gmra.mxu1 %v2050_v47  ;;  %v2445_v11 = vpop.f32.mrf.mxu1  ;;  %3325 = vmatprep.subr.mxu1 %v1861_v48  ;;  %v838_v48 = vld [vmem:[%s6212_s24 + $0xf70] sm:$0xff] }
 0x1c7   : > { %3166 = vmatprep.subr.mxu0 %v1729_v51  ;;  %v6548_v19 = vadd.f32 %v2445_v11, %v2285_v1  ;;  %3326 = vmatpush2.msra.mxu1 %v1860_v52  ;;  %v772_v51 = vld [vmem:[%s6212_s24 + $0xd60] sm:$0xff] }
 0x1c8   : > { %2932 = vmatprep.mubr.f32.mxu0 %v2065_v60  ;;  %v6551_v23 = vpop.f32.mrf.mxu1  ;;  %3167 = vmatpush2.msra.mxu0 %v1728_v59  ;;  %v2080_v59 = vld [vmem:[#allocation2 + $0x640] sm:$0xff]  ;;  %v2083_v60 = vld [vmem:[#allocation2 + $0x658] sm:$0xff] }
 0x1c9   : > { %8517 = vst [vmem:[#allocation14_spill] sm:$0xff] %v6551_v23  ;;  %3327 = vmatprep.subr.mxu1 %v1857_v0  ;;  %2933 = vmatmul.mubr.f32.gmra.mxu0 %v2064_v14  ;;  %v2290_v39 = vpop.f32.mrf.mxu0  ;;  %v1717_v0 = vunpack.c.h.bf16 %v774_v38  ;;  %v1845_v14 = vunpack.c.h.bf16 %v838_v48  ;;  %v834_v38 = vld [vmem:[%s6212_s24 + $0xf50] sm:$0xff] }
 0x1ca   : > { %3093 = vmatprep.mubr.f32.mxu1 %v2067_v16  ;;  %3168 = vmatprep.subr.mxu0 %v1725_v17  ;;  %v2291_v47 = vadd.f32 %v2290_v39, %v6429_v10  ;;  %v1713_v16 = vunpack.c.h.bf16 %v772_v51  ;;  %v1844_v17 = vunpack.c.l.bf16 %v838_v48  ;;  %v768_v39 = vld [vmem:[%s6212_s24 + $0xd40] sm:$0xff]  ;;  %v2099_v48 = vld [vmem:[#allocation2 + $0x6d8] sm:$0xff] }
 0x1cb   : > { %3328 = vmatpush2.msra.mxu1 %v1856_v13  ;;  %3169 = vmatpush2.msra.mxu0 %v1724_v20  ;;  %v6557_v53 = vpop.f32.mrf.mxu0  ;;  %v2082_v13 = vld [vmem:[#allocation2 + $0x650] sm:$0xff] }
 0x1cc   : > { %3094 = vmatmul.mubr.f32.gmra.mxu1 %v2066_v25  ;;  %v2451_v52 = vpop.f32.mrf.mxu1  ;;  %3329 = vmatprep.subr.mxu1 %v1853_v26  ;;  %v770_v20 = vld [vmem:[%s6212_s24 + $0xd50] sm:$0xff]  ;;  %v1712_v25 = vunpack.c.l.bf16 %v772_v51  ;;  %v2097_v26 = vld [vmem:[#allocation2 + $0x6c8] sm:$0xff] }
 0x1cd   : > { %3170 = vmatprep.subr.mxu0 %v1721_v28  ;;  %v6559_v1 = vadd.f32 %v2451_v52, %v2291_v47  ;;  %3330 = vmatpush2.msra.mxu1 %v1852_v33  ;;  %v1841_v28 = vunpack.c.h.bf16 %v836_v7  ;;  %v2096_v47 = vld [vmem:[#allocation2 + $0x6c0] sm:$0xff]  ;;  %v1709_v52 = vunpack.c.h.bf16 %v770_v20 }
 0x1ce   : > { %2938 = vmatprep.mubr.f32.mxu0 %v2081_v44  ;;  %v6562_v11 = vpop.f32.mrf.mxu1  ;;  %3171 = vmatpush2.msra.mxu0 %v1720_v41 }
 0x1cf   : > { %8518 = vst [vmem:[#allocation15_spill] sm:$0xff] %v6562_v11  ;;  %3331 = vmatprep.subr.mxu1 %v1849_v45  ;;  %2939 = vmatmul.mubr.f32.gmra.mxu0 %v2080_v59  ;;  %v2296_v21 = vpop.f32.mrf.mxu0  ;;  %v1840_v45 = vunpack.c.l.bf16 %v836_v7  ;;  %v832_v59 = vld [vmem:[%s6212_s24 + $0xf40] sm:$0xff]  ;;  %v1836_v7 = vunpack.c.l.bf16 %v834_v38 }
 0x1d0   : > { %3099 = vmatprep.mubr.f32.mxu1 %v2083_v60  ;;  %3172 = vmatprep.subr.mxu0 %v1717_v0  ;;  %v2297_v33 = vadd.f32 %v2296_v21, %v6429_v10  ;;  %v2098_v0 = vld [vmem:[#allocation2 + $0x6d0] sm:$0xff]  ;;  %v2113_v21 = vld [vmem:[#allocation2 + $0x748] sm:$0xff] }
 0x1d1   : > { %3332 = vmatpush2.msra.mxu1 %v1848_v56  ;;  %3173 = vmatpush2.msra.mxu0 %v1716_v5  ;;  %v6568_v44 = vpop.f32.mrf.mxu0  ;;  %v1708_v56 = vunpack.c.l.bf16 %v770_v20  ;;  %v1837_v5 = vunpack.c.h.bf16 %v834_v38  ;;  %v1833_v20 = vunpack.c.h.bf16 %v832_v59  ;;  %v1832_v38 = vunpack.c.l.bf16 %v832_v59 }
 0x1d2   : > { %3100 = vmatmul.mubr.f32.gmra.mxu1 %v2082_v13  ;;  %v2457_v41 = vpop.f32.mrf.mxu1  ;;  %3333 = vmatprep.subr.mxu1 %v1845_v14  ;;  %v1705_v13 = vunpack.c.h.bf16 %v768_v39  ;;  %v766_v14 = vld [vmem:[%s6212_s24 + $0xd30] sm:$0xff] }
 0x1d3   : > { %3174 = vmatprep.subr.mxu0 %v1713_v16  ;;  %v6570_v51 = vadd.f32 %v2457_v41, %v2297_v33  ;;  %3334 = vmatpush2.msra.mxu1 %v1844_v17  ;;  %v1704_v17 = vunpack.c.l.bf16 %v768_v39 }
 0x1d4   : > { %2944 = vmatprep.mubr.f32.mxu0 %v2097_v26  ;;  %v6573_v60 = vpop.f32.mrf.mxu1  ;;  %3175 = vmatpush2.msra.mxu0 %v1712_v25  ;;  %v830_v25 = vld [vmem:[%s6212_s24 + $0xf30] sm:$0xff] }
 0x1d5   : > { %8519 = vst [vmem:[#allocation16_spill] sm:$0xff] %v6573_v60  ;;  %3335 = vmatprep.subr.mxu1 %v1841_v28  ;;  %2945 = vmatmul.mubr.f32.gmra.mxu0 %v2096_v47  ;;  %v2302_v16 = vpop.f32.mrf.mxu0  ;;  %v764_v28 = vld [vmem:[%s6212_s24 + $0xd20] sm:$0xff]  ;;  %v1829_v62 = vunpack.c.h.bf16 %v830_v25  ;;  %v1828_v59 = vunpack.c.l.bf16 %v830_v25 }
 0x1d6   : > { %3105 = vmatprep.mubr.f32.mxu1 %v2099_v48  ;;  %3176 = vmatprep.subr.mxu0 %v1709_v52  ;;  %v2303_v26 = vadd.f32 %v2302_v16, %v6429_v10  ;;  %v2112_v47 = vld [vmem:[#allocation2 + $0x740] sm:$0xff]  ;;  %v2115_v48 = vld [vmem:[#allocation2 + $0x758] sm:$0xff]  ;;  %v1700_v52 = vunpack.c.l.bf16 %v766_v14 }
 0x1d7   : > { %3336 = vmatpush2.msra.mxu1 %v1840_v45  ;;  %3177 = vmatpush2.msra.mxu0 %v1708_v56  ;;  %v6579_v41 = vpop.f32.mrf.mxu0  ;;  %v1701_v45 = vunpack.c.h.bf16 %v766_v14  ;;  %v2114_v56 = vld [vmem:[#allocation2 + $0x750] sm:$0xff] }
 0x1d8   : > { %3106 = vmatmul.mubr.f32.gmra.mxu1 %v2098_v0  ;;  %v2463_v33 = vpop.f32.mrf.mxu1  ;;  %3337 = vmatprep.subr.mxu1 %v1837_v5  ;;  %v828_v0 = vld [vmem:[%s6212_s24 + $0xf20] sm:$0xff]  ;;  %v1697_v5 = vunpack.c.h.bf16 %v764_v28 }
 0x1d9   : > { %3178 = vmatprep.subr.mxu0 %v1705_v13  ;;  %v6581_v39 = vadd.f32 %v2463_v33, %v2303_v26  ;;  %3338 = vmatpush2.msra.mxu1 %v1836_v7  ;;  %v762_v13 = vld [vmem:[%s6212_s24 + $0xd10] sm:$0xff]  ;;  %v1696_v7 = vunpack.c.l.bf16 %v764_v28  ;;  %v1825_v14 = vunpack.c.h.bf16 %v828_v0  ;;  %v1824_v25 = vunpack.c.l.bf16 %v828_v0 }
 0x1da   : > { %2950 = vmatprep.mubr.f32.mxu0 %v2113_v21  ;;  %v6584_v16 = vpop.f32.mrf.mxu1  ;;  %3179 = vmatpush2.msra.mxu0 %v1704_v17  ;;  %v2129_v21 = vld [vmem:[#allocation2 + $0x7c8] sm:$0xff]  ;;  %v826_v17 = vld [vmem:[%s6212_s24 + $0xf10] sm:$0xff] }
 0x1db   : > { %8520 = vst [vmem:[#allocation17_spill] sm:$0xff] %v6584_v16  ;;  %3339 = vmatprep.subr.mxu1 %v1833_v20  ;;  %2951 = vmatmul.mubr.f32.gmra.mxu0 %v2112_v47  ;;  %v2308_v60 = vpop.f32.mrf.mxu0  ;;  %v760_v20 = vld [vmem:[%s6212_s24 + $0xd00] sm:$0xff]  ;;  %v1821_v11 = vunpack.c.h.bf16 %v826_v17  ;;  %v1820_v0 = vunpack.c.l.bf16 %v826_v17 }
 0x1dc   : > { %3111 = vmatprep.mubr.f32.mxu1 %v2115_v48  ;;  %3180 = vmatprep.subr.mxu0 %v1701_v45  ;;  %v2309_v26 = vadd.f32 %v2308_v60, %v6429_v10  ;;  %v2128_v47 = vld [vmem:[#allocation2 + $0x7c0] sm:$0xff]  ;;  %v2131_v48 = vld [vmem:[#allocation2 + $0x7d8] sm:$0xff]  ;;  %v1693_v45 = vunpack.c.h.bf16 %v762_v13  ;;  %v1692_v60 = vunpack.c.l.bf16 %v762_v13 }
 0x1dd   : > { %3340 = vmatpush2.msra.mxu1 %v1832_v38  ;;  %3181 = vmatpush2.msra.mxu0 %v1700_v52  ;;  %v6590_v16 = vpop.f32.mrf.mxu0  ;;  %v824_v38 = vld [vmem:[%s6212_s24 + $0xf00] sm:$0xff]  ;;  %v2130_v52 = vld [vmem:[#allocation2 + $0x7d0] sm:$0xff] }
 0x1de   : > { %3112 = vmatmul.mubr.f32.gmra.mxu1 %v2114_v56  ;;  %v2469_v33 = vpop.f32.mrf.mxu1  ;;  %8521 = vst [vmem:[#allocation18_spill] sm:$0xff] %v6590_v16  ;;  %3341 = vmatprep.subr.mxu1 %v1829_v62  ;;  %v1689_v62 = vunpack.c.h.bf16 %v760_v20  ;;  %v375_v16 = vld [vmem:[%s6212_s24 + $0xf8] sm:$0xff]  ;;  %v1892_v17 = vld [vmem:[#allocation2 + $0x60] sm:$0xff] }
 0x1df   : > { %3182 = vmatprep.subr.mxu0 %v1697_v5  ;;  %v6592_v28 = vadd.f32 %v2469_v33, %v2309_v26  ;;  %3342 = vmatpush2.msra.mxu1 %v1828_v59  ;;  %v1688_v5 = vunpack.c.l.bf16 %v760_v20  ;;  %v1817_v59 = vunpack.c.h.bf16 %v824_v38  ;;  %v373_v33 = vld [vmem:[%s6212_s24 + $0xe8] sm:$0xff]  ;;  %v919_v20 = vunpack.c.h.bf16 %v375_v16 }
 0x1e0   : > { %2956 = vmatprep.mubr.f32.mxu0 %v2129_v21  ;;  %v6595_v56 = vpop.f32.mrf.mxu1  ;;  %3183 = vmatpush2.msra.mxu0 %v1696_v7  ;;  %v1893_v7 = vld [vmem:[#allocation2 + $0x68] sm:$0xff]  ;;  %v1816_v21 = vunpack.c.l.bf16 %v824_v38 }
 0x1e1   : > { %8522 = vst [vmem:[#allocation19_spill] sm:$0xff] %v6595_v56  ;;  %3343 = vmatprep.subr.mxu1 %v1825_v14  ;;  %2957 = vmatmul.mubr.f32.gmra.mxu0 %v2128_v47  ;;  %v2314_v26 = vpop.f32.mrf.mxu0  ;;  %v439_v14 = vld [vmem:[%s6212_s24 + $0x2f8] sm:$0xff] }
 0x1e2   : > { %3117 = vmatprep.mubr.f32.mxu1 %v2131_v48  ;;  %3184 = vmatprep.subr.mxu0 %v1693_v45  ;;  %v2315_v13 = vadd.f32 %v2314_v26, %v6429_v10  ;;  %v1895_v10 = vld [vmem:[#allocation2 + $0x78] sm:$0xff]  ;;  %v437_v48 = vld [vmem:[%s6212_s24 + $0x2e8] sm:$0xff]  ;;  %v1047_v38 = vunpack.c.h.bf16 %v439_v14 }
 0x1e3   : > { %3344 = vmatpush2.msra.mxu1 %v1824_v25  ;;  %3185 = vmatpush2.msra.mxu0 %v1692_v60  ;;  %v6601_v23 = vpop.f32.mrf.mxu0  ;;  %v918_v25 = vunpack.c.l.bf16 %v375_v16  ;;  %v1894_v60 = vld [vmem:[#allocation2 + $0x70] sm:$0xff]  ;;  %v1043_v16 = vunpack.c.h.bf16 %v437_v48 }
 0x1e4   : > { %3118 = vmatmul.mubr.f32.gmra.mxu1 %v2130_v52  ;;  %v2475_v56 = vpop.f32.mrf.mxu1  ;;  %3345 = vmatprep.subr.mxu1 %v1821_v11  ;;  %v915_v11 = vunpack.c.h.bf16 %v373_v33  ;;  %v1046_v52 = vunpack.c.l.bf16 %v439_v14  ;;  %v1908_v14 = vld [vmem:[#allocation2 + $0xe0] sm:$0xff] }
 0x1e5   : > { %3186 = vmatprep.subr.mxu0 %v1689_v62  ;;  %v6603_v47 = vadd.f32 %v2475_v56, %v2315_v13  ;;  %3346 = vmatpush2.msra.mxu1 %v1820_v0  ;;  %v371_v62 = vld [vmem:[%s6212_s24 + $0xd8] sm:$0xff]  ;;  %v914_v0 = vunpack.c.l.bf16 %v373_v33  ;;  %v369_v13 = vld [vmem:[%s6212_s24 + $0xc8] sm:$0xff] }
 0x1e6   : > { %3187 = vmatpush2.msra.mxu0 %v1688_v5  ;;  %v6606_v45 = vpop.f32.mrf.mxu1  ;;  %3188 = vmatprep.mubr.f32.mxu0 %v1893_v7  ;;  %v1909_v5 = vld [vmem:[#allocation2 + $0xe8] sm:$0xff] }
 0x1e7   : > { %8523 = vst [vmem:[#allocation20_spill] sm:$0xff] %v6606_v45  ;;  %3347 = vmatprep.subr.mxu1 %v1817_v59  ;;  %3189 = vmatmul.mubr.f32.vlgmr.msra.gmra.mxu0 %v1892_v17  ;;  %v2546_v56 = vpop.f32.mrf.mxu0  ;;  %v435_v59 = vld [vmem:[%s6212_s24 + $0x2d8] sm:$0xff] }
 0x1e8   : > { %3348 = vmatpush2.msra.mxu1 %v1816_v21  ;;  %3349 = vmatprep.mubr.f32.mxu1 %v1895_v10  ;;  %v2547_v26 = vadd.f32 %v2546_v56, %v6438_v32  ;;  %v1042_v21 = vunpack.c.l.bf16 %v437_v48  ;;  %v1911_v17 = vld [vmem:[#allocation2 + $0xf8] sm:$0xff]  ;;  %v910_v32 = vunpack.c.l.bf16 %v371_v62  ;;  %v433_v10 = vld [vmem:[%s6212_s24 + $0x2c8] sm:$0xff]  ;;  %v1039_v56 = vunpack.c.h.bf16 %v435_v59 }
 0x1e9   : > { %3446 = vmatprep.subr.mxu0 %v919_v20  ;;  %3350 = vmatmul.mubr.f32.vlgmr.msra.gmra.mxu1 %v1894_v60  ;;  %v2707_v7 = vpop.f32.mrf.mxu1  ;;  %v6612_v45 = vpop.f32.mrf.mxu0  ;;  %v911_v20 = vunpack.c.h.bf16 %v371_v62  ;;  %v1038_v48 = vunpack.c.l.bf16 %v435_v59  ;;  %v1035_v62 = vunpack.c.h.bf16 %v433_v10  ;;  %v1034_v59 = vunpack.c.l.bf16 %v433_v10 }
 0x1ea   : > { %3447 = vmatpush1.msra.mxu0 %v918_v25  ;;  %8524 = vst [vmem:[#allocation21_spill] sm:$0xff] %v6612_v45  ;;  %3607 = vmatprep.subr.mxu1 %v1047_v38  ;;  %v6614_v33 = vadd.f32 %v2707_v7, %v2547_v26  ;;  %v1910_v25 = vld [vmem:[#allocation2 + $0xf0] sm:$0xff]  ;;  %v907_v38 = vunpack.c.h.bf16 %v369_v13 }
 0x1eb   : > { %3448 = vmatprep.subr.mxu0 %v915_v11  ;;  %3608 = vmatpush1.msra.mxu1 %v1046_v52  ;;  %v6617_v60 = vpop.f32.mrf.mxu1  ;;  %v367_v11 = vld [vmem:[%s6212_s24 + $0xb8] sm:$0xff]  ;;  %v906_v52 = vunpack.c.l.bf16 %v369_v13 }
 0x1ec   : > { %8525 = vst [vmem:[#allocation22_spill] sm:$0xff] %v6614_v33  ;;  %3194 = vmatprep.mubr.f32.mxu0 %v1909_v5  ;;  %8526 = vst [vmem:[#allocation23_spill] sm:$0xff] %v6617_v60  ;;  %3449 = vmatpush1.msra.mxu0 %v914_v0  ;;  %v1925_v5 = vld [vmem:[#allocation2 + $0x168] sm:$0xff]  ;;  %v431_v0 = vld [vmem:[%s6212_s24 + $0x2b8] sm:$0xff] }
 0x1ed   : > { %3609 = vmatprep.subr.mxu1 %v1043_v16  ;;  %3195 = vmatmul.mubr.f32.gmra.mxu0 %v1908_v14  ;;  %v2552_v45 = vpop.f32.mrf.mxu0  ;;  %v365_v16 = vld [vmem:[%s6212_s24 + $0xa8] sm:$0xff]  ;;  %v1924_v14 = vld [vmem:[#allocation2 + $0x160] sm:$0xff]  ;;  %v1030_v10 = vunpack.c.l.bf16 %v431_v0 }
 0x1ee   : > { %3355 = vmatprep.mubr.f32.mxu1 %v1911_v17  ;;  %3450 = vmatprep.subr.mxu0 %v911_v20  ;;  %v2553_v26 = vadd.f32 %v2552_v45, %v6449_v55  ;;  %v1927_v17 = vld [vmem:[#allocation2 + $0x178] sm:$0xff]  ;;  %v902_v55 = vunpack.c.l.bf16 %v367_v11  ;;  %v429_v45 = vld [vmem:[%s6212_s24 + $0x2a8] sm:$0xff] }
 0x1ef   : > { %3610 = vmatpush1.msra.mxu1 %v1042_v21  ;;  %3451 = vmatpush1.msra.mxu0 %v910_v32  ;;  %v6623_v33 = vpop.f32.mrf.mxu0  ;;  %v903_v21 = vunpack.c.h.bf16 %v367_v11  ;;  %v1926_v32 = vld [vmem:[#allocation2 + $0x170] sm:$0xff]  ;;  %v1027_v11 = vunpack.c.h.bf16 %v429_v45 }
 0x1f0   : > { %3356 = vmatmul.mubr.f32.gmra.mxu1 %v1910_v25  ;;  %v2713_v7 = vpop.f32.mrf.mxu1  ;;  %3611 = vmatprep.subr.mxu1 %v1039_v56  ;;  %v1031_v25 = vunpack.c.h.bf16 %v431_v0  ;;  %v899_v56 = vunpack.c.h.bf16 %v365_v16  ;;  %v1026_v0 = vunpack.c.l.bf16 %v429_v45 }
 0x1f1   : > { %3452 = vmatprep.subr.mxu0 %v907_v38  ;;  %v6625_v13 = vadd.f32 %v2713_v7, %v2553_v26  ;;  %3612 = vmatpush1.msra.mxu1 %v1038_v48  ;;  %v363_v38 = vld [vmem:[%s6212_s24 + $0x98] sm:$0xff]  ;;  %v898_v48 = vunpack.c.l.bf16 %v365_v16 }
 0x1f2   : > { %3200 = vmatprep.mubr.f32.mxu0 %v1925_v5  ;;  %v6628_v20 = vpop.f32.mrf.mxu1  ;;  %3453 = vmatpush1.msra.mxu0 %v906_v52  ;;  %v1941_v5 = vld [vmem:[#allocation2 + $0x1e8] sm:$0xff]  ;;  %v427_v52 = vld [vmem:[%s6212_s24 + $0x298] sm:$0xff] }
 0x1f3   : > { %8527 = vst [vmem:[#allocation24_spill] sm:$0xff] %v6625_v13  ;;  %8528 = vst [vmem:[#allocation25_spill] sm:$0xff] %v6628_v20  ;;  %3613 = vmatprep.subr.mxu1 %v1035_v62  ;;  %3201 = vmatmul.mubr.f32.gmra.mxu0 %v1924_v14  ;;  %v2558_v60 = vpop.f32.mrf.mxu0  ;;  %v361_v62 = vld [vmem:[%s6212_s24 + $0x88] sm:$0xff]  ;;  %v1940_v14 = vld [vmem:[#allocation2 + $0x1e0] sm:$0xff]  ;;  %v1022_v45 = vunpack.c.l.bf16 %v427_v52 }
 0x1f4   : > { %3361 = vmatprep.mubr.f32.mxu1 %v1927_v17  ;;  %3454 = vmatprep.subr.mxu0 %v903_v21  ;;  %v2559_v26 = vadd.f32 %v2558_v60, %v6460_v15  ;;  %v1943_v17 = vld [vmem:[#allocation2 + $0x1f8] sm:$0xff]  ;;  %v894_v15 = vunpack.c.l.bf16 %v363_v38  ;;  %v425_v60 = vld [vmem:[%s6212_s24 + $0x288] sm:$0xff] }
 0x1f5   : > { %3614 = vmatpush1.msra.mxu1 %v1034_v59  ;;  %3455 = vmatpush1.msra.mxu0 %v902_v55  ;;  %v6634_v13 = vpop.f32.mrf.mxu0  ;;  %v895_v59 = vunpack.c.h.bf16 %v363_v38  ;;  %v1942_v55 = vld [vmem:[#allocation2 + $0x1f0] sm:$0xff]  ;;  %v1019_v38 = vunpack.c.h.bf16 %v425_v60 }
 0x1f6   : > { %3362 = vmatmul.mubr.f32.gmra.mxu1 %v1926_v32  ;;  %v2719_v7 = vpop.f32.mrf.mxu1  ;;  %3615 = vmatprep.subr.mxu1 %v1031_v25  ;;  %v1023_v32 = vunpack.c.h.bf16 %v427_v52  ;;  %v891_v25 = vunpack.c.h.bf16 %v361_v62  ;;  %v1018_v52 = vunpack.c.l.bf16 %v425_v60 }
 0x1f7   : > { %3456 = vmatprep.subr.mxu0 %v899_v56  ;;  %v6636_v16 = vadd.f32 %v2719_v7, %v2559_v26  ;;  %3616 = vmatpush1.msra.mxu1 %v1030_v10  ;;  %v359_v56 = vld [vmem:[%s6212_s24 + $0x78] sm:$0xff]  ;;  %v890_v10 = vunpack.c.l.bf16 %v361_v62 }
 0x1f8   : > { %3206 = vmatprep.mubr.f32.mxu0 %v1941_v5  ;;  %v6639_v21 = vpop.f32.mrf.mxu1  ;;  %3457 = vmatpush1.msra.mxu0 %v898_v48  ;;  %v1957_v5 = vld [vmem:[#allocation2 + $0x268] sm:$0xff]  ;;  %v423_v48 = vld [vmem:[%s6212_s24 + $0x278] sm:$0xff] }
 0x1f9   : > { %8529 = vst [vmem:[#allocation26_spill] sm:$0xff] %v6639_v21  ;;  %3617 = vmatprep.subr.mxu1 %v1027_v11  ;;  %3207 = vmatmul.mubr.f32.gmra.mxu0 %v1940_v14  ;;  %v2564_v20 = vpop.f32.mrf.mxu0  ;;  %v357_v11 = vld [vmem:[%s6212_s24 + $0x68] sm:$0xff]  ;;  %v1956_v14 = vld [vmem:[#allocation2 + $0x260] sm:$0xff]  ;;  %v1014_v60 = vunpack.c.l.bf16 %v423_v48 }
 0x1fa   : > { %3367 = vmatprep.mubr.f32.mxu1 %v1943_v17  ;;  %3458 = vmatprep.subr.mxu0 %v895_v59  ;;  %v2565_v26 = vadd.f32 %v2564_v20, %v6471_v40  ;;  %v1959_v17 = vld [vmem:[#allocation2 + $0x278] sm:$0xff]  ;;  %v886_v40 = vunpack.c.l.bf16 %v359_v56  ;;  %v421_v20 = vld [vmem:[%s6212_s24 + $0x268] sm:$0xff] }
 0x1fb   : > { %3618 = vmatpush1.msra.mxu1 %v1026_v0  ;;  %3459 = vmatpush1.msra.mxu0 %v894_v15  ;;  %v6645_v21 = vpop.f32.mrf.mxu0  ;;  %v887_v0 = vunpack.c.h.bf16 %v359_v56  ;;  %v1958_v15 = vld [vmem:[#allocation2 + $0x270] sm:$0xff]  ;;  %v1011_v56 = vunpack.c.h.bf16 %v421_v20 }
 0x1fc   : > { %3368 = vmatmul.mubr.f32.gmra.mxu1 %v1942_v55  ;;  %v2725_v7 = vpop.f32.mrf.mxu1  ;;  %8530 = vst [vmem:[#allocation27_spill] sm:$0xff] %v6645_v21  ;;  %3619 = vmatprep.subr.mxu1 %v1023_v32  ;;  %v1015_v55 = vunpack.c.h.bf16 %v423_v48  ;;  %v883_v32 = vunpack.c.h.bf16 %v357_v11  ;;  %v1010_v48 = vunpack.c.l.bf16 %v421_v20 }
 0x1fd   : > { %3460 = vmatprep.subr.mxu0 %v891_v25  ;;  %v6647_v62 = vadd.f32 %v2725_v7, %v2565_v26  ;;  %3620 = vmatpush1.msra.mxu1 %v1022_v45  ;;  %v355_v25 = vld [vmem:[%s6212_s24 + $0x58] sm:$0xff]  ;;  %v882_v45 = vunpack.c.l.bf16 %v357_v11 }
 0x1fe   : > { %3212 = vmatprep.mubr.f32.mxu0 %v1957_v5  ;;  %v6650_v59 = vpop.f32.mrf.mxu1  ;;  %3461 = vmatpush1.msra.mxu0 %v890_v10  ;;  %v1973_v5 = vld [vmem:[#allocation2 + $0x2e8] sm:$0xff]  ;;  %v419_v10 = vld [vmem:[%s6212_s24 + $0x258] sm:$0xff] }
 0x1ff   : > { %8531 = vst [vmem:[#allocation28_spill] sm:$0xff] %v6650_v59  ;;  %3621 = vmatprep.subr.mxu1 %v1019_v38  ;;  %3213 = vmatmul.mubr.f32.gmra.mxu0 %v1956_v14  ;;  %v2570_v21 = vpop.f32.mrf.mxu0  ;;  %v353_v38 = vld [vmem:[%s6212_s24 + $0x48] sm:$0xff]  ;;  %v1972_v14 = vld [vmem:[#allocation2 + $0x2e0] sm:$0xff]  ;;  %v1006_v20 = vunpack.c.l.bf16 %v419_v10 }
 0x200   : > { %3373 = vmatprep.mubr.f32.mxu1 %v1959_v17  ;;  %3462 = vmatprep.subr.mxu0 %v887_v0  ;;  %v2571_v26 = vadd.f32 %v2570_v21, %v6482_v3  ;;  %v1975_v17 = vld [vmem:[#allocation2 + $0x2f8] sm:$0xff]  ;;  %v878_v3 = vunpack.c.l.bf16 %v355_v25  ;;  %v417_v21 = vld [vmem:[%s6212_s24 + $0x248] sm:$0xff] }
 0x201   : > { %3622 = vmatpush1.msra.mxu1 %v1018_v52  ;;  %3463 = vmatpush1.msra.mxu0 %v886_v40  ;;  %v6656_v59 = vpop.f32.mrf.mxu0  ;;  %v879_v52 = vunpack.c.h.bf16 %v355_v25  ;;  %v1974_v40 = vld [vmem:[#allocation2 + $0x2f0] sm:$0xff]  ;;  %v1003_v25 = vunpack.c.h.bf16 %v417_v21 }
 0x202   : > { %3374 = vmatmul.mubr.f32.gmra.mxu1 %v1958_v15  ;;  %v2731_v7 = vpop.f32.mrf.mxu1  ;;  %8532 = vst [vmem:[#allocation29_spill] sm:$0xff] %v6656_v59  ;;  %3623 = vmatprep.subr.mxu1 %v1015_v55  ;;  %v1007_v15 = vunpack.c.h.bf16 %v419_v10  ;;  %v875_v55 = vunpack.c.h.bf16 %v353_v38  ;;  %v1002_v10 = vunpack.c.l.bf16 %v417_v21 }
 0x203   : > { %3464 = vmatprep.subr.mxu0 %v883_v32  ;;  %v6658_v11 = vadd.f32 %v2731_v7, %v2571_v26  ;;  %3624 = vmatpush1.msra.mxu1 %v1014_v60  ;;  %v351_v32 = vld [vmem:[%s6212_s24 + $0x38] sm:$0xff]  ;;  %v874_v60 = vunpack.c.l.bf16 %v353_v38 }
 0x204   : > { %3218 = vmatprep.mubr.f32.mxu0 %v1973_v5  ;;  %v6661_v0 = vpop.f32.mrf.mxu1  ;;  %3465 = vmatpush1.msra.mxu0 %v882_v45  ;;  %v1989_v5 = vld [vmem:[#allocation2 + $0x368] sm:$0xff]  ;;  %v415_v45 = vld [vmem:[%s6212_s24 + $0x238] sm:$0xff] }
 0x205   : > { %8533 = vst [vmem:[#allocation30_spill] sm:$0xff] %v6661_v0  ;;  %3625 = vmatprep.subr.mxu1 %v1011_v56  ;;  %3219 = vmatmul.mubr.f32.gmra.mxu0 %v1972_v14  ;;  %v2576_v59 = vpop.f32.mrf.mxu0  ;;  %v349_v56 = vld [vmem:[%s6212_s24 + $0x28] sm:$0xff]  ;;  %v1988_v14 = vld [vmem:[#allocation2 + $0x360] sm:$0xff]  ;;  %v998_v21 = vunpack.c.l.bf16 %v415_v45 }
 0x206   : > { %3379 = vmatprep.mubr.f32.mxu1 %v1975_v17  ;;  %3466 = vmatprep.subr.mxu0 %v879_v52  ;;  %v2577_v26 = vadd.f32 %v2576_v59, %v6493_v30  ;;  %v1991_v17 = vld [vmem:[#allocation2 + $0x378] sm:$0xff]  ;;  %v870_v30 = vunpack.c.l.bf16 %v351_v32  ;;  %v413_v59 = vld [vmem:[%s6212_s24 + $0x228] sm:$0xff] }
 0x207   : > { %3626 = vmatpush1.msra.mxu1 %v1010_v48  ;;  %3467 = vmatpush1.msra.mxu0 %v878_v3  ;;  %v6667_v0 = vpop.f32.mrf.mxu0  ;;  %v871_v48 = vunpack.c.h.bf16 %v351_v32  ;;  %v1990_v3 = vld [vmem:[#allocation2 + $0x370] sm:$0xff]  ;;  %v995_v32 = vunpack.c.h.bf16 %v413_v59 }
 0x208   : > { %3380 = vmatmul.mubr.f32.gmra.mxu1 %v1974_v40  ;;  %v2737_v7 = vpop.f32.mrf.mxu1  ;;  %8534 = vst [vmem:[#allocation31_spill] sm:$0xff] %v6667_v0  ;;  %3627 = vmatprep.subr.mxu1 %v1007_v15  ;;  %v999_v40 = vunpack.c.h.bf16 %v415_v45  ;;  %v867_v15 = vunpack.c.h.bf16 %v349_v56  ;;  %v994_v45 = vunpack.c.l.bf16 %v413_v59 }
 0x209   : > { %3468 = vmatprep.subr.mxu0 %v875_v55  ;;  %v6669_v38 = vadd.f32 %v2737_v7, %v2577_v26  ;;  %3628 = vmatpush1.msra.mxu1 %v1006_v20  ;;  %v347_v55 = vld [vmem:[%s6212_s24 + $0x18] sm:$0xff]  ;;  %v866_v20 = vunpack.c.l.bf16 %v349_v56 }
 0x20a   : > { %3224 = vmatprep.mubr.f32.mxu0 %v1989_v5  ;;  %v6672_v52 = vpop.f32.mrf.mxu1  ;;  %3469 = vmatpush1.msra.mxu0 %v874_v60  ;;  %v2005_v5 = vld [vmem:[#allocation2 + $0x3e8] sm:$0xff]  ;;  %v411_v60 = vld [vmem:[%s6212_s24 + $0x218] sm:$0xff] }
 0x20b   : > { %8535 = vst [vmem:[#allocation32_spill] sm:$0xff] %v6672_v52  ;;  %3629 = vmatprep.subr.mxu1 %v1003_v25  ;;  %3225 = vmatmul.mubr.f32.gmra.mxu0 %v1988_v14  ;;  %v2582_v0 = vpop.f32.mrf.mxu0  ;;  %v345_v25 = vld [vmem:[%s6212_s24 + $0x8] sm:$0xff]  ;;  %v2004_v14 = vld [vmem:[#allocation2 + $0x3e0] sm:$0xff]  ;;  %v990_v59 = vunpack.c.l.bf16 %v411_v60 }
 0x20c   : > { %3385 = vmatprep.mubr.f32.mxu1 %v1991_v17  ;;  %3470 = vmatprep.subr.mxu0 %v871_v48  ;;  %v2583_v26 = vadd.f32 %v2582_v0, %v6504_v63  ;;  %v2007_v17 = vld [vmem:[#allocation2 + $0x3f8] sm:$0xff]  ;;  %v862_v63 = vunpack.c.l.bf16 %v347_v55  ;;  %v409_v0 = vld [vmem:[%s6212_s24 + $0x208] sm:$0xff] }
 0x20d   : > { %3630 = vmatpush1.msra.mxu1 %v1002_v10  ;;  %3471 = vmatpush1.msra.mxu0 %v870_v30  ;;  %v6678_v52 = vpop.f32.mrf.mxu0  ;;  %v863_v10 = vunpack.c.h.bf16 %v347_v55  ;;  %v2006_v30 = vld [vmem:[#allocation2 + $0x3f0] sm:$0xff]  ;;  %v987_v55 = vunpack.c.h.bf16 %v409_v0 }
 0x20e   : > { %3386 = vmatmul.mubr.f32.gmra.mxu1 %v1990_v3  ;;  %v2743_v7 = vpop.f32.mrf.mxu1  ;;  %8536 = vst [vmem:[#allocation33_spill] sm:$0xff] %v6678_v52  ;;  %3631 = vmatprep.subr.mxu1 %v999_v40  ;;  %v991_v3 = vunpack.c.h.bf16 %v411_v60  ;;  %v859_v40 = vunpack.c.h.bf16 %v345_v25  ;;  %v986_v60 = vunpack.c.l.bf16 %v409_v0 }
 0x20f   : > { %3472 = vmatprep.subr.mxu0 %v867_v15  ;;  %v6680_v56 = vadd.f32 %v2743_v7, %v2583_v26  ;;  %3632 = vmatpush1.msra.mxu1 %v998_v21  ;;  %v407_v15 = vld [vmem:[%s6212_s24 + $0x1f8] sm:$0xff]  ;;  %v858_v21 = vunpack.c.l.bf16 %v345_v25 }
 0x210   : > { %3230 = vmatprep.mubr.f32.mxu0 %v2005_v5  ;;  %v6683_v48 = vpop.f32.mrf.mxu1  ;;  %3473 = vmatpush1.msra.mxu0 %v866_v20  ;;  %v2021_v5 = vld [vmem:[#allocation2 + $0x468] sm:$0xff]  ;;  %v471_v20 = vld [vmem:[%s6212_s24 + $0x3f8] sm:$0xff] }
 0x211   : > { %8537 = vst [vmem:[#allocation34_spill] sm:$0xff] %v6683_v48  ;;  %3633 = vmatprep.subr.mxu1 %v995_v32  ;;  %3231 = vmatmul.mubr.f32.gmra.mxu0 %v2004_v14  ;;  %v2588_v52 = vpop.f32.mrf.mxu0  ;;  %v405_v32 = vld [vmem:[%s6212_s24 + $0x1e8] sm:$0xff]  ;;  %v2020_v14 = vld [vmem:[#allocation2 + $0x460] sm:$0xff]  ;;  %v1110_v0 = vunpack.c.l.bf16 %v471_v20 }
 0x212   : > { %3391 = vmatprep.mubr.f32.mxu1 %v2007_v17  ;;  %3474 = vmatprep.subr.mxu0 %v863_v10  ;;  %v2589_v26 = vadd.f32 %v2588_v52, %v6515_v29  ;;  %v2023_v17 = vld [vmem:[#allocation2 + $0x478] sm:$0xff]  ;;  %v982_v29 = vunpack.c.l.bf16 %v407_v15  ;;  %v469_v52 = vld [vmem:[%s6212_s24 + $0x3e8] sm:$0xff] }
 0x213   : > { %3634 = vmatpush1.msra.mxu1 %v994_v45  ;;  %3475 = vmatpush1.msra.mxu0 %v862_v63  ;;  %v6689_v48 = vpop.f32.mrf.mxu0  ;;  %v983_v45 = vunpack.c.h.bf16 %v407_v15  ;;  %v2022_v63 = vld [vmem:[#allocation2 + $0x470] sm:$0xff]  ;;  %v1107_v15 = vunpack.c.h.bf16 %v469_v52 }
 0x214   : > { %3392 = vmatmul.mubr.f32.gmra.mxu1 %v2006_v30  ;;  %v2749_v7 = vpop.f32.mrf.mxu1  ;;  %8538 = vst [vmem:[#allocation35_spill] sm:$0xff] %v6689_v48  ;;  %3635 = vmatprep.subr.mxu1 %v991_v3  ;;  %v1111_v30 = vunpack.c.h.bf16 %v471_v20  ;;  %v979_v3 = vunpack.c.h.bf16 %v405_v32  ;;  %v1106_v20 = vunpack.c.l.bf16 %v469_v52 }
 0x215   : > { %3476 = vmatprep.subr.mxu0 %v859_v40  ;;  %v6691_v25 = vadd.f32 %v2749_v7, %v2589_v26  ;;  %3636 = vmatpush1.msra.mxu1 %v990_v59  ;;  %v403_v40 = vld [vmem:[%s6212_s24 + $0x1d8] sm:$0xff]  ;;  %v978_v59 = vunpack.c.l.bf16 %v405_v32 }
 0x216   : > { %3236 = vmatprep.mubr.f32.mxu0 %v2021_v5  ;;  %v6694_v10 = vpop.f32.mrf.mxu1  ;;  %3477 = vmatpush1.msra.mxu0 %v858_v21  ;;  %v2037_v5 = vld [vmem:[#allocation2 + $0x4e8] sm:$0xff]  ;;  %v467_v21 = vld [vmem:[%s6212_s24 + $0x3d8] sm:$0xff] }
 0x217   : > { %8539 = vst [vmem:[#allocation36_spill] sm:$0xff] %v6694_v10  ;;  %3637 = vmatprep.subr.mxu1 %v987_v55  ;;  %3237 = vmatmul.mubr.f32.gmra.mxu0 %v2020_v14  ;;  %v2594_v48 = vpop.f32.mrf.mxu0  ;;  %v401_v55 = vld [vmem:[%s6212_s24 + $0x1c8] sm:$0xff]  ;;  %v2036_v14 = vld [vmem:[#allocation2 + $0x4e0] sm:$0xff]  ;;  %v1102_v52 = vunpack.c.l.bf16 %v467_v21 }
 0x218   : > { %3397 = vmatprep.mubr.f32.mxu1 %v2023_v17  ;;  %3478 = vmatprep.subr.mxu0 %v983_v45  ;;  %v2595_v26 = vadd.f32 %v2594_v48, %v6526_v4  ;;  %v2039_v17 = vld [vmem:[#allocation2 + $0x4f8] sm:$0xff]  ;;  %v974_v4 = vunpack.c.l.bf16 %v403_v40  ;;  %v465_v48 = vld [vmem:[%s6212_s24 + $0x3c8] sm:$0xff] }
 0x219   : > { %3638 = vmatpush1.msra.mxu1 %v986_v60  ;;  %3479 = vmatpush2.msra.mxu0 %v982_v29  ;;  %v6700_v10 = vpop.f32.mrf.mxu0  ;;  %v975_v60 = vunpack.c.h.bf16 %v403_v40  ;;  %v2038_v29 = vld [vmem:[#allocation2 + $0x4f0] sm:$0xff]  ;;  %v1099_v40 = vunpack.c.h.bf16 %v465_v48 }
 0x21a   : > { %3398 = vmatmul.mubr.f32.gmra.mxu1 %v2022_v63  ;;  %v2755_v7 = vpop.f32.mrf.mxu1  ;;  %8540 = vst [vmem:[#allocation37_spill] sm:$0xff] %v6700_v10  ;;  %3639 = vmatprep.subr.mxu1 %v1111_v30  ;;  %v1103_v63 = vunpack.c.h.bf16 %v467_v21  ;;  %v971_v30 = vunpack.c.h.bf16 %v401_v55  ;;  %v1098_v21 = vunpack.c.l.bf16 %v465_v48 }
 0x21b   : > { %3480 = vmatprep.subr.mxu0 %v979_v3  ;;  %v6702_v32 = vadd.f32 %v2755_v7, %v2595_v26  ;;  %3640 = vmatpush2.msra.mxu1 %v1110_v0  ;;  %v399_v3 = vld [vmem:[%s6212_s24 + $0x1b8] sm:$0xff]  ;;  %v970_v0 = vunpack.c.l.bf16 %v401_v55 }
 0x21c   : > { %3242 = vmatprep.mubr.f32.mxu0 %v2037_v5  ;;  %v6705_v45 = vpop.f32.mrf.mxu1  ;;  %3481 = vmatpush2.msra.mxu0 %v978_v59  ;;  %v2053_v5 = vld [vmem:[#allocation2 + $0x568] sm:$0xff]  ;;  %v463_v59 = vld [vmem:[%s6212_s24 + $0x3b8] sm:$0xff] }
 0x21d   : > { %8541 = vst [vmem:[#allocation38_spill] sm:$0xff] %v6705_v45  ;;  %3641 = vmatprep.subr.mxu1 %v1107_v15  ;;  %3243 = vmatmul.mubr.f32.gmra.mxu0 %v2036_v14  ;;  %v2600_v10 = vpop.f32.mrf.mxu0  ;;  %v397_v15 = vld [vmem:[%s6212_s24 + $0x1a8] sm:$0xff]  ;;  %v2052_v14 = vld [vmem:[#allocation2 + $0x560] sm:$0xff]  ;;  %v1094_v48 = vunpack.c.l.bf16 %v463_v59 }
 0x21e   : > { %3403 = vmatprep.mubr.f32.mxu1 %v2039_v17  ;;  %3482 = vmatprep.subr.mxu0 %v975_v60  ;;  %v2601_v26 = vadd.f32 %v2600_v10, %v6537_v42  ;;  %v2055_v17 = vld [vmem:[#allocation2 + $0x578] sm:$0xff]  ;;  %v966_v42 = vunpack.c.l.bf16 %v399_v3  ;;  %v461_v10 = vld [vmem:[%s6212_s24 + $0x3a8] sm:$0xff] }
 0x21f   : > { %3642 = vmatpush2.msra.mxu1 %v1106_v20  ;;  %3483 = vmatpush2.msra.mxu0 %v974_v4  ;;  %v6711_v45 = vpop.f32.mrf.mxu0  ;;  %v967_v20 = vunpack.c.h.bf16 %v399_v3  ;;  %v2054_v4 = vld [vmem:[#allocation2 + $0x570] sm:$0xff]  ;;  %v1091_v3 = vunpack.c.h.bf16 %v461_v10 }
 0x220   : > { %3404 = vmatmul.mubr.f32.gmra.mxu1 %v2038_v29  ;;  %v2761_v7 = vpop.f32.mrf.mxu1  ;;  %8542 = vst [vmem:[#allocation39_spill] sm:$0xff] %v6711_v45  ;;  %3643 = vmatprep.subr.mxu1 %v1103_v63  ;;  %v1095_v29 = vunpack.c.h.bf16 %v463_v59  ;;  %v963_v63 = vunpack.c.h.bf16 %v397_v15  ;;  %v1090_v59 = vunpack.c.l.bf16 %v461_v10 }
 0x221   : > { %3484 = vmatprep.subr.mxu0 %v971_v30  ;;  %v6713_v55 = vadd.f32 %v2761_v7, %v2601_v26  ;;  %3644 = vmatpush2.msra.mxu1 %v1102_v52  ;;  %v395_v30 = vld [vmem:[%s6212_s24 + $0x198] sm:$0xff]  ;;  %v962_v52 = vunpack.c.l.bf16 %v397_v15 }
 0x222   : > { %3248 = vmatprep.mubr.f32.mxu0 %v2053_v5  ;;  %v6716_v60 = vpop.f32.mrf.mxu1  ;;  %3485 = vmatpush2.msra.mxu0 %v970_v0  ;;  %v2069_v5 = vld [vmem:[#allocation2 + $0x5e8] sm:$0xff]  ;;  %v459_v0 = vld [vmem:[%s6212_s24 + $0x398] sm:$0xff] }
 0x223   : > { %8543 = vst [vmem:[#allocation40_spill] sm:$0xff] %v6716_v60  ;;  %3645 = vmatprep.subr.mxu1 %v1099_v40  ;;  %3249 = vmatmul.mubr.f32.gmra.mxu0 %v2052_v14  ;;  %v2606_v45 = vpop.f32.mrf.mxu0  ;;  %v393_v40 = vld [vmem:[%s6212_s24 + $0x188] sm:$0xff]  ;;  %v2068_v14 = vld [vmem:[#allocation2 + $0x5e0] sm:$0xff]  ;;  %v1086_v10 = vunpack.c.l.bf16 %v459_v0 }
 0x224   : > { %3409 = vmatprep.mubr.f32.mxu1 %v2055_v17  ;;  %3486 = vmatprep.subr.mxu0 %v967_v20  ;;  %v2607_v26 = vadd.f32 %v2606_v45, %v6548_v19  ;;  %v2071_v17 = vld [vmem:[#allocation2 + $0x5f8] sm:$0xff]  ;;  %v958_v19 = vunpack.c.l.bf16 %v395_v30  ;;  %v457_v45 = vld [vmem:[%s6212_s24 + $0x388] sm:$0xff] }
 0x225   : > { %3646 = vmatpush2.msra.mxu1 %v1098_v21  ;;  %3487 = vmatpush2.msra.mxu0 %v966_v42  ;;  %v6722_v60 = vpop.f32.mrf.mxu0  ;;  %v959_v21 = vunpack.c.h.bf16 %v395_v30  ;;  %v2070_v42 = vld [vmem:[#allocation2 + $0x5f0] sm:$0xff]  ;;  %v1083_v30 = vunpack.c.h.bf16 %v457_v45 }
 0x226   : > { %3410 = vmatmul.mubr.f32.gmra.mxu1 %v2054_v4  ;;  %v2767_v7 = vpop.f32.mrf.mxu1  ;;  %8544 = vst [vmem:[#allocation41_spill] sm:$0xff] %v6722_v60  ;;  %3647 = vmatprep.subr.mxu1 %v1095_v29  ;;  %v1087_v4 = vunpack.c.h.bf16 %v459_v0  ;;  %v955_v29 = vunpack.c.h.bf16 %v393_v40  ;;  %v1082_v0 = vunpack.c.l.bf16 %v457_v45 }
 0x227   : > { %3488 = vmatprep.subr.mxu0 %v963_v63  ;;  %v6724_v15 = vadd.f32 %v2767_v7, %v2607_v26  ;;  %3648 = vmatpush2.msra.mxu1 %v1094_v48  ;;  %v391_v63 = vld [vmem:[%s6212_s24 + $0x178] sm:$0xff]  ;;  %v954_v48 = vunpack.c.l.bf16 %v393_v40 }
 0x228   : > { %3254 = vmatprep.mubr.f32.mxu0 %v2069_v5  ;;  %v6727_v20 = vpop.f32.mrf.mxu1  ;;  %3489 = vmatpush2.msra.mxu0 %v962_v52  ;;  %v2085_v5 = vld [vmem:[#allocation2 + $0x668] sm:$0xff]  ;;  %v455_v52 = vld [vmem:[%s6212_s24 + $0x378] sm:$0xff] }
 0x229   : > { %8545 = vst [vmem:[#allocation42_spill] sm:$0xff] %v6727_v20  ;;  %3649 = vmatprep.subr.mxu1 %v1091_v3  ;;  %3255 = vmatmul.mubr.f32.gmra.mxu0 %v2068_v14  ;;  %v2612_v60 = vpop.f32.mrf.mxu0  ;;  %v389_v3 = vld [vmem:[%s6212_s24 + $0x168] sm:$0xff]  ;;  %v2084_v14 = vld [vmem:[#allocation2 + $0x660] sm:$0xff]  ;;  %v1078_v45 = vunpack.c.l.bf16 %v455_v52 }
 0x22a   : > { %3415 = vmatprep.mubr.f32.mxu1 %v2071_v17  ;;  %3490 = vmatprep.subr.mxu0 %v959_v21  ;;  %v2613_v26 = vadd.f32 %v2612_v60, %v6559_v1  ;;  %v2087_v17 = vld [vmem:[#allocation2 + $0x678] sm:$0xff]  ;;  %v950_v1 = vunpack.c.l.bf16 %v391_v63  ;;  %v453_v60 = vld [vmem:[%s6212_s24 + $0x368] sm:$0xff] }
 0x22b   : > { %3650 = vmatpush2.msra.mxu1 %v1090_v59  ;;  %3491 = vmatpush2.msra.mxu0 %v958_v19  ;;  %v6733_v20 = vpop.f32.mrf.mxu0  ;;  %v951_v59 = vunpack.c.h.bf16 %v391_v63  ;;  %v2086_v19 = vld [vmem:[#allocation2 + $0x670] sm:$0xff]  ;;  %v1075_v63 = vunpack.c.h.bf16 %v453_v60 }
 0x22c   : > { %3416 = vmatmul.mubr.f32.gmra.mxu1 %v2070_v42  ;;  %v2773_v7 = vpop.f32.mrf.mxu1  ;;  %8546 = vst [vmem:[#allocation43_spill] sm:$0xff] %v6733_v20  ;;  %3651 = vmatprep.subr.mxu1 %v1087_v4  ;;  %v1079_v42 = vunpack.c.h.bf16 %v455_v52  ;;  %v947_v4 = vunpack.c.h.bf16 %v389_v3  ;;  %v1074_v52 = vunpack.c.l.bf16 %v453_v60 }
 0x22d   : > { %3492 = vmatprep.subr.mxu0 %v955_v29  ;;  %v6735_v40 = vadd.f32 %v2773_v7, %v2613_v26  ;;  %3652 = vmatpush2.msra.mxu1 %v1086_v10  ;;  %v387_v29 = vld [vmem:[%s6212_s24 + $0x158] sm:$0xff]  ;;  %v946_v10 = vunpack.c.l.bf16 %v389_v3 }
 0x22e   : > { %3260 = vmatprep.mubr.f32.mxu0 %v2085_v5  ;;  %v6738_v21 = vpop.f32.mrf.mxu1  ;;  %3493 = vmatpush2.msra.mxu0 %v954_v48  ;;  %v2101_v5 = vld [vmem:[#allocation2 + $0x6e8] sm:$0xff]  ;;  %v451_v48 = vld [vmem:[%s6212_s24 + $0x358] sm:$0xff] }
 0x22f   : > { %8547 = vst [vmem:[#allocation44_spill] sm:$0xff] %v6738_v21  ;;  %3653 = vmatprep.subr.mxu1 %v1083_v30  ;;  %3261 = vmatmul.mubr.f32.gmra.mxu0 %v2084_v14  ;;  %v2618_v20 = vpop.f32.mrf.mxu0  ;;  %v385_v30 = vld [vmem:[%s6212_s24 + $0x148] sm:$0xff]  ;;  %v2100_v14 = vld [vmem:[#allocation2 + $0x6e0] sm:$0xff]  ;;  %v1070_v60 = vunpack.c.l.bf16 %v451_v48 }
 0x230   : > { %3421 = vmatprep.mubr.f32.mxu1 %v2087_v17  ;;  %3494 = vmatprep.subr.mxu0 %v951_v59  ;;  %v2619_v26 = vadd.f32 %v2618_v20, %v6570_v51  ;;  %v2103_v17 = vld [vmem:[#allocation2 + $0x6f8] sm:$0xff]  ;;  %v942_v51 = vunpack.c.l.bf16 %v387_v29  ;;  %v449_v20 = vld [vmem:[%s6212_s24 + $0x348] sm:$0xff] }
 0x231   : > { %3654 = vmatpush2.msra.mxu1 %v1082_v0  ;;  %3495 = vmatpush2.msra.mxu0 %v950_v1  ;;  %v6744_v21 = vpop.f32.mrf.mxu0  ;;  %v943_v0 = vunpack.c.h.bf16 %v387_v29  ;;  %v2102_v1 = vld [vmem:[#allocation2 + $0x6f0] sm:$0xff]  ;;  %v1067_v29 = vunpack.c.h.bf16 %v449_v20 }
 0x232   : > { %3422 = vmatmul.mubr.f32.gmra.mxu1 %v2086_v19  ;;  %v2779_v7 = vpop.f32.mrf.mxu1  ;;  %8548 = vst [vmem:[#allocation45_spill] sm:$0xff] %v6744_v21  ;;  %3655 = vmatprep.subr.mxu1 %v1079_v42  ;;  %v1071_v19 = vunpack.c.h.bf16 %v451_v48  ;;  %v939_v42 = vunpack.c.h.bf16 %v385_v30  ;;  %v1066_v48 = vunpack.c.l.bf16 %v449_v20 }
 0x233   : > { %3496 = vmatprep.subr.mxu0 %v947_v4  ;;  %v6746_v3 = vadd.f32 %v2779_v7, %v2619_v26  ;;  %3656 = vmatpush2.msra.mxu1 %v1078_v45  ;;  %v383_v4 = vld [vmem:[%s6212_s24 + $0x138] sm:$0xff]  ;;  %v938_v45 = vunpack.c.l.bf16 %v385_v30 }
 0x234   : > { %3266 = vmatprep.mubr.f32.mxu0 %v2101_v5  ;;  %v6749_v59 = vpop.f32.mrf.mxu1  ;;  %3497 = vmatpush2.msra.mxu0 %v946_v10  ;;  %v2117_v5 = vld [vmem:[#allocation2 + $0x768] sm:$0xff]  ;;  %v447_v10 = vld [vmem:[%s6212_s24 + $0x338] sm:$0xff] }
 0x235   : > { %8549 = vst [vmem:[#allocation46_spill] sm:$0xff] %v6749_v59  ;;  %3657 = vmatprep.subr.mxu1 %v1075_v63  ;;  %3267 = vmatmul.mubr.f32.gmra.mxu0 %v2100_v14  ;;  %v2624_v21 = vpop.f32.mrf.mxu0  ;;  %v381_v63 = vld [vmem:[%s6212_s24 + $0x128] sm:$0xff]  ;;  %v2116_v14 = vld [vmem:[#allocation2 + $0x760] sm:$0xff]  ;;  %v1062_v20 = vunpack.c.l.bf16 %v447_v10 }
 0x236   : > { %3427 = vmatprep.mubr.f32.mxu1 %v2103_v17  ;;  %3498 = vmatprep.subr.mxu0 %v943_v0  ;;  %v2625_v26 = vadd.f32 %v2624_v21, %v6581_v39  ;;  %v2119_v17 = vld [vmem:[#allocation2 + $0x778] sm:$0xff]  ;;  %v934_v39 = vunpack.c.l.bf16 %v383_v4  ;;  %v445_v21 = vld [vmem:[%s6212_s24 + $0x328] sm:$0xff] }
 0x237   : > { %3658 = vmatpush2.msra.mxu1 %v1074_v52  ;;  %3499 = vmatpush2.msra.mxu0 %v942_v51  ;;  %v6755_v59 = vpop.f32.mrf.mxu0  ;;  %v935_v52 = vunpack.c.h.bf16 %v383_v4  ;;  %v2118_v51 = vld [vmem:[#allocation2 + $0x770] sm:$0xff]  ;;  %v1059_v4 = vunpack.c.h.bf16 %v445_v21 }
 0x238   : > { %3428 = vmatmul.mubr.f32.gmra.mxu1 %v2102_v1  ;;  %v2785_v7 = vpop.f32.mrf.mxu1  ;;  %8550 = vst [vmem:[#allocation47_spill] sm:$0xff] %v6755_v59  ;;  %3659 = vmatprep.subr.mxu1 %v1071_v19  ;;  %v1063_v1 = vunpack.c.h.bf16 %v447_v10  ;;  %v931_v19 = vunpack.c.h.bf16 %v381_v63  ;;  %v1058_v10 = vunpack.c.l.bf16 %v445_v21 }
 0x239   : > { %3500 = vmatprep.subr.mxu0 %v939_v42  ;;  %v6757_v30 = vadd.f32 %v2785_v7, %v2625_v26  ;;  %3660 = vmatpush2.msra.mxu1 %v1070_v60  ;;  %v379_v42 = vld [vmem:[%s6212_s24 + $0x118] sm:$0xff]  ;;  %v930_v60 = vunpack.c.l.bf16 %v381_v63 }
 0x23a   : > { %3272 = vmatprep.mubr.f32.mxu0 %v2117_v5  ;;  %v6760_v0 = vpop.f32.mrf.mxu1  ;;  %3501 = vmatpush2.msra.mxu0 %v938_v45  ;;  %v2133_v5 = vld [vmem:[#allocation2 + $0x7e8] sm:$0xff]  ;;  %v443_v45 = vld [vmem:[%s6212_s24 + $0x318] sm:$0xff] }
 0x23b   : > { %8551 = vst [vmem:[#allocation48_spill] sm:$0xff] %v6760_v0  ;;  %3661 = vmatprep.subr.mxu1 %v1067_v29  ;;  %3273 = vmatmul.mubr.f32.gmra.mxu0 %v2116_v14  ;;  %v2630_v59 = vpop.f32.mrf.mxu0  ;;  %v377_v29 = vld [vmem:[%s6212_s24 + $0x108] sm:$0xff]  ;;  %v2132_v14 = vld [vmem:[#allocation2 + $0x7e0] sm:$0xff]  ;;  %v1054_v21 = vunpack.c.l.bf16 %v443_v45 }
 0x23c   : > { %3433 = vmatprep.mubr.f32.mxu1 %v2119_v17  ;;  %3502 = vmatprep.subr.mxu0 %v935_v52  ;;  %v2631_v26 = vadd.f32 %v2630_v59, %v6592_v28  ;;  %v2135_v17 = vld [vmem:[#allocation2 + $0x7f8] sm:$0xff]  ;;  %v927_v52 = vunpack.c.h.bf16 %v379_v42  ;;  %v926_v28 = vunpack.c.l.bf16 %v379_v42  ;;  %v441_v59 = vld [vmem:[%s6212_s24 + $0x308] sm:$0xff] }
 0x23d   : > { %3662 = vmatpush2.msra.mxu1 %v1066_v48  ;;  %3503 = vmatpush2.msra.mxu0 %v934_v39  ;;  %v6766_v0 = vpop.f32.mrf.mxu0  ;;  %v2134_v39 = vld [vmem:[#allocation2 + $0x7f0] sm:$0xff] }
 0x23e   : > { %3434 = vmatmul.mubr.f32.gmra.mxu1 %v2118_v51  ;;  %v2791_v7 = vpop.f32.mrf.mxu1  ;;  %8552 = vst [vmem:[#allocation49_spill] sm:$0xff] %v6766_v0  ;;  %3663 = vmatprep.subr.mxu1 %v1063_v1  ;;  %v1055_v51 = vunpack.c.h.bf16 %v443_v45  ;;  %v923_v1 = vunpack.c.h.bf16 %v377_v29  ;;  %v503_v0 = vld [vmem:[%s6212_s24 + $0x4f8] sm:$0xff] }
 0x23f   : > { %3504 = vmatprep.subr.mxu0 %v931_v19  ;;  %v6768_v63 = vadd.f32 %v2791_v7, %v2631_v26  ;;  %3664 = vmatpush2.msra.mxu1 %v1062_v20  ;;  %v922_v19 = vunpack.c.l.bf16 %v377_v29  ;;  %v1051_v20 = vunpack.c.h.bf16 %v441_v59  ;;  %v1175_v45 = vunpack.c.h.bf16 %v503_v0 }
 0x240   : > { %3278 = vmatprep.mubr.f32.mxu0 %v2133_v5  ;;  %v6771_v48 = vpop.f32.mrf.mxu1  ;;  %3505 = vmatpush2.msra.mxu0 %v930_v60  ;;  %v1050_v60 = vunpack.c.l.bf16 %v441_v59  ;;  %v567_v5 = vld [vmem:[%s6212_s24 + $0x6f8] sm:$0xff]  ;;  %v5573_v59 = vld [vmem:[#allocation2] sm:$0xff] }
 0x241   : > { %8553 = vst [vmem:[#allocation50_spill] sm:$0xff] %v6771_v48  ;;  %3665 = vmatprep.subr.mxu1 %v1059_v4  ;;  %3279 = vmatmul.mubr.f32.gmra.mxu0 %v2132_v14  ;;  %v2636_v26 = vpop.f32.mrf.mxu0  ;;  %v501_v4 = vld [vmem:[%s6212_s24 + $0x4e8] sm:$0xff] }
 0x242   : > { %3439 = vmatprep.mubr.f32.mxu1 %v2135_v17  ;;  %3506 = vmatprep.subr.mxu0 %v927_v52  ;;  %v2637_v42 = vadd.f32 %v2636_v26, %v6603_v47  ;;  %v565_v14 = vld [vmem:[%s6212_s24 + $0x6e8] sm:$0xff]  ;;  %v1303_v52 = vunpack.c.h.bf16 %v567_v5  ;;  %v5575_v26 = vld [vmem:[#allocation2 + $0x10] sm:$0xff] }
 0x243   : > { %3666 = vmatpush2.msra.mxu1 %v1058_v10  ;;  %3507 = vmatpush2.msra.mxu0 %v926_v28  ;;  %v6777_v48 = vpop.f32.mrf.mxu0  ;;  %v1174_v10 = vunpack.c.l.bf16 %v503_v0  ;;  %v5572_v47 = vld [vmem:[#allocation2 + $0x8] sm:$0xff]  ;;  %v1171_v28 = vunpack.c.h.bf16 %v501_v4  ;;  %v1170_v0 = vunpack.c.l.bf16 %v501_v4 }
 0x244   : > { %3440 = vmatmul.mubr.f32.gmra.mxu1 %v2134_v39  ;;  %v2797_v7 = vpop.f32.mrf.mxu1  ;;  %8554 = vst [vmem:[#allocation51_spill] sm:$0xff] %v6777_v48  ;;  %3667 = vmatprep.subr.mxu1 %v1055_v51  ;;  %v1302_v39 = vunpack.c.l.bf16 %v567_v5  ;;  %v499_v51 = vld [vmem:[%s6212_s24 + $0x4d8] sm:$0xff] }
 0x245   : > { %3508 = vmatprep.subr.mxu0 %v923_v1  ;;  %v6779_v29 = vadd.f32 %v2797_v7, %v2637_v42  ;;  %3668 = vmatpush2.msra.mxu1 %v1054_v21  ;;  %v5574_v21 = vld [vmem:[#allocation2 + $0x18] sm:$0xff]  ;;  %v497_v42 = vld [vmem:[%s6212_s24 + $0x4c8] sm:$0xff]  ;;  %v1167_v5 = vunpack.c.h.bf16 %v499_v51  ;;  %v1166_v4 = vunpack.c.l.bf16 %v499_v51 }
 0x246   : > { %3509 = vmatpush2.msra.mxu0 %v922_v19  ;;  %v6782_v17 = vpop.f32.mrf.mxu1  ;;  %3510 = vmatprep.mubr.f32.mxu0 %v5572_v47  ;;  %v1299_v19 = vunpack.c.h.bf16 %v565_v14 }
 0x247   : > { %8555 = vst [vmem:[#allocation52_spill] sm:$0xff] %v6782_v17  ;;  %3669 = vmatprep.subr.mxu1 %v1051_v20  ;;  %3511 = vmatmul.mubr.f32.vlgmr.msra.gmra.mxu0 %v5573_v59  ;;  %v6785_v1 = vpop.f32.mrf.mxu0  ;;  %v563_v20 = vld [vmem:[%s6212_s24 + $0x6d8] sm:$0xff]  ;;  %v5576_v59 = vld [vmem:[#allocation2 + $0x88] sm:$0xff]  ;;  %v5577_v17 = vld [vmem:[#allocation2 + $0x80] sm:$0xff] }
 0x248   : > { %3670 = vmatpush2.msra.mxu1 %v1050_v60  ;;  %3671 = vmatprep.mubr.f32.mxu1 %v5574_v21  ;;  %v1298_v60 = vunpack.c.l.bf16 %v565_v14  ;;  %v1294_v14 = vunpack.c.l.bf16 %v563_v20 }
 0x249   : > { %3768 = vmatprep.subr.mxu0 %v1175_v45  ;;  %3672 = vmatmul.mubr.f32.vlgmr.msra.gmra.mxu1 %v5575_v26  ;;  %v6789_v7 = vpop.f32.mrf.mxu1  ;;  %v6791_v47 = vpop.f32.mrf.mxu0  ;;  %v561_v45 = vld [vmem:[%s6212_s24 + $0x6c8] sm:$0xff]  ;;  %v1163_v26 = vunpack.c.h.bf16 %v497_v42 }
 0x24a   : > { %3769 = vmatpush1.msra.mxu0 %v1174_v10  ;;  %8556 = vst [vmem:[#allocation53_spill] sm:$0xff] %v6789_v7  ;;  %8557 = vst [vmem:[#allocation54_spill] sm:$0xff] %v6791_v47  ;;  %3929 = vmatprep.subr.mxu1 %v1303_v52  ;;  %v1295_v10 = vunpack.c.h.bf16 %v563_v20  ;;  %v5578_v52 = vld [vmem:[#allocation2 + $0x98] sm:$0xff]  ;;  %v1291_v51 = vunpack.c.h.bf16 %v561_v45 }
 0x24b   : > { %3770 = vmatprep.subr.mxu0 %v1171_v28  ;;  %3930 = vmatpush1.msra.mxu1 %v1302_v39  ;;  %v6794_v21 = vpop.f32.mrf.mxu1  ;;  %v495_v28 = vld [vmem:[%s6212_s24 + $0x4b8] sm:$0xff]  ;;  %v1162_v39 = vunpack.c.l.bf16 %v497_v42 }
 0x24c   : > { %3516 = vmatprep.mubr.f32.mxu0 %v5576_v59  ;;  %8558 = vst [vmem:[#allocation55_spill] sm:$0xff] %v6794_v21  ;;  %3771 = vmatpush1.msra.mxu0 %v1170_v0  ;;  %v5579_v59 = vld [vmem:[#allocation2 + $0x90] sm:$0xff]  ;;  %v559_v0 = vld [vmem:[%s6212_s24 + $0x6b8] sm:$0xff]  ;;  %v1159_v20 = vunpack.c.h.bf16 %v495_v28  ;;  %v1158_v42 = vunpack.c.l.bf16 %v495_v28 }
 0x24d   : > { %3931 = vmatprep.subr.mxu1 %v1299_v19  ;;  %3517 = vmatmul.mubr.f32.gmra.mxu0 %v5577_v17  ;;  %v6797_v48 = vpop.f32.mrf.mxu0  ;;  %v493_v19 = vld [vmem:[%s6212_s24 + $0x4a8] sm:$0xff]  ;;  %v1290_v17 = vunpack.c.l.bf16 %v561_v45  ;;  %v1286_v45 = vunpack.c.l.bf16 %v559_v0 }
 0x24e   : > { %3677 = vmatprep.mubr.f32.mxu1 %v5578_v52  ;;  %8559 = vst [vmem:[#allocation56_spill] sm:$0xff] %v6797_v48  ;;  %3772 = vmatprep.subr.mxu0 %v1167_v5  ;;  %v5580_v5 = vld [vmem:[#allocation2 + $0x108] sm:$0xff] }
 0x24f   : > { %3932 = vmatpush1.msra.mxu1 %v1298_v60  ;;  %3773 = vmatpush1.msra.mxu0 %v1166_v4  ;;  %v6803_v7 = vpop.f32.mrf.mxu0  ;;  %v557_v60 = vld [vmem:[%s6212_s24 + $0x6a8] sm:$0xff]  ;;  %v1287_v4 = vunpack.c.h.bf16 %v559_v0 }
 0x250   : > { %3678 = vmatmul.mubr.f32.gmra.mxu1 %v5579_v59  ;;  %v6801_v21 = vpop.f32.mrf.mxu1  ;;  %8561 = vst [vmem:[#allocation58_spill] sm:$0xff] %v6803_v7  ;;  %3933 = vmatprep.subr.mxu1 %v1295_v10  ;;  %v1155_v59 = vunpack.c.h.bf16 %v493_v19  ;;  %v5582_v10 = vld [vmem:[#allocation2 + $0x118] sm:$0xff]  ;;  %v1283_v28 = vunpack.c.h.bf16 %v557_v60 }
 0x251   : > { %8560 = vst [vmem:[#allocation57_spill] sm:$0xff] %v6801_v21  ;;  %3774 = vmatprep.subr.mxu0 %v1163_v26  ;;  %3934 = vmatpush1.msra.mxu1 %v1294_v14  ;;  %v5581_v21 = vld [vmem:[#allocation2 + $0x100] sm:$0xff]  ;;  %v491_v26 = vld [vmem:[%s6212_s24 + $0x498] sm:$0xff]  ;;  %v1154_v14 = vunpack.c.l.bf16 %v493_v19  ;;  %v5584_v19 = vld [vmem:[#allocation2 + $0x188] sm:$0xff] }
 0x252   : > { %3522 = vmatprep.mubr.f32.mxu0 %v5580_v5  ;;  %v6806_v52 = vpop.f32.mrf.mxu1  ;;  %3775 = vmatpush1.msra.mxu0 %v1162_v39  ;;  %v555_v39 = vld [vmem:[%s6212_s24 + $0x698] sm:$0xff]  ;;  %v1151_v0 = vunpack.c.h.bf16 %v491_v26 }
 0x253   : > { %8562 = vst [vmem:[#allocation59_spill] sm:$0xff] %v6806_v52  ;;  %3935 = vmatprep.subr.mxu1 %v1291_v51  ;;  %3523 = vmatmul.mubr.f32.gmra.mxu0 %v5581_v21  ;;  %v2880_v7 = vpop.f32.mrf.mxu0  ;;  %v5583_v52 = vld [vmem:[#allocation2 + $0x110] sm:$0xff]  ;;  %v489_v51 = vld [vmem:[%s6212_s24 + $0x488] sm:$0xff]  ;;  %v1282_v21 = vunpack.c.l.bf16 %v557_v60  ;;  %v5586_v60 = vld [vmem:[#allocation2 + $0x198] sm:$0xff] }
 0x254   : > { %3683 = vmatprep.mubr.f32.mxu1 %v5582_v10  ;;  %3776 = vmatprep.subr.mxu0 %v1159_v20  ;;  %v2881_v5 = vadd.f32 %v2880_v7, %v6636_v16  ;;  %v1150_v16 = vunpack.c.l.bf16 %v491_v26  ;;  %v553_v7 = vld [vmem:[%s6212_s24 + $0x688] sm:$0xff]  ;;  %v1279_v20 = vunpack.c.h.bf16 %v555_v39 }
 0x255   : > { %3936 = vmatpush1.msra.mxu1 %v1290_v17  ;;  %3777 = vmatpush1.msra.mxu0 %v1158_v42  ;;  %v6812_v47 = vpop.f32.mrf.mxu0  ;;  %v1147_v42 = vunpack.c.h.bf16 %v489_v51  ;;  %v1275_v26 = vunpack.c.h.bf16 %v553_v7 }
 0x256   : > { %3684 = vmatmul.mubr.f32.gmra.mxu1 %v5583_v52  ;;  %v3041_v48 = vpop.f32.mrf.mxu1  ;;  %3937 = vmatprep.subr.mxu1 %v1287_v4  ;;  %v5585_v52 = vld [vmem:[#allocation2 + $0x180] sm:$0xff]  ;;  %v487_v4 = vld [vmem:[%s6212_s24 + $0x478] sm:$0xff] }
 0x257   : > { %3778 = vmatprep.subr.mxu0 %v1155_v59  ;;  %v6814_v10 = vadd.f32 %v3041_v48, %v2881_v5  ;;  %3938 = vmatpush1.msra.mxu1 %v1286_v45  ;;  %v1278_v48 = vunpack.c.l.bf16 %v555_v39  ;;  %v1146_v45 = vunpack.c.l.bf16 %v489_v51  ;;  %v1274_v39 = vunpack.c.l.bf16 %v553_v7  ;;  %v5588_v51 = vld [vmem:[#allocation2 + $0x208] sm:$0xff]  ;;  %v5590_v7 = vld [vmem:[#allocation2 + $0x218] sm:$0xff] }
 0x258   : > { %3528 = vmatprep.mubr.f32.mxu0 %v5584_v19  ;;  %v6817_v17 = vpop.f32.mrf.mxu1  ;;  %3779 = vmatpush1.msra.mxu0 %v1154_v14  ;;  %v5587_v19 = vld [vmem:[#allocation2 + $0x190] sm:$0xff]  ;;  %v551_v14 = vld [vmem:[%s6212_s24 + $0x678] sm:$0xff] }
 0x259   : > { %8563 = vst [vmem:[#allocation60_spill] sm:$0xff] %v6814_v10  ;;  %8564 = vst [vmem:[#allocation61_spill] sm:$0xff] %v6817_v17  ;;  %3939 = vmatprep.subr.mxu1 %v1283_v28  ;;  %3529 = vmatmul.mubr.f32.gmra.mxu0 %v5585_v52  ;;  %v2886_v59 = vpop.f32.mrf.mxu0  ;;  %v485_v28 = vld [vmem:[%s6212_s24 + $0x468] sm:$0xff]  ;;  %v1143_v52 = vunpack.c.h.bf16 %v487_v4 }
 0x25a   : > { %3689 = vmatprep.mubr.f32.mxu1 %v5586_v60  ;;  %3780 = vmatprep.subr.mxu0 %v1151_v0  ;;  %v2887_v5 = vadd.f32 %v2886_v59, %v6647_v62  ;;  %v1142_v62 = vunpack.c.l.bf16 %v487_v4  ;;  %v1139_v59 = vunpack.c.h.bf16 %v485_v28 }
 0x25b   : > { %3940 = vmatpush1.msra.mxu1 %v1282_v21  ;;  %3781 = vmatpush1.msra.mxu0 %v1150_v16  ;;  %v6823_v17 = vpop.f32.mrf.mxu0  ;;  %v549_v21 = vld [vmem:[%s6212_s24 + $0x668] sm:$0xff]  ;;  %v1271_v16 = vunpack.c.h.bf16 %v551_v14 }
 0x25c   : > { %3690 = vmatmul.mubr.f32.gmra.mxu1 %v5587_v19  ;;  %v3047_v10 = vpop.f32.mrf.mxu1  ;;  %3941 = vmatprep.subr.mxu1 %v1279_v20  ;;  %v5589_v19 = vld [vmem:[#allocation2 + $0x200] sm:$0xff]  ;;  %v483_v20 = vld [vmem:[%s6212_s24 + $0x458] sm:$0xff]  ;;  %v1267_v4 = vunpack.c.h.bf16 %v549_v21 }
 0x25d   : > { %3782 = vmatprep.subr.mxu0 %v1147_v42  ;;  %v6825_v60 = vadd.f32 %v3047_v10, %v2887_v5  ;;  %3942 = vmatpush1.msra.mxu1 %v1278_v48  ;;  %v1270_v10 = vunpack.c.l.bf16 %v551_v14  ;;  %v1138_v48 = vunpack.c.l.bf16 %v485_v28  ;;  %v1266_v14 = vunpack.c.l.bf16 %v549_v21  ;;  %v5592_v28 = vld [vmem:[#allocation2 + $0x288] sm:$0xff]  ;;  %v5594_v21 = vld [vmem:[#allocation2 + $0x298] sm:$0xff] }
 0x25e   : > { %3534 = vmatprep.mubr.f32.mxu0 %v5588_v51  ;;  %v6828_v0 = vpop.f32.mrf.mxu1  ;;  %3783 = vmatpush1.msra.mxu0 %v1146_v45  ;;  %v5591_v51 = vld [vmem:[#allocation2 + $0x210] sm:$0xff]  ;;  %v547_v45 = vld [vmem:[%s6212_s24 + $0x658] sm:$0xff] }
 0x25f   : > { %8565 = vst [vmem:[#allocation62_spill] sm:$0xff] %v6825_v60  ;;  %8566 = vst [vmem:[#allocation63_spill] sm:$0xff] %v6828_v0  ;;  %3943 = vmatprep.subr.mxu1 %v1275_v26  ;;  %3535 = vmatmul.mubr.f32.gmra.mxu0 %v5589_v19  ;;  %v2892_v42 = vpop.f32.mrf.mxu0  ;;  %v481_v26 = vld [vmem:[%s6212_s24 + $0x448] sm:$0xff]  ;;  %v1135_v19 = vunpack.c.h.bf16 %v483_v20 }
 0x260   : > { %3695 = vmatprep.mubr.f32.mxu1 %v5590_v7  ;;  %3784 = vmatprep.subr.mxu0 %v1143_v52  ;;  %v2893_v5 = vadd.f32 %v2892_v42, %v6658_v11  ;;  %v1134_v11 = vunpack.c.l.bf16 %v483_v20  ;;  %v1131_v42 = vunpack.c.h.bf16 %v481_v26 }
 0x261   : > { %3944 = vmatpush1.msra.mxu1 %v1274_v39  ;;  %3785 = vmatpush1.msra.mxu0 %v1142_v62  ;;  %v6834_v0 = vpop.f32.mrf.mxu0  ;;  %v545_v39 = vld [vmem:[%s6212_s24 + $0x648] sm:$0xff]  ;;  %v1263_v62 = vunpack.c.h.bf16 %v547_v45 }
 0x262   : > { %3696 = vmatmul.mubr.f32.gmra.mxu1 %v5591_v51  ;;  %v3053_v60 = vpop.f32.mrf.mxu1  ;;  %3945 = vmatprep.subr.mxu1 %v1271_v16  ;;  %v5593_v51 = vld [vmem:[#allocation2 + $0x280] sm:$0xff]  ;;  %v479_v16 = vld [vmem:[%s6212_s24 + $0x438] sm:$0xff]  ;;  %v1259_v20 = vunpack.c.h.bf16 %v545_v39 }
 0x263   : > { %3786 = vmatprep.subr.mxu0 %v1139_v59  ;;  %v6836_v7 = vadd.f32 %v3053_v60, %v2893_v5  ;;  %3946 = vmatpush1.msra.mxu1 %v1270_v10  ;;  %v1262_v60 = vunpack.c.l.bf16 %v547_v45  ;;  %v1130_v10 = vunpack.c.l.bf16 %v481_v26  ;;  %v1258_v45 = vunpack.c.l.bf16 %v545_v39  ;;  %v5596_v26 = vld [vmem:[#allocation2 + $0x308] sm:$0xff]  ;;  %v5598_v39 = vld [vmem:[#allocation2 + $0x318] sm:$0xff] }
 0x264   : > { %3540 = vmatprep.mubr.f32.mxu0 %v5592_v28  ;;  %v6839_v52 = vpop.f32.mrf.mxu1  ;;  %3787 = vmatpush1.msra.mxu0 %v1138_v48  ;;  %v5595_v28 = vld [vmem:[#allocation2 + $0x290] sm:$0xff]  ;;  %v543_v48 = vld [vmem:[%s6212_s24 + $0x638] sm:$0xff] }
 0x265   : > { %8567 = vst [vmem:[#allocation64_spill] sm:$0xff] %v6836_v7  ;;  %8568 = vst [vmem:[#allocation65_spill] sm:$0xff] %v6839_v52  ;;  %3947 = vmatprep.subr.mxu1 %v1267_v4  ;;  %3541 = vmatmul.mubr.f32.gmra.mxu0 %v5593_v51  ;;  %v2898_v59 = vpop.f32.mrf.mxu0  ;;  %v477_v4 = vld [vmem:[%s6212_s24 + $0x428] sm:$0xff]  ;;  %v1127_v51 = vunpack.c.h.bf16 %v479_v16 }
 0x266   : > { %3701 = vmatprep.mubr.f32.mxu1 %v5594_v21  ;;  %3788 = vmatprep.subr.mxu0 %v1135_v19  ;;  %v2899_v5 = vadd.f32 %v2898_v59, %v6669_v38  ;;  %v1126_v38 = vunpack.c.l.bf16 %v479_v16  ;;  %v1123_v59 = vunpack.c.h.bf16 %v477_v4 }
 0x267   : > { %3948 = vmatpush1.msra.mxu1 %v1266_v14  ;;  %3789 = vmatpush1.msra.mxu0 %v1134_v11  ;;  %v6845_v52 = vpop.f32.mrf.mxu0  ;;  %v541_v14 = vld [vmem:[%s6212_s24 + $0x628] sm:$0xff]  ;;  %v1255_v11 = vunpack.c.h.bf16 %v543_v48 }
 0x268   : > { %3702 = vmatmul.mubr.f32.gmra.mxu1 %v5595_v28  ;;  %v3059_v7 = vpop.f32.mrf.mxu1  ;;  %3949 = vmatprep.subr.mxu1 %v1263_v62  ;;  %v5597_v28 = vld [vmem:[#allocation2 + $0x300] sm:$0xff]  ;;  %v475_v62 = vld [vmem:[%s6212_s24 + $0x418] sm:$0xff]  ;;  %v1251_v16 = vunpack.c.h.bf16 %v541_v14 }
 0x269   : > { %3790 = vmatprep.subr.mxu0 %v1131_v42  ;;  %v6847_v21 = vadd.f32 %v3059_v7, %v2899_v5  ;;  %3950 = vmatpush1.msra.mxu1 %v1262_v60  ;;  %v1254_v7 = vunpack.c.l.bf16 %v543_v48  ;;  %v1122_v60 = vunpack.c.l.bf16 %v477_v4  ;;  %v1250_v48 = vunpack.c.l.bf16 %v541_v14  ;;  %v5600_v4 = vld [vmem:[#allocation2 + $0x388] sm:$0xff]  ;;  %v5602_v14 = vld [vmem:[#allocation2 + $0x398] sm:$0xff] }
 0x26a   : > { %3546 = vmatprep.mubr.f32.mxu0 %v5596_v26  ;;  %v6850_v19 = vpop.f32.mrf.mxu1  ;;  %3791 = vmatpush1.msra.mxu0 %v1130_v10  ;;  %v5599_v26 = vld [vmem:[#allocation2 + $0x310] sm:$0xff]  ;;  %v539_v10 = vld [vmem:[%s6212_s24 + $0x618] sm:$0xff] }
 0x26b   : > { %8569 = vst [vmem:[#allocation66_spill] sm:$0xff] %v6847_v21  ;;  %8570 = vst [vmem:[#allocation67_spill] sm:$0xff] %v6850_v19  ;;  %3951 = vmatprep.subr.mxu1 %v1259_v20  ;;  %3547 = vmatmul.mubr.f32.gmra.mxu0 %v5597_v28  ;;  %v2904_v42 = vpop.f32.mrf.mxu0  ;;  %v473_v20 = vld [vmem:[%s6212_s24 + $0x408] sm:$0xff]  ;;  %v1119_v28 = vunpack.c.h.bf16 %v475_v62 }
 0x26c   : > { %3707 = vmatprep.mubr.f32.mxu1 %v5598_v39  ;;  %3792 = vmatprep.subr.mxu0 %v1127_v51  ;;  %v2905_v5 = vadd.f32 %v2904_v42, %v6680_v56  ;;  %v1118_v56 = vunpack.c.l.bf16 %v475_v62  ;;  %v1115_v42 = vunpack.c.h.bf16 %v473_v20 }
 0x26d   : > { %3952 = vmatpush1.msra.mxu1 %v1258_v45  ;;  %3793 = vmatpush1.msra.mxu0 %v1126_v38  ;;  %v6856_v19 = vpop.f32.mrf.mxu0  ;;  %v537_v45 = vld [vmem:[%s6212_s24 + $0x608] sm:$0xff]  ;;  %v1247_v38 = vunpack.c.h.bf16 %v539_v10 }
 0x26e   : > { %3708 = vmatmul.mubr.f32.gmra.mxu1 %v5599_v26  ;;  %v3065_v21 = vpop.f32.mrf.mxu1  ;;  %3953 = vmatprep.subr.mxu1 %v1255_v11  ;;  %v5601_v26 = vld [vmem:[#allocation2 + $0x380] sm:$0xff]  ;;  %v535_v11 = vld [vmem:[%s6212_s24 + $0x5f8] sm:$0xff]  ;;  %v1243_v62 = vunpack.c.h.bf16 %v537_v45 }
 0x26f   : > { %3794 = vmatprep.subr.mxu0 %v1123_v59  ;;  %v6858_v39 = vadd.f32 %v3065_v21, %v2905_v5  ;;  %3954 = vmatpush1.msra.mxu1 %v1254_v7  ;;  %v1246_v21 = vunpack.c.l.bf16 %v539_v10  ;;  %v1114_v7 = vunpack.c.l.bf16 %v473_v20  ;;  %v1242_v10 = vunpack.c.l.bf16 %v537_v45  ;;  %v5604_v20 = vld [vmem:[#allocation2 + $0x408] sm:$0xff]  ;;  %v5606_v45 = vld [vmem:[#allocation2 + $0x418] sm:$0xff] }
 0x270   : > { %3552 = vmatprep.mubr.f32.mxu0 %v5600_v4  ;;  %v6861_v51 = vpop.f32.mrf.mxu1  ;;  %3795 = vmatpush1.msra.mxu0 %v1122_v60  ;;  %v5603_v4 = vld [vmem:[#allocation2 + $0x390] sm:$0xff]  ;;  %v599_v60 = vld [vmem:[%s6212_s24 + $0x7f8] sm:$0xff] }
 0x271   : > { %8571 = vst [vmem:[#allocation68_spill] sm:$0xff] %v6858_v39  ;;  %8572 = vst [vmem:[#allocation69_spill] sm:$0xff] %v6861_v51  ;;  %3955 = vmatprep.subr.mxu1 %v1251_v16  ;;  %3553 = vmatmul.mubr.f32.gmra.mxu0 %v5601_v26  ;;  %v2910_v59 = vpop.f32.mrf.mxu0  ;;  %v533_v16 = vld [vmem:[%s6212_s24 + $0x5e8] sm:$0xff]  ;;  %v1239_v26 = vunpack.c.h.bf16 %v535_v11 }
 0x272   : > { %3713 = vmatprep.mubr.f32.mxu1 %v5602_v14  ;;  %3796 = vmatprep.subr.mxu0 %v1119_v28  ;;  %v2911_v5 = vadd.f32 %v2910_v59, %v6691_v25  ;;  %v1238_v25 = vunpack.c.l.bf16 %v535_v11  ;;  %v1235_v59 = vunpack.c.h.bf16 %v533_v16 }
 0x273   : > { %3956 = vmatpush1.msra.mxu1 %v1250_v48  ;;  %3797 = vmatpush1.msra.mxu0 %v1118_v56  ;;  %v6867_v51 = vpop.f32.mrf.mxu0  ;;  %v597_v48 = vld [vmem:[%s6212_s24 + $0x7e8] sm:$0xff]  ;;  %v1367_v56 = vunpack.c.h.bf16 %v599_v60 }
 0x274   : > { %3714 = vmatmul.mubr.f32.gmra.mxu1 %v5603_v4  ;;  %v3071_v39 = vpop.f32.mrf.mxu1  ;;  %3957 = vmatprep.subr.mxu1 %v1247_v38  ;;  %v5605_v4 = vld [vmem:[#allocation2 + $0x400] sm:$0xff]  ;;  %v531_v38 = vld [vmem:[%s6212_s24 + $0x5d8] sm:$0xff]  ;;  %v1363_v11 = vunpack.c.h.bf16 %v597_v48 }
 0x275   : > { %3798 = vmatprep.subr.mxu0 %v1115_v42  ;;  %v6869_v14 = vadd.f32 %v3071_v39, %v2911_v5  ;;  %3958 = vmatpush1.msra.mxu1 %v1246_v21  ;;  %v1366_v39 = vunpack.c.l.bf16 %v599_v60  ;;  %v1234_v21 = vunpack.c.l.bf16 %v533_v16  ;;  %v1362_v60 = vunpack.c.l.bf16 %v597_v48  ;;  %v5608_v16 = vld [vmem:[#allocation2 + $0x488] sm:$0xff]  ;;  %v5610_v48 = vld [vmem:[#allocation2 + $0x498] sm:$0xff] }
 0x276   : > { %3558 = vmatprep.mubr.f32.mxu0 %v5604_v20  ;;  %v6872_v28 = vpop.f32.mrf.mxu1  ;;  %3799 = vmatpush1.msra.mxu0 %v1114_v7  ;;  %v5607_v20 = vld [vmem:[#allocation2 + $0x410] sm:$0xff]  ;;  %v595_v7 = vld [vmem:[%s6212_s24 + $0x7d8] sm:$0xff] }
 0x277   : > { %8573 = vst [vmem:[#allocation70_spill] sm:$0xff] %v6869_v14  ;;  %8574 = vst [vmem:[#allocation71_spill] sm:$0xff] %v6872_v28  ;;  %3959 = vmatprep.subr.mxu1 %v1243_v62  ;;  %3559 = vmatmul.mubr.f32.gmra.mxu0 %v5605_v4  ;;  %v2916_v42 = vpop.f32.mrf.mxu0  ;;  %v529_v62 = vld [vmem:[%s6212_s24 + $0x5c8] sm:$0xff]  ;;  %v1231_v4 = vunpack.c.h.bf16 %v531_v38 }
 0x278   : > { %3719 = vmatprep.mubr.f32.mxu1 %v5606_v45  ;;  %3800 = vmatprep.subr.mxu0 %v1239_v26  ;;  %v2917_v5 = vadd.f32 %v2916_v42, %v6702_v32  ;;  %v1230_v32 = vunpack.c.l.bf16 %v531_v38  ;;  %v1227_v42 = vunpack.c.h.bf16 %v529_v62 }
 0x279   : > { %3960 = vmatpush1.msra.mxu1 %v1242_v10  ;;  %3801 = vmatpush2.msra.mxu0 %v1238_v25  ;;  %v6878_v28 = vpop.f32.mrf.mxu0  ;;  %v593_v10 = vld [vmem:[%s6212_s24 + $0x7c8] sm:$0xff]  ;;  %v1359_v25 = vunpack.c.h.bf16 %v595_v7 }
 0x27a   : > { %3720 = vmatmul.mubr.f32.gmra.mxu1 %v5607_v20  ;;  %v3077_v14 = vpop.f32.mrf.mxu1  ;;  %3961 = vmatprep.subr.mxu1 %v1367_v56  ;;  %v5609_v20 = vld [vmem:[#allocation2 + $0x480] sm:$0xff]  ;;  %v527_v56 = vld [vmem:[%s6212_s24 + $0x5b8] sm:$0xff]  ;;  %v1355_v38 = vunpack.c.h.bf16 %v593_v10 }
 0x27b   : > { %3802 = vmatprep.subr.mxu0 %v1235_v59  ;;  %v6880_v45 = vadd.f32 %v3077_v14, %v2917_v5  ;;  %3962 = vmatpush2.msra.mxu1 %v1366_v39  ;;  %v1358_v14 = vunpack.c.l.bf16 %v595_v7  ;;  %v1226_v39 = vunpack.c.l.bf16 %v529_v62  ;;  %v1354_v7 = vunpack.c.l.bf16 %v593_v10  ;;  %v5612_v62 = vld [vmem:[#allocation2 + $0x508] sm:$0xff]  ;;  %v5614_v10 = vld [vmem:[#allocation2 + $0x518] sm:$0xff] }
 0x27c   : > { %3564 = vmatprep.mubr.f32.mxu0 %v5608_v16  ;;  %v6883_v26 = vpop.f32.mrf.mxu1  ;;  %3803 = vmatpush2.msra.mxu0 %v1234_v21  ;;  %v5611_v16 = vld [vmem:[#allocation2 + $0x490] sm:$0xff]  ;;  %v591_v21 = vld [vmem:[%s6212_s24 + $0x7b8] sm:$0xff] }
 0x27d   : > { %8575 = vst [vmem:[#allocation72_spill] sm:$0xff] %v6880_v45  ;;  %8576 = vst [vmem:[#allocation73_spill] sm:$0xff] %v6883_v26  ;;  %3963 = vmatprep.subr.mxu1 %v1363_v11  ;;  %3565 = vmatmul.mubr.f32.gmra.mxu0 %v5609_v20  ;;  %v2922_v59 = vpop.f32.mrf.mxu0  ;;  %v525_v11 = vld [vmem:[%s6212_s24 + $0x5a8] sm:$0xff]  ;;  %v1223_v20 = vunpack.c.h.bf16 %v527_v56 }
 0x27e   : > { %3725 = vmatprep.mubr.f32.mxu1 %v5610_v48  ;;  %3804 = vmatprep.subr.mxu0 %v1231_v4  ;;  %v2923_v5 = vadd.f32 %v2922_v59, %v6713_v55  ;;  %v1222_v55 = vunpack.c.l.bf16 %v527_v56  ;;  %v1219_v59 = vunpack.c.h.bf16 %v525_v11 }
 0x27f   : > { %3964 = vmatpush2.msra.mxu1 %v1362_v60  ;;  %3805 = vmatpush2.msra.mxu0 %v1230_v32  ;;  %v6889_v26 = vpop.f32.mrf.mxu0  ;;  %v589_v60 = vld [vmem:[%s6212_s24 + $0x7a8] sm:$0xff]  ;;  %v1351_v32 = vunpack.c.h.bf16 %v591_v21 }
 0x280   : > { %3726 = vmatmul.mubr.f32.gmra.mxu1 %v5611_v16  ;;  %v3083_v45 = vpop.f32.mrf.mxu1  ;;  %3965 = vmatprep.subr.mxu1 %v1359_v25  ;;  %v5613_v16 = vld [vmem:[#allocation2 + $0x500] sm:$0xff]  ;;  %v523_v25 = vld [vmem:[%s6212_s24 + $0x598] sm:$0xff]  ;;  %v1347_v56 = vunpack.c.h.bf16 %v589_v60 }
 0x281   : > { %3806 = vmatprep.subr.mxu0 %v1227_v42  ;;  %v6891_v48 = vadd.f32 %v3083_v45, %v2923_v5  ;;  %3966 = vmatpush2.msra.mxu1 %v1358_v14  ;;  %v1350_v45 = vunpack.c.l.bf16 %v591_v21  ;;  %v1218_v14 = vunpack.c.l.bf16 %v525_v11  ;;  %v1346_v21 = vunpack.c.l.bf16 %v589_v60  ;;  %v5618_v60 = vld [vmem:[#allocation2 + $0x598] sm:$0xff] }
 0x282   : > { %3570 = vmatprep.mubr.f32.mxu0 %v5612_v62  ;;  %v6894_v4 = vpop.f32.mrf.mxu1  ;;  %3807 = vmatpush2.msra.mxu0 %v1226_v39  ;;  %v5615_v62 = vld [vmem:[#allocation2 + $0x510] sm:$0xff]  ;;  %v587_v39 = vld [vmem:[%s6212_s24 + $0x798] sm:$0xff]  ;;  %v1214_v11 = vunpack.c.l.bf16 %v523_v25 }
 0x283   : > { %8577 = vst [vmem:[#allocation74_spill] sm:$0xff] %v6891_v48  ;;  %8578 = vst [vmem:[#allocation75_spill] sm:$0xff] %v6894_v4  ;;  %3967 = vmatprep.subr.mxu1 %v1355_v38  ;;  %3571 = vmatmul.mubr.f32.gmra.mxu0 %v5613_v16  ;;  %v2928_v42 = vpop.f32.mrf.mxu0  ;;  %v521_v38 = vld [vmem:[%s6212_s24 + $0x588] sm:$0xff]  ;;  %v5617_v16 = vld [vmem:[#allocation2 + $0x580] sm:$0xff] }
 0x284   : > { %3731 = vmatprep.mubr.f32.mxu1 %v5614_v10  ;;  %3808 = vmatprep.subr.mxu0 %v1223_v20  ;;  %v2929_v5 = vadd.f32 %v2928_v42, %v6724_v15  ;;  %v1215_v20 = vunpack.c.h.bf16 %v523_v25  ;;  %v5616_v15 = vld [vmem:[#allocation2 + $0x588] sm:$0xff]  ;;  %v1343_v42 = vunpack.c.h.bf16 %v587_v39 }
 0x285   : > { %3968 = vmatpush2.msra.mxu1 %v1354_v7  ;;  %3809 = vmatpush2.msra.mxu0 %v1222_v55  ;;  %v6900_v4 = vpop.f32.mrf.mxu0  ;;  %v585_v55 = vld [vmem:[%s6212_s24 + $0x788] sm:$0xff] }
 0x286   : > { %3732 = vmatmul.mubr.f32.gmra.mxu1 %v5615_v62  ;;  %v3089_v48 = vpop.f32.mrf.mxu1  ;;  %8579 = vst [vmem:[#allocation76_spill] sm:$0xff] %v6900_v4  ;;  %3969 = vmatprep.subr.mxu1 %v1351_v32  ;;  %v1211_v62 = vunpack.c.h.bf16 %v521_v38  ;;  %v519_v32 = vld [vmem:[%s6212_s24 + $0x578] sm:$0xff]  ;;  %v1338_v4 = vunpack.c.l.bf16 %v585_v55 }
 0x287   : > { %3810 = vmatprep.subr.mxu0 %v1219_v59  ;;  %v6903_v7 = vadd.f32 %v3089_v48, %v2929_v5  ;;  %3970 = vmatpush2.msra.mxu1 %v1350_v45  ;;  %v1342_v48 = vunpack.c.l.bf16 %v587_v39  ;;  %v5619_v45 = vld [vmem:[%s6219_s23] sm:$0xf]  ;;  %v8582_v5 = vsub.s32 1, %v6417_v50 }
 0x288   : > { %3576 = vmatprep.mubr.f32.mxu0 %v5616_v15  ;;  %v6906_v10 = vpop.f32.mrf.mxu1  ;;  %3811 = vmatpush2.msra.mxu0 %v1218_v14  ;;  %v1210_v14 = vunpack.c.l.bf16 %v521_v38  ;;  %v5621_v38 = vld [vmem:[#allocation2 + $0x608] sm:$0xff] }
 0x289   : > { %8580 = vst [vmem:[#allocation77_spill] sm:$0xff] %v6903_v7  ;;  %8581 = vst [vmem:[#allocation78_spill] sm:$0xff] %v6906_v10  ;;  %3971 = vmatprep.subr.mxu1 %v1347_v56  ;;  %3577 = vmatmul.mubr.f32.gmra.mxu0 %v5617_v16  ;;  %v2934_v59 = vpop.f32.mrf.mxu0  ;;  %v6912_v25 = vrot.slane %v5619_v45, %v8582_v5  ;;  %v1339_v56 = vunpack.c.h.bf16 %v585_v55  ;;  %v5620_v7 = vld [vmem:[#allocation2 + $0x590] sm:$0xff]  ;;  %v583_v16 = vld [vmem:[%s6212_s24 + $0x778] sm:$0xff]  ;;  %v1207_v45 = vunpack.c.h.bf16 %v519_v32 }
 0x28a   : > { %3737 = vmatprep.mubr.f32.mxu1 %v5618_v60  ;;  %3812 = vmatprep.subr.mxu0 %v1215_v20  ;;  %v2935_v15 = vadd.f32 %v2934_v59, %v6735_v40  ;;  %v517_v60 = vld [vmem:[%s6212_s24 + $0x568] sm:$0xff]  ;;  %v1206_v40 = vunpack.c.l.bf16 %v519_v32  ;;  %v1334_v32 = vunpack.c.l.bf16 %v583_v16  ;;  %v515_v59 = vld [vmem:[%s6212_s24 + $0x558] sm:$0xff] }
 0x28b   : > { %3972 = vmatpush2.msra.mxu1 %v1346_v21  ;;  %3813 = vmatpush2.msra.mxu0 %v1214_v11  ;;  %v6917_v10 = vpop.f32.mrf.mxu0  ;;  %v6922_v21 = vld [vmem:[%s6212_s24 + $0x768] sm:$0xff]  ;;  %v1335_v11 = vunpack.c.h.bf16 %v583_v16  ;;  %v2233_v55 = vadd.f32 %v6447_v49, %v6912_v25  ;;  %v2245_v49 = vadd.f32 %v6469_v34, %v6912_v25  ;;  %v579_v16 = vld [vmem:[%s6212_s24 + $0x758] sm:$0xff] }
 0x28c   : > { %3738 = vmatmul.mubr.f32.gmra.mxu1 %v5620_v7  ;;  %v3095_v39 = vpop.f32.mrf.mxu1  ;;  %3973 = vmatprep.subr.mxu1 %v1343_v42  ;;  %v2227_v7 = vadd.f32 %v6436_v27, %v6912_v25  ;;  %v1203_v42 = vunpack.c.h.bf16 %v517_v60  ;;  %v1202_v27 = vunpack.c.l.bf16 %v517_v60  ;;  %v1330_v34 = vunpack.c.l.bf16 %v6922_v21 }
 0x28d   : > { %3814 = vmatprep.subr.mxu0 %v1211_v62  ;;  %v6919_v5 = vadd.f32 %v3095_v39, %v2935_v15  ;;  %3974 = vmatpush2.msra.mxu1 %v1342_v48  ;;  %v5622_v62 = vld [vmem:[#allocation2 + $0x600] sm:$0xff]  ;;  %v5623_v48 = vld [vmem:[#allocation2 + $0x618] sm:$0xff]  ;;  %v2239_v39 = vadd.f32 %v6458_v9, %v6912_v25 }
 0x28e   : > { %3582 = vmatprep.mubr.f32.mxu0 %v5621_v38  ;;  %v6924_v20 = vpop.f32.mrf.mxu1  ;;  %3815 = vmatpush2.msra.mxu0 %v1210_v14  ;;  %v1331_v14 = vunpack.c.h.bf16 %v6922_v21  ;;  %v2251_v38 = vadd.f32 %v6480_v61, %v6912_v25  ;;  %v6946_v60 = vadd.f32 %v6441_v35, %v2227_v7  ;;  %v6952_v61 = vadd.f32 %v6452_v58, %v2233_v55  ;;  %v6959_v7 = vld [vmem:[%s6212_s24 + $0x748] sm:$0xff] }
 0x28f   : > { %3975 = vmatprep.subr.mxu1 %v1339_v56  ;;  %3583 = vmatmul.mubr.f32.gmra.mxu0 %v5622_v62  ;;  %v2940_v15 = vpop.f32.mrf.mxu0  ;;  %v5624_v62 = vld [vmem:[#allocation2 + $0x610] sm:$0xff]  ;;  %v1198_v35 = vunpack.c.l.bf16 %v515_v59  ;;  %v2269_v58 = vadd.f32 %v6513_v22, %v6912_v25  ;;  %v1326_v22 = vunpack.c.l.bf16 %v579_v16 }
 0x290   : > { %3743 = vmatprep.mubr.f32.mxu1 %v5623_v48  ;;  %3816 = vmatprep.subr.mxu0 %v1207_v45  ;;  %v2941_v56 = vadd.f32 %v2940_v15, %v6746_v3  ;;  %v6941_v48 = vld [vmem:[%s6212_s24 + $0x548] sm:$0xff]  ;;  %v1199_v3 = vunpack.c.h.bf16 %v515_v59  ;;  %v2263_v15 = vadd.f32 %v6502_v54, %v6912_v25  ;;  %v6973_v55 = vadd.f32 %v6485_v6, %v2251_v38  ;;  %v5626_v59 = vld [vmem:[#allocation2 + $0x680] sm:$0xff] }
 0x291   : > { %3976 = vmatpush2.msra.mxu1 %v1338_v4  ;;  %3817 = vmatpush2.msra.mxu0 %v1206_v40  ;;  %v6943_v4 = vpop.f32.mrf.mxu0  ;;  %v2257_v40 = vadd.f32 %v6491_v24, %v6912_v25  ;;  %v1327_v24 = vunpack.c.h.bf16 %v579_v16  ;;  %v1195_v54 = vunpack.c.h.bf16 %v6941_v48  ;;  %v1323_v6 = vunpack.c.h.bf16 %v6959_v7  ;;  %v5628_v16 = vld [vmem:[#allocation2 + $0x690] sm:$0xff] }
 0x292   : > { %3744 = vmatmul.mubr.f32.gmra.mxu1 %v5624_v62  ;;  %v3101_v9 = vpop.f32.mrf.mxu1  ;;  %3977 = vmatprep.subr.mxu1 %v1335_v11  ;;  %v5625_v62 = vld [vmem:[#allocation2 + $0x688] sm:$0xff]  ;;  %v6964_v11 = vadd.f32 %v6463_v18, %v2239_v39  ;;  %v5627_v18 = vld [vmem:[#allocation2 + $0x698] sm:$0xff]  ;;  %v2287_v38 = vadd.f32 %v6546_v12, %v6912_v25 }
 0x293   : > { %3818 = vmatprep.subr.mxu0 %v1203_v42  ;;  %v6949_v45 = vadd.f32 %v3101_v9, %v2941_v56  ;;  %3978 = vmatpush2.msra.mxu1 %v1334_v32  ;;  %v6970_v42 = vadd.f32 %v6474_v43, %v2245_v49  ;;  %v2275_v32 = vadd.f32 %v6524_v57, %v6912_v25  ;;  %v511_v39 = vld [vmem:[%s6212_s24 + $0x538] sm:$0xff]  ;;  %v1194_v43 = vunpack.c.l.bf16 %v6941_v48  ;;  %v6993_v9 = vld [vmem:[%s6212_s24 + $0x528] sm:$0xff] }
 0x294   : > { %3588 = vmatprep.mubr.f32.mxu0 %v5625_v62  ;;  %v6961_v21 = vpop.f32.mrf.mxu1  ;;  %3819 = vmatpush2.msra.mxu0 %v1202_v27  ;;  %v6984_v56 = vadd.f32 %v6496_v36, %v2257_v40  ;;  %v6987_v49 = vadd.f32 %v6507_v2, %v2263_v15  ;;  %v1322_v36 = vunpack.c.l.bf16 %v6959_v7  ;;  %v1191_v2 = vunpack.c.h.bf16 %v511_v39  ;;  %v5629_v62 = vld [vmem:[#allocation2 + $0x708] sm:$0xff] }
 0x295   : > { %3979 = vmatprep.subr.mxu1 %v1331_v14  ;;  %3589 = vmatmul.mubr.f32.gmra.mxu0 %v5626_v59  ;;  %v2946_v27 = vpop.f32.mrf.mxu0  ;;  %v2281_v14 = vadd.f32 %v6535_v31, %v6912_v25  ;;  %v575_v31 = vld [vmem:[%s6212_s24 + $0x738] sm:$0xff]  ;;  %v7004_v12 = vadd.f32 %v6529_v8, %v2275_v32  ;;  %v2293_v40 = vadd.f32 %v6557_v53, %v6912_v25  ;;  %v8584_v32 = vld [vmem:[#allocation18_spill] sm:$0xff] }
 0x296   : > { %3749 = vmatprep.mubr.f32.mxu1 %v5627_v18  ;;  %3820 = vmatprep.subr.mxu0 %v1199_v3  ;;  %v2947_v57 = vadd.f32 %v2946_v27, %v6757_v30  ;;  %v6998_v30 = vadd.f32 %v6518_v37, %v2269_v58  ;;  %v2299_v15 = vadd.f32 %v6568_v44, %v6912_v25  ;;  %v1190_v37 = vunpack.c.l.bf16 %v511_v39  ;;  %v507_v39 = vld [vmem:[%s6212_s24 + $0x518] sm:$0xff] }
 0x297   : > { %3980 = vmatpush2.msra.mxu1 %v1330_v34  ;;  %3821 = vmatpush2.msra.mxu0 %v1198_v35  ;;  %v6995_v34 = vpop.f32.mrf.mxu0  ;;  %v7011_v35 = vld [vmem:[%s6212_s24 + $0x728] sm:$0xff]  ;;  %v7016_v58 = vadd.f32 %v6540_v46, %v2281_v14  ;;  %v2305_v8 = vadd.f32 %v6579_v41, %v6912_v25  ;;  %v1319_v53 = vunpack.c.h.bf16 %v575_v31  ;;  %v1187_v44 = vunpack.c.h.bf16 %v6993_v9  ;;  %v5631_v46 = vld [vmem:[#allocation2 + $0x718] sm:$0xff] }
 0x298   : > { %3750 = vmatmul.mubr.f32.gmra.mxu1 %v5628_v16  ;;  %v3107_v48 = vpop.f32.mrf.mxu1  ;;  %3981 = vmatprep.subr.mxu1 %v1327_v24  ;;  %v8583_v24 = vld [vmem:[#allocation14_spill] sm:$0xff]  ;;  %v2311_v59 = vadd.f32 %v8584_v32, %v6912_v25  ;;  %v2317_v18 = vadd.f32 %v6601_v23, %v6912_v25  ;;  %v1318_v41 = vunpack.c.l.bf16 %v575_v31  ;;  %v8585_v14 = vld [vmem:[#allocation21_spill] sm:$0xff]  ;;  %v8586_v25 = vld [vmem:[#allocation15_spill] sm:$0xff]  ;;  %v2555_v31 = vadd.f32 %v6623_v33, %v6952_v61 }
 0x299   : > { %3822 = vmatprep.subr.mxu0 %v1195_v54  ;;  %v7001_v3 = vadd.f32 %v3107_v48, %v2947_v57  ;;  %3982 = vmatpush2.msra.mxu1 %v1326_v22  ;;  %v7022_v54 = vadd.f32 %v8583_v24, %v2287_v38  ;;  %v5630_v22 = vld [vmem:[#allocation2 + $0x700] sm:$0xff]  ;;  %v1315_v57 = vunpack.c.h.bf16 %v7011_v35  ;;  %v7035_v38 = vadd.f32 %v8586_v25, %v2293_v40  ;;  %v8588_v24 = vld [vmem:[#allocation17_spill] sm:$0xff]  ;;  %v8589_v33 = vld [vmem:[#allocation19_spill] sm:$0xff] }
 0x29a   : > { %3594 = vmatprep.mubr.f32.mxu0 %v5629_v62  ;;  %v7013_v7 = vpop.f32.mrf.mxu1  ;;  %3823 = vmatpush2.msra.mxu0 %v1194_v43  ;;  %v2549_v43 = vadd.f32 %v8585_v14, %v6946_v60  ;;  %v8587_v16 = vld [vmem:[#allocation16_spill] sm:$0xff]  ;;  %v5632_v62 = vld [vmem:[#allocation2 + $0x710] sm:$0xff]  ;;  %v571_v60 = vld [vmem:[%s6212_s24 + $0x718] sm:$0xff]  ;;  %v1314_v40 = vunpack.c.l.bf16 %v7011_v35  ;;  %v7053_v61 = vadd.f32 %v8589_v33, %v2311_v59 }
 0x29b   : > { %3983 = vmatprep.subr.mxu1 %v1323_v6  ;;  %3595 = vmatmul.mubr.f32.gmra.mxu0 %v5630_v22  ;;  %v2952_v27 = vpop.f32.mrf.mxu0  ;;  %v1186_v6 = vunpack.c.l.bf16 %v6993_v9  ;;  %v7038_v48 = vadd.f32 %v8587_v16, %v2299_v15  ;;  %v1183_v15 = vunpack.c.h.bf16 %v507_v39  ;;  %v8591_v35 = vld [vmem:[#allocation23_spill] sm:$0xff]  ;;  %v8593_v16 = vld [vmem:[#allocation25_spill] sm:$0xff]  ;;  %v8596_v33 = vld [vmem:[#allocation22_spill] sm:$0xff] }
 0x29c   : > { %3755 = vmatprep.mubr.f32.mxu1 %v5631_v46  ;;  %3824 = vmatprep.subr.mxu0 %v1191_v2  ;;  %v2953_v23 = vadd.f32 %v2952_v27, %v6768_v63  ;;  %v7047_v63 = vadd.f32 %v8588_v24, %v2305_v8  ;;  %v2561_v46 = vadd.f32 %v6634_v13, %v6964_v11  ;;  %v5633_v27 = vld [vmem:[#allocation2 + $0x788] sm:$0xff]  ;;  %v1182_v8 = vunpack.c.l.bf16 %v507_v39  ;;  %v5635_v39 = vld [vmem:[#allocation2 + $0x798] sm:$0xff] }
 0x29d   : > { %3984 = vmatpush2.msra.mxu1 %v1322_v36  ;;  %3825 = vmatpush2.msra.mxu0 %v1190_v37  ;;  %v505_v36 = vld [vmem:[%s6212_s24 + $0x508] sm:$0xff]  ;;  %v7044_v2 = vpop.f32.mrf.mxu0  ;;  %v8590_v37 = vld [vmem:[#allocation20_spill] sm:$0xff]  ;;  %v2710_v14 = vadd.f32 %v8591_v35, %v2549_v43  ;;  %v631_v43 = vld [vmem:[%s6212_s24 + $0x8f8] sm:$0xff] }
 0x29e   : > { %3756 = vmatmul.mubr.f32.gmra.mxu1 %v5632_v62  ;;  %v3113_v9 = vpop.f32.mrf.mxu1  ;;  %3985 = vmatprep.subr.mxu1 %v1319_v53  ;;  %v7056_v22 = vadd.f32 %v8590_v37, %v2317_v18  ;;  %v569_v53 = vld [vmem:[%s6212_s24 + $0x708] sm:$0xff]  ;;  %v1311_v18 = vunpack.c.h.bf16 %v571_v60  ;;  %v1179_v25 = vunpack.c.h.bf16 %v505_v36  ;;  %v7067_v62 = vadd.f32 %v8593_v16, %v2555_v31 }
 0x29f   : > { %3826 = vmatprep.subr.mxu0 %v1187_v44  ;;  %v7050_v32 = vadd.f32 %v3113_v9, %v2953_v23  ;;  %3986 = vmatpush2.msra.mxu1 %v1318_v41  ;;  %v8592_v23 = vld [vmem:[#allocation27_spill] sm:$0xff]  ;;  %v8594_v13 = vld [vmem:[#allocation29_spill] sm:$0xff]  ;;  %v5634_v41 = vld [vmem:[#allocation2 + $0x780] sm:$0xff]  ;;  %v1310_v9 = vunpack.c.l.bf16 %v571_v60  ;;  %v1178_v24 = vunpack.c.l.bf16 %v505_v36  ;;  %v1307_v31 = vunpack.c.h.bf16 %v569_v53 }
 0x2a0   : > { %3600 = vmatprep.mubr.f32.mxu0 %v5633_v27  ;;  %v7061_v44 = vpop.f32.mrf.mxu1  ;;  %v2567_v59 = vadd.f32 %v8592_v23, %v6970_v42  ;;  %3827 = vmatpush2.msra.mxu0 %v1186_v6  ;;  %v2573_v11 = vadd.f32 %v8594_v13, %v6973_v55  ;;  %v8595_v6 = vld [vmem:[#allocation31_spill] sm:$0xff]  ;;  %v2869_v37 = vadd.f32 %v6785_v1, %v8596_v33  ;;  %v8597_v27 = vld [vmem:[#allocation26_spill] sm:$0xff]  ;;  %v8598_v60 = vld [vmem:[#allocation33_spill] sm:$0xff] }
 0x2a1   : > { %3987 = vmatprep.subr.mxu1 %v1315_v57  ;;  %3601 = vmatmul.mubr.f32.gmra.mxu0 %v5634_v41  ;;  %v2958_v42 = vpop.f32.mrf.mxu0  ;;  %v2579_v57 = vadd.f32 %v8595_v6, %v6984_v56  ;;  %v7078_v35 = vadd.f32 %v8597_v27, %v2561_v46  ;;  %v2585_v36 = vadd.f32 %v8598_v60, %v6987_v49  ;;  %v8599_v23 = vld [vmem:[#allocation35_spill] sm:$0xff]  ;;  %v5636_v13 = vld [vmem:[#allocation2 + $0x790] sm:$0xff]  ;;  %v1306_v56 = vunpack.c.l.bf16 %v569_v53  ;;  %v8605_v53 = vld [vmem:[#allocation37_spill] sm:$0xff] }
 0x2a2   : > { %3761 = vmatprep.mubr.f32.mxu1 %v5635_v39  ;;  %3828 = vmatprep.subr.mxu0 %v1183_v15  ;;  %v2959_v55 = vadd.f32 %v2958_v42, %v6779_v29  ;;  %v2591_v16 = vadd.f32 %v8599_v23, %v6998_v30  ;;  %v7086_v15 = vld [vmem:[%s6212_s24 + $0x8e8] sm:$0xff]  ;;  %v8601_v29 = vld [vmem:[#allocation28_spill] sm:$0xff]  ;;  %v1431_v49 = vunpack.c.h.bf16 %v631_v43  ;;  %v8602_v39 = vld [vmem:[#allocation54_spill] sm:$0xff]  ;;  %v2597_v33 = vadd.f32 %v8605_v53, %v7004_v12 }
 0x2a3   : > { %3988 = vmatpush2.msra.mxu1 %v1314_v40  ;;  %3829 = vmatpush2.msra.mxu0 %v1182_v8  ;;  %v695_v40 = vld [vmem:[%s6212_s24 + $0xaf8] sm:$0xff]  ;;  %v7088_v41 = vpop.f32.mrf.mxu0  ;;  %v7091_v46 = vadd.f32 %v8601_v29, %v2567_v59  ;;  %v2871_v42 = vadd.f32 %v8602_v39, %v2710_v14  ;;  %v8604_v6 = vld [vmem:[#allocation30_spill] sm:$0xff]  ;;  %v1430_v59 = vunpack.c.l.bf16 %v631_v43  ;;  %v7104_v23 = vld [vmem:[%s6212_s24 + $0xae8] sm:$0xff]  ;;  %v1426_v39 = vunpack.c.l.bf16 %v7086_v15 }
 0x2a4   : > { %3762 = vmatmul.mubr.f32.gmra.mxu1 %v5636_v13  ;;  %v3119_v1 = vpop.f32.mrf.mxu1  ;;  %8600 = vst [vmem:[#allocation14_spill] sm:$0xff] %v7088_v41  ;;  %3989 = vmatprep.subr.mxu1 %v1311_v18  ;;  %v7097_v8 = vadd.f32 %v8604_v6, %v2573_v11  ;;  %v8606_v27 = vld [vmem:[#allocation39_spill] sm:$0xff]  ;;  %v8608_v14 = vld [vmem:[#allocation32_spill] sm:$0xff]  ;;  %v8609_v11 = vld [vmem:[#allocation53_spill] sm:$0xff]  ;;  %v1559_v12 = vunpack.c.h.bf16 %v695_v40 }
 0x2a5   : > { %3830 = vmatprep.subr.mxu0 %v1179_v25  ;;  %v7094_v30 = vadd.f32 %v3119_v1, %v2959_v55  ;;  %v2603_v60 = vadd.f32 %v8606_v27, %v7016_v58  ;;  %3990 = vmatpush2.msra.mxu1 %v1310_v9  ;;  %v7109_v25 = vadd.f32 %v8608_v14, %v2579_v57  ;;  %v5637_v55 = vld [vmem:[#allocation2 + $0x28] sm:$0xff]  ;;  %v1427_v1 = vunpack.c.h.bf16 %v7086_v15  ;;  %v8610_v58 = vld [vmem:[#allocation34_spill] sm:$0xff]  ;;  %v5638_v29 = vld [vmem:[#allocation2 + $0x20] sm:$0xff] }
 0x2a6   : > { %3831 = vmatpush2.msra.mxu0 %v1178_v24  ;;  %v7106_v18 = vpop.f32.mrf.mxu1  ;;  %3832 = vmatprep.mubr.f32.mxu0 %v5637_v55  ;;  %v3030_v13 = vadd.f32 %v8609_v11, %v2869_v37  ;;  %v7114_v9 = vadd.f32 %v8610_v58, %v2585_v36  ;;  %v8611_v24 = vld [vmem:[#allocation36_spill] sm:$0xff]  ;;  %v1558_v57 = vunpack.c.l.bf16 %v695_v40  ;;  %v5639_v37 = vld [vmem:[#allocation2 + $0x38] sm:$0xff]  ;;  %v1555_v36 = vunpack.c.h.bf16 %v7104_v23  ;;  %v8615_v15 = vld [vmem:[#allocation38_spill] sm:$0xff] }
 0x2a7   : > { %8603 = vst [vmem:[#allocation18_spill] sm:$0xff] %v7094_v30  ;;  %8607 = vst [vmem:[#allocation21_spill] sm:$0xff] %v7106_v18  ;;  %3991 = vmatprep.subr.mxu1 %v1307_v31  ;;  %v7117_v43 = vadd.f32 %v8611_v24, %v2591_v16  ;;  %3833 = vmatmul.mubr.f32.vlgmr.msra.gmra.mxu0 %v5638_v29  ;;  %v627_v31 = vld [vmem:[%s6212_s24 + $0x8d8] sm:$0xff]  ;;  %v3190_v6 = vpop.f32.mrf.mxu0  ;;  %v8613_v14 = vld [vmem:[#allocation24_spill] sm:$0xff]  ;;  %v7132_v58 = vadd.f32 %v8615_v15, %v2597_v33  ;;  %v8621_v30 = vsub.s32 1, %v6417_v50 }
 0x2a8   : > { %3992 = vmatpush2.msra.mxu1 %v1306_v56  ;;  %3993 = vmatprep.mubr.f32.mxu1 %v5639_v37  ;;  %v8612_v53 = vld [vmem:[#allocation55_spill] sm:$0xff]  ;;  %v8614_v55 = vld [vmem:[#allocation56_spill] sm:$0xff]  ;;  %v7129_v56 = vld [vmem:[%s6212_s24 + $0x8c8] sm:$0xff]  ;;  %v3191_v40 = vadd.f32 %v3190_v6, %v3030_v13  ;;  %v1423_v13 = vunpack.c.h.bf16 %v627_v31 }
 0x2a9   : > { %4090 = vmatprep.subr.mxu0 %v1431_v49  ;;  %v3032_v27 = vadd.f32 %v8612_v53, %v2871_v42  ;;  %v2875_v16 = vadd.f32 %v8614_v55, %v8613_v14  ;;  %v7126_v11 = vld [vmem:[%s6212_s24 + $0xad8] sm:$0xff]  ;;  %v8616_v24 = vld [vmem:[#allocation40_spill] sm:$0xff]  ;;  %v5640_v49 = vld [vmem:[#allocation2 + $0x30] sm:$0xff]  ;;  %v3351_v53 = vpop.f32.mrf.mxu1  ;;  %v3192_v14 = vpop.f32.mrf.mxu0  ;;  %4251 = vmatprep.subr.mxu1 %v1559_v12  ;;  %v1554_v55 = vunpack.c.l.bf16 %v7104_v23  ;;  %v1419_v12 = vunpack.c.h.bf16 %v7129_v56 }
 0x2aa   : > { %v7135_v29 = vadd.f32 %v8616_v24, %v2603_v60  ;;  %3994 = vmatmul.mubr.f32.vlgmr.msra.gmra.mxu1 %v5640_v49  ;;  %4091 = vmatpush1.msra.mxu0 %v1430_v59  ;;  %v8617_v42 = vld [vmem:[#allocation58_spill] sm:$0xff]  ;;  %v7142_v33 = vld [vmem:[%s6212_s24 + $0xac8] sm:$0xff]  ;;  %v3352_v6 = vadd.f32 %v3351_v53, %v3191_v40  ;;  %v1551_v49 = vunpack.c.h.bf16 %v7126_v11  ;;  %v7152_v40 = vld [vmem:[%s6212_s24 + $0x8b8] sm:$0xff] }
 0x2ab   : > { %v2877_v37 = vadd.f32 %v8617_v42, %v7067_v62  ;;  %4092 = vmatprep.subr.mxu0 %v1427_v1  ;;  %v3193_v60 = vadd.f32 %v3192_v14, %v3032_v27  ;;  %v8618_v15 = vld [vmem:[#allocation41_spill] sm:$0xff]  ;;  %4252 = vmatpush1.msra.mxu1 %v1558_v57  ;;  %v1422_v62 = vunpack.c.l.bf16 %v627_v31  ;;  %v3353_v1 = vpop.f32.mrf.mxu1  ;;  %v5642_v57 = vld [vmem:[#allocation2 + $0xa0] sm:$0xff]  ;;  %v5643_v53 = vld [vmem:[#allocation2 + $0xb8] sm:$0xff]  ;;  %v1550_v31 = vunpack.c.l.bf16 %v7126_v11 }
 0x2ac   : > { %v7146_v24 = vadd.f32 %v8618_v15, %v7022_v54  ;;  %v5641_v59 = vld [vmem:[#allocation2 + $0xa8] sm:$0xff]  ;;  %4093 = vmatpush1.msra.mxu0 %v1426_v39  ;;  %4253 = vmatprep.subr.mxu1 %v1555_v36  ;;  %vm4734_vm0 = vcmp.gt.f32.partialorder %v3352_v6, 0.0  ;;  %v4798_v54 = vmul.f32 0.2, %v3352_v6  ;;  %v1418_v14 = vunpack.c.l.bf16 %v7129_v56  ;;  %v8620_v15 = vld [vmem:[#allocation59_spill] sm:$0xff]  ;;  %v5644_v56 = vld [vmem:[#allocation2 + $0xb0] sm:$0xff] }
 0x2ad   : > { %3838 = vmatprep.mubr.f32.mxu0 %v5641_v59  ;;  %v8619_v23 = vld [vmem:[#allocation57_spill] sm:$0xff]  ;;  %v3354_v27 = vadd.f32 %v3353_v1, %v3193_v60  ;;  %3999 = vmatprep.mubr.f32.mxu1 %v5643_v53  ;;  %v3038_v59 = vadd.f32 %v8620_v15, %v2877_v37  ;;  %v1547_v39 = vunpack.c.h.bf16 %v7142_v33  ;;  %v7159_v36 = vld [vmem:[%s6212_s24 + $0xab8] sm:$0xff]  ;;  %v1546_v37 = vunpack.c.l.bf16 %v7142_v33 }
 0x2ae   : > { %v3036_v42 = vadd.f32 %v8619_v23, %v2875_v16  ;;  %3839 = vmatmul.mubr.f32.gmra.mxu0 %v5642_v57  ;;  %v3196_v16 = vpop.f32.mrf.mxu0  ;;  %4094 = vmatprep.subr.mxu0 %v1423_v13  ;;  %v7162_v60 = vld [vmem:[%s6212_s24 + $0x8a8] sm:$0xff]  ;;  %v7165_v1 = vsel %vm4734_vm0, %v3352_v6, %v4798_v54  ;;  %v1414_v57 = vunpack.c.l.bf16 %v7152_v40  ;;  %v1415_v13 = vunpack.c.h.bf16 %v7152_v40 }
 0x2af   : > { %4254 = vmatpush1.msra.mxu1 %v1554_v55  ;;  %vm4735_vm1 = vcmp.gt.f32.partialorder %v3354_v27, 0.0  ;;  %v4799_v11 = vmul.f32 0.2, %v3354_v27  ;;  %4095 = vmatpush1.msra.mxu0 %v1422_v62  ;;  %v2883_v55 = vadd.f32 %v6812_v47, %v7078_v35  ;;  %v7173_v53 = vld [vmem:[%s6212_s24 + $0xaa8] sm:$0xff]  ;;  %4926 = vst [vmem:[%s7177_s6] sm:$0xff] %v7165_v1  ;;  %v1543_v33 = vunpack.c.h.bf16 %v7159_v36 }
 0x2b0   : > { %v3197_v23 = vadd.f32 %v3196_v16, %v3036_v42  ;;  %4000 = vmatmul.mubr.f32.gmra.mxu1 %v5644_v56  ;;  %v3357_v6 = vpop.f32.mrf.mxu1  ;;  %v3198_v62 = vpop.f32.mrf.mxu0  ;;  %4255 = vmatprep.subr.mxu1 %v1551_v49  ;;  %v7183_v42 = vld [vmem:[%s6212_s24 + $0x898] sm:$0xff]  ;;  %v4990_v35 = vld [vmem:[%s6222_s29] sm:$0xf]  ;;  %v1542_v16 = vunpack.c.l.bf16 %v7159_v36  ;;  %v1410_v56 = vunpack.c.l.bf16 %v7162_v60  ;;  %v1411_v49 = vunpack.c.h.bf16 %v7162_v60 }
 0x2b1   : > { %4096 = vmatprep.subr.mxu0 %v1419_v12  ;;  %v4863_v40 = vsel %vm4735_vm1, %v3354_v27, %v4799_v11  ;;  %v3199_v54 = vadd.f32 %v3198_v62, %v3038_v59  ;;  %4256 = vmatpush1.msra.mxu1 %v1550_v31  ;;  %v5645_v15 = vld [vmem:[#allocation2 + $0x128] sm:$0xff]  ;;  %v7193_v18 = vrot.slane %v4990_v35, %v8621_v30  ;;  %v1539_v27 = vunpack.c.h.bf16 %v7173_v53  ;;  %v7197_v31 = vld [vmem:[%s6212_s24 + $0xa98] sm:$0xff]  ;;  %v5646_v11 = vld [vmem:[#allocation2 + $0x120] sm:$0xff] }
 0x2b2   : > { %v3358_v47 = vadd.f32 %v3357_v6, %v3197_v23  ;;  %3844 = vmatprep.mubr.f32.mxu0 %v5645_v15  ;;  %4927 = vst [vmem:[%s7177_s6 + $0x8] sm:$0xff] %v4863_v40  ;;  %v3359_v12 = vpop.f32.mrf.mxu1  ;;  %4097 = vmatpush1.msra.mxu0 %v1418_v14  ;;  %v5647_v23 = vld [vmem:[#allocation2 + $0x138] sm:$0xff]  ;;  %v8622_v60 = vld [vmem:[#allocation61_spill] sm:$0xff]  ;;  %v1538_v62 = vunpack.c.l.bf16 %v7173_v53  ;;  %v1407_v30 = vunpack.c.h.bf16 %v7183_v42  ;;  %v8623_v14 = vsub.s32 0, %v6417_v50 }
 0x2b3   : > { %4257 = vmatprep.subr.mxu1 %v1547_v39  ;;  %v3360_v36 = vadd.f32 %v3359_v12, %v3199_v54  ;;  %3845 = vmatmul.mubr.f32.gmra.mxu0 %v5646_v11  ;;  %v3044_v6 = vadd.f32 %v8622_v60, %v2883_v55  ;;  %v3202_v15 = vpop.f32.mrf.mxu0  ;;  %v7207_v41 = vld [vmem:[%s6212_s24 + $0x888] sm:$0xff]  ;;  %v8624_v11 = vld [vmem:[#allocation60_spill] sm:$0xff]  ;;  %v1406_v53 = vunpack.c.l.bf16 %v7183_v42  ;;  %v1535_v60 = vunpack.c.h.bf16 %v7197_v31 }
 0x2b4   : > { %vm4738_vm2 = vcmp.gt.f32.partialorder %v3358_v47, 0.0  ;;  %v4802_v59 = vmul.f32 0.2, %v3358_v47  ;;  %4005 = vmatprep.mubr.f32.mxu1 %v5647_v23  ;;  %v7204_v39 = vrot.slane %v4990_v35, %v8623_v14  ;;  %4098 = vmatprep.subr.mxu0 %v1415_v13  ;;  %v3203_v55 = vadd.f32 %v3202_v15, %v8624_v11  ;;  %v5648_v23 = vld [vmem:[#allocation2 + $0x130] sm:$0xff]  ;;  %v7218_v14 = vld [vmem:[%s6212_s24 + $0xa88] sm:$0xff] }
 0x2b5   : > { %4258 = vmatpush1.msra.mxu1 %v1546_v37  ;;  %vm4739_vm3 = vcmp.gt.f32.partialorder %v3360_v36, 0.0  ;;  %v4803_v12 = vmul.f32 0.2, %v3360_v36  ;;  %4099 = vmatpush1.msra.mxu0 %v1414_v57  ;;  %v2889_v35 = vadd.f32 %v6823_v17, %v7091_v46  ;;  %v3204_v13 = vpop.f32.mrf.mxu0  ;;  %v5649_v11 = vld [vmem:[#allocation2 + $0x1a8] sm:$0xff]  ;;  %v1402_v17 = vunpack.c.l.bf16 %v7207_v41 }
 0x2b6   : > { %v4866_v54 = vsel %vm4738_vm2, %v3358_v47, %v4802_v59  ;;  %4006 = vmatmul.mubr.f32.gmra.mxu1 %v5648_v23  ;;  %v3363_v37 = vpop.f32.mrf.mxu1  ;;  %v5013_v47 = vmul.f32 %v7193_v18, %v4863_v40  ;;  %4259 = vmatprep.subr.mxu1 %v1543_v33  ;;  %v1534_v59 = vunpack.c.l.bf16 %v7197_v31  ;;  %v3205_v15 = vadd.f32 %v3204_v13, %v3044_v6 }
 0x2b7   : > { %4930 = vst [vmem:[%s7177_s6 + $0x20] sm:$0xff] %v4866_v54  ;;  %4100 = vmatprep.subr.mxu0 %v1411_v49  ;;  %v4867_v57 = vsel %vm4739_vm3, %v3360_v36, %v4803_v12  ;;  %v3364_v42 = vadd.f32 %v3363_v37, %v3203_v55  ;;  %4260 = vmatpush1.msra.mxu1 %v1542_v16  ;;  %v1403_v31 = vunpack.c.h.bf16 %v7207_v41  ;;  %v7229_v36 = vld [vmem:[%s6212_s24 + $0x878] sm:$0xff]  ;;  %v5650_v12 = vld [vmem:[#allocation2 + $0x1a0] sm:$0xff]  ;;  %v1531_v37 = vunpack.c.h.bf16 %v7218_v14 }
 0x2b8   : > { %3850 = vmatprep.mubr.f32.mxu0 %v5649_v11  ;;  %v5016_v46 = vmul.f32 %v7204_v39, %v4866_v54  ;;  %4931 = vst [vmem:[%s7177_s6 + $0x28] sm:$0xff] %v4867_v57  ;;  %v5017_v33 = vmul.f32 %v7193_v18, %v4867_v57  ;;  %v3365_v40 = vpop.f32.mrf.mxu1  ;;  %v5012_v49 = vmul.f32 %v7204_v39, %v7165_v1  ;;  %v5651_v54 = vld [vmem:[#allocation2 + $0x1b8] sm:$0xff] }
 0x2b9   : > { %4101 = vmatpush1.msra.mxu0 %v1410_v56  ;;  %4261 = vmatprep.subr.mxu1 %v1539_v27  ;;  %vm4742_vm4 = vcmp.gt.f32.partialorder %v3364_v42, 0.0  ;;  %v4806_v16 = vmul.f32 0.2, %v3364_v42  ;;  %v3366_v6 = vadd.f32 %v3365_v40, %v3205_v15  ;;  %v8625_v55 = vld [vmem:[#allocation63_spill] sm:$0xff]  ;;  %v3208_v13 = vpop.f32.mrf.mxu0  ;;  %v8628_v15 = vld [vmem:[#allocation62_spill] sm:$0xff] }
 0x2ba   : > { %3851 = vmatmul.mubr.f32.gmra.mxu0 %v5650_v12  ;;  %4011 = vmatprep.mubr.f32.mxu1 %v5651_v54  ;;  %v3050_v23 = vadd.f32 %v8625_v55, %v2889_v35  ;;  %v7233_v1 = vadd.f32 %v5013_v47, %v5012_v49  ;;  %v7235_v56 = vadd.f32 %v5017_v33, %v5016_v46  ;;  %v7238_v41 = vld [vmem:[%s6212_s24 + $0xa78] sm:$0xff]  ;;  %v8629_v35 = vld [vmem:[#allocation42_spill] sm:$0xff]  ;;  %v1530_v46 = vunpack.c.l.bf16 %v7218_v14  ;;  %v5653_v54 = vld [vmem:[#allocation2 + $0x228] sm:$0xff] }
 0x2bb   : > { %4102 = vmatprep.subr.mxu0 %v1407_v30  ;;  %4262 = vmatpush1.msra.mxu1 %v1538_v62  ;;  %v4870_v27 = vsel %vm4742_vm4, %v3364_v42, %v4806_v16  ;;  %vm4743_vm5 = vcmp.gt.f32.partialorder %v3366_v6, 0.0  ;;  %v4807_v57 = vmul.f32 0.2, %v3366_v6  ;;  %v3209_v11 = vadd.f32 %v3208_v13, %v8628_v15  ;;  %v5652_v47 = vld [vmem:[#allocation2 + $0x1b0] sm:$0xff]  ;;  %v7250_v42 = vld [vmem:[%s6212_s24 + $0x868] sm:$0xff]  ;;  %v3210_v49 = vpop.f32.mrf.mxu0  ;;  %v5654_v13 = vld [vmem:[#allocation2 + $0x220] sm:$0xff] }
 0x2bc   : > { %8626 = vst [vmem:[#allocation15_spill] sm:$0xff] %v7233_v1  ;;  %8627 = vst [vmem:[#allocation16_spill] sm:$0xff] %v7235_v56  ;;  %v7243_v40 = vadd.f32 %v8629_v35, %v7146_v24  ;;  %4012 = vmatmul.mubr.f32.gmra.mxu1 %v5652_v47  ;;  %4103 = vmatpush1.msra.mxu0 %v1406_v53  ;;  %v1399_v30 = vunpack.c.h.bf16 %v7229_v36  ;;  %v2895_v62 = vadd.f32 %v6834_v0, %v7097_v8  ;;  %v3369_v33 = vpop.f32.mrf.mxu1  ;;  %v7255_v16 = vld [vmem:[%s6212_s24 + $0xa68] sm:$0xff]  ;;  %v7273_v35 = vld [vmem:[%s6212_s24 + $0xa58] sm:$0xff] }
 0x2bd   : > { %4934 = vst [vmem:[%s7177_s6 + $0x40] sm:$0xff] %v4870_v27  ;;  %4263 = vmatprep.subr.mxu1 %v1535_v60  ;;  %4104 = vmatprep.subr.mxu0 %v1403_v31  ;;  %v1398_v24 = vunpack.c.l.bf16 %v7229_v36  ;;  %v4871_v53 = vsel %vm4743_vm5, %v3366_v6, %v4807_v57  ;;  %v3370_v14 = vadd.f32 %v3369_v33, %v3209_v11  ;;  %v1526_v0 = vunpack.c.l.bf16 %v7238_v41  ;;  %v7265_v6 = vld [vmem:[%s6212_s24 + $0x858] sm:$0xff]  ;;  %v8630_v15 = vld [vmem:[#allocation65_spill] sm:$0xff] }
 0x2be   : > { %v3211_v12 = vadd.f32 %v3210_v49, %v3050_v23  ;;  %4264 = vmatpush1.msra.mxu1 %v1534_v59  ;;  %3856 = vmatprep.mubr.f32.mxu0 %v5653_v54  ;;  %v1527_v8 = vunpack.c.h.bf16 %v7238_v41  ;;  %4935 = vst [vmem:[%s7177_s6 + $0x48] sm:$0xff] %v4871_v53  ;;  %v3371_v55 = vpop.f32.mrf.mxu1  ;;  %v5020_v60 = vmul.f32 %v7204_v39, %v4870_v27  ;;  %v1395_v36 = vunpack.c.h.bf16 %v7250_v42  ;;  %v5655_v57 = vld [vmem:[#allocation2 + $0x238] sm:$0xff]  ;;  %v8632_v49 = vld [vmem:[#allocation64_spill] sm:$0xff] }
 0x2bf   : > { %v5021_v31 = vmul.f32 %v7193_v18, %v4871_v53  ;;  %4105 = vmatpush1.msra.mxu0 %v1402_v17  ;;  %4265 = vmatprep.subr.mxu1 %v1531_v37  ;;  %vm4746_vm6 = vcmp.gt.f32.partialorder %v3370_v14, 0.0  ;;  %v4810_v59 = vmul.f32 0.2, %v3370_v14  ;;  %v1394_v41 = vunpack.c.l.bf16 %v7250_v42  ;;  %v3214_v17 = vpop.f32.mrf.mxu0  ;;  %v8633_v42 = vld [vmem:[#allocation43_spill] sm:$0xff] }
 0x2c0   : > { %v3372_v23 = vadd.f32 %v3371_v55, %v3211_v12  ;;  %3857 = vmatmul.mubr.f32.gmra.mxu0 %v5654_v13  ;;  %4017 = vmatprep.mubr.f32.mxu1 %v5655_v57  ;;  %v3056_v27 = vadd.f32 %v8630_v15, %v2895_v62  ;;  %v1523_v11 = vunpack.c.h.bf16 %v7255_v16  ;;  %v3215_v53 = vadd.f32 %v3214_v17, %v8632_v49  ;;  %v5656_v12 = vld [vmem:[#allocation2 + $0x230] sm:$0xff]  ;;  %v5657_v13 = vld [vmem:[#allocation2 + $0x2a8] sm:$0xff]  ;;  %v5659_v17 = vld [vmem:[#allocation2 + $0x2b8] sm:$0xff] }
 0x2c1   : > { %v7270_v37 = vadd.f32 %v5021_v31, %v5020_v60  ;;  %4106 = vmatprep.subr.mxu0 %v1399_v30  ;;  %4266 = vmatpush1.msra.mxu1 %v1530_v46  ;;  %v4874_v47 = vsel %vm4746_vm6, %v3370_v14, %v4810_v59  ;;  %v2615_v62 = vadd.f32 %v8633_v42, %v7035_v38  ;;  %v1522_v54 = vunpack.c.l.bf16 %v7255_v16  ;;  %v7283_v30 = vld [vmem:[%s6212_s24 + $0x848] sm:$0xff]  ;;  %v3216_v60 = vpop.f32.mrf.mxu0 }
 0x2c2   : > { %vm4747_vm7 = vcmp.gt.f32.partialorder %v3372_v23, 0.0  ;;  %v4811_v33 = vmul.f32 0.2, %v3372_v23  ;;  %4018 = vmatmul.mubr.f32.gmra.mxu1 %v5656_v12  ;;  %4107 = vmatpush1.msra.mxu0 %v1398_v24  ;;  %v1391_v55 = vunpack.c.h.bf16 %v7265_v6  ;;  %v2901_v46 = vadd.f32 %v6845_v52, %v7109_v25  ;;  %4938 = vst [vmem:[%s7177_s6 + $0x60] sm:$0xff] %v4874_v47  ;;  %v3375_v14 = vpop.f32.mrf.mxu1  ;;  %v7288_v31 = vld [vmem:[%s6212_s24 + $0xa48] sm:$0xff] }
 0x2c3   : > { %8631 = vst [vmem:[#allocation17_spill] sm:$0xff] %v7270_v37  ;;  %4267 = vmatprep.subr.mxu1 %v1527_v8  ;;  %4108 = vmatprep.subr.mxu0 %v1395_v36  ;;  %v1390_v38 = vunpack.c.l.bf16 %v7265_v6  ;;  %v3376_v16 = vadd.f32 %v3375_v14, %v3215_v53  ;;  %v3217_v59 = vadd.f32 %v3216_v60, %v3056_v27  ;;  %v1518_v52 = vunpack.c.l.bf16 %v7273_v35  ;;  %v5658_v27 = vld [vmem:[#allocation2 + $0x2a0] sm:$0xff]  ;;  %v7306_v53 = vld [vmem:[%s6212_s24 + $0xa38] sm:$0xff]  ;;  %v8636_v14 = vld [vmem:[#allocation66_spill] sm:$0xff] }
 0x2c4   : > { %v4875_v24 = vsel %vm4747_vm7, %v3372_v23, %v4811_v33  ;;  %4268 = vmatpush1.msra.mxu1 %v1526_v0  ;;  %3862 = vmatprep.mubr.f32.mxu0 %v5657_v13  ;;  %v1519_v25 = vunpack.c.h.bf16 %v7273_v35  ;;  %v5024_v57 = vmul.f32 %v7204_v39, %v4874_v47  ;;  %v3377_v36 = vpop.f32.mrf.mxu1  ;;  %v1387_v6 = vunpack.c.h.bf16 %v7283_v30  ;;  %v7298_v23 = vld [vmem:[%s6212_s24 + $0x838] sm:$0xff] }
 0x2c5   : > { %4939 = vst [vmem:[%s7177_s6 + $0x68] sm:$0xff] %v4875_v24  ;;  %v5025_v8 = vmul.f32 %v7193_v18, %v4875_v24  ;;  %4109 = vmatpush1.msra.mxu0 %v1394_v41  ;;  %4269 = vmatprep.subr.mxu1 %v1523_v11  ;;  %vm4750_vm8 = vcmp.gt.f32.partialorder %v3376_v16, 0.0  ;;  %v4814_v0 = vmul.f32 0.2, %v3376_v16  ;;  %v3378_v15 = vadd.f32 %v3377_v36, %v3217_v59  ;;  %v8634_v47 = vld [vmem:[#allocation67_spill] sm:$0xff]  ;;  %v3220_v41 = vpop.f32.mrf.mxu0 }
 0x2c6   : > { %3863 = vmatmul.mubr.f32.gmra.mxu0 %v5658_v27  ;;  %4023 = vmatprep.mubr.f32.mxu1 %v5659_v17  ;;  %v1386_v35 = vunpack.c.l.bf16 %v7283_v30  ;;  %v3062_v33 = vadd.f32 %v8634_v47, %v2901_v46  ;;  %v1515_v49 = vunpack.c.h.bf16 %v7288_v31  ;;  %v3221_v60 = vadd.f32 %v3220_v41, %v8636_v14  ;;  %v8637_v30 = vld [vmem:[#allocation44_spill] sm:$0xff]  ;;  %v5660_v46 = vld [vmem:[#allocation2 + $0x2b0] sm:$0xff]  ;;  %v7340_v14 = vld [vmem:[%s6212_s24 + $0xa18] sm:$0xff] }
 0x2c7   : > { %v7303_v11 = vadd.f32 %v5025_v8, %v5024_v57  ;;  %4110 = vmatprep.subr.mxu0 %v1391_v55  ;;  %4270 = vmatpush1.msra.mxu1 %v1522_v54  ;;  %v4878_v42 = vsel %vm4750_vm8, %v3376_v16, %v4814_v0  ;;  %vm4751_vm9 = vcmp.gt.f32.partialorder %v3378_v15, 0.0  ;;  %v4815_v12 = vmul.f32 0.2, %v3378_v15  ;;  %v7317_v55 = vld [vmem:[%s6212_s24 + $0x828] sm:$0xff]  ;;  %v3222_v57 = vpop.f32.mrf.mxu0  ;;  %v5662_v47 = vld [vmem:[#allocation2 + $0x320] sm:$0xff] }
 0x2c8   : > { %v7310_v24 = vadd.f32 %v8637_v30, %v2615_v62  ;;  %4024 = vmatmul.mubr.f32.gmra.mxu1 %v5660_v46  ;;  %4111 = vmatpush1.msra.mxu0 %v1390_v38  ;;  %v1514_v59 = vunpack.c.l.bf16 %v7288_v31  ;;  %v1383_v13 = vunpack.c.h.bf16 %v7298_v23  ;;  %v2907_v54 = vadd.f32 %v6856_v19, %v7114_v9  ;;  %4942 = vst [vmem:[%s7177_s6 + $0x80] sm:$0xff] %v4878_v42  ;;  %v3381_v16 = vpop.f32.mrf.mxu1  ;;  %v7322_v8 = vld [vmem:[%s6212_s24 + $0xa28] sm:$0xff]  ;;  %v8640_v46 = vld [vmem:[#allocation68_spill] sm:$0xff] }
 0x2c9   : > { %8635 = vst [vmem:[#allocation19_spill] sm:$0xff] %v7303_v11  ;;  %4271 = vmatprep.subr.mxu1 %v1519_v25  ;;  %4112 = vmatprep.subr.mxu0 %v1387_v6  ;;  %v1382_v62 = vunpack.c.l.bf16 %v7298_v23  ;;  %v4879_v38 = vsel %vm4751_vm9, %v3378_v15, %v4815_v12  ;;  %v3382_v31 = vadd.f32 %v3381_v16, %v3221_v60  ;;  %v5661_v0 = vld [vmem:[#allocation2 + $0x328] sm:$0xff]  ;;  %v1510_v19 = vunpack.c.l.bf16 %v7306_v53  ;;  %v7332_v15 = vld [vmem:[%s6212_s24 + $0x818] sm:$0xff] }
 0x2ca   : > { %v3223_v36 = vadd.f32 %v3222_v57, %v3062_v33  ;;  %4272 = vmatpush1.msra.mxu1 %v1518_v52  ;;  %3868 = vmatprep.mubr.f32.mxu0 %v5661_v0  ;;  %v1511_v9 = vunpack.c.h.bf16 %v7306_v53  ;;  %v5028_v27 = vmul.f32 %v7204_v39, %v4878_v42  ;;  %4943 = vst [vmem:[%s7177_s6 + $0x88] sm:$0xff] %v4879_v38  ;;  %v3383_v6 = vpop.f32.mrf.mxu1  ;;  %v1379_v23 = vunpack.c.h.bf16 %v7317_v55  ;;  %v5663_v33 = vld [vmem:[#allocation2 + $0x338] sm:$0xff]  ;;  %v8638_v53 = vld [vmem:[#allocation69_spill] sm:$0xff]  ;;  %v5664_v57 = vld [vmem:[#allocation2 + $0x330] sm:$0xff] }
 0x2cb   : > { %v5029_v25 = vmul.f32 %v7193_v18, %v4879_v38  ;;  %4113 = vmatpush1.msra.mxu0 %v1386_v35  ;;  %4273 = vmatprep.subr.mxu1 %v1515_v49  ;;  %vm4754_vm10 = vcmp.gt.f32.partialorder %v3382_v31, 0.0  ;;  %v4818_v52 = vmul.f32 0.2, %v3382_v31  ;;  %v1378_v41 = vunpack.c.l.bf16 %v7317_v55  ;;  %v3226_v35 = vpop.f32.mrf.mxu0  ;;  %v8641_v55 = vld [vmem:[#allocation45_spill] sm:$0xff] }
 0x2cc   : > { %v3384_v17 = vadd.f32 %v3383_v6, %v3223_v36  ;;  %3869 = vmatmul.mubr.f32.gmra.mxu0 %v5662_v47  ;;  %4029 = vmatprep.mubr.f32.mxu1 %v5663_v33  ;;  %v3068_v42 = vadd.f32 %v8638_v53, %v2907_v54  ;;  %v1507_v12 = vunpack.c.h.bf16 %v7322_v8  ;;  %v3227_v16 = vadd.f32 %v3226_v35, %v8640_v46  ;;  %v5665_v6 = vld [vmem:[#allocation2 + $0x3a8] sm:$0xff]  ;;  %v5666_v33 = vld [vmem:[#allocation2 + $0x3a0] sm:$0xff]  ;;  %v5667_v53 = vld [vmem:[#allocation2 + $0x3b8] sm:$0xff] }
 0x2cd   : > { %v7337_v49 = vadd.f32 %v5029_v25, %v5028_v27  ;;  %4114 = vmatprep.subr.mxu0 %v1383_v13  ;;  %4274 = vmatpush1.msra.mxu1 %v1514_v59  ;;  %v4882_v60 = vsel %vm4754_vm10, %v3382_v31, %v4818_v52  ;;  %v2621_v54 = vadd.f32 %v8641_v55, %v7038_v48  ;;  %v1506_v38 = vunpack.c.l.bf16 %v7322_v8  ;;  %v7350_v13 = vld [vmem:[%s6212_s24 + $0x808] sm:$0xff]  ;;  %v3228_v0 = vpop.f32.mrf.mxu0  ;;  %v8642_v35 = vld [vmem:[#allocation71_spill] sm:$0xff]  ;;  %v8644_v55 = vld [vmem:[#allocation70_spill] sm:$0xff] }
 0x2ce   : > { %vm4755_vm11 = vcmp.gt.f32.partialorder %v3384_v17, 0.0  ;;  %v4819_v30 = vmul.f32 0.2, %v3384_v17  ;;  %4030 = vmatmul.mubr.f32.gmra.mxu1 %v5664_v57  ;;  %4115 = vmatpush1.msra.mxu0 %v1382_v62  ;;  %v1375_v36 = vunpack.c.h.bf16 %v7332_v15  ;;  %v2913_v59 = vadd.f32 %v6867_v51, %v7117_v43  ;;  %4946 = vst [vmem:[%s7177_s6 + $0xa0] sm:$0xff] %v4882_v60  ;;  %v3387_v31 = vpop.f32.mrf.mxu1  ;;  %v7355_v27 = vld [vmem:[%s6212_s24 + $0xa08] sm:$0xff] }
 0x2cf   : > { %8639 = vst [vmem:[#allocation20_spill] sm:$0xff] %v7337_v49  ;;  %4275 = vmatprep.subr.mxu1 %v1511_v9  ;;  %4116 = vmatprep.subr.mxu0 %v1379_v23  ;;  %v1374_v48 = vunpack.c.l.bf16 %v7332_v15  ;;  %v3388_v8 = vadd.f32 %v3387_v31, %v3227_v16  ;;  %v3229_v25 = vadd.f32 %v3228_v0, %v3068_v42  ;;  %v1502_v51 = vunpack.c.l.bf16 %v7340_v14 }
 0x2d0   : > { %v4883_v62 = vsel %vm4755_vm11, %v3384_v17, %v4819_v30  ;;  %4276 = vmatpush1.msra.mxu1 %v1510_v19  ;;  %3874 = vmatprep.mubr.f32.mxu0 %v5665_v6  ;;  %v1503_v43 = vunpack.c.h.bf16 %v7340_v14  ;;  %v5032_v52 = vmul.f32 %v7204_v39, %v4882_v60  ;;  %v3389_v23 = vpop.f32.mrf.mxu1  ;;  %v1371_v15 = vunpack.c.h.bf16 %v7350_v13  ;;  %v7365_v17 = vld [vmem:[%s6212_s24 + $0x9f8] sm:$0xff]  ;;  %v7389_v6 = vld [vmem:[%s6212_s24 + $0xbe8] sm:$0xff] }
 0x2d1   : > { %4947 = vst [vmem:[%s7177_s6 + $0xa8] sm:$0xff] %v4883_v62  ;;  %v5033_v9 = vmul.f32 %v7193_v18, %v4883_v62  ;;  %4117 = vmatpush1.msra.mxu0 %v1378_v41  ;;  %4277 = vmatprep.subr.mxu1 %v1507_v12  ;;  %vm4758_vm12 = vcmp.gt.f32.partialorder %v3388_v8, 0.0  ;;  %v4822_v19 = vmul.f32 0.2, %v3388_v8  ;;  %v3390_v47 = vadd.f32 %v3389_v23, %v3229_v25  ;;  %v3232_v41 = vpop.f32.mrf.mxu0  ;;  %v7373_v30 = vld [vmem:[%s6212_s24 + $0xbf8] sm:$0xff] }
 0x2d2   : > { %3875 = vmatmul.mubr.f32.gmra.mxu0 %v5666_v33  ;;  %4035 = vmatprep.mubr.f32.mxu1 %v5667_v53  ;;  %v1370_v42 = vunpack.c.l.bf16 %v7350_v13  ;;  %v3074_v14 = vadd.f32 %v8642_v35, %v2913_v59  ;;  %v1499_v60 = vunpack.c.h.bf16 %v7355_v27  ;;  %v3233_v57 = vadd.f32 %v3232_v41, %v8644_v55  ;;  %v8645_v13 = vld [vmem:[#allocation46_spill] sm:$0xff]  ;;  %v5670_v33 = vld [vmem:[#allocation2 + $0x420] sm:$0xff]  ;;  %v5671_v53 = vld [vmem:[#allocation2 + $0x438] sm:$0xff] }
 0x2d3   : > { %v7370_v12 = vadd.f32 %v5033_v9, %v5032_v52  ;;  %4118 = vmatprep.subr.mxu0 %v1375_v36  ;;  %4278 = vmatpush1.msra.mxu1 %v1506_v38  ;;  %v4886_v46 = vsel %vm4758_vm12, %v3388_v8, %v4822_v19  ;;  %vm4759_vm13 = vcmp.gt.f32.partialorder %v3390_v47, 0.0  ;;  %v4823_v16 = vmul.f32 0.2, %v3390_v47  ;;  %v5668_v59 = vld [vmem:[#allocation2 + $0x3b0] sm:$0xff]  ;;  %v7384_v36 = vld [vmem:[%s6212_s24 + $0x9e8] sm:$0xff]  ;;  %v3234_v25 = vpop.f32.mrf.mxu0  ;;  %v7399_v19 = vld [vmem:[%s6212_s24 + $0x9d8] sm:$0xff] }
 0x2d4   : > { %v7377_v31 = vadd.f32 %v8645_v13, %v2621_v54  ;;  %4036 = vmatmul.mubr.f32.gmra.mxu1 %v5668_v59  ;;  %4119 = vmatpush1.msra.mxu0 %v1374_v48  ;;  %v1498_v0 = vunpack.c.l.bf16 %v7355_v27  ;;  %v1495_v62 = vunpack.c.h.bf16 %v7365_v17  ;;  %v2919_v38 = vadd.f32 %v6878_v28, %v7132_v58  ;;  %4950 = vst [vmem:[%s7177_s6 + $0xc0] sm:$0xff] %v4886_v46  ;;  %v3393_v8 = vpop.f32.mrf.mxu1  ;;  %v5669_v9 = vld [vmem:[#allocation2 + $0x428] sm:$0xff]  ;;  %v8649_v59 = vld [vmem:[#allocation47_spill] sm:$0xff] }
 0x2d5   : > { %8643 = vst [vmem:[#allocation23_spill] sm:$0xff] %v7370_v12  ;;  %4279 = vmatprep.subr.mxu1 %v1503_v43  ;;  %4120 = vmatprep.subr.mxu0 %v1371_v15  ;;  %v1494_v54 = vunpack.c.l.bf16 %v7365_v17  ;;  %v4887_v48 = vsel %vm4759_vm13, %v3390_v47, %v4823_v16  ;;  %v3394_v27 = vadd.f32 %v3393_v8, %v3233_v57  ;;  %v1622_v28 = vunpack.c.l.bf16 %v7373_v30  ;;  %v8648_v57 = vld [vmem:[#allocation72_spill] sm:$0xff] }
 0x2d6   : > { %v3235_v52 = vadd.f32 %v3234_v25, %v3074_v14  ;;  %4280 = vmatpush1.msra.mxu1 %v1502_v51  ;;  %3880 = vmatprep.mubr.f32.mxu0 %v5669_v9  ;;  %v1623_v58 = vunpack.c.h.bf16 %v7373_v30  ;;  %v5036_v23 = vmul.f32 %v7204_v39, %v4886_v46  ;;  %4951 = vst [vmem:[%s7177_s6 + $0xc8] sm:$0xff] %v4887_v48  ;;  %v3395_v15 = vpop.f32.mrf.mxu1  ;;  %v1491_v17 = vunpack.c.h.bf16 %v7384_v36  ;;  %v8646_v14 = vld [vmem:[#allocation73_spill] sm:$0xff]  ;;  %v7407_v46 = vld [vmem:[%s6212_s24 + $0xbd8] sm:$0xff] }
 0x2d7   : > { %v5037_v43 = vmul.f32 %v7193_v18, %v4887_v48  ;;  %4121 = vmatpush1.msra.mxu0 %v1370_v42  ;;  %4281 = vmatprep.subr.mxu1 %v1499_v60  ;;  %vm4762_vm14 = vcmp.gt.f32.partialorder %v3394_v27, 0.0  ;;  %v4826_v51 = vmul.f32 0.2, %v3394_v27  ;;  %v1490_v35 = vunpack.c.l.bf16 %v7384_v36  ;;  %v3238_v42 = vpop.f32.mrf.mxu0  ;;  %v5672_v36 = vld [vmem:[#allocation2 + $0x430] sm:$0xff] }
 0x2d8   : > { %v3396_v47 = vadd.f32 %v3395_v15, %v3235_v52  ;;  %3881 = vmatmul.mubr.f32.gmra.mxu0 %v5670_v33  ;;  %4041 = vmatprep.mubr.f32.mxu1 %v5671_v53  ;;  %v3080_v41 = vadd.f32 %v8646_v14, %v2919_v38  ;;  %v1619_v30 = vunpack.c.h.bf16 %v7389_v6  ;;  %v3239_v13 = vadd.f32 %v3238_v42, %v8648_v57  ;;  %v7422_v52 = vld [vmem:[%s6212_s24 + $0xbc8] sm:$0xff]  ;;  %v5675_v33 = vld [vmem:[#allocation2 + $0x4b8] sm:$0xff]  ;;  %v8652_v57 = vld [vmem:[#allocation74_spill] sm:$0xff] }
 0x2d9   : > { %v7404_v60 = vadd.f32 %v5037_v43, %v5036_v23  ;;  %4122 = vmatprep.subr.mxu0 %v1495_v62  ;;  %4282 = vmatpush1.msra.mxu1 %v1498_v0  ;;  %v4890_v16 = vsel %vm4762_vm14, %v3394_v27, %v4826_v51  ;;  %v2627_v38 = vadd.f32 %v8649_v59, %v7047_v63  ;;  %v1618_v8 = vunpack.c.l.bf16 %v7389_v6  ;;  %v7417_v62 = vld [vmem:[%s6212_s24 + $0x9c8] sm:$0xff]  ;;  %v3240_v27 = vpop.f32.mrf.mxu0  ;;  %v8650_v14 = vld [vmem:[#allocation75_spill] sm:$0xff]  ;;  %v8653_v59 = vld [vmem:[#allocation48_spill] sm:$0xff] }
 0x2da   : > { %vm4763_vm15 = vcmp.gt.f32.partialorder %v3396_v47, 0.0  ;;  %v4827_v55 = vmul.f32 0.2, %v3396_v47  ;;  %4042 = vmatmul.mubr.f32.gmra.mxu1 %v5672_v36  ;;  %4123 = vmatpush2.msra.mxu0 %v1494_v54  ;;  %v1487_v25 = vunpack.c.h.bf16 %v7399_v19  ;;  %v2925_v0 = vadd.f32 %v6889_v26, %v7135_v29  ;;  %4954 = vst [vmem:[%s7177_s6 + $0xe0] sm:$0xff] %v4890_v16  ;;  %v3399_v48 = vpop.f32.mrf.mxu1  ;;  %v5673_v23 = vld [vmem:[#allocation2 + $0x4a8] sm:$0xff] }
 0x2db   : > { %8647 = vst [vmem:[#allocation27_spill] sm:$0xff] %v7404_v60  ;;  %4283 = vmatprep.subr.mxu1 %v1623_v58  ;;  %4124 = vmatprep.subr.mxu0 %v1491_v17  ;;  %v1486_v63 = vunpack.c.l.bf16 %v7399_v19  ;;  %v3400_v6 = vadd.f32 %v3399_v48, %v3239_v13  ;;  %v3241_v9 = vadd.f32 %v3240_v27, %v3080_v41  ;;  %v1614_v26 = vunpack.c.l.bf16 %v7407_v46  ;;  %v7432_v19 = vld [vmem:[%s6212_s24 + $0x9b8] sm:$0xff]  ;;  %v7451_v27 = vld [vmem:[%s6212_s24 + $0x9a8] sm:$0xff] }
 0x2dc   : > { %v4891_v54 = vsel %vm4763_vm15, %v3396_v47, %v4827_v55  ;;  %4284 = vmatpush2.msra.mxu1 %v1622_v28  ;;  %3886 = vmatprep.mubr.f32.mxu0 %v5673_v23  ;;  %v1615_v29 = vunpack.c.h.bf16 %v7407_v46  ;;  %v5040_v43 = vmul.f32 %v7204_v39, %v4890_v16  ;;  %v3401_v15 = vpop.f32.mrf.mxu1  ;;  %v1483_v17 = vunpack.c.h.bf16 %v7417_v62  ;;  %v5674_v47 = vld [vmem:[#allocation2 + $0x4a0] sm:$0xff]  ;;  %v7440_v46 = vld [vmem:[%s6212_s24 + $0xbb8] sm:$0xff] }
 0x2dd   : > { %4955 = vst [vmem:[%s7177_s6 + $0xe8] sm:$0xff] %v4891_v54  ;;  %v5041_v58 = vmul.f32 %v7193_v18, %v4891_v54  ;;  %4125 = vmatpush2.msra.mxu0 %v1490_v35  ;;  %4285 = vmatprep.subr.mxu1 %v1619_v30  ;;  %vm4766_vm0 = vcmp.gt.f32.partialorder %v3400_v6, 0.0  ;;  %v4830_v28 = vmul.f32 0.2, %v3400_v6  ;;  %v3402_v51 = vadd.f32 %v3401_v15, %v3241_v9  ;;  %v3244_v35 = vpop.f32.mrf.mxu0  ;;  %v7456_v9 = vld [vmem:[%s6212_s24 + $0xba8] sm:$0xff] }
 0x2de   : > { %3887 = vmatmul.mubr.f32.gmra.mxu0 %v5674_v47  ;;  %4047 = vmatprep.mubr.f32.mxu1 %v5675_v33  ;;  %v1482_v53 = vunpack.c.l.bf16 %v7417_v62  ;;  %v3086_v41 = vadd.f32 %v8650_v14, %v2925_v0  ;;  %v1611_v42 = vunpack.c.h.bf16 %v7422_v52  ;;  %v3245_v13 = vadd.f32 %v3244_v35, %v8652_v57  ;;  %v5676_v0 = vld [vmem:[#allocation2 + $0x4b0] sm:$0xff]  ;;  %v5678_v47 = vld [vmem:[#allocation2 + $0x520] sm:$0xff]  ;;  %v5679_v33 = vld [vmem:[#allocation2 + $0x538] sm:$0xff] }
 0x2df   : > { %v7437_v30 = vadd.f32 %v5041_v58, %v5040_v43  ;;  %4126 = vmatprep.subr.mxu0 %v1487_v25  ;;  %4286 = vmatpush2.msra.mxu1 %v1618_v8  ;;  %v4894_v16 = vsel %vm4766_vm0, %v3400_v6, %v4830_v28  ;;  %vm4767_vm1 = vcmp.gt.f32.partialorder %v3402_v51, 0.0  ;;  %v4831_v55 = vmul.f32 0.2, %v3402_v51  ;;  %v8654_v8 = vld [vmem:[#allocation76_spill] sm:$0xff]  ;;  %v3246_v6 = vpop.f32.mrf.mxu0  ;;  %v5677_v43 = vld [vmem:[#allocation2 + $0x528] sm:$0xff]  ;;  %v7466_v28 = vld [vmem:[%s6212_s24 + $0x998] sm:$0xff] }
 0x2e0   : > { %v7444_v36 = vadd.f32 %v8653_v59, %v2627_v38  ;;  %4048 = vmatmul.mubr.f32.gmra.mxu1 %v5676_v0  ;;  %4127 = vmatpush2.msra.mxu0 %v1486_v63  ;;  %v1610_v62 = vunpack.c.l.bf16 %v7422_v52  ;;  %v1479_v48 = vunpack.c.h.bf16 %v7432_v19  ;;  %v2931_v25 = vadd.f32 %v8654_v8, %v7243_v40  ;;  %4958 = vst [vmem:[%s7177_s6 + $0x100] sm:$0xff] %v4894_v16  ;;  %v3405_v54 = vpop.f32.mrf.mxu1  ;;  %v8658_v0 = vld [vmem:[#allocation49_spill] sm:$0xff] }
 0x2e1   : > { %8651 = vst [vmem:[#allocation25_spill] sm:$0xff] %v7437_v30  ;;  %4287 = vmatprep.subr.mxu1 %v1615_v29  ;;  %4128 = vmatprep.subr.mxu0 %v1483_v17  ;;  %v1478_v38 = vunpack.c.l.bf16 %v7432_v19  ;;  %v4895_v63 = vsel %vm4767_vm1, %v3402_v51, %v4831_v55  ;;  %v3406_v52 = vadd.f32 %v3405_v54, %v3245_v13  ;;  %v1606_v40 = vunpack.c.l.bf16 %v7440_v46  ;;  %v8657_v13 = vld [vmem:[#allocation77_spill] sm:$0xff] }
 0x2e2   : > { %v3247_v23 = vadd.f32 %v3246_v6, %v3086_v41  ;;  %4288 = vmatpush2.msra.mxu1 %v1614_v26  ;;  %3892 = vmatprep.mubr.f32.mxu0 %v5677_v43  ;;  %v1607_v58 = vunpack.c.h.bf16 %v7440_v46  ;;  %v5044_v15 = vmul.f32 %v7204_v39, %v4894_v16  ;;  %4959 = vst [vmem:[%s7177_s6 + $0x108] sm:$0xff] %v4895_v63  ;;  %v3407_v17 = vpop.f32.mrf.mxu1  ;;  %v1475_v19 = vunpack.c.h.bf16 %v7451_v27  ;;  %v8655_v41 = vld [vmem:[#allocation78_spill] sm:$0xff]  ;;  %v7474_v16 = vld [vmem:[%s6212_s24 + $0xb98] sm:$0xff]  ;;  %v5681_v43 = vld [vmem:[#allocation2 + $0x5a8] sm:$0xff] }
 0x2e3   : > { %v5045_v29 = vmul.f32 %v7193_v18, %v4895_v63  ;;  %4129 = vmatpush2.msra.mxu0 %v1482_v53  ;;  %4289 = vmatprep.subr.mxu1 %v1611_v42  ;;  %vm4770_vm2 = vcmp.gt.f32.partialorder %v3406_v52, 0.0  ;;  %v4834_v26 = vmul.f32 0.2, %v3406_v52  ;;  %v1474_v14 = vunpack.c.l.bf16 %v7451_v27  ;;  %v3250_v53 = vpop.f32.mrf.mxu0 }
 0x2e4   : > { %v3408_v51 = vadd.f32 %v3407_v17, %v3247_v23  ;;  %3893 = vmatmul.mubr.f32.gmra.mxu0 %v5678_v47  ;;  %4053 = vmatprep.mubr.f32.mxu1 %v5679_v33  ;;  %v3092_v35 = vadd.f32 %v8655_v41, %v2931_v25  ;;  %v1603_v46 = vunpack.c.h.bf16 %v7456_v9  ;;  %v3251_v59 = vadd.f32 %v3250_v53, %v8657_v13  ;;  %v5680_v25 = vld [vmem:[#allocation2 + $0x530] sm:$0xff] }
 0x2e5   : > { %v7471_v42 = vadd.f32 %v5045_v29, %v5044_v15  ;;  %4130 = vmatprep.subr.mxu0 %v1479_v48  ;;  %4290 = vmatpush2.msra.mxu1 %v1610_v62  ;;  %v4898_v55 = vsel %vm4770_vm2, %v3406_v52, %v4834_v26  ;;  %v2633_v8 = vadd.f32 %v8658_v0, %v7053_v61  ;;  %v1602_v27 = vunpack.c.l.bf16 %v7456_v9  ;;  %v7484_v48 = vld [vmem:[%s6212_s24 + $0x988] sm:$0xff]  ;;  %v3252_v63 = vpop.f32.mrf.mxu0  ;;  %v5682_v26 = vld [vmem:[#allocation2 + $0x5a0] sm:$0xff] }
 0x2e6   : > { %vm4771_vm3 = vcmp.gt.f32.partialorder %v3408_v51, 0.0  ;;  %v4835_v57 = vmul.f32 0.2, %v3408_v51  ;;  %4054 = vmatmul.mubr.f32.gmra.mxu1 %v5680_v25  ;;  %4131 = vmatpush2.msra.mxu0 %v1478_v38  ;;  %v1471_v54 = vunpack.c.h.bf16 %v7466_v28  ;;  %v2937_v62 = vadd.f32 %v6917_v10, %v7310_v24  ;;  %4962 = vst [vmem:[%s7177_s6 + $0x120] sm:$0xff] %v4898_v55  ;;  %v3411_v6 = vpop.f32.mrf.mxu1  ;;  %v7489_v52 = vld [vmem:[%s6212_s24 + $0xb88] sm:$0xff] }
 0x2e7   : > { %8656 = vst [vmem:[#allocation29_spill] sm:$0xff] %v7471_v42  ;;  %4291 = vmatprep.subr.mxu1 %v1607_v58  ;;  %4132 = vmatprep.subr.mxu0 %v1475_v19  ;;  %v1470_v61 = vunpack.c.l.bf16 %v7466_v28  ;;  %v3412_v9 = vadd.f32 %v3411_v6, %v3251_v59  ;;  %v3253_v23 = vadd.f32 %v3252_v63, %v3092_v35  ;;  %v1598_v10 = vunpack.c.l.bf16 %v7474_v16  ;;  %v7499_v19 = vld [vmem:[%s6212_s24 + $0x978] sm:$0xff] }
 0x2e8   : > { %v4899_v38 = vsel %vm4771_vm3, %v3408_v51, %v4835_v57  ;;  %4292 = vmatpush2.msra.mxu1 %v1606_v40  ;;  %3898 = vmatprep.mubr.f32.mxu0 %v5681_v43  ;;  %v1599_v24 = vunpack.c.h.bf16 %v7474_v16  ;;  %v5048_v15 = vmul.f32 %v7204_v39, %v4898_v55  ;;  %v3413_v29 = vpop.f32.mrf.mxu1  ;;  %v1467_v17 = vunpack.c.h.bf16 %v7484_v48  ;;  %v5683_v51 = vld [vmem:[#allocation2 + $0x5b8] sm:$0xff]  ;;  %v8660_v57 = vld [vmem:[#allocation50_spill] sm:$0xff] }
 0x2e9   : > { %4963 = vst [vmem:[%s7177_s6 + $0x128] sm:$0xff] %v4899_v38  ;;  %v5049_v58 = vmul.f32 %v7193_v18, %v4899_v38  ;;  %4133 = vmatpush2.msra.mxu0 %v1474_v14  ;;  %4293 = vmatprep.subr.mxu1 %v1603_v46  ;;  %vm4774_vm4 = vcmp.gt.f32.partialorder %v3412_v9, 0.0  ;;  %v4838_v40 = vmul.f32 0.2, %v3412_v9  ;;  %v3414_v28 = vadd.f32 %v3413_v29, %v3253_v23  ;;  %v3256_v14 = vpop.f32.mrf.mxu0  ;;  %v7507_v46 = vld [vmem:[%s6212_s24 + $0xb78] sm:$0xff] }
 0x2ea   : > { %3899 = vmatmul.mubr.f32.gmra.mxu0 %v5682_v26  ;;  %4059 = vmatprep.mubr.f32.mxu1 %v5683_v51  ;;  %v1466_v47 = vunpack.c.l.bf16 %v7484_v48  ;;  %v3098_v33 = vadd.f32 %v6924_v20, %v2937_v62  ;;  %v1595_v41 = vunpack.c.h.bf16 %v7489_v52  ;;  %v3257_v55 = vadd.f32 %v3256_v14, %v6919_v5  ;;  %v5684_v20 = vld [vmem:[#allocation2 + $0x5b0] sm:$0xff]  ;;  %v7533_v43 = vld [vmem:[%s6212_s24 + $0x958] sm:$0xff] }
 0x2eb   : > { %v7504_v35 = vadd.f32 %v5049_v58, %v5048_v15  ;;  %4134 = vmatprep.subr.mxu0 %v1471_v54  ;;  %4294 = vmatpush2.msra.mxu1 %v1602_v27  ;;  %v4902_v53 = vsel %vm4774_vm4, %v3412_v9, %v4838_v40  ;;  %vm4775_vm5 = vcmp.gt.f32.partialorder %v3414_v28, 0.0  ;;  %v4839_v16 = vmul.f32 0.2, %v3414_v28  ;;  %v7518_v27 = vld [vmem:[%s6212_s24 + $0x968] sm:$0xff]  ;;  %v3258_v62 = vpop.f32.mrf.mxu0  ;;  %v5686_v15 = vld [vmem:[#allocation2 + $0x620] sm:$0xff]  ;;  %v5687_v58 = vld [vmem:[#allocation2 + $0x638] sm:$0xff] }
 0x2ec   : > { %v7511_v13 = vadd.f32 %v8660_v57, %v2633_v8  ;;  %4060 = vmatmul.mubr.f32.gmra.mxu1 %v5684_v20  ;;  %4135 = vmatpush2.msra.mxu0 %v1470_v61  ;;  %v1594_v59 = vunpack.c.l.bf16 %v7489_v52  ;;  %v1463_v0 = vunpack.c.h.bf16 %v7499_v19  ;;  %v2943_v25 = vadd.f32 %v6943_v4, %v7377_v31  ;;  %4966 = vst [vmem:[%s7177_s6 + $0x140] sm:$0xff] %v4902_v53  ;;  %v3417_v54 = vpop.f32.mrf.mxu1  ;;  %v7523_v8 = vld [vmem:[%s6212_s24 + $0xb68] sm:$0xff]  ;;  %v7541_v26 = vld [vmem:[%s6212_s24 + $0xb58] sm:$0xff]  ;;  %v5688_v14 = vld [vmem:[#allocation2 + $0x630] sm:$0xff] }
 0x2ed   : > { %8659 = vst [vmem:[#allocation31_spill] sm:$0xff] %v7504_v35  ;;  %4295 = vmatprep.subr.mxu1 %v1599_v24  ;;  %4136 = vmatprep.subr.mxu0 %v1467_v17  ;;  %v1462_v5 = vunpack.c.l.bf16 %v7499_v19  ;;  %v4903_v48 = vsel %vm4775_vm5, %v3414_v28, %v4839_v16  ;;  %v3418_v6 = vadd.f32 %v3417_v54, %v3257_v55  ;;  %v5685_v61 = vld [vmem:[#allocation2 + $0x628] sm:$0xff]  ;;  %v1590_v4 = vunpack.c.l.bf16 %v7507_v46 }
 0x2ee   : > { %v3259_v63 = vadd.f32 %v3258_v62, %v3098_v33  ;;  %4296 = vmatpush2.msra.mxu1 %v1598_v10  ;;  %3904 = vmatprep.mubr.f32.mxu0 %v5685_v61  ;;  %v1591_v31 = vunpack.c.h.bf16 %v7507_v46  ;;  %v5052_v52 = vmul.f32 %v7204_v39, %v4902_v53  ;;  %4967 = vst [vmem:[%s7177_s6 + $0x148] sm:$0xff] %v4903_v48  ;;  %v3419_v9 = vpop.f32.mrf.mxu1  ;;  %v1459_v23 = vunpack.c.h.bf16 %v7518_v27  ;;  %v7551_v55 = vld [vmem:[%s6212_s24 + $0x948] sm:$0xff]  ;;  %v5690_v61 = vld [vmem:[#allocation2 + $0x6a0] sm:$0xff] }
 0x2ef   : > { %v5053_v38 = vmul.f32 %v7193_v18, %v4903_v48  ;;  %4137 = vmatpush2.msra.mxu0 %v1466_v47  ;;  %4297 = vmatprep.subr.mxu1 %v1595_v41  ;;  %vm4778_vm6 = vcmp.gt.f32.partialorder %v3418_v6, 0.0  ;;  %v4842_v10 = vmul.f32 0.2, %v3418_v6  ;;  %v1458_v29 = vunpack.c.l.bf16 %v7518_v27  ;;  %v3262_v40 = vpop.f32.mrf.mxu0  ;;  %v8662_v41 = vld [vmem:[#allocation51_spill] sm:$0xff]  ;;  %v5689_v27 = vld [vmem:[#allocation2 + $0x6a8] sm:$0xff] }
 0x2f0   : > { %v3420_v24 = vadd.f32 %v3419_v9, %v3259_v63  ;;  %3905 = vmatmul.mubr.f32.gmra.mxu0 %v5686_v15  ;;  %4065 = vmatprep.mubr.f32.mxu1 %v5687_v58  ;;  %v3104_v17 = vadd.f32 %v6961_v21, %v2943_v25  ;;  %v1587_v19 = vunpack.c.h.bf16 %v7523_v8  ;;  %v3263_v33 = vadd.f32 %v3262_v40, %v6949_v45  ;;  %v7566_v48 = vld [vmem:[%s6212_s24 + $0x938] sm:$0xff]  ;;  %v8664_v58 = vld [vmem:[#allocation52_spill] sm:$0xff] }
 0x2f1   : > { %v7538_v28 = vadd.f32 %v5053_v38, %v5052_v52  ;;  %4138 = vmatprep.subr.mxu0 %v1463_v0  ;;  %4298 = vmatpush2.msra.mxu1 %v1594_v59  ;;  %v4906_v51 = vsel %vm4778_vm6, %v3418_v6, %v4842_v10  ;;  %v2639_v21 = vadd.f32 %v8662_v41, %v7056_v22  ;;  %v1586_v46 = vunpack.c.l.bf16 %v7523_v8  ;;  %v3264_v20 = vpop.f32.mrf.mxu0  ;;  %v7556_v22 = vld [vmem:[%s6212_s24 + $0xb48] sm:$0xff] }
 0x2f2   : > { %vm4779_vm7 = vcmp.gt.f32.partialorder %v3420_v24, 0.0  ;;  %v4843_v47 = vmul.f32 0.2, %v3420_v24  ;;  %4066 = vmatmul.mubr.f32.gmra.mxu1 %v5688_v14  ;;  %4139 = vmatpush2.msra.mxu0 %v1462_v5  ;;  %v1455_v53 = vunpack.c.h.bf16 %v7533_v43  ;;  %v2949_v16 = vadd.f32 %v6995_v34, %v7444_v36  ;;  %4970 = vst [vmem:[%s7177_s6 + $0x160] sm:$0xff] %v4906_v51  ;;  %v3423_v57 = vpop.f32.mrf.mxu1 }
 0x2f3   : > { %8661 = vst [vmem:[#allocation22_spill] sm:$0xff] %v7538_v28  ;;  %4299 = vmatprep.subr.mxu1 %v1591_v31  ;;  %4140 = vmatprep.subr.mxu0 %v1459_v23  ;;  %v1454_v45 = vunpack.c.l.bf16 %v7533_v43  ;;  %v3424_v0 = vadd.f32 %v3423_v57, %v3263_v33  ;;  %v3265_v25 = vadd.f32 %v3264_v20, %v3104_v17  ;;  %v1582_v34 = vunpack.c.l.bf16 %v7541_v26  ;;  %v7574_v43 = vld [vmem:[%s6212_s24 + $0xb38] sm:$0xff]  ;;  %v7588_v33 = vld [vmem:[%s6212_s24 + $0xb28] sm:$0xff] }
 0x2f4   : > { %v4907_v59 = vsel %vm4779_vm7, %v3420_v24, %v4843_v47  ;;  %4300 = vmatpush2.msra.mxu1 %v1590_v4  ;;  %3910 = vmatprep.mubr.f32.mxu0 %v5689_v27  ;;  %v1583_v36 = vunpack.c.h.bf16 %v7541_v26  ;;  %v5056_v54 = vmul.f32 %v7204_v39, %v4906_v51  ;;  %v3425_v5 = vpop.f32.mrf.mxu1  ;;  %v1451_v8 = vunpack.c.h.bf16 %v7551_v55  ;;  %v5691_v4 = vld [vmem:[#allocation2 + $0x6b8] sm:$0xff]  ;;  %v7583_v26 = vld [vmem:[%s6212_s24 + $0x928] sm:$0xff] }
 0x2f5   : > { %4971 = vst [vmem:[%s7177_s6 + $0x168] sm:$0xff] %v4907_v59  ;;  %v5057_v62 = vmul.f32 %v7193_v18, %v4907_v59  ;;  %4141 = vmatpush2.msra.mxu0 %v1458_v29  ;;  %4301 = vmatprep.subr.mxu1 %v1587_v19  ;;  %vm4782_vm8 = vcmp.gt.f32.partialorder %v3424_v0, 0.0  ;;  %v4846_v6 = vmul.f32 0.2, %v3424_v0  ;;  %v3426_v63 = vadd.f32 %v3425_v5, %v3265_v25  ;;  %v3268_v9 = vpop.f32.mrf.mxu0  ;;  %v7598_v20 = vld [vmem:[%s6212_s24 + $0x918] sm:$0xff]  ;;  %v5694_v59 = vld [vmem:[#allocation2 + $0x720] sm:$0xff] }
 0x2f6   : > { %3911 = vmatmul.mubr.f32.gmra.mxu0 %v5690_v61  ;;  %4071 = vmatprep.mubr.f32.mxu1 %v5691_v4  ;;  %v1450_v31 = vunpack.c.l.bf16 %v7551_v55  ;;  %v3110_v52 = vadd.f32 %v7013_v7, %v2949_v16  ;;  %v1579_v38 = vunpack.c.h.bf16 %v7556_v22  ;;  %v3269_v15 = vadd.f32 %v3268_v9, %v7001_v3  ;;  %v5692_v7 = vld [vmem:[#allocation2 + $0x6b0] sm:$0xff] }
 0x2f7   : > { %v7571_v23 = vadd.f32 %v5057_v62, %v5056_v54  ;;  %4142 = vmatprep.subr.mxu0 %v1455_v53  ;;  %4302 = vmatpush2.msra.mxu1 %v1586_v46  ;;  %v4910_v10 = vsel %vm4782_vm8, %v3424_v0, %v4846_v6  ;;  %vm4783_vm9 = vcmp.gt.f32.partialorder %v3426_v63, 0.0  ;;  %v4847_v24 = vmul.f32 0.2, %v3426_v63  ;;  %v3270_v47 = vpop.f32.mrf.mxu0  ;;  %v5693_v46 = vld [vmem:[#allocation2 + $0x728] sm:$0xff]  ;;  %v5695_v0 = vld [vmem:[#allocation2 + $0x738] sm:$0xff]  ;;  %v5696_v6 = vld [vmem:[#allocation2 + $0x730] sm:$0xff] }
 0x2f8   : > { %v2800_v29 = vadd.f32 %v8664_v58, %v2639_v21  ;;  %4072 = vmatmul.mubr.f32.gmra.mxu1 %v5692_v7  ;;  %4143 = vmatpush2.msra.mxu0 %v1454_v45  ;;  %v1578_v17 = vunpack.c.l.bf16 %v7556_v22  ;;  %v1447_v19 = vunpack.c.h.bf16 %v7566_v48  ;;  %v2955_v40 = vadd.f32 %v7044_v2, %v7511_v13  ;;  %4974 = vst [vmem:[%s7177_s6 + $0x180] sm:$0xff] %v4910_v10  ;;  %v3429_v51 = vpop.f32.mrf.mxu1  ;;  %v8666_v4 = vld [vmem:[#allocation14_spill] sm:$0xff]  ;;  %v5697_v58 = vld [vmem:[#allocation2 + $0x7a8] sm:$0xff] }
 0x2f9   : > { %8663 = vst [vmem:[#allocation26_spill] sm:$0xff] %v7571_v23  ;;  %4303 = vmatprep.subr.mxu1 %v1583_v36  ;;  %4144 = vmatprep.subr.mxu0 %v1451_v8  ;;  %v1446_v3 = vunpack.c.l.bf16 %v7566_v48  ;;  %v4911_v41 = vsel %vm4783_vm9, %v3426_v63, %v4847_v24  ;;  %v3430_v21 = vadd.f32 %v3429_v51, %v3269_v15  ;;  %v1574_v2 = vunpack.c.l.bf16 %v7574_v43  ;;  %v7604_v36 = vld [vmem:[%s6212_s24 + $0xb18] sm:$0xff] }
 0x2fa   : > { %v3271_v14 = vadd.f32 %v3270_v47, %v3110_v52  ;;  %4304 = vmatpush2.msra.mxu1 %v1582_v34  ;;  %3916 = vmatprep.mubr.f32.mxu0 %v5693_v46  ;;  %v1575_v13 = vunpack.c.h.bf16 %v7574_v43  ;;  %v5060_v53 = vmul.f32 %v7204_v39, %v4910_v10  ;;  %4975 = vst [vmem:[%s7177_s6 + $0x188] sm:$0xff] %v4911_v41  ;;  %v3431_v55 = vpop.f32.mrf.mxu1  ;;  %v1443_v57 = vunpack.c.h.bf16 %v7583_v26  ;;  %v633_v52 = vld [vmem:[%s6212_s24 + $0x908] sm:$0xff] }
 0x2fb   : > { %v5061_v16 = vmul.f32 %v7193_v18, %v4911_v41  ;;  %4145 = vmatpush2.msra.mxu0 %v1450_v31  ;;  %4305 = vmatprep.subr.mxu1 %v1579_v38  ;;  %vm4786_vm10 = vcmp.gt.f32.partialorder %v3430_v21, 0.0  ;;  %v4850_v45 = vmul.f32 0.2, %v3430_v21  ;;  %v1442_v25 = vunpack.c.l.bf16 %v7583_v26  ;;  %v3274_v54 = vpop.f32.mrf.mxu0  ;;  %v7617_v43 = vld [vmem:[%s6212_s24 + $0xb08] sm:$0xff] }
 0x2fc   : > { %v3432_v22 = vadd.f32 %v3431_v55, %v3271_v14  ;;  %3917 = vmatmul.mubr.f32.gmra.mxu0 %v5694_v59  ;;  %4077 = vmatprep.mubr.f32.mxu1 %v5695_v0  ;;  %v3116_v27 = vadd.f32 %v7061_v44, %v2955_v40  ;;  %v1571_v34 = vunpack.c.h.bf16 %v7588_v33  ;;  %v3275_v48 = vadd.f32 %v3274_v54, %v7050_v32  ;;  %v7637_v0 = vld [vmem:[%s6212_s24 + $0xce8] sm:$0xff] }
 0x2fd   : > { %v7606_v62 = vadd.f32 %v5061_v16, %v5060_v53  ;;  %4146 = vmatprep.subr.mxu0 %v1447_v19  ;;  %4306 = vmatpush2.msra.mxu1 %v1578_v17  ;;  %v4914_v5 = vsel %vm4786_vm10, %v3430_v21, %v4850_v45  ;;  %v1570_v44 = vunpack.c.l.bf16 %v7588_v33  ;;  %v1438_v63 = vunpack.c.l.bf16 %v7598_v20  ;;  %v3276_v9 = vpop.f32.mrf.mxu0  ;;  %v5699_v33 = vld [vmem:[#allocation2 + $0x7b8] sm:$0xff]  ;;  %v8667_v21 = vld [vmem:[#allocation21_spill] sm:$0xff] }
 0x2fe   : > { %vm4787_vm11 = vcmp.gt.f32.partialorder %v3432_v22, 0.0  ;;  %v4851_v8 = vmul.f32 0.2, %v3432_v22  ;;  %4078 = vmatmul.mubr.f32.gmra.mxu1 %v5696_v6  ;;  %4147 = vmatpush2.msra.mxu0 %v1446_v3  ;;  %v1439_v61 = vunpack.c.h.bf16 %v7598_v20  ;;  %v2961_v31 = vadd.f32 %v8666_v4, %v2800_v29  ;;  %4978 = vst [vmem:[%s7177_s6 + $0x1a0] sm:$0xff] %v4914_v5  ;;  %v3435_v38 = vpop.f32.mrf.mxu1  ;;  %v5698_v3 = vld [vmem:[#allocation2 + $0x7a0] sm:$0xff]  ;;  %v7631_v16 = vld [vmem:[%s6212_s24 + $0xef8] sm:$0xff] }
 0x2ff   : > { %8665 = vst [vmem:[#allocation33_spill] sm:$0xff] %v7606_v62  ;;  %4307 = vmatprep.subr.mxu1 %v1575_v13  ;;  %4148 = vmatprep.subr.mxu0 %v1443_v57  ;;  %v1567_v32 = vunpack.c.h.bf16 %v7604_v36  ;;  %v3436_v24 = vadd.f32 %v3435_v38, %v3275_v48  ;;  %v3277_v15 = vadd.f32 %v3276_v9, %v3116_v27  ;;  %v1566_v29 = vunpack.c.l.bf16 %v7604_v36  ;;  %v8669_v20 = vld [vmem:[#allocation18_spill] sm:$0xff] }
 0x300   : > { %v4915_v10 = vsel %vm4787_vm11, %v3432_v22, %v4851_v8  ;;  %4308 = vmatpush2.msra.mxu1 %v1574_v2  ;;  %3922 = vmatprep.mubr.f32.mxu0 %v5697_v58  ;;  %v5064_v7 = vmul.f32 %v7204_v39, %v4914_v5  ;;  %v3437_v19 = vpop.f32.mrf.mxu1  ;;  %v8499_v40 = vsub.s32 2, %v6417_v50  ;;  %v1435_v26 = vunpack.c.h.bf16 %v633_v52  ;;  %v759_v2 = vld [vmem:[%s6212_s24 + $0xcf8] sm:$0xff]  ;;  %v5700_v22 = vld [vmem:[#allocation2 + $0x7b0] sm:$0xff]  ;;  %v7649_v5 = vld [vmem:[%s6212_s24 + $0xee8] sm:$0xff] }
 0x301   : > { %4979 = vst [vmem:[%s7177_s6 + $0x1a8] sm:$0xff] %v4915_v10  ;;  %v5065_v17 = vmul.f32 %v7193_v18, %v4915_v10  ;;  %4149 = vmatpush2.msra.mxu0 %v1442_v25  ;;  %4309 = vmatprep.subr.mxu1 %v1571_v34  ;;  %vm4790_vm12 = vcmp.gt.f32.partialorder %v3436_v24, 0.0  ;;  %v4854_v51 = vmul.f32 0.2, %v3436_v24  ;;  %v3438_v47 = vadd.f32 %v3437_v19, %v3277_v15  ;;  %v3280_v13 = vpop.f32.mrf.mxu0  ;;  %v7641_v34 = vld [vmem:[%s6219_s23] sm:$0xf] }
 0x302   : > { %3923 = vmatmul.mubr.f32.gmra.mxu0 %v5698_v3  ;;  %4083 = vmatprep.mubr.f32.mxu1 %v5699_v33  ;;  %v1434_v41 = vunpack.c.l.bf16 %v633_v52  ;;  %v3122_v14 = vadd.f32 %v8667_v21, %v2961_v31  ;;  %v1563_v46 = vunpack.c.h.bf16 %v7617_v43  ;;  %v3281_v45 = vadd.f32 %v3280_v13, %v8669_v20  ;;  %v5702_v52 = vld [vmem:[#allocation2 + $0x48] sm:$0xff]  ;;  %v755_v58 = vld [vmem:[%s6212_s24 + $0xcd8] sm:$0xff] }
 0x303   : > { %v7628_v53 = vadd.f32 %v5065_v17, %v5064_v7  ;;  %4150 = vmatprep.subr.mxu0 %v1439_v61  ;;  %4310 = vmatpush2.msra.mxu1 %v1570_v44  ;;  %v4918_v55 = vsel %vm4790_vm12, %v3436_v24, %v4854_v51  ;;  %vm4791_vm13 = vcmp.gt.f32.partialorder %v3438_v47, 0.0  ;;  %v4855_v57 = vmul.f32 0.2, %v3438_v47  ;;  %v3282_v27 = vpop.f32.mrf.mxu0  ;;  %v5704_v17 = vld [vmem:[#allocation2 + $0x58] sm:$0xff]  ;;  %v753_v33 = vld [vmem:[%s6212_s24 + $0xcc8] sm:$0xff] }
 0x304   : > { %4084 = vmatmul.mubr.f32.gmra.mxu1 %v5700_v22  ;;  %4151 = vmatpush2.msra.mxu0 %v1438_v63  ;;  %v1562_v59 = vunpack.c.l.bf16 %v7617_v43  ;;  %4982 = vst [vmem:[%s7177_s6 + $0x1c0] sm:$0xff] %v4918_v55  ;;  %v3441_v25 = vpop.f32.mrf.mxu1  ;;  %v7646_v36 = vrot.slane %v7641_v34, %v8499_v40  ;;  %v1687_v54 = vunpack.c.h.bf16 %v759_v2  ;;  %v3283_v6 = vadd.f32 %v3282_v27, %v3122_v14  ;;  %v5703_v43 = vld [vmem:[#allocation2 + $0x40] sm:$0xff]  ;;  %v819_v3 = vld [vmem:[%s6212_s24 + $0xed8] sm:$0xff] }
 0x305   : > { %8668 = vst [vmem:[#allocation35_spill] sm:$0xff] %v7628_v53  ;;  %4311 = vmatprep.subr.mxu1 %v1567_v32  ;;  %4152 = vmatprep.subr.mxu0 %v1435_v26  ;;  %v4919_v8 = vsel %vm4791_vm13, %v3438_v47, %v4855_v57  ;;  %v3442_v48 = vadd.f32 %v3441_v25, %v3281_v45  ;;  %v1686_v44 = vunpack.c.l.bf16 %v759_v2  ;;  %v1815_v63 = vunpack.c.h.bf16 %v7631_v16  ;;  %v5705_v47 = vld [vmem:[#allocation2 + $0x50] sm:$0xff]  ;;  %v817_v57 = vld [vmem:[%s6212_s24 + $0xec8] sm:$0xff]  ;;  %v5707_v25 = vld [vmem:[#allocation2 + $0xc0] sm:$0xff] }
 0x306   : > { %4312 = vmatpush2.msra.mxu1 %v1566_v29  ;;  %4153 = vmatpush2.msra.mxu0 %v1434_v41  ;;  %v5068_v61 = vmul.f32 %v7204_v39, %v4918_v55  ;;  %4983 = vst [vmem:[%s7177_s6 + $0x1c8] sm:$0xff] %v4919_v8  ;;  %v5069_v4 = vmul.f32 %v7193_v18, %v4919_v8  ;;  %v3443_v31 = vpop.f32.mrf.mxu1  ;;  %v1683_v38 = vunpack.c.h.bf16 %v7637_v0  ;;  %v1814_v10 = vunpack.c.l.bf16 %v7631_v16  ;;  %v5706_v16 = vld [vmem:[#allocation2 + $0xc8] sm:$0xff]  ;;  %v5708_v27 = vld [vmem:[#allocation2 + $0xd8] sm:$0xff] }
 0x307   : > { %4154 = vmatprep.mubr.f32.mxu0 %v5702_v52  ;;  %4313 = vmatprep.subr.mxu1 %v1563_v46  ;;  %vm4794_vm14 = vcmp.gt.f32.partialorder %v3442_v48, 0.0  ;;  %v4858_v9 = vmul.f32 0.2, %v3442_v48  ;;  %v3444_v32 = vadd.f32 %v3443_v31, %v3283_v6  ;;  %v1682_v24 = vunpack.c.l.bf16 %v7637_v0  ;;  %v3512_v29 = vpop.f32.mrf.mxu0 }
 0x308   : > { %4155 = vmatmul.mubr.f32.vlgmr.msra.gmra.mxu0 %v5703_v43  ;;  %4314 = vmatpush2.msra.mxu1 %v1562_v59  ;;  %v1811_v15 = vunpack.c.h.bf16 %v7649_v5  ;;  %v7661_v7 = vadd.f32 %v5069_v4, %v5068_v61  ;;  %v3513_v51 = vadd.f32 %v3512_v29, %v7646_v36  ;;  %v1810_v14 = vunpack.c.l.bf16 %v7649_v5  ;;  %v751_v5 = vld [vmem:[%s6212_s24 + $0xcb8] sm:$0xff]  ;;  %v749_v61 = vld [vmem:[%s6212_s24 + $0xca8] sm:$0xff]  ;;  %v5711_v29 = vld [vmem:[#allocation2 + $0x140] sm:$0xff] }
 0x309   : > { %4315 = vmatprep.mubr.f32.mxu1 %v5704_v17  ;;  %4412 = vmatprep.subr.mxu0 %v1687_v54  ;;  %v4922_v19 = vsel %vm4794_vm14, %v3442_v48, %v4858_v9  ;;  %vm4795_vm15 = vcmp.gt.f32.partialorder %v3444_v32, 0.0  ;;  %v4859_v26 = vmul.f32 0.2, %v3444_v32  ;;  %v3673_v41 = vpop.f32.mrf.mxu1  ;;  %v7667_v21 = vpop.f32.mrf.mxu0  ;;  %v1679_v46 = vunpack.c.h.bf16 %v755_v58  ;;  %v5712_v17 = vld [vmem:[#allocation2 + $0x158] sm:$0xff] }
 0x30a   : > { %8670 = vst [vmem:[#allocation28_spill] sm:$0xff] %v7661_v7  ;;  %4316 = vmatmul.mubr.f32.vlgmr.msra.gmra.mxu1 %v5705_v47  ;;  %4413 = vmatpush1.msra.mxu0 %v1686_v44  ;;  %4986 = vst [vmem:[%s7177_s6 + $0x1e0] sm:$0xff] %v4922_v19  ;;  %v7670_v13 = vadd.f32 %v3673_v41, %v3513_v51  ;;  %v1678_v55 = vunpack.c.l.bf16 %v755_v58  ;;  %v5072_v20 = vmul.f32 %v7204_v39, %v4922_v19  ;;  %v5709_v44 = vld [vmem:[#allocation2 + $0xd0] sm:$0xff] }
 0x30b   : > { %4573 = vmatprep.subr.mxu1 %v1815_v63  ;;  %4414 = vmatprep.subr.mxu0 %v1683_v38  ;;  %v4923_v2 = vsel %vm4795_vm15, %v3444_v32, %v4859_v26  ;;  %v7676_v22 = vpop.f32.mrf.mxu1  ;;  %v1807_v59 = vunpack.c.h.bf16 %v819_v3  ;;  %v1675_v0 = vunpack.c.h.bf16 %v753_v33  ;;  %v1806_v54 = vunpack.c.l.bf16 %v819_v3  ;;  %v815_v63 = vld [vmem:[%s6212_s24 + $0xeb8] sm:$0xff]  ;;  %v5710_v32 = vld [vmem:[#allocation2 + $0x148] sm:$0xff]  ;;  %v5713_v41 = vld [vmem:[#allocation2 + $0x150] sm:$0xff] }
 0x30c   : > { %4574 = vmatpush1.msra.mxu1 %v1814_v10  ;;  %4160 = vmatprep.mubr.f32.mxu0 %v5706_v16  ;;  %4987 = vst [vmem:[%s7177_s6 + $0x1e8] sm:$0xff] %v4923_v2  ;;  %v5073_v45 = vmul.f32 %v7193_v18, %v4923_v2  ;;  %v1674_v18 = vunpack.c.l.bf16 %v753_v33  ;;  %v1803_v39 = vunpack.c.h.bf16 %v817_v57  ;;  %v1802_v52 = vunpack.c.l.bf16 %v817_v57  ;;  %v813_v10 = vld [vmem:[%s6212_s24 + $0xea8] sm:$0xff]  ;;  %v747_v26 = vld [vmem:[%s6212_s24 + $0xc98] sm:$0xff] }
 0x30d   : > { %4415 = vmatpush1.msra.mxu0 %v1682_v24  ;;  %4575 = vmatprep.subr.mxu1 %v1811_v15  ;;  %v3518_v8 = vpop.f32.mrf.mxu0  ;;  %v1671_v38 = vunpack.c.h.bf16 %v751_v5  ;;  %v1670_v43 = vunpack.c.l.bf16 %v751_v5  ;;  %v1799_v15 = vunpack.c.h.bf16 %v815_v63  ;;  %v1667_v58 = vunpack.c.h.bf16 %v749_v61  ;;  %v5715_v5 = vld [vmem:[#allocation2 + $0x1c0] sm:$0xff] }
 0x30e   : > { %4161 = vmatmul.mubr.f32.gmra.mxu0 %v5707_v25  ;;  %4321 = vmatprep.mubr.f32.mxu1 %v5708_v27  ;;  %v7679_v48 = vadd.f32 %v5073_v45, %v5072_v20  ;;  %v3519_v6 = vadd.f32 %v3518_v8, %v7646_v36  ;;  %v1798_v19 = vunpack.c.l.bf16 %v815_v63  ;;  %v1666_v47 = vunpack.c.l.bf16 %v749_v61  ;;  %v5714_v45 = vld [vmem:[#allocation2 + $0x1c8] sm:$0xff]  ;;  %v5716_v8 = vld [vmem:[#allocation2 + $0x1d8] sm:$0xff] }
 0x30f   : > { %4416 = vmatprep.subr.mxu0 %v1679_v46  ;;  %4576 = vmatpush1.msra.mxu1 %v1810_v14  ;;  %v7684_v31 = vpop.f32.mrf.mxu0  ;;  %v1795_v3 = vunpack.c.h.bf16 %v813_v10  ;;  %v811_v14 = vld [vmem:[%s6212_s24 + $0xe98] sm:$0xff]  ;;  %v745_v46 = vld [vmem:[%s6212_s24 + $0xc88] sm:$0xff]  ;;  %v1663_v57 = vunpack.c.h.bf16 %v747_v26 }
 0x310   : > { %8671 = vst [vmem:[#allocation54_spill] sm:$0xff] %v7679_v48  ;;  %4322 = vmatmul.mubr.f32.gmra.mxu1 %v5709_v44  ;;  %4417 = vmatpush1.msra.mxu0 %v1678_v55  ;;  %v3679_v4 = vpop.f32.mrf.mxu1  ;;  %v1794_v55 = vunpack.c.l.bf16 %v813_v10  ;;  %v1791_v27 = vunpack.c.h.bf16 %v811_v14  ;;  %v1658_v44 = vunpack.c.l.bf16 %v745_v46 }
 0x311   : > { %4577 = vmatprep.subr.mxu1 %v1807_v59  ;;  %4418 = vmatprep.subr.mxu0 %v1675_v0  ;;  %v7686_v9 = vadd.f32 %v3679_v4, %v3519_v6  ;;  %v1662_v59 = vunpack.c.l.bf16 %v747_v26  ;;  %v809_v0 = vld [vmem:[%s6212_s24 + $0xe88] sm:$0xff]  ;;  %v5717_v4 = vld [vmem:[#allocation2 + $0x1d0] sm:$0xff] }
 0x312   : > { %4578 = vmatpush1.msra.mxu1 %v1806_v54  ;;  %4166 = vmatprep.mubr.f32.mxu0 %v5710_v32  ;;  %v7689_v24 = vpop.f32.mrf.mxu1  ;;  %v1659_v54 = vunpack.c.h.bf16 %v745_v46  ;;  %v1787_v63 = vunpack.c.h.bf16 %v809_v0  ;;  %v1786_v10 = vunpack.c.l.bf16 %v809_v0  ;;  %v737_v0 = vld [vmem:[%s6212_s24 + $0xc48] sm:$0xff] }
 0x313   : > { %4419 = vmatpush1.msra.mxu0 %v1674_v18  ;;  %4579 = vmatprep.subr.mxu1 %v1803_v39  ;;  %v3524_v51 = vpop.f32.mrf.mxu0  ;;  %v1790_v18 = vunpack.c.l.bf16 %v811_v14  ;;  %v743_v39 = vld [vmem:[%s6212_s24 + $0xc78] sm:$0xff] }
 0x314   : > { %4167 = vmatmul.mubr.f32.gmra.mxu0 %v5711_v29  ;;  %4327 = vmatprep.mubr.f32.mxu1 %v5712_v17  ;;  %v3525_v33 = vadd.f32 %v3524_v51, %v7646_v36  ;;  %v5718_v29 = vld [vmem:[#allocation2 + $0x248] sm:$0xff]  ;;  %v1654_v17 = vunpack.c.l.bf16 %v743_v39  ;;  %v739_v14 = vld [vmem:[%s6212_s24 + $0xc58] sm:$0xff] }
 0x315   : > { %4420 = vmatprep.subr.mxu0 %v1671_v38  ;;  %4580 = vmatpush1.msra.mxu1 %v1802_v52  ;;  %v7695_v16 = vpop.f32.mrf.mxu0  ;;  %v807_v52 = vld [vmem:[%s6212_s24 + $0xe78] sm:$0xff]  ;;  %v741_v38 = vld [vmem:[%s6212_s24 + $0xc68] sm:$0xff] }
 0x316   : > { %4328 = vmatmul.mubr.f32.gmra.mxu1 %v5713_v41  ;;  %4421 = vmatpush1.msra.mxu0 %v1670_v43  ;;  %v3685_v2 = vpop.f32.mrf.mxu1  ;;  %v1783_v51 = vunpack.c.h.bf16 %v807_v52  ;;  %v1782_v41 = vunpack.c.l.bf16 %v807_v52  ;;  %v5723_v52 = vld [vmem:[#allocation2 + $0x2c0] sm:$0xff] }
 0x317   : > { %4581 = vmatprep.subr.mxu1 %v1799_v15  ;;  %4422 = vmatprep.subr.mxu0 %v1667_v58  ;;  %v7697_v20 = vadd.f32 %v3685_v2, %v3525_v33  ;;  %v1655_v15 = vunpack.c.h.bf16 %v743_v39  ;;  %v5720_v33 = vld [vmem:[#allocation2 + $0x258] sm:$0xff]  ;;  %v1650_v2 = vunpack.c.l.bf16 %v741_v38  ;;  %v5722_v39 = vld [vmem:[#allocation2 + $0x2c8] sm:$0xff] }
 0x318   : > { %4582 = vmatpush1.msra.mxu1 %v1798_v19  ;;  %4172 = vmatprep.mubr.f32.mxu0 %v5714_v45  ;;  %v7700_v25 = vpop.f32.mrf.mxu1  ;;  %v805_v19 = vld [vmem:[%s6212_s24 + $0xe68] sm:$0xff]  ;;  %v5721_v45 = vld [vmem:[#allocation2 + $0x250] sm:$0xff] }
 0x319   : > { %4423 = vmatpush1.msra.mxu0 %v1666_v47  ;;  %4583 = vmatprep.subr.mxu1 %v1795_v3  ;;  %v3530_v6 = vpop.f32.mrf.mxu0  ;;  %v1651_v47 = vunpack.c.h.bf16 %v741_v38  ;;  %v5719_v3 = vld [vmem:[#allocation2 + $0x240] sm:$0xff]  ;;  %v5724_v38 = vld [vmem:[#allocation2 + $0x2d8] sm:$0xff] }
 0x31a   : > { %4173 = vmatmul.mubr.f32.gmra.mxu0 %v5715_v5  ;;  %4333 = vmatprep.mubr.f32.mxu1 %v5716_v8  ;;  %v3531_v61 = vadd.f32 %v3530_v6, %v7646_v36  ;;  %v1778_v5 = vunpack.c.l.bf16 %v805_v19  ;;  %v1647_v8 = vunpack.c.h.bf16 %v739_v14  ;;  %v1646_v6 = vunpack.c.l.bf16 %v739_v14 }
 0x31b   : > { %4424 = vmatprep.subr.mxu0 %v1663_v57  ;;  %4584 = vmatpush1.msra.mxu1 %v1794_v55  ;;  %v7706_v43 = vpop.f32.mrf.mxu0  ;;  %v1779_v55 = vunpack.c.h.bf16 %v805_v19 }
 0x31c   : > { %4334 = vmatmul.mubr.f32.gmra.mxu1 %v5717_v4  ;;  %4425 = vmatpush1.msra.mxu0 %v1662_v59  ;;  %v3691_v32 = vpop.f32.mrf.mxu1  ;;  %v803_v59 = vld [vmem:[%s6212_s24 + $0xe58] sm:$0xff]  ;;  %v1643_v4 = vunpack.c.h.bf16 %v737_v0 }
 0x31d   : > { %4585 = vmatprep.subr.mxu1 %v1791_v27  ;;  %4426 = vmatprep.subr.mxu0 %v1659_v54  ;;  %v7708_v58 = vadd.f32 %v3691_v32, %v3531_v61  ;;  %v1775_v61 = vunpack.c.h.bf16 %v803_v59  ;;  %v1774_v32 = vunpack.c.l.bf16 %v803_v59 }
 0x31e   : > { %4586 = vmatpush1.msra.mxu1 %v1790_v18  ;;  %4178 = vmatprep.mubr.f32.mxu0 %v5718_v29  ;;  %v7711_v26 = vpop.f32.mrf.mxu1  ;;  %v1642_v29 = vunpack.c.l.bf16 %v737_v0 }
 0x31f   : > { %4427 = vmatpush1.msra.mxu0 %v1658_v44  ;;  %4587 = vmatprep.subr.mxu1 %v1787_v63  ;;  %v3536_v46 = vpop.f32.mrf.mxu0  ;;  %v801_v44 = vld [vmem:[%s6212_s24 + $0xe48] sm:$0xff] }
 0x320   : > { %4179 = vmatmul.mubr.f32.gmra.mxu0 %v5719_v3  ;;  %4339 = vmatprep.mubr.f32.mxu1 %v5720_v33  ;;  %v3537_v57 = vadd.f32 %v3536_v46, %v7646_v36  ;;  %v733_v3 = vld [vmem:[%s6212_s24 + $0xc28] sm:$0xff]  ;;  %v1770_v14 = vunpack.c.l.bf16 %v801_v44 }
 0x321   : > { %4428 = vmatprep.subr.mxu0 %v1655_v15  ;;  %4588 = vmatpush1.msra.mxu1 %v1786_v10  ;;  %v7717_v54 = vpop.f32.mrf.mxu0  ;;  %v735_v10 = vld [vmem:[%s6212_s24 + $0xc38] sm:$0xff] }
 0x322   : > { %4340 = vmatmul.mubr.f32.gmra.mxu1 %v5721_v45  ;;  %4429 = vmatpush1.msra.mxu0 %v1654_v17  ;;  %v3697_v27 = vpop.f32.mrf.mxu1  ;;  %v1771_v17 = vunpack.c.h.bf16 %v801_v44  ;;  %v1639_v46 = vunpack.c.h.bf16 %v735_v10  ;;  %v797_v45 = vld [vmem:[%s6212_s24 + $0xe28] sm:$0xff] }
 0x323   : > { %4589 = vmatprep.subr.mxu1 %v1783_v51  ;;  %4430 = vmatprep.subr.mxu0 %v1651_v47  ;;  %v7719_v18 = vadd.f32 %v3697_v27, %v3537_v57  ;;  %v5725_v51 = vld [vmem:[#allocation2 + $0x2d0] sm:$0xff]  ;;  %v799_v47 = vld [vmem:[%s6212_s24 + $0xe38] sm:$0xff]  ;;  %v1638_v57 = vunpack.c.l.bf16 %v735_v10  ;;  %v1635_v27 = vunpack.c.h.bf16 %v733_v3  ;;  %v729_v10 = vld [vmem:[%s6212_s24 + $0xc08] sm:$0xff] }
 0x324   : > { %4590 = vmatpush1.msra.mxu1 %v1782_v41  ;;  %4184 = vmatprep.mubr.f32.mxu0 %v5722_v39  ;;  %v7722_v63 = vpop.f32.mrf.mxu1  ;;  %v1767_v0 = vunpack.c.h.bf16 %v799_v47  ;;  %v1766_v39 = vunpack.c.l.bf16 %v799_v47  ;;  %v5730_v47 = vld [vmem:[#allocation2 + $0x3c8] sm:$0xff] }
 0x325   : > { %4431 = vmatpush1.msra.mxu0 %v1650_v2  ;;  %4591 = vmatprep.subr.mxu1 %v1779_v55  ;;  %v3542_v15 = vpop.f32.mrf.mxu0  ;;  %v5726_v55 = vld [vmem:[#allocation2 + $0x348] sm:$0xff] }
 0x326   : > { %4185 = vmatmul.mubr.f32.gmra.mxu0 %v5723_v52  ;;  %4345 = vmatprep.mubr.f32.mxu1 %v5724_v38  ;;  %v3543_v19 = vadd.f32 %v3542_v15, %v7646_v36  ;;  %v5729_v38 = vld [vmem:[#allocation2 + $0x350] sm:$0xff] }
 0x327   : > { %4432 = vmatprep.subr.mxu0 %v1647_v8  ;;  %4592 = vmatpush1.msra.mxu1 %v1778_v5  ;;  %v7728_v41 = vpop.f32.mrf.mxu0  ;;  %v5727_v5 = vld [vmem:[#allocation2 + $0x340] sm:$0xff]  ;;  %v5728_v8 = vld [vmem:[#allocation2 + $0x358] sm:$0xff] }
 0x328   : > { %4346 = vmatmul.mubr.f32.gmra.mxu1 %v5725_v51  ;;  %4433 = vmatpush1.msra.mxu0 %v1646_v6  ;;  %v3703_v33 = vpop.f32.mrf.mxu1  ;;  %v731_v6 = vld [vmem:[%s6212_s24 + $0xc18] sm:$0xff] }
 0x329   : > { %4593 = vmatprep.subr.mxu1 %v1775_v61  ;;  %4434 = vmatprep.subr.mxu0 %v1643_v4  ;;  %v7730_v2 = vadd.f32 %v3703_v33, %v3543_v19  ;;  %v1634_v61 = vunpack.c.l.bf16 %v733_v3  ;;  %v1763_v4 = vunpack.c.h.bf16 %v797_v45  ;;  %v1631_v19 = vunpack.c.h.bf16 %v731_v6  ;;  %v793_v33 = vld [vmem:[%s6212_s24 + $0xe08] sm:$0xff] }
 0x32a   : > { %4594 = vmatpush1.msra.mxu1 %v1774_v32  ;;  %4190 = vmatprep.mubr.f32.mxu0 %v5726_v55  ;;  %v7733_v59 = vpop.f32.mrf.mxu1  ;;  %v795_v32 = vld [vmem:[%s6212_s24 + $0xe18] sm:$0xff]  ;;  %v1630_v3 = vunpack.c.l.bf16 %v731_v6  ;;  %v1627_v55 = vunpack.c.h.bf16 %v729_v10 }
 0x32b   : > { %4435 = vmatpush1.msra.mxu0 %v1642_v29  ;;  %4595 = vmatprep.subr.mxu1 %v1771_v17  ;;  %v3548_v44 = vpop.f32.mrf.mxu0  ;;  %v1762_v17 = vunpack.c.l.bf16 %v797_v45  ;;  %v5732_v45 = vld [vmem:[#allocation2 + $0x3d8] sm:$0xff] }
 0x32c   : > { %4191 = vmatmul.mubr.f32.gmra.mxu0 %v5727_v5  ;;  %4351 = vmatprep.mubr.f32.mxu1 %v5728_v8  ;;  %v3549_v52 = vadd.f32 %v3548_v44, %v7646_v36  ;;  %v1626_v8 = vunpack.c.l.bf16 %v729_v10  ;;  %v5733_v44 = vld [vmem:[#allocation2 + $0x3d0] sm:$0xff]  ;;  %v5734_v10 = vld [vmem:[#allocation2 + $0x448] sm:$0xff] }
 0x32d   : > { %4436 = vmatprep.subr.mxu0 %v1639_v46  ;;  %4596 = vmatpush1.msra.mxu1 %v1770_v14  ;;  %v7739_v29 = vpop.f32.mrf.mxu0  ;;  %v1759_v46 = vunpack.c.h.bf16 %v795_v32 }
 0x32e   : > { %4352 = vmatmul.mubr.f32.gmra.mxu1 %v5729_v38  ;;  %4437 = vmatpush1.msra.mxu0 %v1638_v57  ;;  %v3709_v15 = vpop.f32.mrf.mxu1  ;;  %v5731_v57 = vld [vmem:[#allocation2 + $0x3c0] sm:$0xff] }
 0x32f   : > { %4597 = vmatprep.subr.mxu1 %v1767_v0  ;;  %4438 = vmatprep.subr.mxu0 %v1635_v27  ;;  %v7741_v51 = vadd.f32 %v3709_v15, %v3549_v52  ;;  %v1758_v0 = vunpack.c.l.bf16 %v795_v32  ;;  %v791_v27 = vld [vmem:[%s6212_s24 + $0xdf8] sm:$0xff]  ;;  %v1754_v32 = vunpack.c.l.bf16 %v793_v33 }
 0x330   : > { %4598 = vmatpush1.msra.mxu1 %v1766_v39  ;;  %4196 = vmatprep.mubr.f32.mxu0 %v5730_v47  ;;  %v7744_v14 = vpop.f32.mrf.mxu1  ;;  %v1755_v39 = vunpack.c.h.bf16 %v793_v33  ;;  %v1751_v15 = vunpack.c.h.bf16 %v791_v27  ;;  %v1750_v47 = vunpack.c.l.bf16 %v791_v27  ;;  %v5736_v33 = vld [vmem:[#allocation2 + $0x458] sm:$0xff] }
 0x331   : > { %4439 = vmatpush1.msra.mxu0 %v1634_v61  ;;  %4599 = vmatprep.subr.mxu1 %v1763_v4  ;;  %v3554_v5 = vpop.f32.mrf.mxu0  ;;  %v855_v61 = vld [vmem:[%s6212_s24 + $0xff8] sm:$0xff]  ;;  %v789_v4 = vld [vmem:[%s6212_s24 + $0xde8] sm:$0xff] }
 0x332   : > { %4197 = vmatmul.mubr.f32.gmra.mxu0 %v5731_v57  ;;  %4357 = vmatprep.mubr.f32.mxu1 %v5732_v45  ;;  %v3555_v6 = vadd.f32 %v3554_v5, %v7646_v36  ;;  %v853_v57 = vld [vmem:[%s6212_s24 + $0xfe8] sm:$0xff]  ;;  %v1879_v45 = vunpack.c.h.bf16 %v855_v61  ;;  %v1747_v5 = vunpack.c.h.bf16 %v789_v4 }
 0x333   : > { %4440 = vmatprep.subr.mxu0 %v1631_v19  ;;  %4600 = vmatpush1.msra.mxu1 %v1762_v17  ;;  %v7750_v38 = vpop.f32.mrf.mxu0  ;;  %v8500_v19 = vsub.s32 3, %v6417_v50  ;;  %v1875_v27 = vunpack.c.h.bf16 %v853_v57 }
 0x334   : > { %4358 = vmatmul.mubr.f32.gmra.mxu1 %v5733_v44  ;;  %4441 = vmatpush1.msra.mxu0 %v1630_v3  ;;  %v3715_v52 = vpop.f32.mrf.mxu1 }
 0x335   : > { %4601 = vmatprep.subr.mxu1 %v1759_v46  ;;  %4442 = vmatprep.subr.mxu0 %v1627_v55  ;;  %v7753_v17 = vadd.f32 %v3715_v52, %v3555_v6  ;;  %v5735_v46 = vld [vmem:[#allocation2 + $0x440] sm:$0xff]  ;;  %v1878_v55 = vunpack.c.l.bf16 %v855_v61  ;;  %v787_v6 = vld [vmem:[%s6212_s24 + $0xdd8] sm:$0xff]  ;;  %v5737_v52 = vld [vmem:[#allocation2 + $0x450] sm:$0xff] }
 0x336   : > { %4602 = vmatpush1.msra.mxu1 %v1758_v0  ;;  %4202 = vmatprep.mubr.f32.mxu0 %v5734_v10  ;;  %v7756_v3 = vpop.f32.mrf.mxu1  ;;  %v1746_v0 = vunpack.c.l.bf16 %v789_v4  ;;  %v851_v10 = vld [vmem:[%s6212_s24 + $0xfd8] sm:$0xff]  ;;  %v1743_v4 = vunpack.c.h.bf16 %v787_v6 }
 0x337   : > { %4443 = vmatpush1.msra.mxu0 %v1626_v8  ;;  %4603 = vmatprep.subr.mxu1 %v1755_v39  ;;  %v3560_v44 = vpop.f32.mrf.mxu0  ;;  %v7762_v8 = vrot.slane %v7641_v34, %v8500_v19  ;;  %v5738_v34 = vld [vmem:[#allocation2 + $0x4c8] sm:$0xff] }
 0x338   : > { %4203 = vmatmul.mubr.f32.gmra.mxu0 %v5735_v46  ;;  %4363 = vmatprep.mubr.f32.mxu1 %v5736_v33  ;;  %v3561_v39 = vadd.f32 %v3560_v44, %v7646_v36  ;;  %v785_v46 = vld [vmem:[%s6212_s24 + $0xdc8] sm:$0xff]  ;;  %v1742_v44 = vunpack.c.l.bf16 %v787_v6 }
 0x339   : > { %4444 = vmatprep.subr.mxu0 %v1751_v15  ;;  %4604 = vmatpush1.msra.mxu1 %v1754_v32  ;;  %v3562_v33 = vpop.f32.mrf.mxu0  ;;  %v1874_v32 = vunpack.c.l.bf16 %v853_v57  ;;  %v1739_v48 = vunpack.c.h.bf16 %v785_v46  ;;  %v5739_v57 = vld [vmem:[#allocation2 + $0x4c0] sm:$0xff]  ;;  %v1738_v6 = vunpack.c.l.bf16 %v785_v46  ;;  %v5742_v46 = vld [vmem:[#allocation2 + $0x548] sm:$0xff] }
 0x33a   : > { %4364 = vmatmul.mubr.f32.gmra.mxu1 %v5737_v52  ;;  %4445 = vmatpush2.msra.mxu0 %v1750_v47  ;;  %v3721_v61 = vpop.f32.mrf.mxu1  ;;  %v3563_v40 = vadd.f32 %v3562_v33, %v7762_v8  ;;  %v849_v52 = vld [vmem:[%s6212_s24 + $0xfc8] sm:$0xff]  ;;  %v1871_v47 = vunpack.c.h.bf16 %v851_v10 }
 0x33b   : > { %4605 = vmatprep.subr.mxu1 %v1879_v45  ;;  %4446 = vmatprep.subr.mxu0 %v1747_v5  ;;  %v7767_v15 = vadd.f32 %v3721_v61, %v3561_v39  ;;  %v5740_v45 = vld [vmem:[#allocation2 + $0x4d8] sm:$0xff]  ;;  %v1870_v5 = vunpack.c.l.bf16 %v851_v10  ;;  %v1867_v61 = vunpack.c.h.bf16 %v849_v52 }
 0x33c   : > { %4606 = vmatpush2.msra.mxu1 %v1878_v55  ;;  %4208 = vmatprep.mubr.f32.mxu0 %v5738_v34  ;;  %v3723_v19 = vpop.f32.mrf.mxu1  ;;  %v783_v55 = vld [vmem:[%s6212_s24 + $0xdb8] sm:$0xff] }
 0x33d   : > { %4447 = vmatpush2.msra.mxu0 %v1746_v0  ;;  %4607 = vmatprep.subr.mxu1 %v1875_v27  ;;  %v7771_v7 = vadd.f32 %v3723_v19, %v3563_v40  ;;  %v3566_v39 = vpop.f32.mrf.mxu0  ;;  %v5741_v27 = vld [vmem:[#allocation2 + $0x4d0] sm:$0xff]  ;;  %v847_v40 = vld [vmem:[%s6212_s24 + $0xfb8] sm:$0xff]  ;;  %v781_v19 = vld [vmem:[%s6212_s24 + $0xda8] sm:$0xff]  ;;  %v1735_v10 = vunpack.c.h.bf16 %v783_v55 }
 0x33e   : > { %4209 = vmatmul.mubr.f32.gmra.mxu0 %v5739_v57  ;;  %4369 = vmatprep.mubr.f32.mxu1 %v5740_v45  ;;  %v3567_v0 = vadd.f32 %v3566_v39, %v7646_v36  ;;  %v1866_v57 = vunpack.c.l.bf16 %v849_v52  ;;  %v845_v39 = vld [vmem:[%s6212_s24 + $0xfa8] sm:$0xff]  ;;  %v1731_v53 = vunpack.c.h.bf16 %v781_v19  ;;  %v5744_v52 = vld [vmem:[#allocation2 + $0x558] sm:$0xff] }
 0x33f   : > { %4448 = vmatprep.subr.mxu0 %v1743_v4  ;;  %4608 = vmatpush2.msra.mxu1 %v1874_v32  ;;  %v3568_v34 = vpop.f32.mrf.mxu0  ;;  %v1734_v4 = vunpack.c.l.bf16 %v783_v55  ;;  %v1730_v55 = vunpack.c.l.bf16 %v781_v19  ;;  %v5746_v19 = vld [vmem:[#allocation2 + $0x5c8] sm:$0xff] }
 0x340   : > { %4370 = vmatmul.mubr.f32.gmra.mxu1 %v5741_v27  ;;  %4449 = vmatpush2.msra.mxu0 %v1742_v44  ;;  %v3727_v33 = vpop.f32.mrf.mxu1  ;;  %v3569_v32 = vadd.f32 %v3568_v34, %v7762_v8  ;;  %v1863_v44 = vunpack.c.h.bf16 %v847_v40  ;;  %v843_v34 = vld [vmem:[%s6212_s24 + $0xf98] sm:$0xff] }
 0x341   : > { %4609 = vmatprep.subr.mxu1 %v1871_v47  ;;  %4450 = vmatprep.subr.mxu0 %v1739_v48  ;;  %v7777_v45 = vadd.f32 %v3727_v33, %v3567_v0  ;;  %v5743_v48 = vld [vmem:[#allocation2 + $0x540] sm:$0xff]  ;;  %v1862_v47 = vunpack.c.l.bf16 %v847_v40  ;;  %v1859_v33 = vunpack.c.h.bf16 %v845_v39 }
 0x342   : > { %4610 = vmatpush2.msra.mxu1 %v1870_v5  ;;  %4214 = vmatprep.mubr.f32.mxu0 %v5742_v46  ;;  %v3729_v27 = vpop.f32.mrf.mxu1  ;;  %v779_v5 = vld [vmem:[%s6212_s24 + $0xd98] sm:$0xff] }
 0x343   : > { %4451 = vmatpush2.msra.mxu0 %v1738_v6  ;;  %4611 = vmatprep.subr.mxu1 %v1867_v61  ;;  %v7781_v62 = vadd.f32 %v3729_v27, %v3569_v32  ;;  %v3572_v0 = vpop.f32.mrf.mxu0  ;;  %v5745_v61 = vld [vmem:[#allocation2 + $0x550] sm:$0xff]  ;;  %v777_v32 = vld [vmem:[%s6212_s24 + $0xd88] sm:$0xff]  ;;  %v1727_v40 = vunpack.c.h.bf16 %v779_v5 }
 0x344   : > { %4215 = vmatmul.mubr.f32.gmra.mxu0 %v5743_v48  ;;  %4375 = vmatprep.mubr.f32.mxu1 %v5744_v52  ;;  %v3573_v6 = vadd.f32 %v3572_v0, %v7646_v36  ;;  %v1858_v48 = vunpack.c.l.bf16 %v845_v39  ;;  %v841_v0 = vld [vmem:[%s6212_s24 + $0xf88] sm:$0xff]  ;;  %v1723_v23 = vunpack.c.h.bf16 %v777_v32  ;;  %v5748_v39 = vld [vmem:[#allocation2 + $0x5d8] sm:$0xff] }
 0x345   : > { %4452 = vmatprep.subr.mxu0 %v1735_v10  ;;  %4612 = vmatpush2.msra.mxu1 %v1866_v57  ;;  %v3574_v27 = vpop.f32.mrf.mxu0  ;;  %v1726_v10 = vunpack.c.l.bf16 %v779_v5  ;;  %v1722_v5 = vunpack.c.l.bf16 %v777_v32  ;;  %v5750_v32 = vld [vmem:[#allocation2 + $0x648] sm:$0xff] }
 0x346   : > { %4376 = vmatmul.mubr.f32.gmra.mxu1 %v5745_v61  ;;  %4453 = vmatpush2.msra.mxu0 %v1734_v4  ;;  %v3733_v46 = vpop.f32.mrf.mxu1  ;;  %v3575_v57 = vadd.f32 %v3574_v27, %v7762_v8  ;;  %v1855_v4 = vunpack.c.h.bf16 %v843_v34  ;;  %v839_v27 = vld [vmem:[%s6212_s24 + $0xf78] sm:$0xff] }
 0x347   : > { %4613 = vmatprep.subr.mxu1 %v1863_v44  ;;  %4454 = vmatprep.subr.mxu0 %v1731_v53  ;;  %v7787_v52 = vadd.f32 %v3733_v46, %v3573_v6  ;;  %v5747_v53 = vld [vmem:[#allocation2 + $0x5c0] sm:$0xff]  ;;  %v1854_v44 = vunpack.c.l.bf16 %v843_v34  ;;  %v1851_v46 = vunpack.c.h.bf16 %v841_v0 }
 0x348   : > { %4614 = vmatpush2.msra.mxu1 %v1862_v47  ;;  %4220 = vmatprep.mubr.f32.mxu0 %v5746_v19  ;;  %v3735_v61 = vpop.f32.mrf.mxu1  ;;  %v775_v47 = vld [vmem:[%s6212_s24 + $0xd78] sm:$0xff] }
 0x349   : > { %4455 = vmatpush2.msra.mxu0 %v1730_v55  ;;  %4615 = vmatprep.subr.mxu1 %v1859_v33  ;;  %v7791_v28 = vadd.f32 %v3735_v61, %v3575_v57  ;;  %v3578_v6 = vpop.f32.mrf.mxu0  ;;  %v5749_v33 = vld [vmem:[#allocation2 + $0x5d0] sm:$0xff]  ;;  %v773_v57 = vld [vmem:[%s6212_s24 + $0xd68] sm:$0xff]  ;;  %v1719_v34 = vunpack.c.h.bf16 %v775_v47 }
 0x34a   : > { %4221 = vmatmul.mubr.f32.gmra.mxu0 %v5747_v53  ;;  %4381 = vmatprep.mubr.f32.mxu1 %v5748_v39  ;;  %v3579_v55 = vadd.f32 %v3578_v6, %v7646_v36  ;;  %v1850_v53 = vunpack.c.l.bf16 %v841_v0  ;;  %v837_v6 = vld [vmem:[%s6212_s24 + $0xf68] sm:$0xff]  ;;  %v1715_v35 = vunpack.c.h.bf16 %v773_v57  ;;  %v5752_v0 = vld [vmem:[#allocation2 + $0x658] sm:$0xff] }
 0x34b   : > { %4456 = vmatprep.subr.mxu0 %v1727_v40  ;;  %4616 = vmatpush2.msra.mxu1 %v1858_v48  ;;  %v3580_v61 = vpop.f32.mrf.mxu0  ;;  %v1718_v40 = vunpack.c.l.bf16 %v775_v47  ;;  %v1714_v47 = vunpack.c.l.bf16 %v773_v57  ;;  %v5754_v57 = vld [vmem:[#allocation2 + $0x6c8] sm:$0xff] }
 0x34c   : > { %4382 = vmatmul.mubr.f32.gmra.mxu1 %v5749_v33  ;;  %4457 = vmatpush2.msra.mxu0 %v1726_v10  ;;  %v3739_v19 = vpop.f32.mrf.mxu1  ;;  %v3581_v48 = vadd.f32 %v3580_v61, %v7762_v8  ;;  %v1847_v10 = vunpack.c.h.bf16 %v839_v27  ;;  %v835_v61 = vld [vmem:[%s6212_s24 + $0xf58] sm:$0xff] }
 0x34d   : > { %4617 = vmatprep.subr.mxu1 %v1855_v4  ;;  %4458 = vmatprep.subr.mxu0 %v1723_v23  ;;  %v7797_v39 = vadd.f32 %v3739_v19, %v3579_v55  ;;  %v5751_v23 = vld [vmem:[#allocation2 + $0x640] sm:$0xff]  ;;  %v1846_v4 = vunpack.c.l.bf16 %v839_v27  ;;  %v1843_v19 = vunpack.c.h.bf16 %v837_v6 }
 0x34e   : > { %4618 = vmatpush2.msra.mxu1 %v1854_v44  ;;  %4226 = vmatprep.mubr.f32.mxu0 %v5750_v32  ;;  %v3741_v33 = vpop.f32.mrf.mxu1  ;;  %v771_v44 = vld [vmem:[%s6212_s24 + $0xd58] sm:$0xff] }
 0x34f   : > { %4459 = vmatpush2.msra.mxu0 %v1722_v5  ;;  %4619 = vmatprep.subr.mxu1 %v1851_v46  ;;  %v7801_v42 = vadd.f32 %v3741_v33, %v3581_v48  ;;  %v3584_v55 = vpop.f32.mrf.mxu0  ;;  %v5753_v46 = vld [vmem:[#allocation2 + $0x650] sm:$0xff]  ;;  %v769_v48 = vld [vmem:[%s6212_s24 + $0xd48] sm:$0xff]  ;;  %v1711_v27 = vunpack.c.h.bf16 %v771_v44 }
 0x350   : > { %4227 = vmatmul.mubr.f32.gmra.mxu0 %v5751_v23  ;;  %4387 = vmatprep.mubr.f32.mxu1 %v5752_v0  ;;  %v3585_v5 = vadd.f32 %v3584_v55, %v7646_v36  ;;  %v1842_v23 = vunpack.c.l.bf16 %v837_v6  ;;  %v833_v55 = vld [vmem:[%s6212_s24 + $0xf48] sm:$0xff]  ;;  %v1707_v30 = vunpack.c.h.bf16 %v769_v48  ;;  %v5756_v6 = vld [vmem:[#allocation2 + $0x6d8] sm:$0xff] }
 0x351   : > { %4460 = vmatprep.subr.mxu0 %v1719_v34  ;;  %4620 = vmatpush2.msra.mxu1 %v1850_v53  ;;  %v3586_v33 = vpop.f32.mrf.mxu0  ;;  %v1710_v34 = vunpack.c.l.bf16 %v771_v44  ;;  %v1706_v44 = vunpack.c.l.bf16 %v769_v48  ;;  %v5758_v48 = vld [vmem:[#allocation2 + $0x748] sm:$0xff] }
 0x352   : > { %4388 = vmatmul.mubr.f32.gmra.mxu1 %v5753_v46  ;;  %4461 = vmatpush2.msra.mxu0 %v1718_v40  ;;  %v3745_v32 = vpop.f32.mrf.mxu1  ;;  %v3587_v53 = vadd.f32 %v3586_v33, %v7762_v8  ;;  %v1839_v40 = vunpack.c.h.bf16 %v835_v61  ;;  %v831_v33 = vld [vmem:[%s6212_s24 + $0xf38] sm:$0xff] }
 0x353   : > { %4621 = vmatprep.subr.mxu1 %v1847_v10  ;;  %4462 = vmatprep.subr.mxu0 %v1715_v35  ;;  %v7807_v0 = vadd.f32 %v3745_v32, %v3585_v5  ;;  %v5755_v35 = vld [vmem:[#allocation2 + $0x6c0] sm:$0xff]  ;;  %v1838_v10 = vunpack.c.l.bf16 %v835_v61  ;;  %v1835_v32 = vunpack.c.h.bf16 %v833_v55 }
 0x354   : > { %4622 = vmatpush2.msra.mxu1 %v1846_v4  ;;  %4232 = vmatprep.mubr.f32.mxu0 %v5754_v57  ;;  %v3747_v46 = vpop.f32.mrf.mxu1  ;;  %v767_v4 = vld [vmem:[%s6212_s24 + $0xd38] sm:$0xff] }
 0x355   : > { %4463 = vmatpush2.msra.mxu0 %v1714_v47  ;;  %4623 = vmatprep.subr.mxu1 %v1843_v19  ;;  %v7811_v60 = vadd.f32 %v3747_v46, %v3587_v53  ;;  %v3590_v5 = vpop.f32.mrf.mxu0  ;;  %v5757_v19 = vld [vmem:[#allocation2 + $0x6d0] sm:$0xff]  ;;  %v765_v53 = vld [vmem:[%s6212_s24 + $0xd28] sm:$0xff]  ;;  %v1703_v61 = vunpack.c.h.bf16 %v767_v4 }
 0x356   : > { %4233 = vmatmul.mubr.f32.gmra.mxu0 %v5755_v35  ;;  %4393 = vmatprep.mubr.f32.mxu1 %v5756_v6  ;;  %v3591_v47 = vadd.f32 %v3590_v5, %v7646_v36  ;;  %v1834_v35 = vunpack.c.l.bf16 %v833_v55  ;;  %v829_v5 = vld [vmem:[%s6212_s24 + $0xf28] sm:$0xff]  ;;  %v1699_v12 = vunpack.c.h.bf16 %v765_v53  ;;  %v5760_v55 = vld [vmem:[#allocation2 + $0x758] sm:$0xff] }
 0x357   : > { %4464 = vmatprep.subr.mxu0 %v1711_v27  ;;  %4624 = vmatpush2.msra.mxu1 %v1842_v23  ;;  %v3592_v46 = vpop.f32.mrf.mxu0  ;;  %v1702_v27 = vunpack.c.l.bf16 %v767_v4  ;;  %v1698_v4 = vunpack.c.l.bf16 %v765_v53  ;;  %v5762_v53 = vld [vmem:[#allocation2 + $0x7c8] sm:$0xff] }
 0x358   : > { %4394 = vmatmul.mubr.f32.gmra.mxu1 %v5757_v19  ;;  %4465 = vmatpush2.msra.mxu0 %v1710_v34  ;;  %v3751_v57 = vpop.f32.mrf.mxu1  ;;  %v3593_v23 = vadd.f32 %v3592_v46, %v7762_v8  ;;  %v1831_v34 = vunpack.c.h.bf16 %v831_v33  ;;  %v827_v46 = vld [vmem:[%s6212_s24 + $0xf18] sm:$0xff] }
 0x359   : > { %4625 = vmatprep.subr.mxu1 %v1839_v40  ;;  %4466 = vmatprep.subr.mxu0 %v1707_v30  ;;  %v7817_v6 = vadd.f32 %v3751_v57, %v3591_v47  ;;  %v5759_v30 = vld [vmem:[#allocation2 + $0x740] sm:$0xff]  ;;  %v1830_v40 = vunpack.c.l.bf16 %v831_v33  ;;  %v1827_v57 = vunpack.c.h.bf16 %v829_v5 }
 0x35a   : > { %4626 = vmatpush2.msra.mxu1 %v1838_v10  ;;  %4238 = vmatprep.mubr.f32.mxu0 %v5758_v48  ;;  %v3753_v19 = vpop.f32.mrf.mxu1  ;;  %v763_v10 = vld [vmem:[%s6212_s24 + $0xd18] sm:$0xff] }
 0x35b   : > { %4467 = vmatpush2.msra.mxu0 %v1706_v44  ;;  %4627 = vmatprep.subr.mxu1 %v1835_v32  ;;  %v7821_v49 = vadd.f32 %v3753_v19, %v3593_v23  ;;  %v3596_v47 = vpop.f32.mrf.mxu0  ;;  %v5761_v32 = vld [vmem:[#allocation2 + $0x750] sm:$0xff]  ;;  %v761_v23 = vld [vmem:[%s6212_s24 + $0xd08] sm:$0xff]  ;;  %v1695_v33 = vunpack.c.h.bf16 %v763_v10 }
 0x35c   : > { %4239 = vmatmul.mubr.f32.gmra.mxu0 %v5759_v30  ;;  %4399 = vmatprep.mubr.f32.mxu1 %v5760_v55  ;;  %v3597_v44 = vadd.f32 %v3596_v47, %v7646_v36  ;;  %v1826_v30 = vunpack.c.l.bf16 %v829_v5  ;;  %v825_v47 = vld [vmem:[%s6212_s24 + $0xf08] sm:$0xff]  ;;  %v1691_v11 = vunpack.c.h.bf16 %v761_v23  ;;  %v1822_v5 = vunpack.c.l.bf16 %v827_v46 }
 0x35d   : > { %4468 = vmatprep.subr.mxu0 %v1703_v61  ;;  %4628 = vmatpush2.msra.mxu1 %v1834_v35  ;;  %v3598_v19 = vpop.f32.mrf.mxu0  ;;  %v1694_v61 = vunpack.c.l.bf16 %v763_v10 }
 0x35e   : > { %4400 = vmatmul.mubr.f32.gmra.mxu1 %v5761_v32  ;;  %4469 = vmatpush2.msra.mxu0 %v1702_v27  ;;  %v3757_v48 = vpop.f32.mrf.mxu1  ;;  %v3599_v35 = vadd.f32 %v3598_v19, %v7762_v8  ;;  %v1823_v27 = vunpack.c.h.bf16 %v827_v46  ;;  %v5765_v19 = vld [vmem:[#allocation2 + $0x7d0] sm:$0xff] }
 0x35f   : > { %4629 = vmatprep.subr.mxu1 %v1831_v34  ;;  %4470 = vmatprep.subr.mxu0 %v1699_v12  ;;  %v7827_v55 = vadd.f32 %v3757_v48, %v3597_v44  ;;  %v5763_v34 = vld [vmem:[#allocation2 + $0x7c0] sm:$0xff]  ;;  %v5764_v12 = vld [vmem:[#allocation2 + $0x7d8] sm:$0xff]  ;;  %v1690_v44 = vunpack.c.l.bf16 %v761_v23 }
 0x360   : > { %4630 = vmatpush2.msra.mxu1 %v1830_v40  ;;  %4244 = vmatprep.mubr.f32.mxu0 %v5762_v53  ;;  %v3759_v32 = vpop.f32.mrf.mxu1  ;;  %v1819_v40 = vunpack.c.h.bf16 %v825_v47 }
 0x361   : > { %4471 = vmatpush2.msra.mxu0 %v1698_v4  ;;  %4631 = vmatprep.subr.mxu1 %v1827_v57  ;;  %v7831_v37 = vadd.f32 %v3759_v32, %v3599_v35  ;;  %v3602_v48 = vpop.f32.mrf.mxu0  ;;  %v1818_v4 = vunpack.c.l.bf16 %v825_v47  ;;  %v3515_v35 = vadd.f32 %v7667_v21, %v7762_v8  ;;  %v5769_v47 = vld [vmem:[#allocation2 + $0xe8] sm:$0xff] }
 0x362   : > { %4245 = vmatmul.mubr.f32.gmra.mxu0 %v5763_v34  ;;  %4405 = vmatprep.mubr.f32.mxu1 %v5764_v12  ;;  %v3603_v10 = vadd.f32 %v3602_v48, %v7646_v36  ;;  %v5770_v34 = vld [vmem:[#allocation2 + $0x70] sm:$0xff]  ;;  %v3521_v48 = vadd.f32 %v7684_v31, %v7762_v8  ;;  %v5776_v31 = vld [vmem:[#allocation2 + $0x160] sm:$0xff] }
 0x363   : > { %4472 = vmatprep.subr.mxu0 %v1695_v33  ;;  %4632 = vmatpush2.msra.mxu1 %v1826_v30  ;;  %v3604_v53 = vpop.f32.mrf.mxu0  ;;  %v5766_v30 = vld [vmem:[#allocation2 + $0x68] sm:$0xff]  ;;  %v5767_v33 = vld [vmem:[#allocation2 + $0x60] sm:$0xff]  ;;  %v3676_v21 = vadd.f32 %v7676_v22, %v3515_v35 }
 0x364   : > { %4406 = vmatmul.mubr.f32.gmra.mxu1 %v5765_v19  ;;  %4473 = vmatpush2.msra.mxu0 %v1694_v61  ;;  %v3763_v57 = vpop.f32.mrf.mxu1  ;;  %v3605_v46 = vadd.f32 %v3604_v53, %v7762_v8  ;;  %v5772_v19 = vld [vmem:[#allocation2 + $0xe0] sm:$0xff]  ;;  %v5773_v22 = vld [vmem:[#allocation2 + $0x168] sm:$0xff]  ;;  %v3682_v35 = vadd.f32 %v7689_v24, %v3521_v48  ;;  %v5779_v24 = vld [vmem:[#allocation2 + $0x1f8] sm:$0xff] }
 0x365   : > { %4633 = vmatprep.subr.mxu1 %v1823_v27  ;;  %4474 = vmatprep.subr.mxu0 %v1691_v11  ;;  %v7836_v32 = vadd.f32 %v3763_v57, %v3603_v10  ;;  %v5768_v11 = vld [vmem:[#allocation2 + $0x78] sm:$0xff]  ;;  %v5781_v48 = vld [vmem:[#allocation2 + $0x268] sm:$0xff] }
 0x366   : > { %4634 = vmatpush2.msra.mxu1 %v1822_v5  ;;  %4475 = vmatpush2.msra.mxu0 %v1690_v44  ;;  %v3765_v23 = vpop.f32.mrf.mxu1  ;;  %v5771_v44 = vld [vmem:[#allocation2 + $0xf8] sm:$0xff] }
 0x367   : > { %4476 = vmatprep.mubr.f32.mxu0 %v5766_v30  ;;  %4635 = vmatprep.subr.mxu1 %v1819_v40  ;;  %v7839_v36 = vadd.f32 %v3765_v23, %v3605_v46  ;;  %v3834_v61 = vpop.f32.mrf.mxu0  ;;  %v5775_v46 = vld [vmem:[#allocation2 + $0x178] sm:$0xff] }
 0x368   : > { %4477 = vmatmul.mubr.f32.vlgmr.msra.gmra.mxu0 %v5767_v33  ;;  %4636 = vmatpush2.msra.mxu1 %v1818_v4  ;;  %v3835_v27 = vadd.f32 %v3834_v61, %v7670_v13  ;;  %v5774_v13 = vld [vmem:[#allocation2 + $0xf0] sm:$0xff]  ;;  %v3527_v61 = vadd.f32 %v7695_v16, %v7762_v8 }
 0x369   : > { %4637 = vmatprep.mubr.f32.mxu1 %v5768_v11  ;;  %4482 = vmatprep.mubr.f32.mxu0 %v5769_v47  ;;  %v3836_v5 = vpop.f32.mrf.mxu0  ;;  %v5777_v11 = vld [vmem:[#allocation2 + $0x1e8] sm:$0xff] }
 0x36a   : > { %4638 = vmatmul.mubr.f32.vlgmr.msra.gmra.mxu1 %v5770_v34  ;;  %v3995_v12 = vpop.f32.mrf.mxu1  ;;  %v3837_v10 = vadd.f32 %v3836_v5, %v3676_v21 }
 0x36b   : > { %4643 = vmatprep.mubr.f32.mxu1 %v5771_v44  ;;  %v7845_v40 = vadd.f32 %v3995_v12, %v3835_v27  ;;  %v5778_v27 = vld [vmem:[#allocation2 + $0x170] sm:$0xff]  ;;  %v3688_v44 = vadd.f32 %v7700_v25, %v3527_v61  ;;  %v5785_v25 = vld [vmem:[#allocation2 + $0x2e8] sm:$0xff]  ;;  %v5787_v61 = vld [vmem:[#allocation2 + $0x2f8] sm:$0xff] }
 0x36c   : > { %4483 = vmatmul.mubr.f32.gmra.mxu0 %v5772_v19  ;;  %v3997_v4 = vpop.f32.mrf.mxu1 }
 0x36d   : > { %4488 = vmatprep.mubr.f32.mxu0 %v5773_v22  ;;  %v7847_v57 = vadd.f32 %v3997_v4, %v3837_v10  ;;  %v5782_v10 = vld [vmem:[#allocation2 + $0x1f0] sm:$0xff]  ;;  %v3533_v22 = vadd.f32 %v7706_v43, %v7762_v8 }
 0x36e   : > { %4644 = vmatmul.mubr.f32.gmra.mxu1 %v5774_v13  ;;  %v3840_v53 = vpop.f32.mrf.mxu0  ;;  %v5783_v13 = vld [vmem:[#allocation2 + $0x278] sm:$0xff] }
 0x36f   : > { %4649 = vmatprep.mubr.f32.mxu1 %v5775_v46  ;;  %v3841_v23 = vadd.f32 %v3840_v53, %v7686_v9  ;;  %v5780_v9 = vld [vmem:[#allocation2 + $0x1e0] sm:$0xff] }
 0x370   : > { %4489 = vmatmul.mubr.f32.gmra.mxu0 %v5776_v31  ;;  %v4001_v30 = vpop.f32.mrf.mxu1  ;;  %v3842_v33 = vpop.f32.mrf.mxu0  ;;  %v5784_v46 = vld [vmem:[#allocation2 + $0x260] sm:$0xff] }
 0x371   : > { %4494 = vmatprep.mubr.f32.mxu0 %v5777_v11  ;;  %v7853_v21 = vadd.f32 %v4001_v30, %v3841_v23  ;;  %v3843_v47 = vadd.f32 %v3842_v33, %v3682_v35  ;;  %v3694_v33 = vadd.f32 %v7711_v26, %v3533_v22  ;;  %v5788_v11 = vld [vmem:[#allocation2 + $0x2e0] sm:$0xff]  ;;  %v5791_v26 = vld [vmem:[#allocation2 + $0x378] sm:$0xff]  ;;  %v5794_v22 = vld [vmem:[#allocation2 + $0x370] sm:$0xff] }
 0x372   : > { %4650 = vmatmul.mubr.f32.gmra.mxu1 %v5778_v27  ;;  %v4003_v34 = vpop.f32.mrf.mxu1 }
 0x373   : > { %4655 = vmatprep.mubr.f32.mxu1 %v5779_v24  ;;  %v7855_v12 = vadd.f32 %v4003_v34, %v3843_v47  ;;  %v3846_v5 = vpop.f32.mrf.mxu0  ;;  %v3539_v34 = vadd.f32 %v7717_v54, %v7762_v8  ;;  %v5789_v24 = vld [vmem:[#allocation2 + $0x368] sm:$0xff] }
 0x374   : > { %4495 = vmatmul.mubr.f32.gmra.mxu0 %v5780_v9  ;;  %v3847_v16 = vadd.f32 %v3846_v5, %v7697_v20  ;;  %v5786_v20 = vld [vmem:[#allocation2 + $0x270] sm:$0xff] }
 0x375   : > { %4500 = vmatprep.mubr.f32.mxu0 %v5781_v48  ;;  %v3848_v4 = vpop.f32.mrf.mxu0 }
 0x376   : > { %4656 = vmatmul.mubr.f32.gmra.mxu1 %v5782_v10  ;;  %v4007_v19 = vpop.f32.mrf.mxu1  ;;  %v3849_v35 = vadd.f32 %v3848_v4, %v3688_v44  ;;  %v5790_v44 = vld [vmem:[#allocation2 + $0x2f0] sm:$0xff]  ;;  %v5793_v4 = vld [vmem:[#allocation2 + $0x3e8] sm:$0xff] }
 0x377   : > { %4661 = vmatprep.mubr.f32.mxu1 %v5783_v13  ;;  %v7861_v53 = vadd.f32 %v4007_v19, %v3847_v16  ;;  %v3700_v19 = vadd.f32 %v7722_v63, %v3539_v34  ;;  %v5797_v63 = vld [vmem:[#allocation2 + $0x468] sm:$0xff] }
 0x378   : > { %4501 = vmatmul.mubr.f32.gmra.mxu0 %v5784_v46  ;;  %v4009_v23 = vpop.f32.mrf.mxu1  ;;  %v3545_v46 = vadd.f32 %v7728_v41, %v7762_v8 }
 0x379   : > { %4506 = vmatprep.mubr.f32.mxu0 %v5785_v25  ;;  %v7863_v31 = vadd.f32 %v4009_v23, %v3849_v35  ;;  %v5795_v23 = vld [vmem:[#allocation2 + $0x3f8] sm:$0xff] }
 0x37a   : > { %4662 = vmatmul.mubr.f32.gmra.mxu1 %v5786_v20  ;;  %v3852_v30 = vpop.f32.mrf.mxu0 }
 0x37b   : > { %4667 = vmatprep.mubr.f32.mxu1 %v5787_v61  ;;  %v3853_v43 = vadd.f32 %v3852_v30, %v7708_v58  ;;  %v5792_v58 = vld [vmem:[#allocation2 + $0x360] sm:$0xff] }
 0x37c   : > { %4507 = vmatmul.mubr.f32.gmra.mxu0 %v5788_v11  ;;  %v4013_v47 = vpop.f32.mrf.mxu1  ;;  %v3854_v27 = vpop.f32.mrf.mxu0  ;;  %v5796_v30 = vld [vmem:[#allocation2 + $0x3e0] sm:$0xff]  ;;  %v3706_v11 = vadd.f32 %v7733_v59, %v3545_v46  ;;  %v5803_v59 = vld [vmem:[#allocation2 + $0x4f8] sm:$0xff] }
 0x37d   : > { %4512 = vmatprep.mubr.f32.mxu0 %v5789_v24  ;;  %v7869_v9 = vadd.f32 %v4013_v47, %v3853_v43  ;;  %v3855_v5 = vadd.f32 %v3854_v27, %v3694_v33  ;;  %v5799_v47 = vld [vmem:[#allocation2 + $0x478] sm:$0xff]  ;;  %v5800_v27 = vld [vmem:[#allocation2 + $0x460] sm:$0xff] }
 0x37e   : > { %4668 = vmatmul.mubr.f32.gmra.mxu1 %v5790_v44  ;;  %v4015_v48 = vpop.f32.mrf.mxu1  ;;  %v5801_v44 = vld [vmem:[#allocation2 + $0x4e8] sm:$0xff] }
 0x37f   : > { %4673 = vmatprep.mubr.f32.mxu1 %v5791_v26  ;;  %v7871_v16 = vadd.f32 %v4015_v48, %v3855_v5  ;;  %v3551_v5 = vadd.f32 %v7739_v29, %v7762_v8 }
 0x380   : > { %4513 = vmatmul.mubr.f32.gmra.mxu0 %v5792_v58  ;;  %v3858_v10 = vpop.f32.mrf.mxu0  ;;  %v5802_v58 = vld [vmem:[#allocation2 + $0x470] sm:$0xff] }
 0x381   : > { %4518 = vmatprep.mubr.f32.mxu0 %v5793_v4  ;;  %v3859_v54 = vadd.f32 %v3858_v10, %v7719_v18  ;;  %v5798_v18 = vld [vmem:[#allocation2 + $0x3f0] sm:$0xff] }
 0x382   : > { %4674 = vmatmul.mubr.f32.gmra.mxu1 %v5794_v22  ;;  %v4019_v13 = vpop.f32.mrf.mxu1  ;;  %v3860_v35 = vpop.f32.mrf.mxu0  ;;  %v5805_v22 = vld [vmem:[#allocation2 + $0x568] sm:$0xff] }
 0x383   : > { %4679 = vmatprep.mubr.f32.mxu1 %v5795_v23  ;;  %v7877_v25 = vadd.f32 %v4019_v13, %v3859_v54  ;;  %v3861_v20 = vadd.f32 %v3860_v35, %v3700_v19  ;;  %v3712_v54 = vadd.f32 %v7744_v14, %v3551_v5  ;;  %v5806_v13 = vld [vmem:[#allocation2 + $0x4f0] sm:$0xff]  ;;  %v3557_v23 = vadd.f32 %v7750_v38, %v7762_v8  ;;  %v5809_v14 = vld [vmem:[#allocation2 + $0x5e8] sm:$0xff]  ;;  %v5812_v8 = vld [vmem:[#allocation2 + $0x5e0] sm:$0xff] }
 0x384   : > { %4519 = vmatmul.mubr.f32.gmra.mxu0 %v5796_v30  ;;  %v4021_v33 = vpop.f32.mrf.mxu1 }
 0x385   : > { %4524 = vmatprep.mubr.f32.mxu0 %v5797_v63  ;;  %v7879_v61 = vadd.f32 %v4021_v33, %v3861_v20  ;;  %v5807_v20 = vld [vmem:[#allocation2 + $0x578] sm:$0xff]  ;;  %v5808_v63 = vld [vmem:[#allocation2 + $0x560] sm:$0xff] }
 0x386   : > { %4680 = vmatmul.mubr.f32.gmra.mxu1 %v5798_v18  ;;  %v3864_v43 = vpop.f32.mrf.mxu0 }
 0x387   : > { %4685 = vmatprep.mubr.f32.mxu1 %v5799_v47  ;;  %v3865_v41 = vadd.f32 %v3864_v43, %v7730_v2  ;;  %v5804_v2 = vld [vmem:[#allocation2 + $0x4e0] sm:$0xff]  ;;  %v3718_v47 = vadd.f32 %v7756_v3, %v3557_v23 }
 0x388   : > { %4525 = vmatmul.mubr.f32.gmra.mxu0 %v5800_v27  ;;  %v4025_v34 = vpop.f32.mrf.mxu1  ;;  %v3866_v24 = vpop.f32.mrf.mxu0  ;;  %v5816_v3 = vld [vmem:[#allocation2 + $0x660] sm:$0xff] }
 0x389   : > { %4530 = vmatprep.mubr.f32.mxu0 %v5801_v44  ;;  %v7885_v48 = vadd.f32 %v4025_v34, %v3865_v41  ;;  %v3867_v26 = vadd.f32 %v3866_v24, %v3706_v11  ;;  %v5811_v41 = vld [vmem:[#allocation2 + $0x5f8] sm:$0xff]  ;;  %v5813_v24 = vld [vmem:[#allocation2 + $0x668] sm:$0xff]  ;;  %v5820_v23 = vld [vmem:[#allocation2 + $0x6e0] sm:$0xff] }
 0x38a   : > { %4686 = vmatmul.mubr.f32.gmra.mxu1 %v5802_v58  ;;  %v4027_v10 = vpop.f32.mrf.mxu1 }
 0x38b   : > { %4691 = vmatprep.mubr.f32.mxu1 %v5803_v59  ;;  %v7887_v19 = vadd.f32 %v4027_v10, %v3867_v26  ;;  %v5814_v26 = vld [vmem:[#allocation2 + $0x5f0] sm:$0xff]  ;;  %v5815_v10 = vld [vmem:[#allocation2 + $0x678] sm:$0xff] }
 0x38c   : > { %4531 = vmatmul.mubr.f32.gmra.mxu0 %v5804_v2  ;;  %v3870_v4 = vpop.f32.mrf.mxu0 }
 0x38d   : > { %4536 = vmatprep.mubr.f32.mxu0 %v5805_v22  ;;  %v3871_v29 = vadd.f32 %v3870_v4, %v7741_v51  ;;  %v5810_v51 = vld [vmem:[#allocation2 + $0x570] sm:$0xff] }
 0x38e   : > { %4692 = vmatmul.mubr.f32.gmra.mxu1 %v5806_v13  ;;  %v4031_v35 = vpop.f32.mrf.mxu1  ;;  %v3872_v46 = vpop.f32.mrf.mxu0  ;;  %v5819_v13 = vld [vmem:[#allocation2 + $0x6f8] sm:$0xff] }
 0x38f   : > { %4697 = vmatprep.mubr.f32.mxu1 %v5807_v20  ;;  %v7893_v30 = vadd.f32 %v4031_v35, %v3871_v29  ;;  %v3873_v33 = vadd.f32 %v3872_v46, %v3712_v54  ;;  %v5818_v54 = vld [vmem:[#allocation2 + $0x670] sm:$0xff] }
 0x390   : > { %4537 = vmatmul.mubr.f32.gmra.mxu0 %v5808_v63  ;;  %v4033_v18 = vpop.f32.mrf.mxu1 }
 0x391   : > { %4542 = vmatprep.mubr.f32.mxu0 %v5809_v14  ;;  %v7895_v43 = vadd.f32 %v4033_v18, %v3873_v33  ;;  %v5821_v33 = vld [vmem:[#allocation2 + $0x768] sm:$0xff]  ;;  %v5822_v18 = vld [vmem:[#allocation2 + $0x6f0] sm:$0xff]  ;;  %v5823_v14 = vld [vmem:[#allocation2 + $0x778] sm:$0xff] }
 0x392   : > { %4698 = vmatmul.mubr.f32.gmra.mxu1 %v5810_v51  ;;  %v3876_v11 = vpop.f32.mrf.mxu0 }
 0x393   : > { %4703 = vmatprep.mubr.f32.mxu1 %v5811_v41  ;;  %v3877_v38 = vadd.f32 %v3876_v11, %v7753_v17  ;;  %v5817_v17 = vld [vmem:[#allocation2 + $0x6e8] sm:$0xff]  ;;  %v5824_v11 = vld [vmem:[#allocation2 + $0x760] sm:$0xff] }
 0x394   : > { %4543 = vmatmul.mubr.f32.gmra.mxu0 %v5812_v8  ;;  %v4037_v27 = vpop.f32.mrf.mxu1  ;;  %v3878_v34 = vpop.f32.mrf.mxu0 }
 0x395   : > { %4548 = vmatprep.mubr.f32.mxu0 %v5813_v24  ;;  %v7899_v5 = vadd.f32 %v4037_v27, %v3877_v38  ;;  %v3879_v44 = vadd.f32 %v3878_v34, %v3718_v47  ;;  %v5825_v38 = vld [vmem:[#allocation2 + $0x7e8] sm:$0xff]  ;;  %v5826_v27 = vld [vmem:[#allocation2 + $0x770] sm:$0xff]  ;;  %v5827_v24 = vld [vmem:[#allocation2 + $0x7f8] sm:$0xff] }
 0x396   : > { %4704 = vmatmul.mubr.f32.gmra.mxu1 %v5814_v26  ;;  %v4039_v58 = vpop.f32.mrf.mxu1  ;;  %v5828_v26 = vld [vmem:[#allocation2 + $0x7e0] sm:$0xff] }
 0x397   : > { %4709 = vmatprep.mubr.f32.mxu1 %v5815_v10  ;;  %v7901_v59 = vadd.f32 %v4039_v58, %v3879_v44  ;;  %v5829_v10 = vld [vmem:[#allocation2 + $0x7f0] sm:$0xff] }
 0x398   : > { %4549 = vmatmul.mubr.f32.gmra.mxu0 %v5816_v3  ;;  %v3882_v2 = vpop.f32.mrf.mxu0 }
 0x399   : > { %4554 = vmatprep.mubr.f32.mxu0 %v5817_v17  ;;  %v3883_v4 = vadd.f32 %v3882_v2, %v7767_v15 }
 0x39a   : > { %4710 = vmatmul.mubr.f32.gmra.mxu1 %v5818_v54  ;;  %v4043_v22 = vpop.f32.mrf.mxu1  ;;  %v3884_v29 = vpop.f32.mrf.mxu0 }
 0x39b   : > { %4715 = vmatprep.mubr.f32.mxu1 %v5819_v13  ;;  %v7904_v35 = vadd.f32 %v4043_v22, %v3883_v4  ;;  %v3885_v46 = vadd.f32 %v3884_v29, %v7771_v7 }
 0x39c   : > { %4555 = vmatmul.mubr.f32.gmra.mxu0 %v5820_v23  ;;  %v4045_v20 = vpop.f32.mrf.mxu1 }
 0x39d   : > { %4560 = vmatprep.mubr.f32.mxu0 %v5821_v33  ;;  %v7907_v63 = vadd.f32 %v4045_v20, %v3885_v46 }
 0x39e   : > { %4716 = vmatmul.mubr.f32.gmra.mxu1 %v5822_v18  ;;  %v3888_v15 = vpop.f32.mrf.mxu0 }
 0x39f   : > { %4721 = vmatprep.mubr.f32.mxu1 %v5823_v14  ;;  %v3889_v51 = vadd.f32 %v3888_v15, %v7777_v45 }
 0x3a0   : > { %4561 = vmatmul.mubr.f32.gmra.mxu0 %v5824_v11  ;;  %v4049_v47 = vpop.f32.mrf.mxu1  ;;  %v3890_v41 = vpop.f32.mrf.mxu0 }
 0x3a1   : > { %4566 = vmatprep.mubr.f32.mxu0 %v5825_v38  ;;  %v7910_v7 = vadd.f32 %v4049_v47, %v3889_v51  ;;  %v3891_v8 = vadd.f32 %v3890_v41, %v7781_v62 }
 0x3a2   : > { %4722 = vmatmul.mubr.f32.gmra.mxu1 %v5826_v27  ;;  %v4051_v34 = vpop.f32.mrf.mxu1 }
 0x3a3   : > { %4727 = vmatprep.mubr.f32.mxu1 %v5827_v24  ;;  %v7913_v44 = vadd.f32 %v4051_v34, %v3891_v8 }
 0x3a4   : > { %4567 = vmatmul.mubr.f32.gmra.mxu0 %v5828_v26  ;;  %v3894_v45 = vpop.f32.mrf.mxu0 }
 0x3a5   : > { %8672 = vst [vmem:[#allocation30_spill] sm:$0xff] %v7913_v44  ;;  %v3895_v58 = vadd.f32 %v3894_v45, %v7787_v52 }
 0x3a6   : > { %4728 = vmatmul.mubr.f32.gmra.mxu1 %v5829_v10  ;;  %v4055_v3 = vpop.f32.mrf.mxu1  ;;  %v3896_v2 = vpop.f32.mrf.mxu0 }
 0x3a7   : > { %v7916_v17 = vadd.f32 %v4055_v3, %v3895_v58  ;;  %v3897_v62 = vadd.f32 %v3896_v2, %v7791_v28 }
 0x3a8   : > { %v4057_v4 = vpop.f32.mrf.mxu1 }
 0x3a9   : > { %8673 = vst [vmem:[#allocation37_spill] sm:$0xff] %v7916_v17  ;;  %v7919_v54 = vadd.f32 %v4057_v4, %v3897_v62 }
 0x3aa   : > { %v3900_v22 = vpop.f32.mrf.mxu0 }
 0x3ab   : > { %8674 = vst [vmem:[#allocation39_spill] sm:$0xff] %v7919_v54  ;;  %v3901_v29 = vadd.f32 %v3900_v22, %v7797_v39 }
 0x3ac   : > { %v4061_v13 = vpop.f32.mrf.mxu1  ;;  %v3902_v46 = vpop.f32.mrf.mxu0 }
 0x3ad   : > { %v7922_v23 = vadd.f32 %v4061_v13, %v3901_v29  ;;  %v3903_v52 = vadd.f32 %v3902_v46, %v7801_v42 }
 0x3ae   : > { %v4063_v20 = vpop.f32.mrf.mxu1 }
 0x3af   : > { %8675 = vst [vmem:[#allocation32_spill] sm:$0xff] %v7922_v23  ;;  %v7925_v33 = vadd.f32 %v4063_v20, %v3903_v52 }
 0x3b0   : > { %v3906_v18 = vpop.f32.mrf.mxu0 }
 0x3b1   : > { %8676 = vst [vmem:[#allocation53_spill] sm:$0xff] %v7925_v33  ;;  %v3907_v15 = vadd.f32 %v3906_v18, %v7807_v0 }
 0x3b2   : > { %v4067_v14 = vpop.f32.mrf.mxu1  ;;  %v3908_v28 = vpop.f32.mrf.mxu0 }
 0x3b3   : > { %v7928_v51 = vadd.f32 %v4067_v14, %v3907_v15  ;;  %v3909_v11 = vadd.f32 %v3908_v28, %v7811_v60 }
 0x3b4   : > { %v4069_v47 = vpop.f32.mrf.mxu1 }
 0x3b5   : > { %8677 = vst [vmem:[#allocation34_spill] sm:$0xff] %v7928_v51  ;;  %v7931_v39 = vadd.f32 %v4069_v47, %v3909_v11 }
 0x3b6   : > { %v3912_v41 = vpop.f32.mrf.mxu0 }
 0x3b7   : > { %8678 = vst [vmem:[#allocation36_spill] sm:$0xff] %v7931_v39  ;;  %v3913_v38 = vadd.f32 %v3912_v41, %v7817_v6 }
 0x3b8   : > { %v4073_v8 = vpop.f32.mrf.mxu1  ;;  %v3914_v42 = vpop.f32.mrf.mxu0 }
 0x3b9   : > { %v7934_v27 = vadd.f32 %v4073_v8, %v3913_v38  ;;  %v3915_v34 = vadd.f32 %v3914_v42, %v7821_v49 }
 0x3ba   : > { %v4075_v24 = vpop.f32.mrf.mxu1 }
 0x3bb   : > { %8679 = vst [vmem:[#allocation55_spill] sm:$0xff] %v7934_v27  ;;  %v7937_v0 = vadd.f32 %v4075_v24, %v3915_v34 }
 0x3bc   : > { %v3918_v26 = vpop.f32.mrf.mxu0 }
 0x3bd   : > { %8680 = vst [vmem:[#allocation24_spill] sm:$0xff] %v7937_v0  ;;  %v3919_v45 = vadd.f32 %v3918_v26, %v7827_v55 }
 0x3be   : > { %v4079_v58 = vpop.f32.mrf.mxu1  ;;  %v3920_v60 = vpop.f32.mrf.mxu0 }
 0x3bf   : > { %v7940_v10 = vadd.f32 %v4079_v58, %v3919_v45  ;;  %v3921_v3 = vadd.f32 %v3920_v60, %v7831_v37 }
 0x3c0   : > { %v4081_v2 = vpop.f32.mrf.mxu1 }
 0x3c1   : > { %8681 = vst [vmem:[#allocation56_spill] sm:$0xff] %v7940_v10  ;;  %v7943_v6 = vadd.f32 %v4081_v2, %v3921_v3 }
 0x3c2   : > { %v3924_v62 = vpop.f32.mrf.mxu0 }
 0x3c3   : > { %8682 = vst [vmem:[#allocation38_spill] sm:$0xff] %v7943_v6  ;;  %v3925_v4 = vadd.f32 %v3924_v62, %v7836_v32 }
 0x3c4   : > { %v4085_v22 = vpop.f32.mrf.mxu1  ;;  %v3926_v49 = vpop.f32.mrf.mxu0 }
 0x3c5   : > { %v7946_v29 = vadd.f32 %v4085_v22, %v3925_v4  ;;  %v3927_v13 = vadd.f32 %v3926_v49, %v7839_v36 }
 0x3c6   : > { %v4087_v46 = vpop.f32.mrf.mxu1 }
 0x3c7   : > { %8683 = vst [vmem:[#allocation40_spill] sm:$0xff] %v7946_v29  ;;  %v7949_v55 = vadd.f32 %v4087_v46, %v3927_v13 }
 0x3c8   : > { %v4156_v52 = vpop.f32.mrf.mxu0 }
 0x3c9   : > { %8684 = vst [vmem:[#allocation58_spill] sm:$0xff] %v7949_v55 }
 0x3ca   : > { %v7951_v20 = vpop.f32.mrf.mxu1  ;;  %v4158_v18 = vpop.f32.mrf.mxu0 }
 0x3cc   : > { %v7953_v37 = vpop.f32.mrf.mxu1 }
 0x3ce   : > { %v4162_v15 = vpop.f32.mrf.mxu0 }
 0x3d0   : > { %v7955_v14 = vpop.f32.mrf.mxu1  ;;  %v4164_v28 = vpop.f32.mrf.mxu0 }
 0x3d2   : > { %v7957_v32 = vpop.f32.mrf.mxu1 }
 0x3d4   : > { %v4168_v11 = vpop.f32.mrf.mxu0 }
 0x3d6   : > { %v7959_v47 = vpop.f32.mrf.mxu1  ;;  %v4170_v41 = vpop.f32.mrf.mxu0 }
 0x3d8   : > { %v7961_v36 = vpop.f32.mrf.mxu1 }
 0x3da   : > { %v4174_v38 = vpop.f32.mrf.mxu0 }
 0x3dc   : > { %v7963_v8 = vpop.f32.mrf.mxu1  ;;  %v4176_v42 = vpop.f32.mrf.mxu0 }
 0x3de   : > { %v7965_v34 = vpop.f32.mrf.mxu1 }
 0x3e0   : > { %v4180_v24 = vpop.f32.mrf.mxu0 }
 0x3e2   : > { %v7967_v26 = vpop.f32.mrf.mxu1  ;;  %v4182_v45 = vpop.f32.mrf.mxu0 }
 0x3e4   : > { %v7969_v58 = vpop.f32.mrf.mxu1 }
 0x3e6   : > { %v4186_v60 = vpop.f32.mrf.mxu0 }
 0x3e8   : > { %v7971_v3 = vpop.f32.mrf.mxu1  ;;  %v4188_v2 = vpop.f32.mrf.mxu0 }
 0x3ea   : > { %v7973_v62 = vpop.f32.mrf.mxu1 }
 0x3ec   : > { %v7975_v4 = vpop.f32.mrf.mxu0 }
 0x3ee   : > { %v7977_v22 = vpop.f32.mrf.mxu1  ;;  %v7979_v49 = vpop.f32.mrf.mxu0 }
 0x3f0   : > { %v7981_v13 = vpop.f32.mrf.mxu1 }
 0x3f2   : > { %v7983_v46 = vpop.f32.mrf.mxu0 }
 0x3f4   : > { %v7985_v55 = vpop.f32.mrf.mxu1  ;;  %v7987_v29 = vpop.f32.mrf.mxu0 }
 0x3f5   : > { %8685 = vst [vmem:[#allocation41_spill] sm:$0xff] %v7985_v55 }
 0x3f6   : > { %v7989_v6 = vpop.f32.mrf.mxu1 }
 0x3f7   : > { %8686 = vst [vmem:[#allocation57_spill] sm:$0xff] %v7989_v6 }
 0x3f8   : > { %v7991_v10 = vpop.f32.mrf.mxu0 }
 0x3fa   : > { %v7993_v0 = vpop.f32.mrf.mxu1  ;;  %v7995_v27 = vpop.f32.mrf.mxu0 }
 0x3fb   : > { %8687 = vst [vmem:[#allocation59_spill] sm:$0xff] %v7993_v0 }
 0x3fc   : > { %v7997_v39 = vpop.f32.mrf.mxu1 }
 0x3fd   : > { %8688 = vst [vmem:[#allocation61_spill] sm:$0xff] %v7997_v39 }
 0x3fe   : > { %v7999_v51 = vpop.f32.mrf.mxu0 }
 0x400   : > { %v8001_v33 = vpop.f32.mrf.mxu1  ;;  %v8003_v23 = vpop.f32.mrf.mxu0 }
 0x401   : > { %8689 = vst [vmem:[#allocation60_spill] sm:$0xff] %v8001_v33  ;;  %8690 = vst [vmem:[#allocation63_spill] sm:$0xff] %v8003_v23 }
 0x402   : > { %v8005_v54 = vpop.f32.mrf.mxu1 }
 0x403   : > { %8691 = vst [vmem:[#allocation62_spill] sm:$0xff] %v8005_v54 }
 0x404   : > { %v8007_v56 = vpop.f32.mrf.mxu0 }
 0x405   : > { %8692 = vst [vmem:[#allocation42_spill] sm:$0xff] %v8007_v56 }
 0x406   : > { %v8009_v1 = vpop.f32.mrf.mxu1  ;;  %v8011_v17 = vpop.f32.mrf.mxu0 }
 0x407   : > { %8693 = vst [vmem:[#allocation65_spill] sm:$0xff] %v8009_v1  ;;  %8694 = vst [vmem:[#allocation64_spill] sm:$0xff] %v8011_v17 }
 0x408   : > { %v8013_v44 = vpop.f32.mrf.mxu1 }
 0x409   : > { %8695 = vst [vmem:[#allocation43_spill] sm:$0xff] %v8013_v44 }
 0x40a   : > { %v8015_v0 = vpop.f32.mrf.mxu0 }
 0x40b   : > { %8696 = vst [vmem:[#allocation67_spill] sm:$0xff] %v8015_v0 }
 0x40c   : > { %v8017_v6 = vpop.f32.mrf.mxu1  ;;  %v8019_v39 = vpop.f32.mrf.mxu0 }
 0x40d   : > { %8697 = vst [vmem:[#allocation66_spill] sm:$0xff] %v8017_v6  ;;  %8698 = vst [vmem:[#allocation44_spill] sm:$0xff] %v8019_v39 }
 0x40e   : > { %v8021_v55 = vpop.f32.mrf.mxu1 }
 0x40f   : > { %8699 = vst [vmem:[#allocation69_spill] sm:$0xff] %v8021_v55 }
 0x410   : > { %v8023_v33 = vpop.f32.mrf.mxu0 }
 0x412   : > { %v8025_v23 = vpop.f32.mrf.mxu1  ;;  %v8027_v54 = vpop.f32.mrf.mxu0 }
 0x413   : > { %8700 = vst [vmem:[#allocation68_spill] sm:$0xff] %v8025_v23  ;;  %8701 = vst [vmem:[#allocation45_spill] sm:$0xff] %v8027_v54  ;;  %v4157_v54 = vadd.f32 %v4156_v52, %v7845_v40  ;;  %v4177_v40 = vadd.f32 %v4176_v42, %v7871_v16  ;;  %v4181_v52 = vadd.f32 %v4180_v24, %v7877_v25 }
 0x414   : > { %v8029_v56 = vpop.f32.mrf.mxu1  ;;  %v4183_v16 = vadd.f32 %v4182_v45, %v7879_v61  ;;  %v4187_v25 = vadd.f32 %v4186_v60, %v7885_v48  ;;  %v4193_v48 = vadd.f32 %v7975_v4, %v7893_v30  ;;  %v8713_v45 = vld [vmem:[#allocation41_spill] sm:$0xff] }
 0x415   : > { %8702 = vst [vmem:[#allocation71_spill] sm:$0xff] %v8029_v56 }
 0x416   : > { %v8031_v1 = vpop.f32.mrf.mxu0  ;;  %v8115_v24 = vadd.f32 %v7977_v22, %v4193_v48  ;;  %v8717_v22 = vld [vmem:[#allocation60_spill] sm:$0xff] }
 0x417   : > { %8703 = vst [vmem:[#allocation70_spill] sm:$0xff] %v8031_v1  ;;  %v4159_v1 = vadd.f32 %v4158_v18, %v7847_v57  ;;  %v4318_v57 = vadd.f32 %v7951_v20, %v4157_v54 }
 0x418   : > { %v8033_v17 = vpop.f32.mrf.mxu1  ;;  %v8035_v44 = vpop.f32.mrf.mxu0 }
 0x419   : > { %8704 = vst [vmem:[#allocation46_spill] sm:$0xff] %v8033_v17  ;;  %8705 = vst [vmem:[#allocation73_spill] sm:$0xff] %v8035_v44  ;;  %v4163_v17 = vadd.f32 %v4162_v15, %v7853_v21  ;;  %v4165_v44 = vadd.f32 %v4164_v28, %v7855_v12  ;;  %v5830_v21 = vld [vmem:[%s6222_s29] sm:$0xf]  ;;  %v8711_v12 = vsub.s32 2, %v6417_v50  ;;  %v4320_v28 = vadd.f32 %v7953_v37, %v4159_v1 }
 0x41a   : > { %v8037_v0 = vpop.f32.mrf.mxu1  ;;  %v8086_v1 = vadd.f32 %v7965_v34, %v4177_v40  ;;  %v8100_v37 = vadd.f32 %v7969_v58, %v4183_v16  ;;  %v8721_v16 = vld [vmem:[#allocation42_spill] sm:$0xff] }
 0x41b   : > { %8706 = vst [vmem:[#allocation72_spill] sm:$0xff] %v8037_v0  ;;  %v4169_v0 = vadd.f32 %v4168_v11, %v7861_v53  ;;  %v8068_v53 = vrot.slane %v5830_v21, %v8711_v12  ;;  %v4326_v54 = vadd.f32 %v7957_v32, %v4165_v44  ;;  %v4195_v44 = vadd.f32 %v7979_v49, %v7895_v43  ;;  %v8718_v12 = vld [vmem:[#allocation30_spill] sm:$0xff] }
 0x41c   : > { %v8039_v6 = vpop.f32.mrf.mxu0  ;;  %v4205_v43 = vadd.f32 %v7991_v10, %v7904_v35  ;;  %v8714_v10 = vld [vmem:[#allocation57_spill] sm:$0xff] }
 0x41d   : > { %8707 = vst [vmem:[#allocation47_spill] sm:$0xff] %v8039_v6  ;;  %v4171_v6 = vadd.f32 %v4170_v41, %v7863_v31  ;;  %v8712_v31 = vsub.s32 3, %v6417_v50  ;;  %v4330_v20 = vadd.f32 %v7959_v47, %v4169_v0  ;;  %v4189_v41 = vadd.f32 %v4188_v2, %v7887_v19 }
 0x41e   : > { %v8041_v39 = vpop.f32.mrf.mxu1  ;;  %v8043_v55 = vpop.f32.mrf.mxu0  ;;  %v4199_v19 = vadd.f32 %v7983_v46, %v7899_v5  ;;  %v4207_v5 = vadd.f32 %v7995_v27, %v7907_v63 }
 0x41f   : > { %8708 = vst [vmem:[#allocation75_spill] sm:$0xff] %v8041_v39  ;;  %8709 = vst [vmem:[#allocation74_spill] sm:$0xff] %v8043_v55  ;;  %v8072_v15 = vrot.slane %v5830_v21, %v8712_v31  ;;  %v4332_v11 = vadd.f32 %v7961_v36, %v4171_v6  ;;  %v8106_v30 = vadd.f32 %v7973_v62, %v4189_v41  ;;  %v8716_v62 = vld [vmem:[#allocation61_spill] sm:$0xff]  ;;  %v8719_v31 = vld [vmem:[#allocation63_spill] sm:$0xff] }
 0x420   : > { %v8045_v23 = vpop.f32.mrf.mxu1  ;;  %v8121_v35 = vadd.f32 %v8713_v45, %v4199_v19  ;;  %v8130_v4 = vadd.f32 %v8716_v62, %v4207_v5  ;;  %v8723_v45 = vld [vmem:[#allocation16_spill] sm:$0xff] }
 0x421   : > { %8710 = vst [vmem:[#allocation48_spill] sm:$0xff] %v8045_v23  ;;  %v4175_v23 = vadd.f32 %v4174_v38, %v7869_v9  ;;  %v4324_v9 = vadd.f32 %v7955_v14, %v4163_v17  ;;  %v8089_v17 = vadd.f32 %v7967_v26, %v4181_v52  ;;  %v8103_v14 = vadd.f32 %v7971_v3, %v4187_v25  ;;  %v8715_v3 = vld [vmem:[#allocation59_spill] sm:$0xff] }
 0x422   : > { %v8048_v56 = vpop.f32.mrf.mxu0  ;;  %v8118_v26 = vadd.f32 %v7981_v13, %v4195_v44  ;;  %v8127_v2 = vadd.f32 %v8715_v3, %v4205_v43 }
 0x423   : > { %v8083_v50 = vadd.f32 %v7963_v8, %v4175_v23  ;;  %v4201_v23 = vadd.f32 %v7987_v29, %v7901_v59  ;;  %v4211_v59 = vadd.f32 %v7999_v51, %v7910_v7 }
 0x424   : > { %v8055_v39 = vpop.f32.mrf.mxu1  ;;  %v8057_v55 = vpop.f32.mrf.mxu0 }
 0x425   : > { %v8124_v63 = vadd.f32 %v8714_v10, %v4201_v23  ;;  %v8133_v49 = vadd.f32 %v8717_v22, %v4211_v59 }
 0x426   : > { %v8063_v18 = vpop.f32.mrf.mxu1 }
 0x428   : > { %v4478_v38 = vpop.f32.mrf.mxu0 }
 0x429   : > { %v4479_v61 = vadd.f32 %v4478_v38, %v4318_v57 }
 0x42a   : > { %v4639_v0 = vpop.f32.mrf.mxu1  ;;  %v4480_v6 = vpop.f32.mrf.mxu0 }
 0x42b   : > { %v4640_v32 = vadd.f32 %v4639_v0, %v4479_v61  ;;  %v4481_v47 = vadd.f32 %v4480_v6, %v4320_v28  ;;  %v4213_v28 = vadd.f32 %v8719_v31, %v8718_v12  ;;  %v8727_v12 = vld [vmem:[#allocation64_spill] sm:$0xff] }
 0x42c   : > { %v4641_v29 = vpop.f32.mrf.mxu1  ;;  %v4484_v36 = vpop.f32.mrf.mxu0 }
 0x42d   : > { %vm4736_vm0 = vcmp.gt.f32.partialorder %v4640_v32, 0.0  ;;  %v4800_v8 = vmul.f32 0.2, %v4640_v32  ;;  %v4642_v42 = vadd.f32 %v4641_v29, %v4481_v47  ;;  %v4485_v34 = vadd.f32 %v4484_v36, %v4324_v9  ;;  %v8720_v9 = vld [vmem:[#allocation37_spill] sm:$0xff] }
 0x42e   : > { %v4645_v27 = vpop.f32.mrf.mxu1  ;;  %v4486_v7 = vpop.f32.mrf.mxu0  ;;  %v4217_v25 = vadd.f32 %v8721_v16, %v8720_v9 }
 0x42f   : > { %vm4737_vm1 = vcmp.gt.f32.partialorder %v4642_v42, 0.0  ;;  %v4801_v51 = vmul.f32 0.2, %v4642_v42  ;;  %v4646_v58 = vadd.f32 %v4645_v27, %v4485_v34  ;;  %v4487_v60 = vadd.f32 %v4486_v7, %v4326_v54  ;;  %v8724_v27 = vld [vmem:[#allocation62_spill] sm:$0xff] }
 0x430   : > { %v4647_v13 = vpop.f32.mrf.mxu1  ;;  %v4490_v46 = vpop.f32.mrf.mxu0  ;;  %v4864_v40 = vsel %vm4736_vm0, %v4640_v32, %v4800_v8  ;;  %v8722_v32 = vld [vmem:[#allocation15_spill] sm:$0xff]  ;;  %v8153_v7 = vadd.f32 %v8724_v27, %v4213_v28 }
 0x431   : > { %vm4740_vm2 = vcmp.gt.f32.partialorder %v4646_v58, 0.0  ;;  %v4804_v52 = vmul.f32 0.2, %v4646_v58  ;;  %v4648_v57 = vadd.f32 %v4647_v13, %v4487_v60  ;;  %v4491_v21 = vadd.f32 %v4490_v46, %v4330_v20  ;;  %4928 = vst [vmem:[%s7177_s6 + $0x10] sm:$0xff] %v4864_v40 }
 0x432   : > { %v4651_v54 = vpop.f32.mrf.mxu1  ;;  %v4492_v41 = vpop.f32.mrf.mxu0  ;;  %v4865_v38 = vsel %vm4737_vm1, %v4642_v42, %v4801_v51  ;;  %v5014_v61 = vmul.f32 %v8068_v53, %v4864_v40 }
 0x433   : > { %v4868_v48 = vsel %vm4740_vm2, %v4646_v58, %v4804_v52  ;;  %vm4741_vm3 = vcmp.gt.f32.partialorder %v4648_v57, 0.0  ;;  %v4805_v44 = vmul.f32 0.2, %v4648_v57  ;;  %v4652_v19 = vadd.f32 %v4651_v54, %v4491_v21  ;;  %4929 = vst [vmem:[%s7177_s6 + $0x18] sm:$0xff] %v4865_v38  ;;  %v8728_v54 = vld [vmem:[#allocation17_spill] sm:$0xff] }
 0x434   : > { %4932 = vst [vmem:[%s7177_s6 + $0x30] sm:$0xff] %v4868_v48  ;;  %v4493_v20 = vadd.f32 %v4492_v41, %v4332_v11  ;;  %v4653_v23 = vpop.f32.mrf.mxu1  ;;  %v4496_v0 = vpop.f32.mrf.mxu0  ;;  %v5015_v6 = vmul.f32 %v8072_v15, %v4865_v38  ;;  %v5077_v47 = vadd.f32 %v8722_v32, %v5014_v61  ;;  %v5018_v43 = vmul.f32 %v8068_v53, %v4868_v48 }
 0x435   : > { %vm4744_vm4 = vcmp.gt.f32.partialorder %v4652_v19, 0.0  ;;  %v4808_v5 = vmul.f32 0.2, %v4652_v19  ;;  %v4497_v59 = vadd.f32 %v4496_v0, %v8083_v50  ;;  %v4869_v29 = vsel %vm4741_vm3, %v4648_v57, %v4805_v44  ;;  %v8725_v57 = vld [vmem:[#allocation65_spill] sm:$0xff]  ;;  %v8729_v44 = vld [vmem:[#allocation32_spill] sm:$0xff] }
 0x436   : > { %v4654_v36 = vadd.f32 %v4653_v23, %v4493_v20  ;;  %v4657_v8 = vpop.f32.mrf.mxu1  ;;  %v4498_v42 = vpop.f32.mrf.mxu0  ;;  %v5078_v34 = vadd.f32 %v5077_v47, %v5015_v6  ;;  %4933 = vst [vmem:[%s7177_s6 + $0x38] sm:$0xff] %v4869_v29  ;;  %v5019_v11 = vmul.f32 %v8072_v15, %v4869_v29  ;;  %v5082_v10 = vadd.f32 %v8723_v45, %v5018_v43 }
 0x437   : > { %v4658_v51 = vadd.f32 %v4657_v8, %v4497_v59  ;;  %v4499_v58 = vadd.f32 %v4498_v42, %v8086_v1  ;;  %v4872_v60 = vsel %vm4744_vm4, %v4652_v19, %v4808_v5  ;;  %v8160_v21 = vadd.f32 %v8725_v57, %v4217_v25  ;;  %v8726_v1 = vld [vmem:[#allocation39_spill] sm:$0xff] }
 0x438   : > { %vm4745_vm5 = vcmp.gt.f32.partialorder %v4654_v36, 0.0  ;;  %v4809_v50 = vmul.f32 0.2, %v4654_v36  ;;  %5079 = vadd.xlane.f32.xlu0 %v5078_v34  ;;  %v4659_v3 = vpop.f32.mrf.mxu1  ;;  %v4502_v62 = vpop.f32.mrf.mxu0  ;;  %v5083_v22 = vadd.f32 %v5082_v10, %v5019_v11  ;;  %4936 = vst [vmem:[%s7177_s6 + $0x50] sm:$0xff] %v4872_v60  ;;  %v5022_v13 = vmul.f32 %v8068_v53, %v4872_v60  ;;  %v8730_v19 = vld [vmem:[#allocation67_spill] sm:$0xff] }
 0x439   : > { %vm4748_vm6 = vcmp.gt.f32.partialorder %v4658_v51, 0.0  ;;  %v4812_v46 = vmul.f32 0.2, %v4658_v51  ;;  %v4660_v40 = vadd.f32 %v4659_v3, %v4499_v58  ;;  %v4503_v52 = vadd.f32 %v4502_v62, %v8089_v17  ;;  %v8731_v8 = vld [vmem:[#allocation19_spill] sm:$0xff] }
 0x43a   : > { %v4219_v31 = vadd.f32 %v8727_v12, %v8726_v1  ;;  %v4663_v28 = vpop.f32.mrf.mxu1  ;;  %v4504_v9 = vpop.f32.mrf.mxu0  ;;  %v4873_v16 = vsel %vm4745_vm5, %v4654_v36, %v4809_v50  ;;  %v5087_v41 = vadd.f32 %v8728_v54, %v5022_v13  ;;  %v4223_v17 = vadd.f32 %v8730_v19, %v8729_v44  ;;  %v8732_v34 = vld [vmem:[#allocation43_spill] sm:$0xff]  ;;  %v8733_v13 = vld [vmem:[#allocation66_spill] sm:$0xff] }
 0x43b   : > { %v4876_v38 = vsel %vm4748_vm6, %v4658_v51, %v4812_v46  ;;  %vm4749_vm7 = vcmp.gt.f32.partialorder %v4660_v40, 0.0  ;;  %v4813_v61 = vmul.f32 0.2, %v4660_v40  ;;  %v4664_v48 = vadd.f32 %v4663_v28, %v4503_v52  ;;  %4937 = vst [vmem:[%s7177_s6 + $0x58] sm:$0xff] %v4873_v16 }
 0x43c   : > { %4940 = vst [vmem:[%s7177_s6 + $0x70] sm:$0xff] %v4876_v38  ;;  %v4505_v25 = vadd.f32 %v4504_v9, %v8100_v37  ;;  %5084 = vadd.xlane.f32.xlu0 %v5083_v22  ;;  %v4665_v20 = vpop.f32.mrf.mxu1  ;;  %v4508_v23 = vpop.f32.mrf.mxu0  ;;  %v5023_v0 = vmul.f32 %v8072_v15, %v4873_v16  ;;  %v5026_v6 = vmul.f32 %v8068_v53, %v4876_v38 }
 0x43d   : > { %vm4752_vm8 = vcmp.gt.f32.partialorder %v4664_v48, 0.0  ;;  %v4816_v32 = vmul.f32 0.2, %v4664_v48  ;;  %v4509_v47 = vadd.f32 %v4508_v23, %v8103_v14  ;;  %v4877_v43 = vsel %vm4749_vm7, %v4660_v40, %v4813_v61  ;;  %v8735_v40 = vld [vmem:[#allocation44_spill] sm:$0xff] }
 0x43e   : > { %v4666_v5 = vadd.f32 %v4665_v20, %v4505_v25  ;;  %v4669_v59 = vpop.f32.mrf.mxu1  ;;  %v4510_v29 = vpop.f32.mrf.mxu0  ;;  %v5088_v36 = vadd.f32 %v5087_v41, %v5023_v0  ;;  %4941 = vst [vmem:[%s7177_s6 + $0x78] sm:$0xff] %v4877_v43  ;;  %v5027_v37 = vmul.f32 %v8072_v15, %v4877_v43  ;;  %v5092_v42 = vadd.f32 %v8731_v8, %v5026_v6  ;;  %v8737_v41 = vld [vmem:[#allocation34_spill] sm:$0xff]  ;;  %v8739_v43 = vld [vmem:[#allocation69_spill] sm:$0xff] }
 0x43f   : > { %v8178_v11 = vadd.f32 %v8732_v34, %v4219_v31  ;;  %v4880_v45 = vsel %vm4752_vm8, %v4664_v48, %v4816_v32  ;;  %v4670_v10 = vadd.f32 %v4669_v59, %v4509_v47  ;;  %v4511_v27 = vadd.f32 %v4510_v29, %v8106_v30  ;;  %v8734_v30 = vld [vmem:[#allocation53_spill] sm:$0xff]  ;;  %v8736_v31 = vld [vmem:[#allocation20_spill] sm:$0xff]  ;;  %v8738_v32 = vld [vmem:[#allocation23_spill] sm:$0xff] }
 0x440   : > { %4944 = vst [vmem:[%s7177_s6 + $0x90] sm:$0xff] %v4880_v45  ;;  %vm4753_vm9 = vcmp.gt.f32.partialorder %v4666_v5, 0.0  ;;  %v4817_v14 = vmul.f32 0.2, %v4666_v5  ;;  %5089 = vadd.xlane.f32.xlu1 %v5088_v36  ;;  %v4671_v51 = vpop.f32.mrf.mxu1  ;;  %v4514_v58 = vpop.f32.mrf.mxu0  ;;  %v5093_v60 = vadd.f32 %v5092_v42, %v5027_v37  ;;  %v5030_v50 = vmul.f32 %v8068_v53, %v4880_v45 }
 0x441   : > { %vm4756_vm10 = vcmp.gt.f32.partialorder %v4670_v10, 0.0  ;;  %v4820_v3 = vmul.f32 0.2, %v4670_v10  ;;  %v4672_v62 = vadd.f32 %v4671_v51, %v4511_v27  ;;  %v4515_v22 = vadd.f32 %v4514_v58, %v8115_v24  ;;  %v8742_v58 = vld [vmem:[#allocation45_spill] sm:$0xff] }
 0x442   : > { %v8185_v46 = vadd.f32 %v8733_v13, %v4223_v17  ;;  %v4225_v52 = vadd.f32 %v8735_v40, %v8734_v30  ;;  %v4675_v57 = vpop.f32.mrf.mxu1  ;;  %v4516_v1 = vpop.f32.mrf.mxu0  ;;  %v4881_v12 = vsel %vm4753_vm9, %v4666_v5, %v4817_v14  ;;  %v5097_v28 = vadd.f32 %v8736_v31, %v5030_v50  ;;  %v8740_v14 = vld [vmem:[#allocation68_spill] sm:$0xff] }
 0x443   : > { %v4884_v9 = vsel %vm4756_vm10, %v4670_v10, %v4820_v3  ;;  %vm4757_vm11 = vcmp.gt.f32.partialorder %v4672_v62, 0.0  ;;  %v4821_v16 = vmul.f32 0.2, %v4672_v62  ;;  %v4676_v54 = vadd.f32 %v4675_v57, %v4515_v22  ;;  %4945 = vst [vmem:[%s7177_s6 + $0x98] sm:$0xff] %v4881_v12  ;;  %v8743_v22 = vld [vmem:[#allocation27_spill] sm:$0xff] }
 0x444   : > { %v4229_v38 = vadd.f32 %v8023_v33, %v8737_v41  ;;  %4948 = vst [vmem:[%s7177_s6 + $0xb0] sm:$0xff] %v4884_v9  ;;  %v4517_v24 = vadd.f32 %v4516_v1, %v8118_v26  ;;  %5094 = vadd.xlane.f32.xlu1 %v5093_v60  ;;  %v4677_v61 = vpop.f32.mrf.mxu1  ;;  %v4520_v48 = vpop.f32.mrf.mxu0  ;;  %v5031_v44 = vmul.f32 %v8072_v15, %v4881_v12  ;;  %v8744_v57 = vld [vmem:[#allocation55_spill] sm:$0xff] }
 0x445   : > { %v5034_v19 = vmul.f32 %v8068_v53, %v4884_v9  ;;  %vm4760_vm12 = vcmp.gt.f32.partialorder %v4676_v54, 0.0  ;;  %v4824_v17 = vmul.f32 0.2, %v4676_v54  ;;  %v4521_v25 = vadd.f32 %v4520_v48, %v8121_v35 }
 0x446   : > { %v4885_v20 = vsel %vm4757_vm11, %v4672_v62, %v4821_v16  ;;  %v4678_v23 = vadd.f32 %v4677_v61, %v4517_v24  ;;  %v4681_v0 = vpop.f32.mrf.mxu1  ;;  %v4522_v33 = vpop.f32.mrf.mxu0  ;;  %v5098_v6 = vadd.f32 %v5097_v28, %v5031_v44  ;;  %v8202_v5 = vadd.f32 %v8739_v43, %v4225_v52 }
 0x447   : > { %4949 = vst [vmem:[%s7177_s6 + $0xb8] sm:$0xff] %v4885_v20  ;;  %v5035_v26 = vmul.f32 %v8072_v15, %v4885_v20  ;;  %v5102_v47 = vadd.f32 %v8738_v32, %v5034_v19  ;;  %v4888_v59 = vsel %vm4760_vm12, %v4676_v54, %v4824_v17  ;;  %v4682_v29 = vadd.f32 %v4681_v0, %v4521_v25  ;;  %v8747_v25 = vld [vmem:[#allocation71_spill] sm:$0xff] }
 0x448   : > { %v4523_v36 = vadd.f32 %v4522_v33, %v8124_v63  ;;  %4952 = vst [vmem:[%s7177_s6 + $0xd0] sm:$0xff] %v4888_v59  ;;  %vm4761_vm13 = vcmp.gt.f32.partialorder %v4678_v23, 0.0  ;;  %v4825_v35 = vmul.f32 0.2, %v4678_v23  ;;  %5099 = vadd.xlane.f32.xlu0 %v5098_v6  ;;  %v4683_v37 = vpop.f32.mrf.mxu1  ;;  %v4526_v8 = vpop.f32.mrf.mxu0  ;;  %v5038_v34 = vmul.f32 %v8068_v53, %v4888_v59  ;;  %v8741_v63 = vld [vmem:[#allocation36_spill] sm:$0xff] }
 0x449   : > { %v5103_v42 = vadd.f32 %v5102_v47, %v5035_v26  ;;  %vm4764_vm14 = vcmp.gt.f32.partialorder %v4682_v29, 0.0  ;;  %v4828_v45 = vmul.f32 0.2, %v4682_v29  ;;  %v4527_v27 = vadd.f32 %v4526_v8, %v8127_v2  ;;  %v8745_v2 = vld [vmem:[#allocation70_spill] sm:$0xff] }
 0x44a   : > { %v4684_v10 = vadd.f32 %v4683_v37, %v4523_v36  ;;  %v8209_v51 = vadd.f32 %v8740_v14, %v4229_v38  ;;  %v4231_v60 = vadd.f32 %v8742_v58, %v8741_v63  ;;  %v4687_v50 = vpop.f32.mrf.mxu1  ;;  %v4528_v3 = vpop.f32.mrf.mxu0  ;;  %v4889_v62 = vsel %vm4761_vm13, %v4678_v23, %v4825_v35  ;;  %v8748_v36 = vld [vmem:[#allocation46_spill] sm:$0xff]  ;;  %v8750_v37 = vld [vmem:[#allocation73_spill] sm:$0xff] }
 0x44b   : > { %5104 = vadd.xlane.f32.xlu1 %v5103_v42  ;;  %v5107_v13 = vadd.f32 %v8743_v22, %v5038_v34  ;;  %v4892_v30 = vsel %vm4764_vm14, %v4682_v29, %v4828_v45  ;;  %v4688_v52 = vadd.f32 %v4687_v50, %v4527_v27  ;;  %4953 = vst [vmem:[%s7177_s6 + $0xd8] sm:$0xff] %v4889_v62 }
 0x44c   : > { %vm4765_vm15 = vcmp.gt.f32.partialorder %v4684_v10, 0.0  ;;  %v4829_v40 = vmul.f32 0.2, %v4684_v10  ;;  %v4235_v1 = vadd.f32 %v8745_v2, %v8744_v57  ;;  %4956 = vst [vmem:[%s7177_s6 + $0xf0] sm:$0xff] %v4892_v30  ;;  %v4529_v12 = vadd.f32 %v4528_v3, %v8130_v4  ;;  %v4689_v31 = vpop.f32.mrf.mxu1  ;;  %v4532_v28 = vpop.f32.mrf.mxu0  ;;  %v8746_v4 = vld [vmem:[#allocation25_spill] sm:$0xff] }
 0x44d   : > { %v5039_v9 = vmul.f32 %v8072_v15, %v4889_v62  ;;  %v5042_v16 = vmul.f32 %v8068_v53, %v4892_v30  ;;  %vm4768_vm0 = vcmp.gt.f32.partialorder %v4688_v52, 0.0  ;;  %v4832_v54 = vmul.f32 0.2, %v4688_v52 }
 0x44e   : > { %v4533_v41 = vadd.f32 %v4532_v28, %v8133_v49  ;;  %v4893_v38 = vsel %vm4765_vm15, %v4684_v10, %v4829_v40  ;;  %v4690_v24 = vadd.f32 %v4689_v31, %v4529_v12  ;;  %v4693_v61 = vpop.f32.mrf.mxu1  ;;  %v4534_v48 = vpop.f32.mrf.mxu0  ;;  %v8227_v20 = vadd.f32 %v8747_v25, %v4231_v60  ;;  %v8751_v10 = vld [vmem:[#allocation29_spill] sm:$0xff]  ;;  %v8752_v60 = vld [vmem:[#allocation56_spill] sm:$0xff] }
 0x44f   : > { %v5108_v44 = vadd.f32 %v5107_v13, %v5039_v9  ;;  %4957 = vst [vmem:[%s7177_s6 + $0xf8] sm:$0xff] %v4893_v38  ;;  %v5043_v19 = vmul.f32 %v8072_v15, %v4893_v38  ;;  %v5112_v17 = vadd.f32 %v8746_v4, %v5042_v16  ;;  %v4896_v23 = vsel %vm4768_vm0, %v4688_v52, %v4832_v54  ;;  %v8755_v16 = vld [vmem:[#allocation72_spill] sm:$0xff] }
 0x450   : > { %v4694_v0 = vadd.f32 %v4693_v61, %v4533_v41  ;;  %v4535_v33 = vadd.f32 %v4534_v48, %v8153_v7  ;;  %4960 = vst [vmem:[%s7177_s6 + $0x110] sm:$0xff] %v4896_v23  ;;  %vm4769_vm1 = vcmp.gt.f32.partialorder %v4690_v24, 0.0  ;;  %v4833_v49 = vmul.f32 0.2, %v4690_v24  ;;  %v4695_v6 = vpop.f32.mrf.mxu1  ;;  %v4538_v26 = vpop.f32.mrf.mxu0  ;;  %v8749_v7 = vld [vmem:[#allocation24_spill] sm:$0xff] }
 0x451   : > { %5109 = vadd.xlane.f32.xlu0 %v5108_v44  ;;  %v5113_v32 = vadd.f32 %v5112_v17, %v5043_v19  ;;  %v5046_v47 = vmul.f32 %v8068_v53, %v4896_v23  ;;  %v4539_v29 = vadd.f32 %v4538_v26, %v8160_v21  ;;  %v8234_v35 = vadd.f32 %v8748_v36, %v4235_v1  ;;  %v8753_v21 = vld [vmem:[#allocation47_spill] sm:$0xff] }
 0x452   : > { %vm4772_vm2 = vcmp.gt.f32.partialorder %v4694_v0, 0.0  ;;  %v4836_v43 = vmul.f32 0.2, %v4694_v0  ;;  %v4696_v59 = vadd.f32 %v4695_v6, %v4535_v33  ;;  %v4237_v8 = vadd.f32 %v8750_v37, %v8749_v7  ;;  %v4699_v42 = vpop.f32.mrf.mxu1  ;;  %v4540_v34 = vpop.f32.mrf.mxu0  ;;  %v8756_v23 = vld [vmem:[#allocation75_spill] sm:$0xff]  ;;  %v8757_v33 = vld [vmem:[#allocation38_spill] sm:$0xff]  ;;  %v8760_v7 = vld [vmem:[#allocation40_spill] sm:$0xff] }
 0x453   : > { %5114 = vadd.xlane.f32.xlu1 %v5113_v32  ;;  %v4897_v45 = vsel %vm4769_vm1, %v4690_v24, %v4833_v49  ;;  %v5117_v27 = vadd.f32 %v8751_v10, %v5046_v47  ;;  %v4700_v58 = vadd.f32 %v4699_v42, %v4539_v29  ;;  %v4241_v50 = vadd.f32 %v8753_v21, %v8752_v60  ;;  %v8759_v47 = vld [vmem:[#allocation22_spill] sm:$0xff] }
 0x454   : > { %v4900_v14 = vsel %vm4772_vm2, %v4694_v0, %v4836_v43  ;;  %vm4773_vm3 = vcmp.gt.f32.partialorder %v4696_v59, 0.0  ;;  %v4837_v63 = vmul.f32 0.2, %v4696_v59  ;;  %4961 = vst [vmem:[%s7177_s6 + $0x118] sm:$0xff] %v4897_v45  ;;  %v4541_v3 = vadd.f32 %v4540_v34, %v8178_v11  ;;  %v4701_v62 = vpop.f32.mrf.mxu1  ;;  %v4544_v22 = vpop.f32.mrf.mxu0  ;;  %v8754_v11 = vld [vmem:[#allocation31_spill] sm:$0xff] }
 0x455   : > { %4964 = vst [vmem:[%s7177_s6 + $0x130] sm:$0xff] %v4900_v14  ;;  %v5047_v13 = vmul.f32 %v8072_v15, %v4897_v45  ;;  %v5050_v30 = vmul.f32 %v8068_v53, %v4900_v14  ;;  %vm4776_vm4 = vcmp.gt.f32.partialorder %v4700_v58, 0.0  ;;  %v4840_v40 = vmul.f32 0.2, %v4700_v58 }
 0x456   : > { %v4545_v52 = vadd.f32 %v4544_v22, %v8185_v46  ;;  %v4901_v57 = vsel %vm4773_vm3, %v4696_v59, %v4837_v63  ;;  %v4702_v2 = vadd.f32 %v4701_v62, %v4541_v3  ;;  %v4705_v1 = vpop.f32.mrf.mxu1  ;;  %v4546_v12 = vpop.f32.mrf.mxu0  ;;  %v4398_v54 = vadd.f32 %v8755_v16, %v4237_v8  ;;  %v8762_v3 = vld [vmem:[#allocation58_spill] sm:$0xff] }
 0x457   : > { %v5118_v31 = vadd.f32 %v5117_v27, %v5047_v13  ;;  %4965 = vst [vmem:[%s7177_s6 + $0x138] sm:$0xff] %v4901_v57  ;;  %v5051_v28 = vmul.f32 %v8072_v15, %v4901_v57  ;;  %v5122_v9 = vadd.f32 %v8754_v11, %v5050_v30  ;;  %v4904_v41 = vsel %vm4776_vm4, %v4700_v58, %v4840_v40 }
 0x458   : > { %v4706_v38 = vadd.f32 %v4705_v1, %v4545_v52  ;;  %v4547_v24 = vadd.f32 %v4546_v12, %v8202_v5  ;;  %4968 = vst [vmem:[%s7177_s6 + $0x150] sm:$0xff] %v4904_v41  ;;  %vm4777_vm5 = vcmp.gt.f32.partialorder %v4702_v2, 0.0  ;;  %v4841_v61 = vmul.f32 0.2, %v4702_v2  ;;  %v4707_v46 = vpop.f32.mrf.mxu1  ;;  %v4550_v48 = vpop.f32.mrf.mxu0  ;;  %v8758_v5 = vld [vmem:[#allocation74_spill] sm:$0xff] }
 0x459   : > { %5119 = vadd.xlane.f32.xlu0 %v5118_v31  ;;  %v5123_v44 = vadd.f32 %v5122_v9, %v5051_v28  ;;  %v5054_v19 = vmul.f32 %v8068_v53, %v4904_v41  ;;  %v4551_v25 = vadd.f32 %v4550_v48, %v8209_v51  ;;  %v4402_v0 = vadd.f32 %v8756_v23, %v4241_v50  ;;  %v8763_v28 = vld [vmem:[#allocation48_spill] sm:$0xff]  ;;  %v8764_v41 = vld [vmem:[#allocation33_spill] sm:$0xff] }
 0x45a   : > { %vm4780_vm6 = vcmp.gt.f32.partialorder %v4706_v38, 0.0  ;;  %v4844_v4 = vmul.f32 0.2, %v4706_v38  ;;  %v4708_v17 = vadd.f32 %v4707_v46, %v4547_v24  ;;  %v4243_v49 = vadd.f32 %v8758_v5, %v8757_v33  ;;  %v4711_v6 = vpop.f32.mrf.mxu1  ;;  %v4552_v26 = vpop.f32.mrf.mxu0 }
 0x45b   : > { %5124 = vadd.xlane.f32.xlu1 %v5123_v44  ;;  %v4905_v32 = vsel %vm4777_vm5, %v4702_v2, %v4841_v61  ;;  %v5127_v43 = vadd.f32 %v8759_v47, %v5054_v19  ;;  %v4712_v36 = vadd.f32 %v4711_v6, %v4551_v25  ;;  %v4247_v51 = vadd.f32 %v8048_v56, %v8760_v7 }
 0x45c   : > { %v4908_v59 = vsel %vm4780_vm6, %v4706_v38, %v4844_v4  ;;  %vm4781_vm7 = vcmp.gt.f32.partialorder %v4708_v17, 0.0  ;;  %v4845_v29 = vmul.f32 0.2, %v4708_v17  ;;  %4969 = vst [vmem:[%s7177_s6 + $0x158] sm:$0xff] %v4905_v32  ;;  %v4553_v37 = vadd.f32 %v4552_v26, %v8227_v20  ;;  %v4713_v8 = vpop.f32.mrf.mxu1  ;;  %v4556_v42 = vpop.f32.mrf.mxu0  ;;  %v8761_v20 = vld [vmem:[#allocation26_spill] sm:$0xff]  ;;  %v8765_v26 = vld [vmem:[#allocation35_spill] sm:$0xff] }
 0x45d   : > { %4972 = vst [vmem:[%s7177_s6 + $0x170] sm:$0xff] %v4908_v59  ;;  %v5055_v34 = vmul.f32 %v8072_v15, %v4905_v32  ;;  %v5058_v45 = vmul.f32 %v8068_v53, %v4908_v59  ;;  %vm4784_vm8 = vcmp.gt.f32.partialorder %v4712_v36, 0.0  ;;  %v4848_v10 = vmul.f32 0.2, %v4712_v36 }
 0x45e   : > { %v4557_v27 = vadd.f32 %v4556_v42, %v8234_v35  ;;  %v4909_v14 = vsel %vm4781_vm7, %v4708_v17, %v4845_v29  ;;  %v4714_v63 = vadd.f32 %v4713_v8, %v4553_v37  ;;  %v4717_v58 = vpop.f32.mrf.mxu1  ;;  %v4558_v60 = vpop.f32.mrf.mxu0  ;;  %v4249_v62 = vadd.f32 %v8057_v55, %v8762_v3 }
 0x45f   : > { %v5128_v21 = vadd.f32 %v5127_v43, %v5055_v34  ;;  %4973 = vst [vmem:[%s7177_s6 + $0x178] sm:$0xff] %v4909_v14  ;;  %v5059_v56 = vmul.f32 %v8072_v15, %v4909_v14  ;;  %v5132_v50 = vadd.f32 %v8761_v20, %v5058_v45  ;;  %v4912_v22 = vsel %vm4784_vm8, %v4712_v36, %v4848_v10  ;;  %v8766_v34 = vld [vmem:[#allocation28_spill] sm:$0xff] }
 0x460   : > { %v4718_v13 = vadd.f32 %v4717_v58, %v4557_v27  ;;  %v4559_v30 = vadd.f32 %v4558_v60, %v4398_v54  ;;  %4976 = vst [vmem:[%s7177_s6 + $0x190] sm:$0xff] %v4912_v22  ;;  %vm4785_vm9 = vcmp.gt.f32.partialorder %v4714_v63, 0.0  ;;  %v4849_v40 = vmul.f32 0.2, %v4714_v63  ;;  %v4719_v35 = vpop.f32.mrf.mxu1  ;;  %v4562_v52 = vpop.f32.mrf.mxu0 }
 0x461   : > { %5129 = vadd.xlane.f32.xlu0 %v5128_v21  ;;  %v5133_v57 = vadd.f32 %v5132_v50, %v5059_v56  ;;  %v5062_v2 = vmul.f32 %v8068_v53, %v4912_v22  ;;  %v4563_v31 = vadd.f32 %v4562_v52, %v4402_v0  ;;  %v4404_v55 = vadd.f32 %v8763_v28, %v4243_v49  ;;  %v8767_v56 = vld [vmem:[#allocation54_spill] sm:$0xff] }
 0x462   : > { %vm4788_vm10 = vcmp.gt.f32.partialorder %v4718_v13, 0.0  ;;  %v4852_v1 = vmul.f32 0.2, %v4718_v13  ;;  %v4720_v12 = vadd.f32 %v4719_v35, %v4559_v30  ;;  %v4408_v11 = vadd.f32 %v8055_v39, %v4247_v51  ;;  %v4723_v9 = vpop.f32.mrf.mxu1  ;;  %v4564_v16 = vpop.f32.mrf.mxu0 }
 0x463   : > { %5134 = vadd.xlane.f32.xlu1 %v5133_v57  ;;  %v4913_v54 = vsel %vm4785_vm9, %v4714_v63, %v4849_v40  ;;  %v5137_v38 = vadd.f32 %v8764_v41, %v5062_v2  ;;  %v4724_v46 = vadd.f32 %v4723_v9, %v4563_v31  ;;  %v4410_v48 = vadd.f32 %v8063_v18, %v4249_v62  ;;  %v5204_v9 = vld [vmem:[%s7177_s6 + $0x10] sm:$0xff] (%p8768_p11)  ;;  %v5210_v41 = vld [vmem:[%s7177_s6 + $0x28] sm:$0xff] (%p8768_p11) }
 0x464   : > { %v4916_v24 = vsel %vm4788_vm10, %v4718_v13, %v4852_v1  ;;  %vm4789_vm11 = vcmp.gt.f32.partialorder %v4720_v12, 0.0  ;;  %v4853_v61 = vmul.f32 0.2, %v4720_v12  ;;  %4977 = vst [vmem:[%s7177_s6 + $0x198] sm:$0xff] %v4913_v54  ;;  %v4565_v44 = vadd.f32 %v4564_v16, %v4404_v55  ;;  %v4725_v19 = vpop.f32.mrf.mxu1  ;;  %v4568_v4 = vpop.f32.mrf.mxu0  ;;  %v5200_v55 = vld [vmem:[%s7177_s6] sm:$0xff] (%p8768_p11)  ;;  %v5206_v16 = vld [vmem:[%s7177_s6 + $0x18] sm:$0xff] (%p8768_p11) }
 0x465   : > { %4980 = vst [vmem:[%s7177_s6 + $0x1b0] sm:$0xff] %v4916_v24  ;;  %v5063_v39 = vmul.f32 %v8072_v15, %v4913_v54  ;;  %v5066_v17 = vmul.f32 %v8068_v53, %v4916_v24  ;;  %vm4792_vm12 = vcmp.gt.f32.partialorder %v4724_v46, 0.0  ;;  %v4856_v25 = vmul.f32 0.2, %v4724_v46  ;;  %v5208_v54 = vld [vmem:[%s7177_s6 + $0x20] sm:$0xff] (%p8768_p11)  ;;  %5201 = vst [vmem:[%s8346_s18] sm:$0xff] (%p8768_p11), %v5200_v55  ;;  %v5214_v24 = vld [vmem:[%s7177_s6 + $0x38] sm:$0xff] (%p8768_p11) }
 0x466   : > { %v4569_v23 = vadd.f32 %v4568_v4, %v4408_v11  ;;  %v4917_v0 = vsel %vm4789_vm11, %v4720_v12, %v4853_v61  ;;  %v4726_v33 = vadd.f32 %v4725_v19, %v4565_v44  ;;  %v4729_v5 = vpop.f32.mrf.mxu1  ;;  %v4570_v49 = vpop.f32.mrf.mxu0  ;;  %vm5156_vm0 = vcmask 7168   ;;  %v5202_v11 = vld [vmem:[%s7177_s6 + $0x8] sm:$0xff] (%p8768_p11)  ;;  %5205 = vst [vmem:[%s8346_s18 + $0x10] sm:$0xff] (%p8768_p11), %v5204_v9  ;;  %5207 = vst [vmem:[%s8346_s18 + $0x18] sm:$0xff] (%p8768_p11), %v5206_v16  ;;  %v5216_v61 = vld [vmem:[%s7177_s6 + $0x40] sm:$0xff] (%p8768_p11) }
 0x467   : > { %v5138_v6 = vadd.f32 %v5137_v38, %v5063_v39  ;;  %4981 = vst [vmem:[%s7177_s6 + $0x1b8] sm:$0xff] %v4917_v0  ;;  %v5067_v18 = vmul.f32 %v8072_v15, %v4917_v0  ;;  %v5142_v32 = vadd.f32 %v8765_v26, %v5066_v17  ;;  %v4920_v47 = vsel %vm4792_vm12, %v4724_v46, %v4856_v25  ;;  %v5212_v38 = vld [vmem:[%s7177_s6 + $0x30] sm:$0xff] (%p8768_p11)  ;;  %v5218_v46 = vld [vmem:[%s7177_s6 + $0x48] sm:$0xff] (%p8768_p11)  ;;  %v5222_v44 = vld [vmem:[%s7177_s6 + $0x58] sm:$0xff] (%p8768_p11) }
 0x468   : > { %v4730_v43 = vadd.f32 %v4729_v5, %v4569_v23  ;;  %v4571_v59 = vadd.f32 %v4570_v49, %v4410_v48  ;;  %4984 = vst [vmem:[%s7177_s6 + $0x1d0] sm:$0xff] %v4920_v47  ;;  %vm4793_vm13 = vcmp.gt.f32.partialorder %v4726_v33, 0.0  ;;  %v4857_v29 = vmul.f32 0.2, %v4726_v33  ;;  %v4731_v36 = vpop.f32.mrf.mxu1  ;;  %5203 = vst [vmem:[%s8346_s18 + $0x8] sm:$0xff] (%p8768_p11), %v5202_v11  ;;  %v5220_v48 = vld [vmem:[%s7177_s6 + $0x50] sm:$0xff] (%p8768_p11) }
 0x469   : > { %5139 = vadd.xlane.f32.xlu0 %v5138_v6  ;;  %v5143_v7 = vadd.f32 %v5142_v32, %v5067_v18  ;;  %v5070_v51 = vmul.f32 %v8068_v53, %v4920_v47  ;;  %5209 = vst [vmem:[%s8346_s18 + $0x40] sm:$0xff] (%p8768_p11), %v5208_v54  ;;  %5211 = vst [vmem:[%s8346_s18 + $0x48] sm:$0xff] (%p8768_p11), %v5210_v41  ;;  %v5224_v19 = vld [vmem:[%s7177_s6 + $0x60] sm:$0xff] (%p8768_p11)  ;;  %v5226_v4 = vld [vmem:[%s7177_s6 + $0x68] sm:$0xff] (%p8768_p11) }
 0x46a   : > { %vm4796_vm14 = vcmp.gt.f32.partialorder %v4730_v43, 0.0  ;;  %v4860_v37 = vmul.f32 0.2, %v4730_v43  ;;  %v4732_v8 = vadd.f32 %v4731_v36, %v4571_v59  ;;  %v4921_v42 = vsel %vm4793_vm13, %v4726_v33, %v4857_v29  ;;  %5213 = vst [vmem:[%s8346_s18 + $0x50] sm:$0xff] (%p8768_p11), %v5212_v38  ;;  %5215 = vst [vmem:[%s8346_s18 + $0x58] sm:$0xff] (%p8768_p11), %v5214_v24  ;;  %v5228_v39 = vld [vmem:[%s7177_s6 + $0x70] sm:$0xff] (%p8768_p11) }
 0x46b   : > { %5144 = vadd.xlane.f32.xlu1 %v5143_v7  ;;  %v5147_v45 = vadd.f32 %v8766_v34, %v5070_v51  ;;  %4985 = vst [vmem:[%s7177_s6 + $0x1d8] sm:$0xff] %v4921_v42  ;;  %v5071_v14 = vmul.f32 %v8072_v15, %v4921_v42  ;;  %5217 = vst [vmem:[%s8346_s18 + $0x80] sm:$0xff] (%p8768_p11), %v5216_v61  ;;  %v5230_v17 = vld [vmem:[%s7177_s6 + $0x78] sm:$0xff] (%p8768_p11)  ;;  %v5232_v25 = vld [vmem:[%s7177_s6 + $0x80] sm:$0xff] (%p8768_p11) }
 0x46c   : > { %v4924_v10 = vsel %vm4796_vm14, %v4730_v43, %v4860_v37  ;;  %vm4797_vm15 = vcmp.gt.f32.partialorder %v4732_v8, 0.0  ;;  %v4861_v27 = vmul.f32 0.2, %v4732_v8  ;;  %5219 = vst [vmem:[%s8346_s18 + $0x88] sm:$0xff] (%p8768_p11), %v5218_v46  ;;  %5221 = vst [vmem:[%s8346_s18 + $0x90] sm:$0xff] (%p8768_p11), %v5220_v48  ;;  %v5234_v23 = vld [vmem:[%s7177_s6 + $0x88] sm:$0xff] (%p8768_p11) }
 0x46d   : > { %4988 = vst [vmem:[%s7177_s6 + $0x1f0] sm:$0xff] %v4924_v10  ;;  %v5074_v63 = vmul.f32 %v8068_v53, %v4924_v10  ;;  %v5148_v58 = vadd.f32 %v5147_v45, %v5071_v14  ;;  %5223 = vst [vmem:[%s8346_s18 + $0x98] sm:$0xff] (%p8768_p11), %v5222_v44  ;;  %v5236_v0 = vld [vmem:[%s7177_s6 + $0x90] sm:$0xff] (%p8768_p11)  ;;  %v5238_v33 = vld [vmem:[%s7177_s6 + $0x98] sm:$0xff] (%p8768_p11) }
 0x46e   : > { %v4925_v60 = vsel %vm4797_vm15, %v4732_v8, %v4861_v27  ;;  %5225 = vst [vmem:[%s8346_s18 + $0xc0] sm:$0xff] (%p8768_p11), %v5224_v19  ;;  %5227 = vst [vmem:[%s8346_s18 + $0xc8] sm:$0xff] (%p8768_p11), %v5226_v4  ;;  %v5240_v5 = vld [vmem:[%s7177_s6 + $0xa0] sm:$0xff] (%p8768_p11)  ;;  %v5242_v49 = vld [vmem:[%s7177_s6 + $0xa8] sm:$0xff] (%p8768_p11) }
 0x46f   : > { %4989 = vst [vmem:[%s7177_s6 + $0x1f8] sm:$0xff] %v4925_v60  ;;  %v5075_v21 = vmul.f32 %v8072_v15, %v4925_v60  ;;  %v5152_v20 = vadd.f32 %v8767_v56, %v5074_v63  ;;  %5149 = vadd.xlane.f32.xlu0 %v5148_v58  ;;  %5229 = vst [vmem:[%s8346_s18 + $0xd0] sm:$0xff] (%p8768_p11), %v5228_v39  ;;  %v5244_v6 = vld [vmem:[%s7177_s6 + $0xb0] sm:$0xff] (%p8768_p11)  ;;  %v5246_v18 = vld [vmem:[%s7177_s6 + $0xb8] sm:$0xff] (%p8768_p11) }
 0x470   : > { %5231 = vst [vmem:[%s8346_s18 + $0xd8] sm:$0xff] (%p8768_p11), %v5230_v17  ;;  %5233 = vst [vmem:[%s8346_s18 + $0x100] sm:$0xff] (%p8768_p11), %v5232_v25  ;;  %v5248_v26 = vld [vmem:[%s7177_s6 + $0xc0] sm:$0xff] (%p8768_p11)  ;;  %v5250_v32 = vld [vmem:[%s7177_s6 + $0xc8] sm:$0xff] (%p8768_p11) }
 0x471   : > { %v5153_v50 = vadd.f32 %v5152_v20, %v5075_v21  ;;  %5235 = vst [vmem:[%s8346_s18 + $0x108] sm:$0xff] (%p8768_p11), %v5234_v23  ;;  %5237 = vst [vmem:[%s8346_s18 + $0x110] sm:$0xff] (%p8768_p11), %v5236_v0  ;;  %v5252_v47 = vld [vmem:[%s7177_s6 + $0xd0] sm:$0xff] (%p8768_p11)  ;;  %v5254_v43 = vld [vmem:[%s7177_s6 + $0xd8] sm:$0xff] (%p8768_p11) }
 0x472   : > { %5239 = vst [vmem:[%s8346_s18 + $0x118] sm:$0xff] (%p8768_p11), %v5238_v33  ;;  %5241 = vst [vmem:[%s8346_s18 + $0x140] sm:$0xff] (%p8768_p11), %v5240_v5  ;;  %v5256_v59 = vld [vmem:[%s7177_s6 + $0xe0] sm:$0xff] (%p8768_p11)  ;;  %v5258_v29 = vld [vmem:[%s7177_s6 + $0xe8] sm:$0xff] (%p8768_p11) }
 0x473   : > { %5154 = vadd.xlane.f32.xlu1 %v5153_v50  ;;  %5243 = vst [vmem:[%s8346_s18 + $0x148] sm:$0xff] (%p8768_p11), %v5242_v49  ;;  %5245 = vst [vmem:[%s8346_s18 + $0x150] sm:$0xff] (%p8768_p11), %v5244_v6  ;;  %v5260_v36 = vld [vmem:[%s7177_s6 + $0xf0] sm:$0xff] (%p8768_p11)  ;;  %v5262_v7 = vld [vmem:[%s7177_s6 + $0xf8] sm:$0xff] (%p8768_p11) }
 0x474   : > { %5247 = vst [vmem:[%s8346_s18 + $0x158] sm:$0xff] (%p8768_p11), %v5246_v18  ;;  %5249 = vst [vmem:[%s8346_s18 + $0x180] sm:$0xff] (%p8768_p11), %v5248_v26  ;;  %v5264_v51 = vld [vmem:[%s7177_s6 + $0x100] sm:$0xff] (%p8768_p11)  ;;  %v5266_v37 = vld [vmem:[%s7177_s6 + $0x108] sm:$0xff] (%p8768_p11) }
 0x475   : > { %5251 = vst [vmem:[%s8346_s18 + $0x188] sm:$0xff] (%p8768_p11), %v5250_v32  ;;  %5253 = vst [vmem:[%s8346_s18 + $0x190] sm:$0xff] (%p8768_p11), %v5252_v47  ;;  %v5268_v8 = vld [vmem:[%s7177_s6 + $0x110] sm:$0xff] (%p8768_p11)  ;;  %v5270_v42 = vld [vmem:[%s7177_s6 + $0x118] sm:$0xff] (%p8768_p11) }
 0x476   : > { %5255 = vst [vmem:[%s8346_s18 + $0x198] sm:$0xff] (%p8768_p11), %v5254_v43  ;;  %5257 = vst [vmem:[%s8346_s18 + $0x1c0] sm:$0xff] (%p8768_p11), %v5256_v59  ;;  %v5272_v34 = vld [vmem:[%s7177_s6 + $0x120] sm:$0xff] (%p8768_p11)  ;;  %v5274_v45 = vld [vmem:[%s7177_s6 + $0x128] sm:$0xff] (%p8768_p11) }
 0x477   : > { %5259 = vst [vmem:[%s8346_s18 + $0x1c8] sm:$0xff] (%p8768_p11), %v5258_v29  ;;  %5261 = vst [vmem:[%s8346_s18 + $0x1d0] sm:$0xff] (%p8768_p11), %v5260_v36  ;;  %v5276_v10 = vld [vmem:[%s7177_s6 + $0x130] sm:$0xff] (%p8768_p11)  ;;  %v5278_v27 = vld [vmem:[%s7177_s6 + $0x138] sm:$0xff] (%p8768_p11) }
 0x478   : > { %5263 = vst [vmem:[%s8346_s18 + $0x1d8] sm:$0xff] (%p8768_p11), %v5262_v7  ;;  %5265 = vst [vmem:[%s8346_s18 + $0x200] sm:$0xff] (%p8768_p11), %v5264_v51  ;;  %v5280_v14 = vld [vmem:[%s7177_s6 + $0x140] sm:$0xff] (%p8768_p11)  ;;  %v5282_v63 = vld [vmem:[%s7177_s6 + $0x148] sm:$0xff] (%p8768_p11) }
 0x479   : > { %5267 = vst [vmem:[%s8346_s18 + $0x208] sm:$0xff] (%p8768_p11), %v5266_v37  ;;  %5269 = vst [vmem:[%s8346_s18 + $0x210] sm:$0xff] (%p8768_p11), %v5268_v8  ;;  %v5284_v58 = vld [vmem:[%s7177_s6 + $0x150] sm:$0xff] (%p8768_p11)  ;;  %v5286_v60 = vld [vmem:[%s7177_s6 + $0x158] sm:$0xff] (%p8768_p11) }
 0x47a   : > { %5271 = vst [vmem:[%s8346_s18 + $0x218] sm:$0xff] (%p8768_p11), %v5270_v42  ;;  %5273 = vst [vmem:[%s8346_s18 + $0x240] sm:$0xff] (%p8768_p11), %v5272_v34  ;;  %v5288_v21 = vld [vmem:[%s7177_s6 + $0x160] sm:$0xff] (%p8768_p11)  ;;  %v5290_v56 = vld [vmem:[%s7177_s6 + $0x168] sm:$0xff] (%p8768_p11) }
 0x47b   : > { %5275 = vst [vmem:[%s8346_s18 + $0x248] sm:$0xff] (%p8768_p11), %v5274_v45  ;;  %5277 = vst [vmem:[%s8346_s18 + $0x250] sm:$0xff] (%p8768_p11), %v5276_v10  ;;  %v5292_v20 = vld [vmem:[%s7177_s6 + $0x170] sm:$0xff] (%p8768_p11)  ;;  %v5294_v50 = vld [vmem:[%s7177_s6 + $0x178] sm:$0xff] (%p8768_p11) }
 0x47c   : > { %5279 = vst [vmem:[%s8346_s18 + $0x258] sm:$0xff] (%p8768_p11), %v5278_v27  ;;  %5281 = vst [vmem:[%s8346_s18 + $0x280] sm:$0xff] (%p8768_p11), %v5280_v14 }
 0x47d   : > { %5283 = vst [vmem:[%s8346_s18 + $0x288] sm:$0xff] (%p8768_p11), %v5282_v63  ;;  %5285 = vst [vmem:[%s8346_s18 + $0x290] sm:$0xff] (%p8768_p11), %v5284_v58 }
 0x47e   : > { %5287 = vst [vmem:[%s8346_s18 + $0x298] sm:$0xff] (%p8768_p11), %v5286_v60  ;;  %5289 = vst [vmem:[%s8346_s18 + $0x2c0] sm:$0xff] (%p8768_p11), %v5288_v21 }
 0x47f   : > { %5291 = vst [vmem:[%s8346_s18 + $0x2c8] sm:$0xff] (%p8768_p11), %v5290_v56  ;;  %5293 = vst [vmem:[%s8346_s18 + $0x2d0] sm:$0xff] (%p8768_p11), %v5292_v20 }
 0x480   : > { %5295 = vst [vmem:[%s8346_s18 + $0x2d8] sm:$0xff] (%p8768_p11), %v5294_v50 }
 0x4c1   : > { %v5080_v53 = vpop.xlane.xlu0 %5079 }
 0x4c2   : > { %5157 = vst.msk [vmem:[%s8303_s30] sm:$0xff] %vm5156_vm0, %v5080_v53  ;;  %v5296_v53 = vld [vmem:[%s7177_s6 + $0x180] sm:$0xff] (%p8768_p11) }
 0x4c3   : > { %5297 = vst [vmem:[%s8346_s18 + $0x300] sm:$0xff] (%p8768_p11), %v5296_v53 }
 0x4c5   : > { %v5085_v15 = vpop.xlane.xlu0 %5084 }
 0x4c6   : > { %5158 = vst.msk [vmem:[%s8303_s30 + $0x8] sm:$0xff] %vm5156_vm0, %v5085_v15  ;;  %v5298_v15 = vld [vmem:[%s7177_s6 + $0x188] sm:$0xff] (%p8768_p11) }
 0x4c7   : > { %5299 = vst [vmem:[%s8346_s18 + $0x308] sm:$0xff] (%p8768_p11), %v5298_v15 }
 0x4c9   : > { %v5090_v3 = vpop.xlane.xlu1 %5089 }
 0x4ca   : > { %5159 = vst.msk [vmem:[%s8303_s30 + $0x10] sm:$0xff] %vm5156_vm0, %v5090_v3  ;;  %v5300_v3 = vld [vmem:[%s7177_s6 + $0x190] sm:$0xff] (%p8768_p11) }
 0x4cb   : > { %5301 = vst [vmem:[%s8346_s18 + $0x310] sm:$0xff] (%p8768_p11), %v5300_v3 }
 0x4cd   : > { %v5095_v62 = vpop.xlane.xlu1 %5094 }
 0x4ce   : > { %5160 = vst.msk [vmem:[%s8303_s30 + $0x18] sm:$0xff] %vm5156_vm0, %v5095_v62  ;;  %v5302_v62 = vld [vmem:[%s7177_s6 + $0x198] sm:$0xff] (%p8768_p11) }
 0x4cf   : > { %5303 = vst [vmem:[%s8346_s18 + $0x318] sm:$0xff] (%p8768_p11), %v5302_v62 }
 0x4d1   : > { %v5100_v22 = vpop.xlane.xlu0 %5099 }
 0x4d2   : > { %5161 = vst.msk [vmem:[%s8303_s30 + $0x20] sm:$0xff] %vm5156_vm0, %v5100_v22  ;;  %v5304_v22 = vld [vmem:[%s7177_s6 + $0x1a0] sm:$0xff] (%p8768_p11) }
 0x4d3   : > { %5305 = vst [vmem:[%s8346_s18 + $0x340] sm:$0xff] (%p8768_p11), %v5304_v22 }
 0x4d4   : > { %v5105_v13 = vpop.xlane.xlu1 %5104 }
 0x4d5   : > { %5162 = vst.msk [vmem:[%s8303_s30 + $0x28] sm:$0xff] %vm5156_vm0, %v5105_v13  ;;  %v5306_v13 = vld [vmem:[%s7177_s6 + $0x1a8] sm:$0xff] (%p8768_p11) }
 0x4d6   : > { %5307 = vst [vmem:[%s8346_s18 + $0x348] sm:$0xff] (%p8768_p11), %v5306_v13 }
 0x4da   : > { %v5110_v30 = vpop.xlane.xlu0 %5109 }
 0x4db   : > { %5163 = vst.msk [vmem:[%s8303_s30 + $0x30] sm:$0xff] %vm5156_vm0, %v5110_v30  ;;  %v5308_v30 = vld [vmem:[%s7177_s6 + $0x1b0] sm:$0xff] (%p8768_p11) }
 0x4dc   : > { %v5115_v40 = vpop.xlane.xlu1 %5114  ;;  %5309 = vst [vmem:[%s8346_s18 + $0x350] sm:$0xff] (%p8768_p11), %v5308_v30 }
 0x4dd   : > { %5164 = vst.msk [vmem:[%s8303_s30 + $0x38] sm:$0xff] %vm5156_vm0, %v5115_v40  ;;  %v5310_v40 = vld [vmem:[%s7177_s6 + $0x1b8] sm:$0xff] (%p8768_p11) }
 0x4de   : > { %5311 = vst [vmem:[%s8346_s18 + $0x358] sm:$0xff] (%p8768_p11), %v5310_v40 }
 0x4e2   : > { %v5120_v35 = vpop.xlane.xlu0 %5119 }
 0x4e3   : > { %5165 = vst.msk [vmem:[%s8303_s30 + $0x40] sm:$0xff] %vm5156_vm0, %v5120_v35  ;;  %v5312_v35 = vld [vmem:[%s7177_s6 + $0x1c0] sm:$0xff] (%p8768_p11) }
 0x4e4   : > { %v5125_v52 = vpop.xlane.xlu1 %5124  ;;  %5313 = vst [vmem:[%s8346_s18 + $0x380] sm:$0xff] (%p8768_p11), %v5312_v35 }
 0x4e5   : > { %5166 = vst.msk [vmem:[%s8303_s30 + $0x48] sm:$0xff] %vm5156_vm0, %v5125_v52  ;;  %v5314_v52 = vld [vmem:[%s7177_s6 + $0x1c8] sm:$0xff] (%p8768_p11) }
 0x4e6   : > { %5315 = vst [vmem:[%s8346_s18 + $0x388] sm:$0xff] (%p8768_p11), %v5314_v52 }
 0x4ea   : > { %v5130_v57 = vpop.xlane.xlu0 %5129 }
 0x4eb   : > { %5167 = vst.msk [vmem:[%s8303_s30 + $0x50] sm:$0xff] %vm5156_vm0, %v5130_v57  ;;  %v5316_v57 = vld [vmem:[%s7177_s6 + $0x1d0] sm:$0xff] (%p8768_p11) }
 0x4ec   : > { %v5135_v2 = vpop.xlane.xlu1 %5134  ;;  %5317 = vst [vmem:[%s8346_s18 + $0x390] sm:$0xff] (%p8768_p11), %v5316_v57 }
 0x4ed   : > { %5168 = vst.msk [vmem:[%s8303_s30 + $0x58] sm:$0xff] %vm5156_vm0, %v5135_v2  ;;  %v5318_v2 = vld [vmem:[%s7177_s6 + $0x1d8] sm:$0xff] (%p8768_p11) }
 0x4ee   : > { %5319 = vst [vmem:[%s8346_s18 + $0x398] sm:$0xff] (%p8768_p11), %v5318_v2 }
 0x4f2   : > { %v5140_v1 = vpop.xlane.xlu0 %5139 }
 0x4f3   : > { %5169 = vst.msk [vmem:[%s8303_s30 + $0x60] sm:$0xff] %vm5156_vm0, %v5140_v1  ;;  %v5320_v1 = vld [vmem:[%s7177_s6 + $0x1e0] sm:$0xff] (%p8768_p11) }
 0x4f4   : > { %v5145_v12 = vpop.xlane.xlu1 %5144  ;;  %5321 = vst [vmem:[%s8346_s18 + $0x3c0] sm:$0xff] (%p8768_p11), %v5320_v1 }
 0x4f5   : > { %5170 = vst.msk [vmem:[%s8303_s30 + $0x68] sm:$0xff] %vm5156_vm0, %v5145_v12  ;;  %v5322_v12 = vld [vmem:[%s7177_s6 + $0x1e8] sm:$0xff] (%p8768_p11) }
 0x4f6   : > { %5323 = vst [vmem:[%s8346_s18 + $0x3c8] sm:$0xff] (%p8768_p11), %v5322_v12 }
 0x4f8   : > { %v5150_v31 = vpop.xlane.xlu0 %5149 }
 0x4f9   : > { %5171 = vst.msk [vmem:[%s8303_s30 + $0x70] sm:$0xff] %vm5156_vm0, %v5150_v31  ;;  %5184 = sbr.rel (!%p8768_p11) target bundleno = 1279 (0x4ff), region = 56  ;;  %v5324_v31 = vld [vmem:[%s7177_s6 + $0x1f0] sm:$0xff] (%p8768_p11) }
 0x4fa   : > { %5325 = vst [vmem:[%s8346_s18 + $0x3d0] sm:$0xff] (%p8768_p11), %v5324_v31 }
 0x4fc   : > { %v5155_v28 = vpop.xlane.xlu1 %5154 }
 0x4fd   : > { %5172 = vst.msk [vmem:[%s8303_s30 + $0x78] sm:$0xff] %vm5156_vm0, %v5155_v28  ;;  %v5326_v28 = vld [vmem:[%s7177_s6 + $0x1f8] sm:$0xff] (%p8768_p11) }
 0x4fe   : > { %5327 = vst [vmem:[%s8346_s18 + $0x3d8] sm:$0xff] %v5326_v28 }
 0x4ff PF: > { %s8769_s12 = sld [smem:[#allocation13_spill]]  ;;  %p20_p13 = scmp.ge.s32.totalorder %s6045_s22, 4  }
 0x500   : > { %s8770_s18 = smov %s5975_s19  ;;  %s8771_s19 = smov %s5979_s20 }
 0x501   : > { %s8773_s21 = smov %s6045_s22  ;;  %22 = sbr.rel (!%p20_p13) target bundleno = 8 (0x8), region = 140 }
 0x505   : > { %s8772_s20 = smov %s8769_s12 }
 0x506   :  { %5354 = vsyncpa [#allocation3], 1 }
 0x507   :  { %5356 = vsyncpa [#allocation3 + $0x1], 1 }
 0x508   :  { %5357 = vsyncpa [#allocation5], 1 }
 0x509   :  { %5359 = vsyncpa [#allocation5 + $0x1], 1 }
 0x50a   :  { %5360 = vsyncpa [#allocation8], 1 }
 0x50b   :  { %5362 = vsyncpa [#allocation8 + $0x1], 1 }

</bundles_post_ra>
